<compile_context>
chip_gen: v6e
topology: v6e:2x2x1
jax: 0.10.0
libtpu: 0.0.40
codegen_flags: <defaults>
</compile_context>

<pallas_src>
import jax
import jax.numpy as jnp
from jax.experimental import pallas as pl
from jax.experimental.pallas import tpu as pltpu


# ----------------------------- fused Pallas kernel ---------------------------

def _make_fused_kernel(H, W, C, cin_p):
    """Per-image kernel: stem conv + basic block (+residual) + global avg pool."""
    Mb = H * W
    taps = [(dh, dw) for dh in range(3) for dw in range(3)]   # (kh, kw) order

    def conv3x3(src_ref, w_ref, cin):
        # src_ref: (1, H+2, W+2, cin) zero-padded activation (f32)
        # w_ref:   (9, cin, C) bf16, tap-major (kh, kw)
        acc = jnp.zeros((Mb, C), jnp.float32)
        for t, (dh, dw) in enumerate(taps):
            xt = src_ref[:, pl.ds(dh, H), pl.ds(dw, W), :].reshape(Mb, cin)
            acc = acc + jnp.dot(xt.astype(jnp.bfloat16), w_ref[t],
                                preferred_element_type=jnp.float32)
        return acc

    def kernel(xpad_ref, w1_ref, s1_ref, b1_ref, w2_ref, s2_ref, b2_ref,
               w3_ref, s3_ref, b3_ref, o_ref, pad1_ref, pad2_ref):
        # ---- stem: conv3x3(cin -> C) + folded BN + ReLU
        a1 = conv3x3(xpad_ref, w1_ref, cin_p)
        a1 = jnp.maximum(a1 * s1_ref[...] + b1_ref[...], 0.0)        # (Mb, C) f32

        # stash zero-padded copy in VMEM scratch for the next conv's taps
        pad1_ref[...] = jnp.zeros_like(pad1_ref)
        pad1_ref[:, pl.ds(1, H), pl.ds(1, W), :] = a1.reshape(1, H, W, C)

        # ---- basic block, conv1: conv3x3(C -> C) + BN + ReLU
        a2 = conv3x3(pad1_ref, w2_ref, C)
        a2 = jnp.maximum(a2 * s2_ref[...] + b2_ref[...], 0.0)

        pad2_ref[...] = jnp.zeros_like(pad2_ref)
        pad2_ref[:, pl.ds(1, H), pl.ds(1, W), :] = a2.reshape(1, H, W, C)

        # ---- basic block, conv2: conv3x3(C -> C) + BN + residual + ReLU
        a3 = conv3x3(pad2_ref, w3_ref, C)
        a3 = jnp.maximum(a3 * s3_ref[...] + b3_ref[...] + a1, 0.0)

        # ---- global average pool (AdaptiveAvgPool2d(1) + flatten)
        o_ref[...] = jnp.mean(a3, axis=0, keepdims=True).reshape(1, 1, C)

    return kernel


# ------------------------------- JAX wrapper ---------------------------------

def fold_bn(gamma, beta, mean, var, eps=1e-5):
    s = gamma / jnp.sqrt(var + eps)
    return s, beta - mean * s


@jax.jit
def net_forward(x_nchw, p):
    """Net.forward: x = self.conv(x); return x.view(B, -1)."""
    B, Cin, H, W = x_nchw.shape
    C = p["w1"].shape[0]
    cin_p = ((Cin + 7) // 8) * 8                 # pad input channels for alignment

    # NCHW -> NHWC, +1 spatial halo, channel pad to cin_p (zeros), f32.
    x = jnp.transpose(x_nchw, (0, 2, 3, 1)).astype(jnp.float32)
    xpad = jnp.pad(x, ((0, 0), (1, 1), (1, 1), (0, cin_p - Cin)))

    def prep_w(w, cin_pad):
        # OIHW (Cout, Cin, 3, 3) -> (9, Cin_pad, Cout), tap-major (kh, kw), bf16
        cout, cin = w.shape[0], w.shape[1]
        wt = jnp.transpose(w, (2, 3, 1, 0)).reshape(9, cin, cout)
        if cin_pad > cin:
            wt = jnp.pad(wt, ((0, 0), (0, cin_pad - cin), (0, 0)))
        return wt.astype(jnp.bfloat16)

    w1 = prep_w(p["w1"], cin_p)
    w2 = prep_w(p["w2"], C)
    w3 = prep_w(p["w3"], C)
    s1 = p["s1"].reshape(1, C).astype(jnp.float32)
    b1 = p["b1"].reshape(1, C).astype(jnp.float32)
    s2 = p["s2"].reshape(1, C).astype(jnp.float32)
    b2 = p["b2"].reshape(1, C).astype(jnp.float32)
    s3 = p["s3"].reshape(1, C).astype(jnp.float32)
    b3 = p["b3"].reshape(1, C).astype(jnp.float32)

    kernel = _make_fused_kernel(H, W, C, cin_p)
    vec_spec = pl.BlockSpec((1, C), lambda b: (0, 0))

    out = pl.pallas_call(
        kernel,
        grid=(B,),
        in_specs=[
            pl.BlockSpec((1, H + 2, W + 2, cin_p), lambda b: (b, 0, 0, 0)),
            pl.BlockSpec((9, cin_p, C), lambda b: (0, 0, 0)),
            vec_spec, vec_spec,
            pl.BlockSpec((9, C, C), lambda b: (0, 0, 0)),
            vec_spec, vec_spec,
            pl.BlockSpec((9, C, C), lambda b: (0, 0, 0)),
            vec_spec, vec_spec,
        ],
        out_specs=pl.BlockSpec((1, 1, C), lambda b: (b, 0, 0)),
        out_shape=jax.ShapeDtypeStruct((B, 1, C), jnp.float32),
        scratch_shapes=[
            pltpu.VMEM((1, H + 2, W + 2, C), jnp.float32),   # padded act after stem
            pltpu.VMEM((1, H + 2, W + 2, C), jnp.float32),   # padded act after conv2
        ],
        compiler_params=pltpu.CompilerParams(
            dimension_semantics=("parallel",)),
    )(xpad, w1, s1, b1, w2, s2, b2, w3, s3, b3)

    # TODO(synk): self.linear = nn.Linear(feature, 2) is created in __init__ but
    # never used in Net.forward(); intentionally not applied.
    return out.reshape(B, C)


# -------------------------------- reference ----------------------------------

def ref_forward(x_nchw, p):
    """Pure-XLA reference using the same bf16-operand / f32-accumulate math."""
    def conv(x, w):
        return jax.lax.conv_general_dilated(
            x.astype(jnp.bfloat16), w.astype(jnp.bfloat16),
            window_strides=(1, 1), padding=((1, 1), (1, 1)),
            dimension_numbers=("NCHW", "OIHW", "NCHW"),
            preferred_element_type=jnp.float32)

    def bn(x, s, b):
        return x * s[None, :, None, None] + b[None, :, None, None]

    x1 = jax.nn.relu(bn(conv(x_nchw, p["w1"]), p["s1"], p["b1"]))
    y = jax.nn.relu(bn(conv(x1, p["w2"]), p["s2"], p["b2"]))
    y = jax.nn.relu(bn(conv(y, p["w3"]), p["s3"], p["b3"]) + x1)
    return jnp.mean(y, axis=(2, 3))


# ----------------------------------- main -------------------------------------

if __name__ == "__main__":
    key = jax.random.PRNGKey(0)
    ks = jax.random.split(key, 16)

    B, Cin, H, W = 2, 3, 16, 16
    C = 32  # backbone feature width

    def bn_params(k):
        k1, k2, k3, k4 = jax.random.split(k, 4)
        gamma = 1.0 + 0.1 * jax.random.normal(k1, (C,), jnp.float32)
        beta = 0.1 * jax.random.normal(k2, (C,), jnp.float32)
        mean = 0.1 * jax.random.normal(k3, (C,), jnp.float32)
        var = jax.random.uniform(k4, (C,), jnp.float32, 0.5, 1.5)
        return fold_bn(gamma, beta, mean, var)

    s1, b1 = bn_params(ks[1])
    s2, b2 = bn_params(ks[3])
    s3, b3 = bn_params(ks[5])

    params = {
        "w1": 0.2 * jax.random.normal(ks[0], (C, Cin, 3, 3), jnp.float32),
        "s1": s1, "b1": b1,
        "w2": 0.1 * jax.random.normal(ks[2], (C, C, 3, 3), jnp.float32),
        "s2": s2, "b2": b2,
        "w3": 0.1 * jax.random.normal(ks[4], (C, C, 3, 3), jnp.float32),
        "s3": s3, "b3": b3,
    }

    x = jax.random.normal(ks[6], (B, Cin, H, W), jnp.float32)

    out = jax.block_until_ready(net_forward(x, params))
    ref = jax.block_until_ready(ref_forward(x, params))

    assert out.shape == (B, C), out.shape
    max_err = jnp.max(jnp.abs(out - ref))
    assert jnp.allclose(out, ref, atol=1e-3, rtol=1e-3), f"max abs err {max_err}"

    print("KERNEL_OK")
</pallas_src>

<mosaic_0001>
module attributes {stable_mosaic.version = 11 : i64} {
  func.func @kernel(%arg0: i32, %arg1: memref<1x18x18x8xf32, #tpu.memory_space<vmem>>, %arg2: memref<9x8x32xbf16, #tpu.memory_space<vmem>>, %arg3: memref<1x32xf32, #tpu.memory_space<vmem>>, %arg4: memref<1x32xf32, #tpu.memory_space<vmem>>, %arg5: memref<9x32x32xbf16, #tpu.memory_space<vmem>>, %arg6: memref<1x32xf32, #tpu.memory_space<vmem>>, %arg7: memref<1x32xf32, #tpu.memory_space<vmem>>, %arg8: memref<9x32x32xbf16, #tpu.memory_space<vmem>>, %arg9: memref<1x32xf32, #tpu.memory_space<vmem>>, %arg10: memref<1x32xf32, #tpu.memory_space<vmem>>, %arg11: memref<1x1x32xf32, #tpu.memory_space<vmem>>, %arg12: memref<1x18x18x32xf32, #tpu.memory_space<vmem>>, %arg13: memref<1x18x18x32xf32, #tpu.memory_space<vmem>>) attributes {dimension_semantics = [#tpu.dimension_semantics<parallel>], iteration_bounds = array<i64: 2>, scalar_prefetch = 0 : i64, scratch_operands = 2 : i64, tpu.core_type = #tpu.core_type<tc>, window_params = [{transform_indices = @transform_0, window_bounds = array<i64: 1, 18, 18, 8>}, {pipeline_mode = #tpu.pipeline_mode<synchronous>, transform_indices = @transform_1, window_bounds = array<i64: 9, 8, 32>}, {pipeline_mode = #tpu.pipeline_mode<synchronous>, transform_indices = @transform_2, window_bounds = array<i64: 1, 32>}, {pipeline_mode = #tpu.pipeline_mode<synchronous>, transform_indices = @transform_3, window_bounds = array<i64: 1, 32>}, {pipeline_mode = #tpu.pipeline_mode<synchronous>, transform_indices = @transform_4, window_bounds = array<i64: 9, 32, 32>}, {pipeline_mode = #tpu.pipeline_mode<synchronous>, transform_indices = @transform_5, window_bounds = array<i64: 1, 32>}, {pipeline_mode = #tpu.pipeline_mode<synchronous>, transform_indices = @transform_6, window_bounds = array<i64: 1, 32>}, {pipeline_mode = #tpu.pipeline_mode<synchronous>, transform_indices = @transform_7, window_bounds = array<i64: 9, 32, 32>}, {pipeline_mode = #tpu.pipeline_mode<synchronous>, transform_indices = @transform_8, window_bounds = array<i64: 1, 32>}, {pipeline_mode = #tpu.pipeline_mode<synchronous>, transform_indices = @transform_9, window_bounds = array<i64: 1, 32>}, {transform_indices = @transform_10, window_bounds = array<i64: 1, 1, 32>}]} {
    %cst = arith.constant 0.000000e+00 : f32
    %0 = vector.broadcast %cst : f32 to vector<256x32xf32>
    %c0 = arith.constant 0 : index
    %c0_0 = arith.constant 0 : index
    %c0_1 = arith.constant 0 : index
    %c0_2 = arith.constant 0 : index
    %1 = vector.load %arg1[%c0, %c0_0, %c0_1, %c0_2] : memref<1x18x18x8xf32, #tpu.memory_space<vmem>>, vector<1x16x16x8xf32>
    %2 = vector.shape_cast %1 : vector<1x16x16x8xf32> to vector<256x8xf32>
    %3 = arith.truncf %2 : vector<256x8xf32> to vector<256x8xbf16>
    %c0_3 = arith.constant 0 : index
    %c0_4 = arith.constant 0 : index
    %c0_5 = arith.constant 0 : index
    %4 = vector.load %arg2[%c0_3, %c0_4, %c0_5] : memref<9x8x32xbf16, #tpu.memory_space<vmem>>, vector<1x8x32xbf16>
    %5 = vector.shape_cast %4 : vector<1x8x32xbf16> to vector<8x32xbf16>
    %cst_6 = arith.constant dense<0.000000e+00> : vector<256x32xf32>
    %6 = tpu.matmul %3, %5, %cst_6 {dimension_numbers = #tpu.dot_dimension_numbers<[1], [0], [0], [1], [0, 0, 1, 1], [], []>} : vector<256x8xbf16>, vector<8x32xbf16>, vector<256x32xf32> -> vector<256x32xf32>
    %7 = arith.addf %0, %6 : vector<256x32xf32>
    %c0_7 = arith.constant 0 : index
    %c0_8 = arith.constant 0 : index
    %c1 = arith.constant 1 : index
    %c0_9 = arith.constant 0 : index
    %8 = vector.load %arg1[%c0_7, %c0_8, %c1, %c0_9] : memref<1x18x18x8xf32, #tpu.memory_space<vmem>>, vector<1x16x16x8xf32>
    %9 = vector.shape_cast %8 : vector<1x16x16x8xf32> to vector<256x8xf32>
    %10 = arith.truncf %9 : vector<256x8xf32> to vector<256x8xbf16>
    %c1_10 = arith.constant 1 : index
    %c0_11 = arith.constant 0 : index
    %c0_12 = arith.constant 0 : index
    %11 = vector.load %arg2[%c1_10, %c0_11, %c0_12] : memref<9x8x32xbf16, #tpu.memory_space<vmem>>, vector<1x8x32xbf16>
    %12 = vector.shape_cast %11 : vector<1x8x32xbf16> to vector<8x32xbf16>
    %cst_13 = arith.constant dense<0.000000e+00> : vector<256x32xf32>
    %13 = tpu.matmul %10, %12, %cst_13 {dimension_numbers = #tpu.dot_dimension_numbers<[1], [0], [0], [1], [0, 0, 1, 1], [], []>} : vector<256x8xbf16>, vector<8x32xbf16>, vector<256x32xf32> -> vector<256x32xf32>
    %14 = arith.addf %7, %13 : vector<256x32xf32>
    %c0_14 = arith.constant 0 : index
    %c0_15 = arith.constant 0 : index
    %c2 = arith.constant 2 : index
    %c0_16 = arith.constant 0 : index
    %15 = vector.load %arg1[%c0_14, %c0_15, %c2, %c0_16] : memref<1x18x18x8xf32, #tpu.memory_space<vmem>>, vector<1x16x16x8xf32>
    %16 = vector.shape_cast %15 : vector<1x16x16x8xf32> to vector<256x8xf32>
    %17 = arith.truncf %16 : vector<256x8xf32> to vector<256x8xbf16>
    %c2_17 = arith.constant 2 : index
    %c0_18 = arith.constant 0 : index
    %c0_19 = arith.constant 0 : index
    %18 = vector.load %arg2[%c2_17, %c0_18, %c0_19] : memref<9x8x32xbf16, #tpu.memory_space<vmem>>, vector<1x8x32xbf16>
    %19 = vector.shape_cast %18 : vector<1x8x32xbf16> to vector<8x32xbf16>
    %cst_20 = arith.constant dense<0.000000e+00> : vector<256x32xf32>
    %20 = tpu.matmul %17, %19, %cst_20 {dimension_numbers = #tpu.dot_dimension_numbers<[1], [0], [0], [1], [0, 0, 1, 1], [], []>} : vector<256x8xbf16>, vector<8x32xbf16>, vector<256x32xf32> -> vector<256x32xf32>
    %21 = arith.addf %14, %20 : vector<256x32xf32>
    %c0_21 = arith.constant 0 : index
    %c1_22 = arith.constant 1 : index
    %c0_23 = arith.constant 0 : index
    %c0_24 = arith.constant 0 : index
    %22 = vector.load %arg1[%c0_21, %c1_22, %c0_23, %c0_24] : memref<1x18x18x8xf32, #tpu.memory_space<vmem>>, vector<1x16x16x8xf32>
    %23 = vector.shape_cast %22 : vector<1x16x16x8xf32> to vector<256x8xf32>
    %24 = arith.truncf %23 : vector<256x8xf32> to vector<256x8xbf16>
    %c3 = arith.constant 3 : index
    %c0_25 = arith.constant 0 : index
    %c0_26 = arith.constant 0 : index
    %25 = vector.load %arg2[%c3, %c0_25, %c0_26] : memref<9x8x32xbf16, #tpu.memory_space<vmem>>, vector<1x8x32xbf16>
    %26 = vector.shape_cast %25 : vector<1x8x32xbf16> to vector<8x32xbf16>
    %cst_27 = arith.constant dense<0.000000e+00> : vector<256x32xf32>
    %27 = tpu.matmul %24, %26, %cst_27 {dimension_numbers = #tpu.dot_dimension_numbers<[1], [0], [0], [1], [0, 0, 1, 1], [], []>} : vector<256x8xbf16>, vector<8x32xbf16>, vector<256x32xf32> -> vector<256x32xf32>
    %28 = arith.addf %21, %27 : vector<256x32xf32>
    %c0_28 = arith.constant 0 : index
    %c1_29 = arith.constant 1 : index
    %c1_30 = arith.constant 1 : index
    %c0_31 = arith.constant 0 : index
    %29 = vector.load %arg1[%c0_28, %c1_29, %c1_30, %c0_31] : memref<1x18x18x8xf32, #tpu.memory_space<vmem>>, vector<1x16x16x8xf32>
    %30 = vector.shape_cast %29 : vector<1x16x16x8xf32> to vector<256x8xf32>
    %31 = arith.truncf %30 : vector<256x8xf32> to vector<256x8xbf16>
    %c4 = arith.constant 4 : index
    %c0_32 = arith.constant 0 : index
    %c0_33 = arith.constant 0 : index
    %32 = vector.load %arg2[%c4, %c0_32, %c0_33] : memref<9x8x32xbf16, #tpu.memory_space<vmem>>, vector<1x8x32xbf16>
    %33 = vector.shape_cast %32 : vector<1x8x32xbf16> to vector<8x32xbf16>
    %cst_34 = arith.constant dense<0.000000e+00> : vector<256x32xf32>
    %34 = tpu.matmul %31, %33, %cst_34 {dimension_numbers = #tpu.dot_dimension_numbers<[1], [0], [0], [1], [0, 0, 1, 1], [], []>} : vector<256x8xbf16>, vector<8x32xbf16>, vector<256x32xf32> -> vector<256x32xf32>
    %35 = arith.addf %28, %34 : vector<256x32xf32>
    %c0_35 = arith.constant 0 : index
    %c1_36 = arith.constant 1 : index
    %c2_37 = arith.constant 2 : index
    %c0_38 = arith.constant 0 : index
    %36 = vector.load %arg1[%c0_35, %c1_36, %c2_37, %c0_38] : memref<1x18x18x8xf32, #tpu.memory_space<vmem>>, vector<1x16x16x8xf32>
    %37 = vector.shape_cast %36 : vector<1x16x16x8xf32> to vector<256x8xf32>
    %38 = arith.truncf %37 : vector<256x8xf32> to vector<256x8xbf16>
    %c5 = arith.constant 5 : index
    %c0_39 = arith.constant 0 : index
    %c0_40 = arith.constant 0 : index
    %39 = vector.load %arg2[%c5, %c0_39, %c0_40] : memref<9x8x32xbf16, #tpu.memory_space<vmem>>, vector<1x8x32xbf16>
    %40 = vector.shape_cast %39 : vector<1x8x32xbf16> to vector<8x32xbf16>
    %cst_41 = arith.constant dense<0.000000e+00> : vector<256x32xf32>
    %41 = tpu.matmul %38, %40, %cst_41 {dimension_numbers = #tpu.dot_dimension_numbers<[1], [0], [0], [1], [0, 0, 1, 1], [], []>} : vector<256x8xbf16>, vector<8x32xbf16>, vector<256x32xf32> -> vector<256x32xf32>
    %42 = arith.addf %35, %41 : vector<256x32xf32>
    %c0_42 = arith.constant 0 : index
    %c2_43 = arith.constant 2 : index
    %c0_44 = arith.constant 0 : index
    %c0_45 = arith.constant 0 : index
    %43 = vector.load %arg1[%c0_42, %c2_43, %c0_44, %c0_45] : memref<1x18x18x8xf32, #tpu.memory_space<vmem>>, vector<1x16x16x8xf32>
    %44 = vector.shape_cast %43 : vector<1x16x16x8xf32> to vector<256x8xf32>
    %45 = arith.truncf %44 : vector<256x8xf32> to vector<256x8xbf16>
    %c6 = arith.constant 6 : index
    %c0_46 = arith.constant 0 : index
    %c0_47 = arith.constant 0 : index
    %46 = vector.load %arg2[%c6, %c0_46, %c0_47] : memref<9x8x32xbf16, #tpu.memory_space<vmem>>, vector<1x8x32xbf16>
    %47 = vector.shape_cast %46 : vector<1x8x32xbf16> to vector<8x32xbf16>
    %cst_48 = arith.constant dense<0.000000e+00> : vector<256x32xf32>
    %48 = tpu.matmul %45, %47, %cst_48 {dimension_numbers = #tpu.dot_dimension_numbers<[1], [0], [0], [1], [0, 0, 1, 1], [], []>} : vector<256x8xbf16>, vector<8x32xbf16>, vector<256x32xf32> -> vector<256x32xf32>
    %49 = arith.addf %42, %48 : vector<256x32xf32>
    %c0_49 = arith.constant 0 : index
    %c2_50 = arith.constant 2 : index
    %c1_51 = arith.constant 1 : index
    %c0_52 = arith.constant 0 : index
    %50 = vector.load %arg1[%c0_49, %c2_50, %c1_51, %c0_52] : memref<1x18x18x8xf32, #tpu.memory_space<vmem>>, vector<1x16x16x8xf32>
    %51 = vector.shape_cast %50 : vector<1x16x16x8xf32> to vector<256x8xf32>
    %52 = arith.truncf %51 : vector<256x8xf32> to vector<256x8xbf16>
    %c7 = arith.constant 7 : index
    %c0_53 = arith.constant 0 : index
    %c0_54 = arith.constant 0 : index
    %53 = vector.load %arg2[%c7, %c0_53, %c0_54] : memref<9x8x32xbf16, #tpu.memory_space<vmem>>, vector<1x8x32xbf16>
    %54 = vector.shape_cast %53 : vector<1x8x32xbf16> to vector<8x32xbf16>
    %cst_55 = arith.constant dense<0.000000e+00> : vector<256x32xf32>
    %55 = tpu.matmul %52, %54, %cst_55 {dimension_numbers = #tpu.dot_dimension_numbers<[1], [0], [0], [1], [0, 0, 1, 1], [], []>} : vector<256x8xbf16>, vector<8x32xbf16>, vector<256x32xf32> -> vector<256x32xf32>
    %56 = arith.addf %49, %55 : vector<256x32xf32>
    %c0_56 = arith.constant 0 : index
    %c2_57 = arith.constant 2 : index
    %c2_58 = arith.constant 2 : index
    %c0_59 = arith.constant 0 : index
    %57 = vector.load %arg1[%c0_56, %c2_57, %c2_58, %c0_59] : memref<1x18x18x8xf32, #tpu.memory_space<vmem>>, vector<1x16x16x8xf32>
    %58 = vector.shape_cast %57 : vector<1x16x16x8xf32> to vector<256x8xf32>
    %59 = arith.truncf %58 : vector<256x8xf32> to vector<256x8xbf16>
    %c8 = arith.constant 8 : index
    %c0_60 = arith.constant 0 : index
    %c0_61 = arith.constant 0 : index
    %60 = vector.load %arg2[%c8, %c0_60, %c0_61] : memref<9x8x32xbf16, #tpu.memory_space<vmem>>, vector<1x8x32xbf16>
    %61 = vector.shape_cast %60 : vector<1x8x32xbf16> to vector<8x32xbf16>
    %cst_62 = arith.constant dense<0.000000e+00> : vector<256x32xf32>
    %62 = tpu.matmul %59, %61, %cst_62 {dimension_numbers = #tpu.dot_dimension_numbers<[1], [0], [0], [1], [0, 0, 1, 1], [], []>} : vector<256x8xbf16>, vector<8x32xbf16>, vector<256x32xf32> -> vector<256x32xf32>
    %63 = arith.addf %56, %62 : vector<256x32xf32>
    %c0_63 = arith.constant 0 : index
    %c0_64 = arith.constant 0 : index
    %64 = vector.load %arg3[%c0_63, %c0_64] : memref<1x32xf32, #tpu.memory_space<vmem>>, vector<1x32xf32>
    %65 = vector.broadcast %64 : vector<1x32xf32> to vector<256x32xf32>
    %66 = arith.mulf %63, %65 : vector<256x32xf32>
    %c0_65 = arith.constant 0 : index
    %c0_66 = arith.constant 0 : index
    %67 = vector.load %arg4[%c0_65, %c0_66] : memref<1x32xf32, #tpu.memory_space<vmem>>, vector<1x32xf32>
    %68 = vector.broadcast %67 : vector<1x32xf32> to vector<256x32xf32>
    %69 = arith.addf %66, %68 : vector<256x32xf32>
    %cst_67 = arith.constant 0.000000e+00 : f32
    %70 = vector.broadcast %cst_67 : f32 to vector<256x32xf32>
    %71 = arith.maximumf %69, %70 : vector<256x32xf32>
    %cst_68 = arith.constant 0.000000e+00 : f32
    %72 = vector.broadcast %cst_68 : f32 to vector<1x18x18x32xf32>
    %c0_69 = arith.constant 0 : index
    %c0_70 = arith.constant 0 : index
    %c0_71 = arith.constant 0 : index
    %c0_72 = arith.constant 0 : index
    %73 = vector.load %arg12[%c0_69, %c0_70, %c0_71, %c0_72] : memref<1x18x18x32xf32, #tpu.memory_space<vmem>>, vector<1x18x18x32xf32>
    tpu.vector_store %arg12[%c0_69, %c0_70, %c0_71, %c0_72], %72 {strides = array<i32>} : memref<1x18x18x32xf32, #tpu.memory_space<vmem>>, vector<1x18x18x32xf32>,
    %74 = vector.shape_cast %71 : vector<256x32xf32> to vector<1x16x16x32xf32>
    %c0_73 = arith.constant 0 : index
    %c1_74 = arith.constant 1 : index
    %c1_75 = arith.constant 1 : index
    %c0_76 = arith.constant 0 : index
    %75 = vector.load %arg12[%c0_73, %c1_74, %c1_75, %c0_76] : memref<1x18x18x32xf32, #tpu.memory_space<vmem>>, vector<1x16x16x32xf32>
    tpu.vector_store %arg12[%c0_73, %c1_74, %c1_75, %c0_76], %74 {strides = array<i32>} : memref<1x18x18x32xf32, #tpu.memory_space<vmem>>, vector<1x16x16x32xf32>,
    %cst_77 = arith.constant 0.000000e+00 : f32
    %76 = vector.broadcast %cst_77 : f32 to vector<256x32xf32>
    %c0_78 = arith.constant 0 : index
    %c0_79 = arith.constant 0 : index
    %c0_80 = arith.constant 0 : index
    %c0_81 = arith.constant 0 : index
    %77 = vector.load %arg12[%c0_78, %c0_79, %c0_80, %c0_81] : memref<1x18x18x32xf32, #tpu.memory_space<vmem>>, vector<1x16x16x32xf32>
    %78 = vector.shape_cast %77 : vector<1x16x16x32xf32> to vector<256x32xf32>
    %79 = arith.truncf %78 : vector<256x32xf32> to vector<256x32xbf16>
    %c0_82 = arith.constant 0 : index
    %c0_83 = arith.constant 0 : index
    %c0_84 = arith.constant 0 : index
    %80 = vector.load %arg5[%c0_82, %c0_83, %c0_84] : memref<9x32x32xbf16, #tpu.memory_space<vmem>>, vector<1x32x32xbf16>
    %81 = vector.shape_cast %80 : vector<1x32x32xbf16> to vector<32x32xbf16>
    %cst_85 = arith.constant dense<0.000000e+00> : vector<256x32xf32>
    %82 = tpu.matmul %79, %81, %cst_85 {dimension_numbers = #tpu.dot_dimension_numbers<[1], [0], [0], [1], [0, 0, 1, 1], [], []>} : vector<256x32xbf16>, vector<32x32xbf16>, vector<256x32xf32> -> vector<256x32xf32>
    %83 = arith.addf %76, %82 : vector<256x32xf32>
    %c0_86 = arith.constant 0 : index
    %c0_87 = arith.constant 0 : index
    %c1_88 = arith.constant 1 : index
    %c0_89 = arith.constant 0 : index
    %84 = vector.load %arg12[%c0_86, %c0_87, %c1_88, %c0_89] : memref<1x18x18x32xf32, #tpu.memory_space<vmem>>, vector<1x16x16x32xf32>
    %85 = vector.shape_cast %84 : vector<1x16x16x32xf32> to vector<256x32xf32>
    %86 = arith.truncf %85 : vector<256x32xf32> to vector<256x32xbf16>
    %c1_90 = arith.constant 1 : index
    %c0_91 = arith.constant 0 : index
    %c0_92 = arith.constant 0 : index
    %87 = vector.load %arg5[%c1_90, %c0_91, %c0_92] : memref<9x32x32xbf16, #tpu.memory_space<vmem>>, vector<1x32x32xbf16>
    %88 = vector.shape_cast %87 : vector<1x32x32xbf16> to vector<32x32xbf16>
    %cst_93 = arith.constant dense<0.000000e+00> : vector<256x32xf32>
    %89 = tpu.matmul %86, %88, %cst_93 {dimension_numbers = #tpu.dot_dimension_numbers<[1], [0], [0], [1], [0, 0, 1, 1], [], []>} : vector<256x32xbf16>, vector<32x32xbf16>, vector<256x32xf32> -> vector<256x32xf32>
    %90 = arith.addf %83, %89 : vector<256x32xf32>
    %c0_94 = arith.constant 0 : index
    %c0_95 = arith.constant 0 : index
    %c2_96 = arith.constant 2 : index
    %c0_97 = arith.constant 0 : index
    %91 = vector.load %arg12[%c0_94, %c0_95, %c2_96, %c0_97] : memref<1x18x18x32xf32, #tpu.memory_space<vmem>>, vector<1x16x16x32xf32>
    %92 = vector.shape_cast %91 : vector<1x16x16x32xf32> to vector<256x32xf32>
    %93 = arith.truncf %92 : vector<256x32xf32> to vector<256x32xbf16>
    %c2_98 = arith.constant 2 : index
    %c0_99 = arith.constant 0 : index
    %c0_100 = arith.constant 0 : index
    %94 = vector.load %arg5[%c2_98, %c0_99, %c0_100] : memref<9x32x32xbf16, #tpu.memory_space<vmem>>, vector<1x32x32xbf16>
    %95 = vector.shape_cast %94 : vector<1x32x32xbf16> to vector<32x32xbf16>
    %cst_101 = arith.constant dense<0.000000e+00> : vector<256x32xf32>
    %96 = tpu.matmul %93, %95, %cst_101 {dimension_numbers = #tpu.dot_dimension_numbers<[1], [0], [0], [1], [0, 0, 1, 1], [], []>} : vector<256x32xbf16>, vector<32x32xbf16>, vector<256x32xf32> -> vector<256x32xf32>
    %97 = arith.addf %90, %96 : vector<256x32xf32>
    %c0_102 = arith.constant 0 : index
    %c1_103 = arith.constant 1 : index
    %c0_104 = arith.constant 0 : index
    %c0_105 = arith.constant 0 : index
    %98 = vector.load %arg12[%c0_102, %c1_103, %c0_104, %c0_105] : memref<1x18x18x32xf32, #tpu.memory_space<vmem>>, vector<1x16x16x32xf32>
    %99 = vector.shape_cast %98 : vector<1x16x16x32xf32> to vector<256x32xf32>
    %100 = arith.truncf %99 : vector<256x32xf32> to vector<256x32xbf16>
    %c3_106 = arith.constant 3 : index
    %c0_107 = arith.constant 0 : index
    %c0_108 = arith.constant 0 : index
    %101 = vector.load %arg5[%c3_106, %c0_107, %c0_108] : memref<9x32x32xbf16, #tpu.memory_space<vmem>>, vector<1x32x32xbf16>
    %102 = vector.shape_cast %101 : vector<1x32x32xbf16> to vector<32x32xbf16>
    %cst_109 = arith.constant dense<0.000000e+00> : vector<256x32xf32>
    %103 = tpu.matmul %100, %102, %cst_109 {dimension_numbers = #tpu.dot_dimension_numbers<[1], [0], [0], [1], [0, 0, 1, 1], [], []>} : vector<256x32xbf16>, vector<32x32xbf16>, vector<256x32xf32> -> vector<256x32xf32>
    %104 = arith.addf %97, %103 : vector<256x32xf32>
    %c0_110 = arith.constant 0 : index
    %c1_111 = arith.constant 1 : index
    %c1_112 = arith.constant 1 : index
    %c0_113 = arith.constant 0 : index
    %105 = vector.load %arg12[%c0_110, %c1_111, %c1_112, %c0_113] : memref<1x18x18x32xf32, #tpu.memory_space<vmem>>, vector<1x16x16x32xf32>
    %106 = vector.shape_cast %105 : vector<1x16x16x32xf32> to vector<256x32xf32>
    %107 = arith.truncf %106 : vector<256x32xf32> to vector<256x32xbf16>
    %c4_114 = arith.constant 4 : index
    %c0_115 = arith.constant 0 : index
    %c0_116 = arith.constant 0 : index
    %108 = vector.load %arg5[%c4_114, %c0_115, %c0_116] : memref<9x32x32xbf16, #tpu.memory_space<vmem>>, vector<1x32x32xbf16>
    %109 = vector.shape_cast %108 : vector<1x32x32xbf16> to vector<32x32xbf16>
    %cst_117 = arith.constant dense<0.000000e+00> : vector<256x32xf32>
    %110 = tpu.matmul %107, %109, %cst_117 {dimension_numbers = #tpu.dot_dimension_numbers<[1], [0], [0], [1], [0, 0, 1, 1], [], []>} : vector<256x32xbf16>, vector<32x32xbf16>, vector<256x32xf32> -> vector<256x32xf32>
    %111 = arith.addf %104, %110 : vector<256x32xf32>
    %c0_118 = arith.constant 0 : index
    %c1_119 = arith.constant 1 : index
    %c2_120 = arith.constant 2 : index
    %c0_121 = arith.constant 0 : index
    %112 = vector.load %arg12[%c0_118, %c1_119, %c2_120, %c0_121] : memref<1x18x18x32xf32, #tpu.memory_space<vmem>>, vector<1x16x16x32xf32>
    %113 = vector.shape_cast %112 : vector<1x16x16x32xf32> to vector<256x32xf32>
    %114 = arith.truncf %113 : vector<256x32xf32> to vector<256x32xbf16>
    %c5_122 = arith.constant 5 : index
    %c0_123 = arith.constant 0 : index
    %c0_124 = arith.constant 0 : index
    %115 = vector.load %arg5[%c5_122, %c0_123, %c0_124] : memref<9x32x32xbf16, #tpu.memory_space<vmem>>, vector<1x32x32xbf16>
    %116 = vector.shape_cast %115 : vector<1x32x32xbf16> to vector<32x32xbf16>
    %cst_125 = arith.constant dense<0.000000e+00> : vector<256x32xf32>
    %117 = tpu.matmul %114, %116, %cst_125 {dimension_numbers = #tpu.dot_dimension_numbers<[1], [0], [0], [1], [0, 0, 1, 1], [], []>} : vector<256x32xbf16>, vector<32x32xbf16>, vector<256x32xf32> -> vector<256x32xf32>
    %118 = arith.addf %111, %117 : vector<256x32xf32>
    %c0_126 = arith.constant 0 : index
    %c2_127 = arith.constant 2 : index
    %c0_128 = arith.constant 0 : index
    %c0_129 = arith.constant 0 : index
    %119 = vector.load %arg12[%c0_126, %c2_127, %c0_128, %c0_129] : memref<1x18x18x32xf32, #tpu.memory_space<vmem>>, vector<1x16x16x32xf32>
    %120 = vector.shape_cast %119 : vector<1x16x16x32xf32> to vector<256x32xf32>
    %121 = arith.truncf %120 : vector<256x32xf32> to vector<256x32xbf16>
    %c6_130 = arith.constant 6 : index
    %c0_131 = arith.constant 0 : index
    %c0_132 = arith.constant 0 : index
    %122 = vector.load %arg5[%c6_130, %c0_131, %c0_132] : memref<9x32x32xbf16, #tpu.memory_space<vmem>>, vector<1x32x32xbf16>
    %123 = vector.shape_cast %122 : vector<1x32x32xbf16> to vector<32x32xbf16>
    %cst_133 = arith.constant dense<0.000000e+00> : vector<256x32xf32>
    %124 = tpu.matmul %121, %123, %cst_133 {dimension_numbers = #tpu.dot_dimension_numbers<[1], [0], [0], [1], [0, 0, 1, 1], [], []>} : vector<256x32xbf16>, vector<32x32xbf16>, vector<256x32xf32> -> vector<256x32xf32>
    %125 = arith.addf %118, %124 : vector<256x32xf32>
    %c0_134 = arith.constant 0 : index
    %c2_135 = arith.constant 2 : index
    %c1_136 = arith.constant 1 : index
    %c0_137 = arith.constant 0 : index
    %126 = vector.load %arg12[%c0_134, %c2_135, %c1_136, %c0_137] : memref<1x18x18x32xf32, #tpu.memory_space<vmem>>, vector<1x16x16x32xf32>
    %127 = vector.shape_cast %126 : vector<1x16x16x32xf32> to vector<256x32xf32>
    %128 = arith.truncf %127 : vector<256x32xf32> to vector<256x32xbf16>
    %c7_138 = arith.constant 7 : index
    %c0_139 = arith.constant 0 : index
    %c0_140 = arith.constant 0 : index
    %129 = vector.load %arg5[%c7_138, %c0_139, %c0_140] : memref<9x32x32xbf16, #tpu.memory_space<vmem>>, vector<1x32x32xbf16>
    %130 = vector.shape_cast %129 : vector<1x32x32xbf16> to vector<32x32xbf16>
    %cst_141 = arith.constant dense<0.000000e+00> : vector<256x32xf32>
    %131 = tpu.matmul %128, %130, %cst_141 {dimension_numbers = #tpu.dot_dimension_numbers<[1], [0], [0], [1], [0, 0, 1, 1], [], []>} : vector<256x32xbf16>, vector<32x32xbf16>, vector<256x32xf32> -> vector<256x32xf32>
    %132 = arith.addf %125, %131 : vector<256x32xf32>
    %c0_142 = arith.constant 0 : index
    %c2_143 = arith.constant 2 : index
    %c2_144 = arith.constant 2 : index
    %c0_145 = arith.constant 0 : index
    %133 = vector.load %arg12[%c0_142, %c2_143, %c2_144, %c0_145] : memref<1x18x18x32xf32, #tpu.memory_space<vmem>>, vector<1x16x16x32xf32>
    %134 = vector.shape_cast %133 : vector<1x16x16x32xf32> to vector<256x32xf32>
    %135 = arith.truncf %134 : vector<256x32xf32> to vector<256x32xbf16>
    %c8_146 = arith.constant 8 : index
    %c0_147 = arith.constant 0 : index
    %c0_148 = arith.constant 0 : index
    %136 = vector.load %arg5[%c8_146, %c0_147, %c0_148] : memref<9x32x32xbf16, #tpu.memory_space<vmem>>, vector<1x32x32xbf16>
    %137 = vector.shape_cast %136 : vector<1x32x32xbf16> to vector<32x32xbf16>
    %cst_149 = arith.constant dense<0.000000e+00> : vector<256x32xf32>
    %138 = tpu.matmul %135, %137, %cst_149 {dimension_numbers = #tpu.dot_dimension_numbers<[1], [0], [0], [1], [0, 0, 1, 1], [], []>} : vector<256x32xbf16>, vector<32x32xbf16>, vector<256x32xf32> -> vector<256x32xf32>
    %139 = arith.addf %132, %138 : vector<256x32xf32>
    %c0_150 = arith.constant 0 : index
    %c0_151 = arith.constant 0 : index
    %140 = vector.load %arg6[%c0_150, %c0_151] : memref<1x32xf32, #tpu.memory_space<vmem>>, vector<1x32xf32>
    %141 = vector.broadcast %140 : vector<1x32xf32> to vector<256x32xf32>
    %142 = arith.mulf %139, %141 : vector<256x32xf32>
    %c0_152 = arith.constant 0 : index
    %c0_153 = arith.constant 0 : index
    %143 = vector.load %arg7[%c0_152, %c0_153] : memref<1x32xf32, #tpu.memory_space<vmem>>, vector<1x32xf32>
    %144 = vector.broadcast %143 : vector<1x32xf32> to vector<256x32xf32>
    %145 = arith.addf %142, %144 : vector<256x32xf32>
    %cst_154 = arith.constant 0.000000e+00 : f32
    %146 = vector.broadcast %cst_154 : f32 to vector<256x32xf32>
    %147 = arith.maximumf %145, %146 : vector<256x32xf32>
    %cst_155 = arith.constant 0.000000e+00 : f32
    %148 = vector.broadcast %cst_155 : f32 to vector<1x18x18x32xf32>
    %c0_156 = arith.constant 0 : index
    %c0_157 = arith.constant 0 : index
    %c0_158 = arith.constant 0 : index
    %c0_159 = arith.constant 0 : index
    %149 = vector.load %arg13[%c0_156, %c0_157, %c0_158, %c0_159] : memref<1x18x18x32xf32, #tpu.memory_space<vmem>>, vector<1x18x18x32xf32>
    tpu.vector_store %arg13[%c0_156, %c0_157, %c0_158, %c0_159], %148 {strides = array<i32>} : memref<1x18x18x32xf32, #tpu.memory_space<vmem>>, vector<1x18x18x32xf32>,
    %150 = vector.shape_cast %147 : vector<256x32xf32> to vector<1x16x16x32xf32>
    %c0_160 = arith.constant 0 : index
    %c1_161 = arith.constant 1 : index
    %c1_162 = arith.constant 1 : index
    %c0_163 = arith.constant 0 : index
    %151 = vector.load %arg13[%c0_160, %c1_161, %c1_162, %c0_163] : memref<1x18x18x32xf32, #tpu.memory_space<vmem>>, vector<1x16x16x32xf32>
    tpu.vector_store %arg13[%c0_160, %c1_161, %c1_162, %c0_163], %150 {strides = array<i32>} : memref<1x18x18x32xf32, #tpu.memory_space<vmem>>, vector<1x16x16x32xf32>,
    %cst_164 = arith.constant 0.000000e+00 : f32
    %152 = vector.broadcast %cst_164 : f32 to vector<256x32xf32>
    %c0_165 = arith.constant 0 : index
    %c0_166 = arith.constant 0 : index
    %c0_167 = arith.constant 0 : index
    %c0_168 = arith.constant 0 : index
    %153 = vector.load %arg13[%c0_165, %c0_166, %c0_167, %c0_168] : memref<1x18x18x32xf32, #tpu.memory_space<vmem>>, vector<1x16x16x32xf32>
    %154 = vector.shape_cast %153 : vector<1x16x16x32xf32> to vector<256x32xf32>
    %155 = arith.truncf %154 : vector<256x32xf32> to vector<256x32xbf16>
    %c0_169 = arith.constant 0 : index
    %c0_170 = arith.constant 0 : index
    %c0_171 = arith.constant 0 : index
    %156 = vector.load %arg8[%c0_169, %c0_170, %c0_171] : memref<9x32x32xbf16, #tpu.memory_space<vmem>>, vector<1x32x32xbf16>
    %157 = vector.shape_cast %156 : vector<1x32x32xbf16> to vector<32x32xbf16>
    %cst_172 = arith.constant dense<0.000000e+00> : vector<256x32xf32>
    %158 = tpu.matmul %155, %157, %cst_172 {dimension_numbers = #tpu.dot_dimension_numbers<[1], [0], [0], [1], [0, 0, 1, 1], [], []>} : vector<256x32xbf16>, vector<32x32xbf16>, vector<256x32xf32> -> vector<256x32xf32>
    %159 = arith.addf %152, %158 : vector<256x32xf32>
    %c0_173 = arith.constant 0 : index
    %c0_174 = arith.constant 0 : index
    %c1_175 = arith.constant 1 : index
    %c0_176 = arith.constant 0 : index
    %160 = vector.load %arg13[%c0_173, %c0_174, %c1_175, %c0_176] : memref<1x18x18x32xf32, #tpu.memory_space<vmem>>, vector<1x16x16x32xf32>
    %161 = vector.shape_cast %160 : vector<1x16x16x32xf32> to vector<256x32xf32>
    %162 = arith.truncf %161 : vector<256x32xf32> to vector<256x32xbf16>
    %c1_177 = arith.constant 1 : index
    %c0_178 = arith.constant 0 : index
    %c0_179 = arith.constant 0 : index
    %163 = vector.load %arg8[%c1_177, %c0_178, %c0_179] : memref<9x32x32xbf16, #tpu.memory_space<vmem>>, vector<1x32x32xbf16>
    %164 = vector.shape_cast %163 : vector<1x32x32xbf16> to vector<32x32xbf16>
    %cst_180 = arith.constant dense<0.000000e+00> : vector<256x32xf32>
    %165 = tpu.matmul %162, %164, %cst_180 {dimension_numbers = #tpu.dot_dimension_numbers<[1], [0], [0], [1], [0, 0, 1, 1], [], []>} : vector<256x32xbf16>, vector<32x32xbf16>, vector<256x32xf32> -> vector<256x32xf32>
    %166 = arith.addf %159, %165 : vector<256x32xf32>
    %c0_181 = arith.constant 0 : index
    %c0_182 = arith.constant 0 : index
    %c2_183 = arith.constant 2 : index
    %c0_184 = arith.constant 0 : index
    %167 = vector.load %arg13[%c0_181, %c0_182, %c2_183, %c0_184] : memref<1x18x18x32xf32, #tpu.memory_space<vmem>>, vector<1x16x16x32xf32>
    %168 = vector.shape_cast %167 : vector<1x16x16x32xf32> to vector<256x32xf32>
    %169 = arith.truncf %168 : vector<256x32xf32> to vector<256x32xbf16>
    %c2_185 = arith.constant 2 : index
    %c0_186 = arith.constant 0 : index
    %c0_187 = arith.constant 0 : index
    %170 = vector.load %arg8[%c2_185, %c0_186, %c0_187] : memref<9x32x32xbf16, #tpu.memory_space<vmem>>, vector<1x32x32xbf16>
    %171 = vector.shape_cast %170 : vector<1x32x32xbf16> to vector<32x32xbf16>
    %cst_188 = arith.constant dense<0.000000e+00> : vector<256x32xf32>
    %172 = tpu.matmul %169, %171, %cst_188 {dimension_numbers = #tpu.dot_dimension_numbers<[1], [0], [0], [1], [0, 0, 1, 1], [], []>} : vector<256x32xbf16>, vector<32x32xbf16>, vector<256x32xf32> -> vector<256x32xf32>
    %173 = arith.addf %166, %172 : vector<256x32xf32>
    %c0_189 = arith.constant 0 : index
    %c1_190 = arith.constant 1 : index
    %c0_191 = arith.constant 0 : index
    %c0_192 = arith.constant 0 : index
    %174 = vector.load %arg13[%c0_189, %c1_190, %c0_191, %c0_192] : memref<1x18x18x32xf32, #tpu.memory_space<vmem>>, vector<1x16x16x32xf32>
    %175 = vector.shape_cast %174 : vector<1x16x16x32xf32> to vector<256x32xf32>
    %176 = arith.truncf %175 : vector<256x32xf32> to vector<256x32xbf16>
    %c3_193 = arith.constant 3 : index
    %c0_194 = arith.constant 0 : index
    %c0_195 = arith.constant 0 : index
    %177 = vector.load %arg8[%c3_193, %c0_194, %c0_195] : memref<9x32x32xbf16, #tpu.memory_space<vmem>>, vector<1x32x32xbf16>
    %178 = vector.shape_cast %177 : vector<1x32x32xbf16> to vector<32x32xbf16>
    %cst_196 = arith.constant dense<0.000000e+00> : vector<256x32xf32>
    %179 = tpu.matmul %176, %178, %cst_196 {dimension_numbers = #tpu.dot_dimension_numbers<[1], [0], [0], [1], [0, 0, 1, 1], [], []>} : vector<256x32xbf16>, vector<32x32xbf16>, vector<256x32xf32> -> vector<256x32xf32>
    %180 = arith.addf %173, %179 : vector<256x32xf32>
    %c0_197 = arith.constant 0 : index
    %c1_198 = arith.constant 1 : index
    %c1_199 = arith.constant 1 : index
    %c0_200 = arith.constant 0 : index
    %181 = vector.load %arg13[%c0_197, %c1_198, %c1_199, %c0_200] : memref<1x18x18x32xf32, #tpu.memory_space<vmem>>, vector<1x16x16x32xf32>
    %182 = vector.shape_cast %181 : vector<1x16x16x32xf32> to vector<256x32xf32>
    %183 = arith.truncf %182 : vector<256x32xf32> to vector<256x32xbf16>
    %c4_201 = arith.constant 4 : index
    %c0_202 = arith.constant 0 : index
    %c0_203 = arith.constant 0 : index
    %184 = vector.load %arg8[%c4_201, %c0_202, %c0_203] : memref<9x32x32xbf16, #tpu.memory_space<vmem>>, vector<1x32x32xbf16>
    %185 = vector.shape_cast %184 : vector<1x32x32xbf16> to vector<32x32xbf16>
    %cst_204 = arith.constant dense<0.000000e+00> : vector<256x32xf32>
    %186 = tpu.matmul %183, %185, %cst_204 {dimension_numbers = #tpu.dot_dimension_numbers<[1], [0], [0], [1], [0, 0, 1, 1], [], []>} : vector<256x32xbf16>, vector<32x32xbf16>, vector<256x32xf32> -> vector<256x32xf32>
    %187 = arith.addf %180, %186 : vector<256x32xf32>
    %c0_205 = arith.constant 0 : index
    %c1_206 = arith.constant 1 : index
    %c2_207 = arith.constant 2 : index
    %c0_208 = arith.constant 0 : index
    %188 = vector.load %arg13[%c0_205, %c1_206, %c2_207, %c0_208] : memref<1x18x18x32xf32, #tpu.memory_space<vmem>>, vector<1x16x16x32xf32>
    %189 = vector.shape_cast %188 : vector<1x16x16x32xf32> to vector<256x32xf32>
    %190 = arith.truncf %189 : vector<256x32xf32> to vector<256x32xbf16>
    %c5_209 = arith.constant 5 : index
    %c0_210 = arith.constant 0 : index
    %c0_211 = arith.constant 0 : index
    %191 = vector.load %arg8[%c5_209, %c0_210, %c0_211] : memref<9x32x32xbf16, #tpu.memory_space<vmem>>, vector<1x32x32xbf16>
    %192 = vector.shape_cast %191 : vector<1x32x32xbf16> to vector<32x32xbf16>
    %cst_212 = arith.constant dense<0.000000e+00> : vector<256x32xf32>
    %193 = tpu.matmul %190, %192, %cst_212 {dimension_numbers = #tpu.dot_dimension_numbers<[1], [0], [0], [1], [0, 0, 1, 1], [], []>} : vector<256x32xbf16>, vector<32x32xbf16>, vector<256x32xf32> -> vector<256x32xf32>
    %194 = arith.addf %187, %193 : vector<256x32xf32>
    %c0_213 = arith.constant 0 : index
    %c2_214 = arith.constant 2 : index
    %c0_215 = arith.constant 0 : index
    %c0_216 = arith.constant 0 : index
    %195 = vector.load %arg13[%c0_213, %c2_214, %c0_215, %c0_216] : memref<1x18x18x32xf32, #tpu.memory_space<vmem>>, vector<1x16x16x32xf32>
    %196 = vector.shape_cast %195 : vector<1x16x16x32xf32> to vector<256x32xf32>
    %197 = arith.truncf %196 : vector<256x32xf32> to vector<256x32xbf16>
    %c6_217 = arith.constant 6 : index
    %c0_218 = arith.constant 0 : index
    %c0_219 = arith.constant 0 : index
    %198 = vector.load %arg8[%c6_217, %c0_218, %c0_219] : memref<9x32x32xbf16, #tpu.memory_space<vmem>>, vector<1x32x32xbf16>
    %199 = vector.shape_cast %198 : vector<1x32x32xbf16> to vector<32x32xbf16>
    %cst_220 = arith.constant dense<0.000000e+00> : vector<256x32xf32>
    %200 = tpu.matmul %197, %199, %cst_220 {dimension_numbers = #tpu.dot_dimension_numbers<[1], [0], [0], [1], [0, 0, 1, 1], [], []>} : vector<256x32xbf16>, vector<32x32xbf16>, vector<256x32xf32> -> vector<256x32xf32>
    %201 = arith.addf %194, %200 : vector<256x32xf32>
    %c0_221 = arith.constant 0 : index
    %c2_222 = arith.constant 2 : index
    %c1_223 = arith.constant 1 : index
    %c0_224 = arith.constant 0 : index
    %202 = vector.load %arg13[%c0_221, %c2_222, %c1_223, %c0_224] : memref<1x18x18x32xf32, #tpu.memory_space<vmem>>, vector<1x16x16x32xf32>
    %203 = vector.shape_cast %202 : vector<1x16x16x32xf32> to vector<256x32xf32>
    %204 = arith.truncf %203 : vector<256x32xf32> to vector<256x32xbf16>
    %c7_225 = arith.constant 7 : index
    %c0_226 = arith.constant 0 : index
    %c0_227 = arith.constant 0 : index
    %205 = vector.load %arg8[%c7_225, %c0_226, %c0_227] : memref<9x32x32xbf16, #tpu.memory_space<vmem>>, vector<1x32x32xbf16>
    %206 = vector.shape_cast %205 : vector<1x32x32xbf16> to vector<32x32xbf16>
    %cst_228 = arith.constant dense<0.000000e+00> : vector<256x32xf32>
    %207 = tpu.matmul %204, %206, %cst_228 {dimension_numbers = #tpu.dot_dimension_numbers<[1], [0], [0], [1], [0, 0, 1, 1], [], []>} : vector<256x32xbf16>, vector<32x32xbf16>, vector<256x32xf32> -> vector<256x32xf32>
    %208 = arith.addf %201, %207 : vector<256x32xf32>
    %c0_229 = arith.constant 0 : index
    %c2_230 = arith.constant 2 : index
    %c2_231 = arith.constant 2 : index
    %c0_232 = arith.constant 0 : index
    %209 = vector.load %arg13[%c0_229, %c2_230, %c2_231, %c0_232] : memref<1x18x18x32xf32, #tpu.memory_space<vmem>>, vector<1x16x16x32xf32>
    %210 = vector.shape_cast %209 : vector<1x16x16x32xf32> to vector<256x32xf32>
    %211 = arith.truncf %210 : vector<256x32xf32> to vector<256x32xbf16>
    %c8_233 = arith.constant 8 : index
    %c0_234 = arith.constant 0 : index
    %c0_235 = arith.constant 0 : index
    %212 = vector.load %arg8[%c8_233, %c0_234, %c0_235] : memref<9x32x32xbf16, #tpu.memory_space<vmem>>, vector<1x32x32xbf16>
    %213 = vector.shape_cast %212 : vector<1x32x32xbf16> to vector<32x32xbf16>
    %cst_236 = arith.constant dense<0.000000e+00> : vector<256x32xf32>
    %214 = tpu.matmul %211, %213, %cst_236 {dimension_numbers = #tpu.dot_dimension_numbers<[1], [0], [0], [1], [0, 0, 1, 1], [], []>} : vector<256x32xbf16>, vector<32x32xbf16>, vector<256x32xf32> -> vector<256x32xf32>
    %215 = arith.addf %208, %214 : vector<256x32xf32>
    %c0_237 = arith.constant 0 : index
    %c0_238 = arith.constant 0 : index
    %216 = vector.load %arg9[%c0_237, %c0_238] : memref<1x32xf32, #tpu.memory_space<vmem>>, vector<1x32xf32>
    %217 = vector.broadcast %216 : vector<1x32xf32> to vector<256x32xf32>
    %218 = arith.mulf %215, %217 : vector<256x32xf32>
    %c0_239 = arith.constant 0 : index
    %c0_240 = arith.constant 0 : index
    %219 = vector.load %arg10[%c0_239, %c0_240] : memref<1x32xf32, #tpu.memory_space<vmem>>, vector<1x32xf32>
    %220 = vector.broadcast %219 : vector<1x32xf32> to vector<256x32xf32>
    %221 = arith.addf %218, %220 : vector<256x32xf32>
    %222 = arith.addf %221, %71 : vector<256x32xf32>
    %cst_241 = arith.constant 0.000000e+00 : f32
    %223 = vector.broadcast %cst_241 : f32 to vector<256x32xf32>
    %224 = arith.maximumf %222, %223 : vector<256x32xf32>
    %cst_242 = arith.constant dense<0.000000e+00> : vector<32xf32>
    %225 = vector.multi_reduction <add>, %224, %cst_242 [0] : vector<256x32xf32> to vector<32xf32>
    %226 = vector.shape_cast %225 : vector<32xf32> to vector<1x32xf32>
    %cst_243 = arith.constant 2.560000e+02 : f32
    %227 = vector.broadcast %cst_243 : f32 to vector<1x32xf32>
    %228 = arith.divf %226, %227 : vector<1x32xf32>
    %229 = vector.shape_cast %228 : vector<1x32xf32> to vector<1x1x32xf32>
    %c0_244 = arith.constant 0 : index
    %c0_245 = arith.constant 0 : index
    %c0_246 = arith.constant 0 : index
    %230 = vector.load %arg11[%c0_244, %c0_245, %c0_246] : memref<1x1x32xf32, #tpu.memory_space<vmem>>, vector<1x1x32xf32>
    tpu.vector_store %arg11[%c0_244, %c0_245, %c0_246], %229 {strides = array<i32>} : memref<1x1x32xf32, #tpu.memory_space<vmem>>, vector<1x1x32xf32>,
    return
  }
  func.func @transform_0(%arg0: i32) -> (i32, i32, i32, i32) {
    %c0_i32 = arith.constant 0 : i32
    %c0_i32_0 = arith.constant 0 : i32
    %c0_i32_1 = arith.constant 0 : i32
    %c0_i32_2 = arith.constant 0 : i32
    return %arg0, %c0_i32, %c0_i32_0, %c0_i32_1 : i32, i32, i32, i32
  }
  func.func @transform_1(%arg0: i32) -> (i32, i32, i32) {
    %c0_i32 = arith.constant 0 : i32
    %c0_i32_0 = arith.constant 0 : i32
    %c0_i32_1 = arith.constant 0 : i32
    %c0_i32_2 = arith.constant 0 : i32
    return %c0_i32, %c0_i32_0, %c0_i32_1 : i32, i32, i32
  }
  func.func @transform_2(%arg0: i32) -> (i32, i32) {
    %c0_i32 = arith.constant 0 : i32
    %c0_i32_0 = arith.constant 0 : i32
    %c0_i32_1 = arith.constant 0 : i32
    return %c0_i32, %c0_i32_0 : i32, i32
  }
  func.func @transform_3(%arg0: i32) -> (i32, i32) {
    %c0_i32 = arith.constant 0 : i32
    %c0_i32_0 = arith.constant 0 : i32
    %c0_i32_1 = arith.constant 0 : i32
    return %c0_i32, %c0_i32_0 : i32, i32
  }
  func.func @transform_4(%arg0: i32) -> (i32, i32, i32) {
    %c0_i32 = arith.constant 0 : i32
    %c0_i32_0 = arith.constant 0 : i32
    %c0_i32_1 = arith.constant 0 : i32
    %c0_i32_2 = arith.constant 0 : i32
    return %c0_i32, %c0_i32_0, %c0_i32_1 : i32, i32, i32
  }
  func.func @transform_5(%arg0: i32) -> (i32, i32) {
    %c0_i32 = arith.constant 0 : i32
    %c0_i32_0 = arith.constant 0 : i32
    %c0_i32_1 = arith.constant 0 : i32
    return %c0_i32, %c0_i32_0 : i32, i32
  }
  func.func @transform_6(%arg0: i32) -> (i32, i32) {
    %c0_i32 = arith.constant 0 : i32
    %c0_i32_0 = arith.constant 0 : i32
    %c0_i32_1 = arith.constant 0 : i32
    return %c0_i32, %c0_i32_0 : i32, i32
  }
  func.func @transform_7(%arg0: i32) -> (i32, i32, i32) {
    %c0_i32 = arith.constant 0 : i32
    %c0_i32_0 = arith.constant 0 : i32
    %c0_i32_1 = arith.constant 0 : i32
    %c0_i32_2 = arith.constant 0 : i32
    return %c0_i32, %c0_i32_0, %c0_i32_1 : i32, i32, i32
  }
  func.func @transform_8(%arg0: i32) -> (i32, i32) {
    %c0_i32 = arith.constant 0 : i32
    %c0_i32_0 = arith.constant 0 : i32
    %c0_i32_1 = arith.constant 0 : i32
    return %c0_i32, %c0_i32_0 : i32, i32
  }
  func.func @transform_9(%arg0: i32) -> (i32, i32) {
    %c0_i32 = arith.constant 0 : i32
    %c0_i32_0 = arith.constant 0 : i32
    %c0_i32_1 = arith.constant 0 : i32
    return %c0_i32, %c0_i32_0 : i32, i32
  }
  func.func @transform_10(%arg0: i32) -> (i32, i32, i32) {
    %c0_i32 = arith.constant 0 : i32
    %c0_i32_0 = arith.constant 0 : i32
    %c0_i32_1 = arith.constant 0 : i32
    return %arg0, %c0_i32, %c0_i32_0 : i32, i32, i32
  }
}

</mosaic_0001>

<bundles_post_ra>
// kernel: net_forward.1
= control target key start
LH: loop header
LB: loop body
LE: loop exit
PB: predicated region body
PF: predicated region fallthrough
CT: control target
= control target key end

     0   :  { %s15325_s0 = inlined_call_operand.vmem [shape: f32[2,18,18,8], index: 0, kind: input, shape index: {}]   ;;  %s15326_s1 = inlined_call_operand.vmem [shape: bf16[9,8,32], index: 1, kind: input, shape index: {}]   ;;  %s15327_s2 = inlined_call_operand.vmem [shape: f32[1,32], index: 2, kind: input, shape index: {}]   ;;  %s15328_s3 = inlined_call_operand.vmem [shape: f32[1,32], index: 3, kind: input, shape index: {}]   ;;  %s15329_s4 = inlined_call_operand.vmem [shape: bf16[9,32,32], index: 4, kind: input, shape index: {}]   ;;  %s15330_s5 = inlined_call_operand.vmem [shape: f32[1,32], index: 5, kind: input, shape index: {}]   ;;  %s15331_s6 = inlined_call_operand.vmem [shape: f32[1,32], index: 6, kind: input, shape index: {}]   ;;  %s15332_s7 = inlined_call_operand.vmem [shape: bf16[9,32,32], index: 7, kind: input, shape index: {}]   ;;  %s15333_s8 = inlined_call_operand.vmem [shape: f32[1,32], index: 8, kind: input, shape index: {}]   ;;  %s15334_s9 = inlined_call_operand.vmem [shape: f32[1,32], index: 9, kind: input, shape index: {}]   ;;  %s15335_s10 = inlined_call_operand.hbm [shape: f32[2,1,32], index: 10, kind: output, shape index: {}]  }
   0x1   :  { %15403 = sst [smem:[#allocation116_spill]] %s15325_s0 }
   0x2   :  { %15 = vsyncpa [#allocation5], 0 }
   0x3   :  { %17 = vsyncpa [#allocation5 + $0x1], 0  ;;  %s11387_s13 = smov 0   ;;  %s11389_s14 = smov 0  }
   0x4   :  { %s11391_s15 = smov 0   ;;  %s11393_s16 = smov 0  }
   0x5 LB: > { %s11408_s17 = sadd.s32 4294967295, %s11328_s16   ;;  %s9002_s18 = sadd.s32 4294967294, %s11328_s16   ;;  %s11328_s16 = sphi %s11393_s16, %s15831_s16   ;;  %s11324_s15 = sphi %s11391_s15, %s15830_s15   ;;  %s11320_s14 = sphi %s11389_s14, %s15829_s14   ;;  %s11316_s13 = sphi %s11387_s13, %s15828_s13  }
   0x6   : > { %s11412_s19 = sadd.s32 1, %s11328_s16   ;;  %s245_s20 = sadd.s32 1, %s11324_s15 }
   0x7   : > { %s242_s21 = ssub.s32 %s11328_s16, %s11412_s19  ;;  %p255_p0 = scmp.ne.s32.totalorder %s11324_s15, %s11320_s14 }
   0x8   : > { %p243_p1 = scmp.eq.s32.totalorder %s242_s21, 0  ;;  %p256_p2 = scmp.eq.s32.totalorder %s11408_s17, 1 }
   0x9   : > { %p261_p3 = scmp.ne.s32.totalorder %s11320_s14, %s11316_s13  ;;  %p262_p4 = scmp.eq.s32.totalorder %s9002_s18, 1 }
   0xa   : > { %s11423_s22 = scalar_select %p243_p1, %s11324_s15, %s245_s20  }
   0xb   : > { %p11425_p5 = por %p256_p2, %p255_p0  ;;  %p11429_p6 = por %p262_p4, %p261_p3 }
   0xc   : > { %p9005_p7 = scmp.ge.s32.totalorder %s11328_s16, 1  ;;  %p315_p8 = scmp.lt.s32.totalorder %s11328_s16, 3 }
   0xe   : > { %p316_p9 = pnand %p9005_p7, %p315_p8 }
  0x10   : > { %319 = sbr.rel (%p316_p9) target bundleno = 1541 (0x605), region = 60 }
  0x15   : > { %v9007_v0 = vld [vmem:[%s15326_s1 + $0x4] sm:$0xf]  ;;  %vm506_vm0 = vcmask 1043456   ;;  %p352_p10 = scmp.lt.s32.totalorder %s11408_s17, 1  ;;  %v406_v2 = vld [vmem:[%s15326_s1] sm:$0xf] }
  0x16   : > { %11182 = vmatprep.subr.msk.bf16.mxu1 %vm506_vm0, %v9007_v0  ;;  %11181 = vmatprep.subr.msk.bf16.mxu0 %vm506_vm0, %v9007_v0  ;;  %v508_v1 = vsel %vm506_vm0, %v9007_v0, 0  ;;  %v9040_v3 = vld [vmem:[%s15326_s1 + $0x8] sm:$0xf]  ;;  %s15406_s0 = sld [smem:[#allocation116_spill]]  ;;  %vm457_vm1 = vcmask 64512   ;;  %v720_v18 = vsel %vm506_vm0, %v406_v2, 0 }
  0x17   : > { %11180 = vmatpush3.bf16.msra.mxu1 %v508_v1  ;;  %10226 = vmatpush3.bf16.msra.mxu0 %v508_v1  ;;  %s353_s11 = scalar_select %p352_p10, %s11408_s17, 1  ;;  %v982_v15 = vsel %vm506_vm0, %v9040_v3, 0  ;;  %v11488_v24 = vld [vmem:[%s15326_s1 + $0xc] sm:$0xf]  ;;  %v11493_v25 = vld [vmem:[%s15326_s1 + $0x10] sm:$0xf] }
  0x18   : > { %11183 = vmatprep.subr.msk.bf16.mxu1 %vm506_vm0, %v406_v2  ;;  %11184 = vmatprep.subr.msk.bf16.mxu0 %vm506_vm0, %v9040_v3  ;;  %vm3053_vm2 = vcmask 261120   ;;  %vm3056_vm3 = vcmask 254976   ;;  %s350_s18 = sand.u32 1, %s11320_s14   ;;  %s9745_s20 = sshll.u32 %s11408_s17, 4  ;;  %vm8932_vm4 = vcmask 253952  }
  0x19   : > { %s11191_s12 = smul.u32 432, %s353_s11  ;;  %s351_s25 = scalar_lea.vmem [#allocation4], %s350_s18 }
  0x1a   : > { %s8947_s26 = sshll.u32 %s351_s25, 4  ;;  %s8935_s29 = scalar_lea.sflag [#allocation5], %s350_s18  ;;  %s8948_s26 = int_to_ptr.vmem [resolvable:$true] %s8947_s26 }
  0x1b   : > { %s11268_s30 = scalar_lea.vmem %s8948_s26, 16  ;;  %s11331_s11 = smov [#allocation4]  }
  0x1c   : > { %s11454_s21 = scalar_lea.vmem %s15406_s0, %s11191_s12  ;;  %p11269_p11 = scmp.ne.s32.totalorder %s8948_s26, %s11268_s30 }
  0x1d   : > { %v407_v4 = vld [vmem:[%s11454_s21 + $0x1] sm:$0xff]  ;;  %v408_v5 = vld [vmem:[%s11454_s21 + $0x9] sm:$0xff]  ;;  %v409_v9 = vld [vmem:[%s11454_s21 + $0x19] sm:$0xff]  ;;  %s11272_s12 = sshll.u32 %s11331_s11, 4  ;;  %s11273_s12 = int_to_ptr.vmem [resolvable:$false] %s11272_s12 }
  0x1e   : > { %v423_v6 = vld [vmem:[%s11454_s21 + $0xc1] sm:$0xff]  ;;  %v439_v7 = vpack.c.bf16 %v408_v5, %v407_v4  ;;  %v424_v8 = vld [vmem:[%s11454_s21 + $0xc9] sm:$0xff]  ;;  %v425_v13 = vld [vmem:[%s11454_s21 + $0xd9] sm:$0xff]  ;;  %p11270_p12 = pnand %p11269_p11, %p11425_p5  ;;  %s11274_s17 = scalar_lea.vmem %s11273_s12, 32 }
  0x1f   : > { %v410_v10 = vld [vmem:[%s11454_s21 + $0x21] sm:$0xff]  ;;  %v11462_v11 = vpack.c.bf16 %v424_v8, %v423_v6  ;;  %v411_v16 = vld [vmem:[%s11454_s21 + $0x31] sm:$0xff]  ;;  %v412_v19 = vld [vmem:[%s11454_s21 + $0x39] sm:$0xff]  ;;  %v1277_v8 = vsel %vm506_vm0, %v11488_v24, 0  ;;  %p11275_p0 = scmp.lt.s32.totalorder %s8948_s26, %s11273_s12  ;;  %p11276_p1 = scmp.lt.s32.totalorder %s11274_s17, %s11268_s30 }
  0x20   : > { %v11464_v12 = vpack.c.bf16 %v410_v10, %v409_v9  ;;  %v426_v14 = vld [vmem:[%s11454_s21 + $0xe1] sm:$0xff]  ;;  %10227 = vmatprep.mubr.msk.bf16.mxu0 %vm457_vm1, %v439_v7  ;;  %v427_v20 = vld [vmem:[%s11454_s21 + $0xf1] sm:$0xff]  ;;  %v428_v21 = vld [vmem:[%s11454_s21 + $0xf9] sm:$0xff]  ;;  %v11481_v22 = vpack.c.bf16 %v412_v19, %v411_v16  ;;  %v1571_v9 = vsel %vm506_vm0, %v11493_v25, 0  ;;  %p11271_p13 = pneg %p11270_p12 }
  0x21   : > { %v11471_v17 = vpack.c.bf16 %v426_v14, %v425_v13  ;;  %10243 = vmatprep.mubr.msk.bf16.mxu1 %vm457_vm1, %v11462_v11  ;;  %v11483_v23 = vpack.c.bf16 %v428_v21, %v427_v20  ;;  %v413_v26 = vld [vmem:[%s11454_s21 + $0x49] sm:$0xff]  ;;  %v414_v27 = vld [vmem:[%s11454_s21 + $0x51] sm:$0xff]  ;;  %v415_v30 = vld [vmem:[%s11454_s21 + $0x61] sm:$0xff]  ;;  %p11277_p2 = por %p11276_p1, %p11275_p0 }
  0x22   : > { %10228 = vmatmul.mubr.msk.bf16.vlgmr.msra.gmra.mxu0 %vm457_vm1, %v11464_v12  ;;  %v429_v28 = vld [vmem:[%s11454_s21 + $0x109] sm:$0xff]  ;;  %v430_v29 = vld [vmem:[%s11454_s21 + $0x111] sm:$0xff]  ;;  %v431_v32 = vld [vmem:[%s11454_s21 + $0x121] sm:$0xff]  ;;  %v11511_v34 = vpack.c.bf16 %v414_v27, %v413_v26 }
  0x23   : > { %10244 = vmatmul.mubr.msk.bf16.vlgmr.msra.gmra.mxu1 %vm457_vm1, %v11471_v17  ;;  %10294 = vmatpush3.bf16.msra.mxu0 %v982_v15  ;;  %v416_v31 = vld [vmem:[%s11454_s21 + $0x69] sm:$0xff]  ;;  %v11515_v35 = vpack.c.bf16 %v430_v29, %v429_v28  ;;  %v417_v38 = vld [vmem:[%s11454_s21 + $0x79] sm:$0xff]  ;;  %v418_v39 = vld [vmem:[%s11454_s21 + $0x81] sm:$0xff]  ;;  %p11278_p3 = pnand %p11277_p2, %p11271_p13 }
  0x24   : > { %10260 = vmatpush3.bf16.msra.mxu1 %v720_v18  ;;  %10231 = vmatprep.mubr.msk.bf16.mxu0 %vm457_vm1, %v11481_v22  ;;  %v432_v33 = vld [vmem:[%s11454_s21 + $0x129] sm:$0xff]  ;;  %v11517_v36 = vpack.c.bf16 %v416_v31, %v415_v30  ;;  %v433_v40 = vld [vmem:[%s11454_s21 + $0x139] sm:$0xff]  ;;  %v434_v41 = vld [vmem:[%s11454_s21 + $0x141] sm:$0xff]  ;;  %v11537_v46 = vpack.c.bf16 %v418_v39, %v417_v38 }
  0x25   : > { %10247 = vmatprep.mubr.msk.bf16.mxu1 %vm457_vm1, %v11483_v23  ;;  %11185 = vmatprep.subr.msk.bf16.mxu1 %vm506_vm0, %v11488_v24  ;;  %v11519_v37 = vpack.c.bf16 %v432_v33, %v431_v32  ;;  %v419_v42 = vld [vmem:[%s11454_s21 + $0x91] sm:$0xff]  ;;  %v420_v43 = vld [vmem:[%s11454_s21 + $0x99] sm:$0xff]  ;;  %v11539_v47 = vpack.c.bf16 %v434_v41, %v433_v40  ;;  %v421_v50 = vld [vmem:[%s11454_s21 + $0xa9] sm:$0xff] }
  0x26   : > { %11186 = vmatprep.subr.msk.bf16.mxu0 %vm506_vm0, %v11493_v25  ;;  %v435_v44 = vld [vmem:[%s11454_s21 + $0x151] sm:$0xff]  ;;  %v436_v45 = vld [vmem:[%s11454_s21 + $0x159] sm:$0xff]  ;;  %v11541_v48 = vpack.c.bf16 %v420_v43, %v419_v42  ;;  %v437_v52 = vld [vmem:[%s11454_s21 + $0x169] sm:$0xff] }
  0x27   : > { %v11543_v49 = vpack.c.bf16 %v436_v45, %v435_v44  ;;  %v422_v51 = vld [vmem:[%s11454_s21 + $0xb1] sm:$0xff]  ;;  %v883_v54 = vld [vmem:[%s11454_s21 + $0x2] sm:$0xff]  ;;  %v885_v62 = vld [vmem:[%s11454_s21 + $0x1a] sm:$0xff] }
  0x28   : > { %v438_v53 = vld [vmem:[%s11454_s21 + $0x171] sm:$0xff]  ;;  %v358_v56 = vld [vmem:[%s11454_s21] sm:$0xff]  ;;  %v359_v57 = vld [vmem:[%s11454_s21 + $0x8] sm:$0xff]  ;;  %v11561_v58 = vpack.c.bf16 %v422_v51, %v421_v50 }
  0x29   : > { %v884_v55 = vld [vmem:[%s11454_s21 + $0xa] sm:$0xff]  ;;  %v11563_v59 = vpack.c.bf16 %v438_v53, %v437_v52  ;;  %v390_v61 = vpack.c.bf16 %v359_v57, %v358_v56  ;;  %v886_v63 = vld [vmem:[%s11454_s21 + $0x22] sm:$0xff]  ;;  %v360_v0 = vld [vmem:[%s11454_s21 + $0x18] sm:$0xff] }
  0x2a   : > { %10232 = vmatmul.mubr.msk.bf16.gmra.mxu0 %vm457_vm1, %v11511_v34  ;;  %v915_v60 = vpack.c.bf16 %v884_v55, %v883_v54  ;;  %v361_v1 = vld [vmem:[%s11454_s21 + $0x20] sm:$0xff]  ;;  %v362_v2 = vld [vmem:[%s11454_s21 + $0x30] sm:$0xff]  ;;  %v363_v3 = vld [vmem:[%s11454_s21 + $0x38] sm:$0xff]  ;;  %v11577_v4 = vpack.c.bf16 %v886_v63, %v885_v62 }
  0x2b   : > { %10248 = vmatmul.mubr.msk.bf16.gmra.mxu1 %vm457_vm1, %v11515_v35  ;;  %10235 = vmatprep.mubr.msk.bf16.mxu0 %vm457_vm1, %v11517_v36  ;;  %v887_v5 = vld [vmem:[%s11454_s21 + $0x32] sm:$0xff]  ;;  %v888_v6 = vld [vmem:[%s11454_s21 + $0x3a] sm:$0xff]  ;;  %v11581_v7 = vpack.c.bf16 %v361_v1, %v360_v0  ;;  %v11587_v10 = vpack.c.bf16 %v363_v3, %v362_v2  ;;  %v889_v15 = vld [vmem:[%s11454_s21 + $0x4a] sm:$0xff] }
  0x2c   : > { %10251 = vmatprep.mubr.msk.bf16.mxu1 %vm457_vm1, %v11519_v37  ;;  %v11592_v13 = vld [vmem:[%s15326_s1 + $0x14] sm:$0xf]  ;;  %v11594_v14 = vpack.c.bf16 %v888_v6, %v887_v5  ;;  %v11601_v18 = vld [vmem:[%s15326_s1 + $0x18] sm:$0xf]  ;;  %v364_v19 = vld [vmem:[%s11454_s21 + $0x48] sm:$0xff] }
  0x2d   : > { %v890_v16 = vld [vmem:[%s11454_s21 + $0x52] sm:$0xff]  ;;  %v366_v21 = vld [vmem:[%s11454_s21 + $0x60] sm:$0xff]  ;;  %v892_v25 = vld [vmem:[%s11454_s21 + $0x6a] sm:$0xff] }
  0x2e   : > { %v365_v20 = vld [vmem:[%s11454_s21 + $0x50] sm:$0xff]  ;;  %v891_v24 = vld [vmem:[%s11454_s21 + $0x62] sm:$0xff]  ;;  %v11619_v27 = vpack.c.bf16 %v890_v16, %v889_v15  ;;  %v893_v31 = vld [vmem:[%s11454_s21 + $0x7a] sm:$0xff] }
  0x2f   : > { %v367_v26 = vld [vmem:[%s11454_s21 + $0x68] sm:$0xff]  ;;  %v11623_v28 = vpack.c.bf16 %v365_v20, %v364_v19  ;;  %v11625_v29 = vpack.c.bf16 %v892_v25, %v891_v24  ;;  %v368_v33 = vld [vmem:[%s11454_s21 + $0x78] sm:$0xff]  ;;  %v369_v38 = vld [vmem:[%s11454_s21 + $0x80] sm:$0xff] }
  0x30   : > { %v11627_v30 = vpack.c.bf16 %v367_v26, %v366_v21  ;;  %v894_v32 = vld [vmem:[%s11454_s21 + $0x82] sm:$0xff]  ;;  %v895_v39 = vld [vmem:[%s11454_s21 + $0x92] sm:$0xff]  ;;  %v896_v40 = vld [vmem:[%s11454_s21 + $0x9a] sm:$0xff]  ;;  %v11647_v44 = vpack.c.bf16 %v369_v38, %v368_v33 }
  0x31   : > { %v370_v41 = vld [vmem:[%s11454_s21 + $0x90] sm:$0xff]  ;;  %v371_v42 = vld [vmem:[%s11454_s21 + $0x98] sm:$0xff]  ;;  %v11645_v43 = vpack.c.bf16 %v894_v32, %v893_v31  ;;  %v11649_v45 = vpack.c.bf16 %v896_v40, %v895_v39  ;;  %v372_v53 = vld [vmem:[%s11454_s21 + $0xa8] sm:$0xff] }
  0x32   : > { %10236 = vmatmul.mubr.msk.bf16.gmra.mxu0 %vm457_vm1, %v11537_v46  ;;  %v11651_v50 = vpack.c.bf16 %v371_v42, %v370_v41  ;;  %v897_v51 = vld [vmem:[%s11454_s21 + $0xaa] sm:$0xff]  ;;  %v898_v52 = vld [vmem:[%s11454_s21 + $0xb2] sm:$0xff]  ;;  %v899_v55 = vld [vmem:[%s11454_s21 + $0xc2] sm:$0xff] }
  0x33   : > { %10252 = vmatmul.mubr.msk.bf16.gmra.mxu1 %vm457_vm1, %v11539_v47  ;;  %10239 = vmatprep.mubr.msk.bf16.mxu0 %vm457_vm1, %v11541_v48  ;;  %v373_v54 = vld [vmem:[%s11454_s21 + $0xb0] sm:$0xff]  ;;  %v374_v57 = vld [vmem:[%s11454_s21 + $0xc0] sm:$0xff]  ;;  %v376_v1 = vld [vmem:[%s11454_s21 + $0xd8] sm:$0xff] }
  0x34   : > { %10255 = vmatprep.mubr.msk.bf16.mxu1 %vm457_vm1, %v11543_v49  ;;  %v900_v56 = vld [vmem:[%s11454_s21 + $0xca] sm:$0xff]  ;;  %v11671_v62 = vpack.c.bf16 %v373_v54, %v372_v53  ;;  %v901_v2 = vld [vmem:[%s11454_s21 + $0xda] sm:$0xff]  ;;  %v902_v3 = vld [vmem:[%s11454_s21 + $0xe2] sm:$0xff] }
  0x35   : > { %v11673_v63 = vpack.c.bf16 %v900_v56, %v899_v55  ;;  %v377_v5 = vld [vmem:[%s11454_s21 + $0xe0] sm:$0xff]  ;;  %v903_v6 = vld [vmem:[%s11454_s21 + $0xf2] sm:$0xff]  ;;  %v11693_v16 = vpack.c.bf16 %v902_v3, %v901_v2  ;;  %v380_v24 = vld [vmem:[%s11454_s21 + $0x108] sm:$0xff] }
  0x36   : > { %v379_v15 = vld [vmem:[%s11454_s21 + $0xf8] sm:$0xff]  ;;  %v11695_v19 = vpack.c.bf16 %v377_v5, %v376_v1  ;;  %v905_v25 = vld [vmem:[%s11454_s21 + $0x10a] sm:$0xff]  ;;  %v907_v32 = vld [vmem:[%s11454_s21 + $0x122] sm:$0xff] }
  0x37   : > { %v906_v26 = vld [vmem:[%s11454_s21 + $0x112] sm:$0xff]  ;;  %v908_v33 = vld [vmem:[%s11454_s21 + $0x12a] sm:$0xff]  ;;  %v382_v38 = vld [vmem:[%s11454_s21 + $0x120] sm:$0xff] }
  0x38   : > { %v381_v31 = vld [vmem:[%s11454_s21 + $0x110] sm:$0xff]  ;;  %v383_v39 = vld [vmem:[%s11454_s21 + $0x128] sm:$0xff]  ;;  %v11717_v40 = vpack.c.bf16 %v906_v26, %v905_v25  ;;  %v11721_v42 = vpack.c.bf16 %v908_v33, %v907_v32  ;;  %v909_v53 = vld [vmem:[%s11454_s21 + $0x13a] sm:$0xff]  ;;  %v1865_v32 = vsel %vm506_vm0, %v11592_v13, 0 }
  0x39   : > { %v11719_v41 = vpack.c.bf16 %v381_v31, %v380_v24  ;;  %v910_v54 = vld [vmem:[%s11454_s21 + $0x142] sm:$0xff]  ;;  %v911_v56 = vld [vmem:[%s11454_s21 + $0x152] sm:$0xff]  ;;  %v2160_v31 = vsel %vm506_vm0, %v11601_v18, 0  ;;  %v9285_v33 = vld [vmem:[%s15326_s1 + $0x1c] sm:$0xf] }
  0x3a   : > { %10240 = vmatmul.mubr.msk.bf16.gmra.mxu0 %vm457_vm1, %v11561_v58  ;;  %v385_v55 = vld [vmem:[%s11454_s21 + $0x140] sm:$0xff]  ;;  %v387_v1 = vld [vmem:[%s11454_s21 + $0x158] sm:$0xff]  ;;  %v11741_v2 = vpack.c.bf16 %v910_v54, %v909_v53  ;;  %v389_v24 = vld [vmem:[%s11454_s21 + $0x170] sm:$0xff] }
  0x3b   : > { %10256 = vmatmul.mubr.msk.bf16.gmra.mxu1 %vm457_vm1, %v11563_v59  ;;  %10295 = vmatprep.mubr.msk.bf16.mxu0 %vm457_vm1, %v915_v60  ;;  %v375_v60 = vld [vmem:[%s11454_s21 + $0xc8] sm:$0xff] }
  0x3c   : > { %10261 = vmatprep.mubr.msk.bf16.mxu1 %vm457_vm1, %v390_v61  ;;  %v11669_v61 = vpack.c.bf16 %v898_v52, %v897_v51  ;;  %v11675_v0 = vpack.c.bf16 %v375_v60, %v374_v57  ;;  %v11723_v51 = vpack.c.bf16 %v383_v39, %v382_v38  ;;  %v384_v52 = vld [vmem:[%s11454_s21 + $0x138] sm:$0xff]  ;;  %v386_v60 = vld [vmem:[%s11454_s21 + $0x150] sm:$0xff]  ;;  %v9185_v54 = vld [vmem:[%s11454_s21 + $0x182] sm:$0xff] }
  0x3d   : > { %v912_v57 = vld [vmem:[%s11454_s21 + $0x15a] sm:$0xff]  ;;  %v11743_v3 = vpack.c.bf16 %v385_v55, %v384_v52  ;;  %v9186_v55 = vld [vmem:[%s11454_s21 + $0x18a] sm:$0xff] }
  0x3e   : > { %v11745_v5 = vpack.c.bf16 %v912_v57, %v911_v56  ;;  %v9235_v52 = vld [vmem:[%s11454_s21 + $0x1a0] sm:$0xff] }
  0x42   : > { %10296 = vmatmul.mubr.msk.bf16.vlgmr.msra.gmra.mxu0 %vm457_vm1, %v11577_v4 }
  0x43   : > { %10262 = vmatmul.mubr.msk.bf16.vlgmr.msra.gmra.mxu1 %vm457_vm1, %v11581_v7  ;;  %10362 = vmatpush3.bf16.msra.mxu0 %v1571_v9  ;;  %v378_v9 = vld [vmem:[%s11454_s21 + $0xf0] sm:$0xff] }
  0x44   : > { %10328 = vmatpush3.bf16.msra.mxu1 %v1277_v8  ;;  %10265 = vmatprep.mubr.msk.bf16.mxu1 %vm457_vm1, %v11587_v10  ;;  %v904_v8 = vld [vmem:[%s11454_s21 + $0xfa] sm:$0xff]  ;;  %v11699_v21 = vpack.c.bf16 %v379_v15, %v378_v9  ;;  %v914_v9 = vld [vmem:[%s11454_s21 + $0x172] sm:$0xff]  ;;  %v388_v15 = vld [vmem:[%s11454_s21 + $0x168] sm:$0xff] }
  0x45   : > { %10299 = vmatprep.mubr.msk.bf16.mxu0 %vm457_vm1, %v11594_v14  ;;  %11187 = vmatprep.subr.msk.bf16.mxu1 %vm506_vm0, %v11592_v13  ;;  %v11697_v20 = vpack.c.bf16 %v904_v8, %v903_v6  ;;  %v11747_v6 = vpack.c.bf16 %v387_v1, %v386_v60  ;;  %v913_v8 = vld [vmem:[%s11454_s21 + $0x16a] sm:$0xff]  ;;  %v11763_v26 = vpack.c.bf16 %v389_v24, %v388_v15 }
  0x46   : > { %11188 = vmatprep.subr.msk.bf16.mxu0 %vm506_vm0, %v11601_v18  ;;  %v11761_v25 = vpack.c.bf16 %v914_v9, %v913_v8 }
  0x4a   : > { %10300 = vmatmul.mubr.msk.bf16.gmra.mxu0 %vm457_vm1, %v11619_v27 }
  0x4b   : > { %10266 = vmatmul.mubr.msk.bf16.gmra.mxu1 %vm457_vm1, %v11623_v28  ;;  %10303 = vmatprep.mubr.msk.bf16.mxu0 %vm457_vm1, %v11625_v29 }
  0x4c   : > { %10269 = vmatprep.mubr.msk.bf16.mxu1 %vm457_vm1, %v11627_v30 }
  0x52   : > { %10304 = vmatmul.mubr.msk.bf16.gmra.mxu0 %vm457_vm1, %v11645_v43 }
  0x53   : > { %10270 = vmatmul.mubr.msk.bf16.gmra.mxu1 %vm457_vm1, %v11647_v44  ;;  %10307 = vmatprep.mubr.msk.bf16.mxu0 %vm457_vm1, %v11649_v45 }
  0x54   : > { %10273 = vmatprep.mubr.msk.bf16.mxu1 %vm457_vm1, %v11651_v50 }
  0x5a   : > { %10308 = vmatmul.mubr.msk.bf16.gmra.mxu0 %vm457_vm1, %v11669_v61 }
  0x5b   : > { %10274 = vmatmul.mubr.msk.bf16.gmra.mxu1 %vm457_vm1, %v11671_v62  ;;  %10311 = vmatprep.mubr.msk.bf16.mxu0 %vm457_vm1, %v11673_v63 }
  0x5c   : > { %10277 = vmatprep.mubr.msk.bf16.mxu1 %vm457_vm1, %v11675_v0 }
  0x62   : > { %10312 = vmatmul.mubr.msk.bf16.gmra.mxu0 %vm457_vm1, %v11693_v16 }
  0x63   : > { %10278 = vmatmul.mubr.msk.bf16.gmra.mxu1 %vm457_vm1, %v11695_v19  ;;  %10315 = vmatprep.mubr.msk.bf16.mxu0 %vm457_vm1, %v11697_v20 }
  0x64   : > { %10281 = vmatprep.mubr.msk.bf16.mxu1 %vm457_vm1, %v11699_v21 }
  0x6a   : > { %10316 = vmatmul.mubr.msk.bf16.gmra.mxu0 %vm457_vm1, %v11717_v40 }
  0x6b   : > { %10282 = vmatmul.mubr.msk.bf16.gmra.mxu1 %vm457_vm1, %v11719_v41  ;;  %10319 = vmatprep.mubr.msk.bf16.mxu0 %vm457_vm1, %v11721_v42 }
  0x6c   : > { %10285 = vmatprep.mubr.msk.bf16.mxu1 %vm457_vm1, %v11723_v51 }
  0x72   : > { %10320 = vmatmul.mubr.msk.bf16.gmra.mxu0 %vm457_vm1, %v11741_v2 }
  0x73   : > { %10286 = vmatmul.mubr.msk.bf16.gmra.mxu1 %vm457_vm1, %v11743_v3  ;;  %10323 = vmatprep.mubr.msk.bf16.mxu0 %vm457_vm1, %v11745_v5 }
  0x74   : > { %10289 = vmatprep.mubr.msk.bf16.mxu1 %vm457_vm1, %v11747_v6 }
  0x7a   : > { %10324 = vmatmul.mubr.msk.bf16.gmra.mxu0 %vm457_vm1, %v11761_v25 }
  0x7b   : > { %10290 = vmatmul.mubr.msk.bf16.gmra.mxu1 %vm457_vm1, %v11763_v26  ;;  %10363 = vmatprep.mubr.msk.bf16.mxu0 %vm457_vm1, %v11464_v12  ;;  %v9334_v12 = vld [vmem:[%s15326_s1 + $0x20] sm:$0xf] }
  0x7c   : > { %10329 = vmatprep.mubr.msk.bf16.mxu1 %vm457_vm1, %v11581_v7 }
  0x82   : > { %10364 = vmatmul.mubr.msk.bf16.vlgmr.msra.gmra.mxu0 %vm457_vm1, %v11481_v22 }
  0x83   : > { %10330 = vmatmul.mubr.msk.bf16.vlgmr.msra.gmra.mxu1 %vm457_vm1, %v11587_v10  ;;  %10430 = vmatpush3.bf16.msra.mxu0 %v2160_v31 }
  0x84   : > { %10396 = vmatpush3.bf16.msra.mxu1 %v1865_v32  ;;  %10333 = vmatprep.mubr.msk.bf16.mxu1 %vm457_vm1, %v11623_v28 }
  0x85   : > { %10367 = vmatprep.mubr.msk.bf16.mxu0 %vm457_vm1, %v11511_v34  ;;  %11189 = vmatprep.subr.msk.bf16.mxu1 %vm506_vm0, %v9285_v33 }
  0x86   : > { %11190 = vmatprep.subr.msk.bf16.mxu0 %vm506_vm0, %v9334_v12 }
  0x8a   : > { %10368 = vmatmul.mubr.msk.bf16.gmra.mxu0 %vm457_vm1, %v11517_v36 }
  0x8b   : > { %10334 = vmatmul.mubr.msk.bf16.gmra.mxu1 %vm457_vm1, %v11627_v30  ;;  %10371 = vmatprep.mubr.msk.bf16.mxu0 %vm457_vm1, %v11537_v46 }
  0x8c   : > { %10337 = vmatprep.mubr.msk.bf16.mxu1 %vm457_vm1, %v11647_v44 }
  0x92   : > { %10372 = vmatmul.mubr.msk.bf16.gmra.mxu0 %vm457_vm1, %v11541_v48  ;;  %v2748_v48 = vsel %vm506_vm0, %v9334_v12, 0 }
  0x93   : > { %10338 = vmatmul.mubr.msk.bf16.gmra.mxu1 %vm457_vm1, %v11651_v50  ;;  %10375 = vmatprep.mubr.msk.bf16.mxu0 %vm457_vm1, %v11561_v58 }
  0x94   : > { %10341 = vmatprep.mubr.msk.bf16.mxu1 %vm457_vm1, %v11671_v62 }
  0x9a   : > { %10376 = vmatmul.mubr.msk.bf16.gmra.mxu0 %vm457_vm1, %v11462_v11  ;;  %v9136_v11 = vld [vmem:[%s11454_s21 + $0x181] sm:$0xff] }
  0x9b   : > { %10342 = vmatmul.mubr.msk.bf16.gmra.mxu1 %vm457_vm1, %v11675_v0  ;;  %10379 = vmatprep.mubr.msk.bf16.mxu0 %vm457_vm1, %v11471_v17  ;;  %v9137_v17 = vld [vmem:[%s11454_s21 + $0x189] sm:$0xff] }
  0x9c   : > { %10345 = vmatprep.mubr.msk.bf16.mxu1 %vm457_vm1, %v11695_v19 }
  0xa2   : > { %10380 = vmatmul.mubr.msk.bf16.gmra.mxu0 %vm457_vm1, %v11483_v23  ;;  %v9087_v23 = vld [vmem:[%s11454_s21 + $0x180] sm:$0xff] }
  0xa3   : > { %10346 = vmatmul.mubr.msk.bf16.gmra.mxu1 %vm457_vm1, %v11699_v21  ;;  %10383 = vmatprep.mubr.msk.bf16.mxu0 %vm457_vm1, %v11515_v35  ;;  %v9088_v35 = vld [vmem:[%s11454_s21 + $0x188] sm:$0xff] }
  0xa4   : > { %10349 = vmatprep.mubr.msk.bf16.mxu1 %vm457_vm1, %v11719_v41 }
  0xaa   : > { %10384 = vmatmul.mubr.msk.bf16.gmra.mxu0 %vm457_vm1, %v11519_v37  ;;  %v11845_v37 = vpack.c.bf16 %v9137_v17, %v9136_v11 }
  0xab   : > { %10350 = vmatmul.mubr.msk.bf16.gmra.mxu1 %vm457_vm1, %v11723_v51  ;;  %10387 = vmatprep.mubr.msk.bf16.mxu0 %vm457_vm1, %v11539_v47  ;;  %v1225_v47 = vpack.c.bf16 %v9088_v35, %v9087_v23  ;;  %v9261_v23 = vld [vmem:[%s11454_s21 + $0x91] sm:$0xff]  ;;  %v9262_v35 = vld [vmem:[%s11454_s21 + $0x99] sm:$0xff] }
  0xac   : > { %10353 = vmatprep.mubr.msk.bf16.mxu1 %vm457_vm1, %v11743_v3 }
  0xb2   : > { %10388 = vmatmul.mubr.msk.bf16.gmra.mxu0 %vm457_vm1, %v11543_v49  ;;  %v2454_v49 = vsel %vm506_vm0, %v9285_v33, 0 }
  0xb3   : > { %10354 = vmatmul.mubr.msk.bf16.gmra.mxu1 %vm457_vm1, %v11747_v6  ;;  %10391 = vmatprep.mubr.msk.bf16.mxu0 %vm457_vm1, %v11563_v59 }
  0xb4   : > { %10357 = vmatprep.mubr.msk.bf16.mxu1 %vm457_vm1, %v11763_v26 }
  0xba   : > { %10392 = vmatmul.mubr.msk.bf16.gmra.mxu0 %vm457_vm1, %v11845_v37 }
  0xbb   : > { %10358 = vmatmul.mubr.msk.bf16.gmra.mxu1 %vm457_vm1, %v1225_v47  ;;  %10431 = vmatprep.mubr.msk.bf16.mxu0 %vm457_vm1, %v11587_v10 }
  0xbc   : > { %10397 = vmatprep.mubr.msk.bf16.mxu1 %vm457_vm1, %v11577_v4 }
  0xc2   : > { %10432 = vmatmul.mubr.msk.bf16.vlgmr.msra.gmra.mxu0 %vm457_vm1, %v11623_v28 }
  0xc3   : > { %10398 = vmatmul.mubr.msk.bf16.vlgmr.msra.gmra.mxu1 %vm457_vm1, %v11594_v14  ;;  %10498 = vmatpush3.bf16.msra.mxu0 %v2748_v48 }
  0xc4   : > { %10464 = vmatpush3.bf16.msra.mxu1 %v2454_v49  ;;  %10401 = vmatprep.mubr.msk.bf16.mxu1 %vm457_vm1, %v11619_v27 }
  0xc5   : > { %10435 = vmatprep.mubr.msk.bf16.mxu0 %vm457_vm1, %v11627_v30 }
  0xca   : > { %10436 = vmatmul.mubr.msk.bf16.gmra.mxu0 %vm457_vm1, %v11647_v44 }
  0xcb   : > { %10402 = vmatmul.mubr.msk.bf16.gmra.mxu1 %vm457_vm1, %v11625_v29  ;;  %10439 = vmatprep.mubr.msk.bf16.mxu0 %vm457_vm1, %v11651_v50 }
  0xcc   : > { %10405 = vmatprep.mubr.msk.bf16.mxu1 %vm457_vm1, %v11645_v43 }
  0xd2   : > { %10440 = vmatmul.mubr.msk.bf16.gmra.mxu0 %vm457_vm1, %v11671_v62 }
  0xd3   : > { %10406 = vmatmul.mubr.msk.bf16.gmra.mxu1 %vm457_vm1, %v11649_v45  ;;  %10443 = vmatprep.mubr.msk.bf16.mxu0 %vm457_vm1, %v11675_v0 }
  0xd4   : > { %10409 = vmatprep.mubr.msk.bf16.mxu1 %vm457_vm1, %v11669_v61 }
  0xda   : > { %10444 = vmatmul.mubr.msk.bf16.gmra.mxu0 %vm457_vm1, %v11695_v19 }
  0xdb   : > { %10410 = vmatmul.mubr.msk.bf16.gmra.mxu1 %vm457_vm1, %v11673_v63  ;;  %10447 = vmatprep.mubr.msk.bf16.mxu0 %vm457_vm1, %v11699_v21 }
  0xdc   : > { %10413 = vmatprep.mubr.msk.bf16.mxu1 %vm457_vm1, %v11693_v16 }
  0xe2   : > { %v10229_v58 = vpop.f32.mrf.mxu0  ;;  %10448 = vmatmul.mubr.msk.bf16.gmra.mxu0 %vm457_vm1, %v11719_v41 }
  0xe3   : > { %v11890_v59 = vpop.f32.mrf.mxu1  ;;  %10414 = vmatmul.mubr.msk.bf16.gmra.mxu1 %vm457_vm1, %v11697_v20  ;;  %10451 = vmatprep.mubr.msk.bf16.mxu0 %vm457_vm1, %v11723_v51  ;;  %v9234_v51 = vld [vmem:[%s11454_s21 + $0x198] sm:$0xff] }
  0xe4   : > { %v544_v4 = vpop.f32.mrf.mxu0  ;;  %10417 = vmatprep.mubr.msk.bf16.mxu1 %vm457_vm1, %v11717_v40  ;;  %v2108_v60 = vpack.c.bf16 %v9235_v52, %v9234_v51 }
  0xe5   : > { %v11898_v7 = vpop.f32.mrf.mxu1 }
  0xe6   : > { %v10230_v10 = vpop.f32.mrf.mxu0 }
  0xe7   : > { %v11900_v13 = vpop.f32.mrf.mxu1 }
  0xe8   : > { %v11902_v18 = vpop.f32.mrf.mxu0 }
  0xe9   : > { %v11904_v28 = vpop.f32.mrf.mxu1 }
  0xea   : > { %v11906_v30 = vpop.f32.mrf.mxu0  ;;  %10452 = vmatmul.mubr.msk.bf16.gmra.mxu0 %vm457_vm1, %v11743_v3  ;;  %v11953_v3 = vpack.c.bf16 %v9186_v55, %v9185_v54 }
  0xeb   : > { %v11910_v44 = vpop.f32.mrf.mxu1  ;;  %10418 = vmatmul.mubr.msk.bf16.gmra.mxu1 %vm457_vm1, %v11721_v42  ;;  %10455 = vmatprep.mubr.msk.bf16.mxu0 %vm457_vm1, %v11747_v6 }
  0xec   : > { %v11916_v50 = vpop.f32.mrf.mxu0  ;;  %10421 = vmatprep.mubr.msk.bf16.mxu1 %vm457_vm1, %v11741_v2 }
  0xed   : > { %v11920_v62 = vpop.f32.mrf.mxu1 }
  0xee   : > { %v11922_v0 = vpop.f32.mrf.mxu0 }
  0xef   : > { %v11924_v19 = vpop.f32.mrf.mxu1 }
  0xf0   : > { %v11926_v21 = vpop.f32.mrf.mxu0 }
  0xf1   : > { %v11928_v38 = vpop.f32.mrf.mxu1 }
  0xf2   : > { %v11930_v39 = vpop.f32.mrf.mxu0  ;;  %10456 = vmatmul.mubr.msk.bf16.gmra.mxu0 %vm457_vm1, %v11763_v26 }
  0xf3   : > { %v11934_v41 = vpop.f32.mrf.mxu1  ;;  %10422 = vmatmul.mubr.msk.bf16.gmra.mxu1 %vm457_vm1, %v11745_v5  ;;  %10459 = vmatprep.mubr.msk.bf16.mxu0 %vm457_vm1, %v1225_v47 }
  0xf4   : > { %v11941_v53 = vpop.f32.mrf.mxu0  ;;  %10425 = vmatprep.mubr.msk.bf16.mxu1 %vm457_vm1, %v11761_v25 }
  0xf5   : > { %v11947_v56 = vpop.f32.mrf.mxu1 }
  0xf6   : > { %v11949_v57 = vpop.f32.mrf.mxu0 }
  0xf7   : > { %v11951_v1 = vpop.f32.mrf.mxu1 }
  0xf8   : > { %v11955_v6 = vpop.f32.mrf.mxu0 }
  0xf9   : > { %v11957_v8 = vpop.f32.mrf.mxu1 }
  0xfa   : > { %v11959_v9 = vpop.f32.mrf.mxu0  ;;  %10460 = vmatmul.mubr.msk.bf16.gmra.mxu0 %vm457_vm1, %v2108_v60 }
  0xfb   : > { %v11962_v15 = vpop.f32.mrf.mxu1  ;;  %10426 = vmatmul.mubr.msk.bf16.gmra.mxu1 %vm457_vm1, %v11953_v3  ;;  %10499 = vmatprep.mubr.msk.bf16.mxu0 %vm457_vm1, %v11594_v14 }
  0xfc   : > { %v11968_v24 = vpop.f32.mrf.mxu0  ;;  %10465 = vmatprep.mubr.msk.bf16.mxu1 %vm457_vm1, %v11481_v22 }
  0xfd   : > { %v11972_v25 = vpop.f32.mrf.mxu1 }
  0xfe   : > { %v11974_v26 = vpop.f32.mrf.mxu0 }
  0xff   : > { %v11976_v31 = vpop.f32.mrf.mxu1 }
 0x100   : > { %v11978_v32 = vpop.f32.mrf.mxu0 }
 0x101   : > { %v11980_v33 = vpop.f32.mrf.mxu1 }
 0x102   : > { %v10297_v12 = vpop.f32.mrf.mxu0  ;;  %10500 = vmatmul.mubr.msk.bf16.vlgmr.msra.gmra.mxu0 %vm457_vm1, %v11619_v27 }
 0x103   : > { %v10263_v14 = vpop.f32.mrf.mxu1  ;;  %10466 = vmatmul.mubr.msk.bf16.vlgmr.msra.gmra.mxu1 %vm457_vm1, %v11511_v34  ;;  %10503 = vmatprep.mubr.msk.bf16.mxu0 %vm457_vm1, %v11625_v29  ;;  %v2391_v29 = vpack.c.bf16 %v9262_v35, %v9261_v23 }
 0x104   : > { %v765_v22 = vadd.f32 %v10263_v14, %v10229_v58  ;;  %v1018_v11 = vpop.f32.mrf.mxu0  ;;  %10469 = vmatprep.mubr.msk.bf16.mxu1 %vm457_vm1, %v11517_v36  ;;  %v9263_v14 = vld [vmem:[%s11454_s21 + $0xa9] sm:$0xff] }
 0x105   : > { %v756_v17 = vpop.f32.mrf.mxu1 }
 0x106   : > { %v11992_v47 = vadd.f32 %v10297_v12, %v765_v22  ;;  %v757_v48 = vadd.f32 %v756_v17, %v544_v4  ;;  %v10298_v49 = vpop.f32.mrf.mxu0  ;;  %v9266_v17 = vld [vmem:[%s11454_s21 + $0xc9] sm:$0xff] }
 0x107   : > { %v10264_v27 = vpop.f32.mrf.mxu1 }
 0x108   : > { %v11994_v51 = vadd.f32 %v1018_v11, %v757_v48  ;;  %v768_v34 = vadd.f32 %v10264_v27, %v10230_v10  ;;  %v1021_v52 = vpop.f32.mrf.mxu0  ;;  %v9265_v11 = vld [vmem:[%s11454_s21 + $0xc1] sm:$0xff] }
 0x109   : > { %v759_v58 = vpop.f32.mrf.mxu1  ;;  %v2393_v27 = vpack.c.bf16 %v9266_v17, %v9265_v11 }
 0x10a   : > { %v11996_v54 = vadd.f32 %v10298_v49, %v768_v34  ;;  %v760_v36 = vadd.f32 %v759_v58, %v11902_v18  ;;  %v10301_v55 = vpop.f32.mrf.mxu0  ;;  %10504 = vmatmul.mubr.msk.bf16.gmra.mxu0 %vm457_vm1, %v11645_v43  ;;  %v9264_v18 = vld [vmem:[%s11454_s21 + $0xb1] sm:$0xff] }
 0x10b   : > { %v10267_v4 = vpop.f32.mrf.mxu1  ;;  %10470 = vmatmul.mubr.msk.bf16.gmra.mxu1 %vm457_vm1, %v11537_v46  ;;  %10507 = vmatprep.mubr.msk.bf16.mxu0 %vm457_vm1, %v11649_v45  ;;  %v2392_v48 = vpack.c.bf16 %v9264_v18, %v9263_v14  ;;  %v9270_v14 = vld [vmem:[%s11454_s21 + $0xf9] sm:$0xff] }
 0x10c   : > { %v12005_v10 = vadd.f32 %v1021_v52, %v760_v36  ;;  %v781_v60 = vadd.f32 %v10267_v4, %v11906_v30  ;;  %v1034_v12 = vpop.f32.mrf.mxu0  ;;  %10473 = vmatprep.mubr.msk.bf16.mxu1 %vm457_vm1, %v2391_v29  ;;  %v9267_v4 = vld [vmem:[%s11454_s21 + $0xd9] sm:$0xff] }
 0x10d   : > { %v772_v22 = vpop.f32.mrf.mxu1 }
 0x10e   : > { %v12013_v43 = vadd.f32 %v10301_v55, %v781_v60  ;;  %v773_v23 = vadd.f32 %v772_v22, %v11916_v50  ;;  %v10302_v46 = vpop.f32.mrf.mxu0  ;;  %v9268_v60 = vld [vmem:[%s11454_s21 + $0xe1] sm:$0xff] }
 0x10f   : > { %v10268_v35 = vpop.f32.mrf.mxu1  ;;  %v2394_v17 = vpack.c.bf16 %v9268_v60, %v9267_v4 }
 0x110   : > { %v12016_v45 = vadd.f32 %v1034_v12, %v773_v23  ;;  %v784_v30 = vadd.f32 %v10268_v35, %v11922_v0  ;;  %v1037_v49 = vpop.f32.mrf.mxu0  ;;  %v9269_v12 = vld [vmem:[%s11454_s21 + $0xf1] sm:$0xff] }
 0x111   : > { %v775_v34 = vpop.f32.mrf.mxu1 }
 0x112   : > { %v12019_v52 = vadd.f32 %v10302_v46, %v784_v30  ;;  %v776_v29 = vadd.f32 %v775_v34, %v11926_v21  ;;  %v10305_v58 = vpop.f32.mrf.mxu0  ;;  %10508 = vmatmul.mubr.msk.bf16.gmra.mxu0 %vm457_vm1, %v11669_v61  ;;  %v2395_v46 = vpack.c.bf16 %v9270_v14, %v9269_v12 }
 0x113   : > { %v10271_v50 = vpop.f32.mrf.mxu1  ;;  %10474 = vmatmul.mubr.msk.bf16.gmra.mxu1 %vm457_vm1, %v2392_v48  ;;  %10511 = vmatprep.mubr.msk.bf16.mxu0 %vm457_vm1, %v11673_v63 }
 0x114   : > { %v12027_v0 = vadd.f32 %v1037_v49, %v776_v29  ;;  %v797_v36 = vadd.f32 %v10271_v50, %v11930_v39  ;;  %v1050_v55 = vpop.f32.mrf.mxu0  ;;  %10477 = vmatprep.mubr.msk.bf16.mxu1 %vm457_vm1, %v2393_v27  ;;  %v9271_v29 = vld [vmem:[%s11454_s21 + $0x109] sm:$0xff]  ;;  %v9273_v50 = vld [vmem:[%s11454_s21 + $0x121] sm:$0xff] }
 0x115   : > { %v788_v21 = vpop.f32.mrf.mxu1 }
 0x116   : > { %v12035_v18 = vadd.f32 %v10305_v58, %v797_v36  ;;  %v789_v61 = vadd.f32 %v788_v21, %v11941_v53  ;;  %v10306_v22 = vpop.f32.mrf.mxu0  ;;  %v9272_v58 = vld [vmem:[%s11454_s21 + $0x111] sm:$0xff]  ;;  %v9274_v36 = vld [vmem:[%s11454_s21 + $0x129] sm:$0xff] }
 0x117   : > { %v10272_v11 = vpop.f32.mrf.mxu1  ;;  %v2396_v21 = vpack.c.bf16 %v9272_v58, %v9271_v29  ;;  %v2397_v14 = vpack.c.bf16 %v9274_v36, %v9273_v50 }
 0x118   : > { %v12038_v63 = vadd.f32 %v1050_v55, %v789_v61  ;;  %v800_v39 = vadd.f32 %v10272_v11, %v11949_v57  ;;  %v1053_v23 = vpop.f32.mrf.mxu0  ;;  %v11232_v61 = vld [vmem:[%s15329_s4 + $0x18] sm:$0xff]  }
 0x119   : > { %v791_v35 = vpop.f32.mrf.mxu1  ;;  %10531 = vmatprep.subr.bf16.mxu1 %v11232_v61 }
 0x11a   : > { %v12041_v48 = vadd.f32 %v10306_v22, %v800_v39  ;;  %v792_v30 = vadd.f32 %v791_v35, %v11955_v6  ;;  %v10309_v49 = vpop.f32.mrf.mxu0  ;;  %10512 = vmatmul.mubr.msk.bf16.gmra.mxu0 %vm457_vm1, %v11693_v16  ;;  %v9276_v35 = vld [vmem:[%s11454_s21 + $0x141] sm:$0xff]  ;;  %10532 = vmatpush3.bf16.msra.mxu1 %v11232_v61 }
 0x11b   : > { %v10275_v53 = vpop.f32.mrf.mxu1  ;;  %10478 = vmatmul.mubr.msk.bf16.gmra.mxu1 %vm457_vm1, %v2394_v17  ;;  %10515 = vmatprep.mubr.msk.bf16.mxu0 %vm457_vm1, %v11697_v20 }
 0x11c   : > { %v12049_v57 = vadd.f32 %v1053_v23, %v792_v30  ;;  %v813_v27 = vadd.f32 %v10275_v53, %v11959_v9  ;;  %v1066_v34 = vpop.f32.mrf.mxu0  ;;  %10481 = vmatprep.mubr.msk.bf16.mxu1 %vm457_vm1, %v2395_v46 }
 0x11d   : > { %v804_v6 = vpop.f32.mrf.mxu1 }
 0x11e   : > { %v12057_v55 = vadd.f32 %v10309_v49, %v813_v27  ;;  %v805_v16 = vadd.f32 %v804_v6, %v11968_v24  ;;  %v10310_v4 = vpop.f32.mrf.mxu0  ;;  %v9277_v49 = vld [vmem:[%s11454_s21 + $0x151] sm:$0xff] }
 0x11f   : > { %v10276_v60 = vpop.f32.mrf.mxu1 }
 0x120   : > { %v12060_v20 = vadd.f32 %v1066_v34, %v805_v16  ;;  %v816_v12 = vadd.f32 %v10276_v60, %v11974_v26  ;;  %v1069_v9 = vpop.f32.mrf.mxu0  ;;  %v9328_v60 = vld [vmem:[%s11454_s21 + $0x16a] sm:$0xff] }
 0x121   : > { %v807_v22 = vpop.f32.mrf.mxu1 }
 0x122   : > { %v12066_v11 = vadd.f32 %v10310_v4, %v816_v12  ;;  %v808_v24 = vadd.f32 %v807_v22, %v11978_v32  ;;  %v10313_v17 = vpop.f32.mrf.mxu0  ;;  %10516 = vmatmul.mubr.msk.bf16.gmra.mxu0 %vm457_vm1, %v11717_v40  ;;  %v9275_v32 = vld [vmem:[%s11454_s21 + $0x139] sm:$0xff] }
 0x123   : > { %v10279_v26 = vpop.f32.mrf.mxu1  ;;  %10482 = vmatmul.mubr.msk.bf16.gmra.mxu1 %vm457_vm1, %v2396_v21  ;;  %10519 = vmatprep.mubr.msk.bf16.mxu0 %vm457_vm1, %v11721_v42  ;;  %v9278_v40 = vld [vmem:[%s11454_s21 + $0x159] sm:$0xff]  ;;  %v2398_v29 = vpack.c.bf16 %v9276_v35, %v9275_v32 }
 0x124   : > { %v12074_v39 = vadd.f32 %v1069_v9, %v808_v24  ;;  %v829_v23 = vadd.f32 %v10279_v26, %v11890_v59  ;;  %v1082_v46 = vpop.f32.mrf.mxu0  ;;  %10485 = vmatprep.mubr.msk.bf16.mxu1 %vm457_vm1, %v2397_v14  ;;  %v2399_v50 = vpack.c.bf16 %v9278_v40, %v9277_v49  ;;  %v9279_v9 = vld [vmem:[%s11454_s21 + $0x169] sm:$0xff]  ;;  %v9280_v14 = vld [vmem:[%s11454_s21 + $0x171] sm:$0xff]  ;;  %v9332_v49 = vld [vmem:[%s11454_s21 + $0x19a] sm:$0xff] }
 0x125   : > { %v820_v30 = vpop.f32.mrf.mxu1  ;;  %v9333_v40 = vld [vmem:[%s11454_s21 + $0x1a2] sm:$0xff] }
 0x126   : > { %v12082_v53 = vadd.f32 %v10313_v17, %v829_v23  ;;  %v821_v27 = vadd.f32 %v820_v30, %v11898_v7  ;;  %v10314_v42 = vpop.f32.mrf.mxu0 }
 0x127   : > { %v10280_v34 = vpop.f32.mrf.mxu1 }
 0x128   : > { %v12085_v58 = vadd.f32 %v1082_v46, %v821_v27  ;;  %v832_v59 = vadd.f32 %v10280_v34, %v11900_v13  ;;  %v12088_v6 = vpop.f32.mrf.mxu0  ;;  %v9329_v13 = vld [vmem:[%s11454_s21 + $0x172] sm:$0xff]  ;;  %v9284_v34 = vld [vmem:[%s11454_s21 + $0x1a1] sm:$0xff] }
 0x129   : > { %v12090_v36 = vpop.f32.mrf.mxu1  ;;  %v2694_v17 = vpack.c.bf16 %v9329_v13, %v9328_v60 }
 0x12a   : > { %v12092_v16 = vadd.f32 %v10314_v42, %v832_v59  ;;  %v10317_v4 = vpop.f32.mrf.mxu0  ;;  %10520 = vmatmul.mubr.msk.bf16.gmra.mxu0 %vm457_vm1, %v11741_v2  ;;  %v9283_v42 = vld [vmem:[%s11454_s21 + $0x199] sm:$0xff]  ;;  %s8945_s21 = scalar_lea.hbm %s15335_s10, %s9745_s20 }
 0x12b   : > { %v10283_v7 = vpop.f32.mrf.mxu1  ;;  %10486 = vmatmul.mubr.msk.bf16.gmra.mxu1 %vm457_vm1, %v2398_v29  ;;  %10523 = vmatprep.mubr.msk.bf16.mxu0 %vm457_vm1, %v11745_v5  ;;  %v2400_v5 = vpack.c.bf16 %v9280_v14, %v9279_v9  ;;  %v2402_v13 = vpack.c.bf16 %v9284_v34, %v9283_v42 }
 0x12c   : > { %v845_v21 = vadd.f32 %v10283_v7, %v11910_v44  ;;  %v1098_v12 = vpop.f32.mrf.mxu0  ;;  %10489 = vmatprep.mubr.msk.bf16.mxu1 %vm457_vm1, %v2399_v50  ;;  %v2696_v7 = vpack.c.bf16 %v9333_v40, %v9332_v49 }
 0x12d   : > { %v836_v61 = vpop.f32.mrf.mxu1 }
 0x12e   : > { %v12105_v22 = vadd.f32 %v10317_v4, %v845_v21  ;;  %v837_v2 = vadd.f32 %v836_v61, %v11920_v62  ;;  %v10318_v24 = vpop.f32.mrf.mxu0 }
 0x12f   : > { %v10284_v26 = vpop.f32.mrf.mxu1 }
 0x130   : > { %v12108_v23 = vadd.f32 %v1098_v12, %v837_v2  ;;  %v848_v44 = vadd.f32 %v10284_v26, %v11924_v19  ;;  %v12111_v46 = vpop.f32.mrf.mxu0 }
 0x131   : > { %v12113_v32 = vpop.f32.mrf.mxu1 }
 0x132   : > { %v12115_v35 = vadd.f32 %v10318_v24, %v848_v44  ;;  %v10321_v30 = vpop.f32.mrf.mxu0  ;;  %10524 = vmatmul.mubr.msk.bf16.gmra.mxu0 %vm457_vm1, %v2694_v17 }
 0x133   : > { %v10287_v62 = vpop.f32.mrf.mxu1  ;;  %10490 = vmatmul.mubr.msk.bf16.gmra.mxu1 %vm457_vm1, %v2400_v5  ;;  %10527 = vmatprep.mubr.msk.bf16.mxu0 %vm457_vm1, %v11953_v3 }
 0x134   : > { %v861_v27 = vadd.f32 %v10287_v62, %v11934_v41  ;;  %v1114_v19 = vpop.f32.mrf.mxu0  ;;  %10493 = vmatprep.mubr.msk.bf16.mxu1 %vm457_vm1, %v11845_v37  ;;  %v11233_v62 = vld [vmem:[%s15329_s4 + $0x10] sm:$0xff]  }
 0x135   : > { %v852_v29 = vpop.f32.mrf.mxu1  ;;  %10533 = vmatprep.subr.bf16.mxu1 %v11233_v62 }
 0x136   : > { %v12128_v59 = vadd.f32 %v10321_v30, %v861_v27  ;;  %v853_v50 = vadd.f32 %v852_v29, %v11947_v56  ;;  %v10322_v4 = vpop.f32.mrf.mxu0  ;;  %10534 = vmatpush3.bf16.msra.mxu1 %v11233_v62 }
 0x137   : > { %v10288_v60 = vpop.f32.mrf.mxu1 }
 0x138   : > { %v12131_v3 = vadd.f32 %v1114_v19, %v853_v50  ;;  %v864_v21 = vadd.f32 %v10288_v60, %v11951_v1  ;;  %v12134_v41 = vpop.f32.mrf.mxu0 }
 0x139   : > { %v12136_v12 = vpop.f32.mrf.mxu1 }
 0x13a   : > { %v12138_v37 = vadd.f32 %v10322_v4, %v864_v21  ;;  %v10325_v9 = vpop.f32.mrf.mxu0  ;;  %10528 = vmatmul.mubr.msk.bf16.gmra.mxu0 %vm457_vm1, %v2696_v7 }
 0x13b   : > { %v10291_v14 = vpop.f32.mrf.mxu1  ;;  %10494 = vmatmul.mubr.msk.bf16.gmra.mxu1 %vm457_vm1, %v2402_v13 }
 0x13c   : > { %v877_v56 = vadd.f32 %v10291_v14, %v11962_v15  ;;  %v1130_v61 = vpop.f32.mrf.mxu0 }
 0x13d   : > { %v868_v2 = vpop.f32.mrf.mxu1 }
 0x13e   : > { %v12143_v24 = vadd.f32 %v10325_v9, %v877_v56  ;;  %v869_v1 = vadd.f32 %v868_v2, %v11972_v25  ;;  %v10326_v17 = vpop.f32.mrf.mxu0 }
 0x13f   : > { %v10292_v26 = vpop.f32.mrf.mxu1 }
 0x140   : > { %v12146_v5 = vadd.f32 %v1130_v61, %v869_v1  ;;  %v880_v44 = vadd.f32 %v10292_v26, %v11976_v31  ;;  %v12149_v30 = vpop.f32.mrf.mxu0  ;;  %v11330_v61 = vmov 0.0  }
 0x141   : > { %v12154_v49 = vpop.f32.mrf.mxu1  ;;  %3061 = vst.msk [vmem:[#allocation2 + $0x30] sm:$0xff] %vm3053_vm2, %v11330_v61  ;;  %3062 = vst.msk [vmem:[#allocation2 + $0x38] sm:$0xff] %vm3053_vm2, %v11330_v61 }
 0x142   : > { %v12156_v15 = vadd.f32 %v10326_v17, %v880_v44  ;;  %v10365_v40 = vpop.f32.mrf.mxu0  ;;  %3054 = vst.msk [vmem:[#allocation2] sm:$0xff] %vm3053_vm2, %v11330_v61  ;;  %3055 = vst.msk [vmem:[#allocation2 + $0x8] sm:$0xff] %vm3053_vm2, %v11330_v61 }
 0x143   : > { %v10331_v27 = vpop.f32.mrf.mxu1  ;;  %3058 = vst.msk [vmem:[#allocation2 + $0x18] sm:$0xff] %vm3053_vm2, %v11330_v61  ;;  %3059 = vst.msk [vmem:[#allocation2 + $0x20] sm:$0xff] %vm3053_vm2, %v11330_v61 }
 0x144   : > { %v1442_v25 = vadd.f32 %v10331_v27, %v11992_v47  ;;  %v1607_v19 = vpop.f32.mrf.mxu0  ;;  %3064 = vst.msk [vmem:[#allocation2 + $0x48] sm:$0xff] %vm3053_vm2, %v11330_v61  ;;  %3065 = vst.msk [vmem:[#allocation2 + $0x50] sm:$0xff] %vm3053_vm2, %v11330_v61 }
 0x145   : > { %v1313_v42 = vpop.f32.mrf.mxu1  ;;  %3067 = vst.msk [vmem:[#allocation2 + $0x60] sm:$0xff] %vm3053_vm2, %v11330_v61  ;;  %3068 = vst.msk [vmem:[#allocation2 + $0x68] sm:$0xff] %vm3053_vm2, %v11330_v61 }
 0x146   : > { %v12159_v34 = vadd.f32 %v10365_v40, %v1442_v25  ;;  %v1440_v31 = vadd.f32 %v1313_v42, %v11994_v51  ;;  %v10366_v29 = vpop.f32.mrf.mxu0  ;;  %3070 = vst.msk [vmem:[#allocation2 + $0x78] sm:$0xff] %vm3053_vm2, %v11330_v61  ;;  %3071 = vst.msk [vmem:[#allocation2 + $0x80] sm:$0xff] %vm3053_vm2, %v11330_v61  ;;  %v11234_v42 = vld [vmem:[%s15329_s4 + $0x8] sm:$0xff]  }
 0x147   : > { %v10332_v50 = vpop.f32.mrf.mxu1  ;;  %3073 = vst.msk [vmem:[#allocation2 + $0x90] sm:$0xff] %vm3053_vm2, %v11330_v61  ;;  %3074 = vst.msk [vmem:[#allocation2 + $0x98] sm:$0xff] %vm3053_vm2, %v11330_v61  ;;  %10567 = vmatprep.subr.bf16.mxu0 %v11234_v42 }
 0x148   : > { %v12162_v4 = vadd.f32 %v1607_v19, %v1440_v31  ;;  %v1443_v7 = vadd.f32 %v10332_v50, %v11996_v54  ;;  %v12165_v60 = vpop.f32.mrf.mxu0  ;;  %3076 = vst.msk [vmem:[#allocation2 + $0xa8] sm:$0xff] %vm3053_vm2, %v11330_v61  ;;  %3077 = vst.msk [vmem:[#allocation2 + $0xb0] sm:$0xff] %vm3053_vm2, %v11330_v61  ;;  %10568 = vmatpush3.bf16.msra.mxu0 %v11234_v42 }
 0x149   : > { %v12167_v13 = vpop.f32.mrf.mxu1  ;;  %3079 = vst.msk [vmem:[#allocation2 + $0xc0] sm:$0xff] %vm3053_vm2, %v11330_v61  ;;  %3080 = vst.msk [vmem:[#allocation2 + $0xc8] sm:$0xff] %vm3053_vm2, %v11330_v61 }
 0x14a   : > { %v12169_v21 = vadd.f32 %v10366_v29, %v1443_v7  ;;  %v12171_v9 = vpop.f32.mrf.mxu0  ;;  %3082 = vst.msk [vmem:[#allocation2 + $0xd8] sm:$0xff] %vm3053_vm2, %v11330_v61  ;;  %3083 = vst.msk [vmem:[#allocation2 + $0xe0] sm:$0xff] %vm3053_vm2, %v11330_v61 }
 0x14b   : > { %v10335_v47 = vpop.f32.mrf.mxu1  ;;  %3085 = vst.msk [vmem:[#allocation2 + $0xf0] sm:$0xff] %vm3053_vm2, %v11330_v61  ;;  %3086 = vst.msk [vmem:[#allocation2 + $0xf8] sm:$0xff] %vm3053_vm2, %v11330_v61 }
 0x14c   : > { %v12174_v14 = vadd.f32 %v10335_v47, %v12013_v43  ;;  %v12176_v56 = vpop.f32.mrf.mxu0  ;;  %3088 = vst.msk [vmem:[#allocation2 + $0x108] sm:$0xff] %vm3053_vm2, %v11330_v61  ;;  %3089 = vst.msk [vmem:[#allocation2 + $0x110] sm:$0xff] %vm3053_vm2, %v11330_v61 }
 0x14d   : > { %v12178_v51 = vpop.f32.mrf.mxu1  ;;  %3091 = vst.msk [vmem:[#allocation2 + $0x120] sm:$0xff] %vm3053_vm2, %v11330_v61  ;;  %3092 = vst.msk [vmem:[#allocation2 + $0x128] sm:$0xff] %vm3053_vm2, %v11330_v61 }
 0x14e   : > { %3094 = vst.msk [vmem:[#allocation2 + $0x138] sm:$0xff] %vm3053_vm2, %v11330_v61  ;;  %3095 = vst.msk [vmem:[#allocation2 + $0x140] sm:$0xff] %vm3053_vm2, %v11330_v61  ;;  %v12326_v54 = vadd.f32 %v12171_v9, %v12174_v14  ;;  %v1444_v43 = vadd.f32 %v12178_v51, %v12016_v45  ;;  %v10370_v2 = vpop.f32.mrf.mxu0 }
 0x14f   : > { %3097 = vst.msk [vmem:[#allocation2 + $0x150] sm:$0xff] %vm3053_vm2, %v11330_v61  ;;  %3098 = vst.msk [vmem:[#allocation2 + $0x158] sm:$0xff] %vm3053_vm2, %v11330_v61  ;;  %v10336_v1 = vpop.f32.mrf.mxu1 }
 0x150   : > { %3100 = vst.msk [vmem:[#allocation2 + $0x168] sm:$0xff] %vm3053_vm2, %v11330_v61  ;;  %3101 = vst.msk [vmem:[#allocation2 + $0x170] sm:$0xff] %vm3053_vm2, %v11330_v61  ;;  %v12331_v17 = vadd.f32 %v12176_v56, %v1444_v43  ;;  %v1447_v26 = vadd.f32 %v10336_v1, %v12019_v52  ;;  %v12334_v44 = vpop.f32.mrf.mxu0  ;;  %v11235_v56 = vld [vmem:[%s15329_s4] sm:$0xff]  }
 0x151   : > { %3103 = vst.msk [vmem:[#allocation2 + $0x180] sm:$0xff] %vm3053_vm2, %v11330_v61  ;;  %3104 = vst.msk [vmem:[#allocation2 + $0x188] sm:$0xff] %vm3053_vm2, %v11330_v61  ;;  %v12336_v62 = vpop.f32.mrf.mxu1  ;;  %10569 = vmatprep.subr.bf16.mxu0 %v11235_v56  ;;  %v3194_v43 = vld [vmem:[#allocation2 + $0x1] sm:$0xff] }
 0x152   : > { %3106 = vst.msk [vmem:[#allocation2 + $0x198] sm:$0xff] %vm3053_vm2, %v11330_v61  ;;  %3107 = vst.msk [vmem:[#allocation2 + $0x1a0] sm:$0xff] %vm3053_vm2, %v11330_v61  ;;  %v12410_v45 = vadd.f32 %v10370_v2, %v1447_v26  ;;  %v10373_v52 = vpop.f32.mrf.mxu0  ;;  %v3142_v1 = vld [vmem:[#allocation2] sm:$0xff]  ;;  %10570 = vmatpush3.bf16.msra.mxu0 %v11235_v56 }
 0x153   : > { %5942 = vst.msk [vmem:[#allocation3] sm:$0xff] %vm3053_vm2, %v11330_v61  ;;  %5943 = vst.msk [vmem:[#allocation3 + $0x8] sm:$0xff] %vm3053_vm2, %v11330_v61  ;;  %v10339_v40 = vpop.f32.mrf.mxu1 }
 0x154   : > { %5945 = vst.msk [vmem:[#allocation3 + $0x18] sm:$0xff] %vm3053_vm2, %v11330_v61  ;;  %5946 = vst.msk [vmem:[#allocation3 + $0x20] sm:$0xff] %vm3053_vm2, %v11330_v61  ;;  %v1450_v27 = vadd.f32 %v10339_v40, %v12035_v18  ;;  %v1639_v25 = vpop.f32.mrf.mxu0  ;;  %v3143_v40 = vld [vmem:[#allocation2 + $0x8] sm:$0xff] }
 0x155   : > { %5948 = vst.msk [vmem:[#allocation3 + $0x30] sm:$0xff] %vm3053_vm2, %v11330_v61  ;;  %5949 = vst.msk [vmem:[#allocation3 + $0x38] sm:$0xff] %vm3053_vm2, %v11330_v61  ;;  %v1345_v19 = vpop.f32.mrf.mxu1 }
 0x156   : > { %5951 = vst.msk [vmem:[#allocation3 + $0x48] sm:$0xff] %vm3053_vm2, %v11330_v61  ;;  %5952 = vst.msk [vmem:[#allocation3 + $0x50] sm:$0xff] %vm3053_vm2, %v11330_v61  ;;  %v12416_v31 = vadd.f32 %v10373_v52, %v1450_v27  ;;  %v1448_v29 = vadd.f32 %v1345_v19, %v12038_v63  ;;  %v10374_v50 = vpop.f32.mrf.mxu0 }
 0x157   : > { %5954 = vst.msk [vmem:[#allocation3 + $0x60] sm:$0xff] %vm3053_vm2, %v11330_v61  ;;  %5955 = vst.msk [vmem:[#allocation3 + $0x68] sm:$0xff] %vm3053_vm2, %v11330_v61  ;;  %v10340_v7 = vpop.f32.mrf.mxu1 }
 0x158   : > { %5957 = vst.msk [vmem:[#allocation3 + $0x78] sm:$0xff] %vm3053_vm2, %v11330_v61  ;;  %5958 = vst.msk [vmem:[#allocation3 + $0x80] sm:$0xff] %vm3053_vm2, %v11330_v61  ;;  %v12419_v9 = vadd.f32 %v1639_v25, %v1448_v29  ;;  %v1451_v47 = vadd.f32 %v10340_v7, %v12041_v48  ;;  %v12422_v14 = vpop.f32.mrf.mxu0  ;;  %v3174_v25 = vpack.c.bf16 %v3143_v40, %v3142_v1 }
 0x159   : > { %5960 = vst.msk [vmem:[#allocation3 + $0x90] sm:$0xff] %vm3053_vm2, %v11330_v61  ;;  %5961 = vst.msk [vmem:[#allocation3 + $0x98] sm:$0xff] %vm3053_vm2, %v11330_v61  ;;  %v12424_v18 = vpop.f32.mrf.mxu1 }
 0x15a   : > { %5963 = vst.msk [vmem:[#allocation3 + $0xa8] sm:$0xff] %vm3053_vm2, %v11330_v61  ;;  %5964 = vst.msk [vmem:[#allocation3 + $0xb0] sm:$0xff] %vm3053_vm2, %v11330_v61  ;;  %v12429_v51 = vadd.f32 %v10374_v50, %v1451_v47  ;;  %10571 = vmatprep.mubr.msk.bf16.mxu0 %vm3053_vm2, %v3174_v25 }
 0x15b   : > { %5966 = vst.msk [vmem:[#allocation3 + $0xc0] sm:$0xff] %vm3053_vm2, %v11330_v61  ;;  %5967 = vst.msk [vmem:[#allocation3 + $0xc8] sm:$0xff] %vm3053_vm2, %v11330_v61  ;;  %v10343_v63 = vpop.f32.mrf.mxu1 }
 0x15c   : > { %5969 = vst.msk [vmem:[#allocation3 + $0xd8] sm:$0xff] %vm3053_vm2, %v11330_v61  ;;  %5970 = vst.msk [vmem:[#allocation3 + $0xe0] sm:$0xff] %vm3053_vm2, %v11330_v61  ;;  %v1454_v26 = vadd.f32 %v10343_v63, %v12057_v55 }
 0x15d   : > { %5972 = vst.msk [vmem:[#allocation3 + $0xf0] sm:$0xff] %vm3053_vm2, %v11330_v61  ;;  %5973 = vst.msk [vmem:[#allocation3 + $0xf8] sm:$0xff] %vm3053_vm2, %v11330_v61  ;;  %v1361_v27 = vpop.f32.mrf.mxu1 }
 0x15e   : > { %5975 = vst.msk [vmem:[#allocation3 + $0x108] sm:$0xff] %vm3053_vm2, %v11330_v61  ;;  %5976 = vst.msk [vmem:[#allocation3 + $0x110] sm:$0xff] %vm3053_vm2, %v11330_v61  ;;  %v1452_v42 = vadd.f32 %v1361_v27, %v12060_v20 }
 0x15f   : > { %5978 = vst.msk [vmem:[#allocation3 + $0x120] sm:$0xff] %vm3053_vm2, %v11330_v61  ;;  %5979 = vst.msk [vmem:[#allocation3 + $0x128] sm:$0xff] %vm3053_vm2, %v11330_v61  ;;  %v10344_v50 = vpop.f32.mrf.mxu1 }
 0x160   : > { %5981 = vst.msk [vmem:[#allocation3 + $0x138] sm:$0xff] %vm3053_vm2, %v11330_v61  ;;  %5982 = vst.msk [vmem:[#allocation3 + $0x140] sm:$0xff] %vm3053_vm2, %v11330_v61  ;;  %v1455_v55 = vadd.f32 %v10344_v50, %v12066_v11 }
 0x161   : > { %5984 = vst.msk [vmem:[#allocation3 + $0x150] sm:$0xff] %vm3053_vm2, %v11330_v61  ;;  %5985 = vst.msk [vmem:[#allocation3 + $0x158] sm:$0xff] %vm3053_vm2, %v11330_v61  ;;  %v12442_v56 = vpop.f32.mrf.mxu1 }
 0x162   : > { %5987 = vst.msk [vmem:[#allocation3 + $0x168] sm:$0xff] %vm3053_vm2, %v11330_v61  ;;  %5988 = vst.msk [vmem:[#allocation3 + $0x170] sm:$0xff] %vm3053_vm2, %v11330_v61 }
 0x163   : > { %5990 = vst.msk [vmem:[#allocation3 + $0x180] sm:$0xff] %vm3053_vm2, %v11330_v61  ;;  %5991 = vst.msk [vmem:[#allocation3 + $0x188] sm:$0xff] %vm3053_vm2, %v11330_v61 }
 0x164   : > { %5993 = vst.msk [vmem:[#allocation3 + $0x198] sm:$0xff] %vm3053_vm2, %v11330_v61  ;;  %5994 = vst.msk [vmem:[#allocation3 + $0x1a0] sm:$0xff] %vm3053_vm2, %v11330_v61 }
 0x165   : > { %3063 = vst.msk [vmem:[#allocation2 + $0x40] sm:$0x3] %vm3056_vm3, %v11330_v61  ;;  %3057 = vst.msk [vmem:[#allocation2 + $0x10] sm:$0x3] %vm3056_vm3, %v11330_v61 }
 0x166   : > { %3060 = vst.msk [vmem:[#allocation2 + $0x28] sm:$0x3] %vm3056_vm3, %v11330_v61  ;;  %3066 = vst.msk [vmem:[#allocation2 + $0x58] sm:$0x3] %vm3056_vm3, %v11330_v61 }
 0x167   : > { %3069 = vst.msk [vmem:[#allocation2 + $0x70] sm:$0x3] %vm3056_vm3, %v11330_v61  ;;  %3072 = vst.msk [vmem:[#allocation2 + $0x88] sm:$0x3] %vm3056_vm3, %v11330_v61 }
 0x168   : > { %3075 = vst.msk [vmem:[#allocation2 + $0xa0] sm:$0x3] %vm3056_vm3, %v11330_v61  ;;  %3078 = vst.msk [vmem:[#allocation2 + $0xb8] sm:$0x3] %vm3056_vm3, %v11330_v61 }
 0x169   : > { %3081 = vst.msk [vmem:[#allocation2 + $0xd0] sm:$0x3] %vm3056_vm3, %v11330_v61  ;;  %3084 = vst.msk [vmem:[#allocation2 + $0xe8] sm:$0x3] %vm3056_vm3, %v11330_v61 }
 0x16a   : > { %3087 = vst.msk [vmem:[#allocation2 + $0x100] sm:$0x3] %vm3056_vm3, %v11330_v61  ;;  %3090 = vst.msk [vmem:[#allocation2 + $0x118] sm:$0x3] %vm3056_vm3, %v11330_v61 }
 0x16b   : > { %3093 = vst.msk [vmem:[#allocation2 + $0x130] sm:$0x3] %vm3056_vm3, %v11330_v61  ;;  %3096 = vst.msk [vmem:[#allocation2 + $0x148] sm:$0x3] %vm3056_vm3, %v11330_v61 }
 0x16c   : > { %3099 = vst.msk [vmem:[#allocation2 + $0x160] sm:$0x3] %vm3056_vm3, %v11330_v61  ;;  %3102 = vst.msk [vmem:[#allocation2 + $0x178] sm:$0x3] %vm3056_vm3, %v11330_v61  ;;  %v3195_v2 = vld [vmem:[#allocation2 + $0x9] sm:$0xff] }
 0x16d   : > { %3105 = vst.msk [vmem:[#allocation2 + $0x190] sm:$0x3] %vm3056_vm3, %v11330_v61  ;;  %3108 = vst.msk [vmem:[#allocation2 + $0x1a8] sm:$0x3] %vm3056_vm3, %v11330_v61  ;;  %v3226_v52 = vpack.c.bf16 %v3195_v2, %v3194_v43  ;;  %v10347_v43 = vpop.f32.mrf.mxu1 }
 0x16e   : > { %5944 = vst.msk [vmem:[#allocation3 + $0x10] sm:$0x3] %vm3056_vm3, %v11330_v61  ;;  %5947 = vst.msk [vmem:[#allocation3 + $0x28] sm:$0x3] %vm3056_vm3, %v11330_v61  ;;  %v1458_v20 = vadd.f32 %v10347_v43, %v12082_v53 }
 0x16f   : > { %5950 = vst.msk [vmem:[#allocation3 + $0x40] sm:$0x3] %vm3056_vm3, %v11330_v61  ;;  %5953 = vst.msk [vmem:[#allocation3 + $0x58] sm:$0x3] %vm3056_vm3, %v11330_v61  ;;  %10535 = vmatprep.mubr.msk.bf16.mxu1 %vm3053_vm2, %v3226_v52  ;;  %v1377_v1 = vpop.f32.mrf.mxu1 }
 0x170   : > { %5956 = vst.msk [vmem:[#allocation3 + $0x70] sm:$0x3] %vm3056_vm3, %v11330_v61  ;;  %5959 = vst.msk [vmem:[#allocation3 + $0x88] sm:$0x3] %vm3056_vm3, %v11330_v61  ;;  %v1456_v52 = vadd.f32 %v1377_v1, %v12085_v58 }
 0x171   : > { %5962 = vst.msk [vmem:[#allocation3 + $0xa0] sm:$0x3] %vm3056_vm3, %v11330_v61  ;;  %5965 = vst.msk [vmem:[#allocation3 + $0xb8] sm:$0x3] %vm3056_vm3, %v11330_v61  ;;  %v10348_v40 = vpop.f32.mrf.mxu1 }
 0x172   : > { %5968 = vst.msk [vmem:[#allocation3 + $0xd0] sm:$0x3] %vm3056_vm3, %v11330_v61  ;;  %5971 = vst.msk [vmem:[#allocation3 + $0xe8] sm:$0x3] %vm3056_vm3, %v11330_v61  ;;  %v1459_v11 = vadd.f32 %v10348_v40, %v12092_v16 }
 0x173   : > { %5974 = vst.msk [vmem:[#allocation3 + $0x100] sm:$0x3] %vm3056_vm3, %v11330_v61  ;;  %5977 = vst.msk [vmem:[#allocation3 + $0x118] sm:$0x3] %vm3056_vm3, %v11330_v61  ;;  %v12460_v53 = vpop.f32.mrf.mxu1 }
 0x174   : > { %5980 = vst.msk [vmem:[#allocation3 + $0x130] sm:$0x3] %vm3056_vm3, %v11330_v61  ;;  %5983 = vst.msk [vmem:[#allocation3 + $0x148] sm:$0x3] %vm3056_vm3, %v11330_v61 }
 0x175   : > { %5986 = vst.msk [vmem:[#allocation3 + $0x160] sm:$0x3] %vm3056_vm3, %v11330_v61  ;;  %5989 = vst.msk [vmem:[#allocation3 + $0x178] sm:$0x3] %vm3056_vm3, %v11330_v61  ;;  %v10351_v58 = vpop.f32.mrf.mxu1 }
 0x176   : > { %5992 = vst.msk [vmem:[#allocation3 + $0x190] sm:$0x3] %vm3056_vm3, %v11330_v61  ;;  %5995 = vst.msk [vmem:[#allocation3 + $0x1a8] sm:$0x3] %vm3056_vm3, %v11330_v61  ;;  %v10377_v61 = vpop.f32.mrf.mxu0 }
 0x177   : > { %15407 = vst [vmem:[#allocation7_spill] sm:$0xff] %v12429_v51  ;;  %v12432_v19 = vadd.f32 %v10377_v61, %v1454_v26  ;;  %v1393_v43 = vpop.f32.mrf.mxu1 }
 0x178   : > { %v1655_v48 = vpop.f32.mrf.mxu0 }
 0x179   : > { %15408 = vst [vmem:[#allocation8_spill] sm:$0xff] %v12432_v19  ;;  %v12437_v7 = vadd.f32 %v1655_v48, %v1452_v42  ;;  %v12458_v42 = vld [vmem:[%s15329_s4 + $0x28] sm:$0xff]   ;;  %v10352_v1 = vpop.f32.mrf.mxu1 }
 0x17a   : > { %v10378_v29 = vpop.f32.mrf.mxu0  ;;  %15413 = vst [vmem:[#allocation13_spill] sm:$0xff] %v12458_v42  ;;  %10603 = vmatprep.subr.bf16.mxu1 %v12458_v42  ;;  %v1463_v40 = vadd.f32 %v10352_v1, %v12115_v35 }
 0x17b   : > { %15409 = vst [vmem:[#allocation9_spill] sm:$0xff] %v12437_v7  ;;  %v12444_v63 = vadd.f32 %v10378_v29, %v1455_v55  ;;  %v1462_v55 = vadd.f32 %v10351_v58, %v12105_v22 }
 0x17c   : > { %v12440_v47 = vpop.f32.mrf.mxu0 }
 0x17d   : > { %15410 = vst [vmem:[#allocation10_spill] sm:$0xff] %v12444_v63  ;;  %v12547_v63 = vld [vmem:[%s15329_s4 + $0x38] sm:$0xff]  }
 0x17e   : > { %v10381_v61 = vpop.f32.mrf.mxu0  ;;  %15432 = vst [vmem:[#allocation32_spill] sm:$0xff] %v12547_v63  ;;  %10639 = vmatprep.subr.bf16.mxu0 %v12547_v63 }
 0x17f   : > { %v12447_v26 = vadd.f32 %v10381_v61, %v1458_v20  ;;  %v1460_v20 = vadd.f32 %v1393_v43, %v12108_v23 }
 0x180   : > { %v1671_v2 = vpop.f32.mrf.mxu0 }
 0x181   : > { %15411 = vst [vmem:[#allocation11_spill] sm:$0xff] %v12447_v26  ;;  %v12450_v27 = vadd.f32 %v1671_v2, %v1456_v52 }
 0x182   : > { %v10382_v48 = vpop.f32.mrf.mxu0 }
 0x183   : > { %15412 = vst [vmem:[#allocation12_spill] sm:$0xff] %v12450_v27  ;;  %v12462_v29 = vadd.f32 %v10382_v48, %v1459_v11  ;;  %v12474_v11 = vpop.f32.mrf.mxu1 }
 0x184   : > { %v12453_v25 = vpop.f32.mrf.mxu0 }
 0x185   : > { %15414 = vst [vmem:[#allocation14_spill] sm:$0xff] %v12462_v29  ;;  %v10355_v22 = vpop.f32.mrf.mxu1 }
 0x186   : > { %v10385_v50 = vpop.f32.mrf.mxu0  ;;  %v1466_v58 = vadd.f32 %v10355_v22, %v12128_v59 }
 0x187   : > { %v12466_v16 = vadd.f32 %v10385_v50, %v1462_v55  ;;  %v1409_v55 = vpop.f32.mrf.mxu1 }
 0x188   : > { %v1687_v61 = vpop.f32.mrf.mxu0  ;;  %v1464_v23 = vadd.f32 %v1409_v55, %v12131_v3 }
 0x189   : > { %15415 = vst [vmem:[#allocation15_spill] sm:$0xff] %v12466_v16  ;;  %v12469_v52 = vadd.f32 %v1687_v61, %v1460_v20  ;;  %v10356_v43 = vpop.f32.mrf.mxu1 }
 0x18a   : > { %v10386_v2 = vpop.f32.mrf.mxu0  ;;  %v1467_v35 = vadd.f32 %v10356_v43, %v12138_v37 }
 0x18b   : > { %15416 = vst [vmem:[#allocation16_spill] sm:$0xff] %v12469_v52  ;;  %v12476_v42 = vadd.f32 %v10386_v2, %v1463_v40  ;;  %v12487_v2 = vpop.f32.mrf.mxu1 }
 0x18c   : > { %v12472_v48 = vpop.f32.mrf.mxu0 }
 0x18d   : > { %15417 = vst [vmem:[#allocation17_spill] sm:$0xff] %v12476_v42  ;;  %v10359_v59 = vpop.f32.mrf.mxu1 }
 0x18e   : > { %v10389_v29 = vpop.f32.mrf.mxu0  ;;  %v1470_v22 = vadd.f32 %v10359_v59, %v12143_v24 }
 0x18f   : > { %v12479_v16 = vadd.f32 %v10389_v29, %v1466_v58  ;;  %v1425_v58 = vpop.f32.mrf.mxu1 }
 0x190   : > { %v1703_v50 = vpop.f32.mrf.mxu0  ;;  %v1468_v3 = vadd.f32 %v1425_v58, %v12146_v5 }
 0x191   : > { %15418 = vst [vmem:[#allocation18_spill] sm:$0xff] %v12479_v16  ;;  %v12482_v20 = vadd.f32 %v1703_v50, %v1464_v23  ;;  %v10360_v55 = vpop.f32.mrf.mxu1 }
 0x192   : > { %v10390_v61 = vpop.f32.mrf.mxu0  ;;  %v1471_v37 = vadd.f32 %v10360_v55, %v12156_v15 }
 0x193   : > { %15419 = vst [vmem:[#allocation19_spill] sm:$0xff] %v12482_v20  ;;  %v12489_v40 = vadd.f32 %v10390_v61, %v1467_v35  ;;  %v12500_v61 = vpop.f32.mrf.mxu1 }
 0x194   : > { %v12485_v1 = vpop.f32.mrf.mxu0  ;;  %15425 = vst [vmem:[#allocation25_spill] sm:$0xff] %v12500_v61 }
 0x195   : > { %15420 = vst [vmem:[#allocation20_spill] sm:$0xff] %v12485_v1  ;;  %15421 = vst [vmem:[#allocation21_spill] sm:$0xff] %v12489_v40  ;;  %v10399_v24 = vpop.f32.mrf.mxu1 }
 0x196   : > { %v10393_v42 = vpop.f32.mrf.mxu0 }
 0x197   : > { %v12492_v16 = vadd.f32 %v10393_v42, %v1470_v22  ;;  %v12508_v42 = vpop.f32.mrf.mxu1 }
 0x198   : > { %v1719_v29 = vpop.f32.mrf.mxu0 }
 0x199   : > { %15422 = vst [vmem:[#allocation22_spill] sm:$0xff] %v12492_v16  ;;  %v12495_v23 = vadd.f32 %v1719_v29, %v1468_v3  ;;  %v12512_v22 = vpop.f32.mrf.mxu1 }
 0x19a   : > { %v10394_v50 = vpop.f32.mrf.mxu0 }
 0x19b   : > { %15423 = vst [vmem:[#allocation23_spill] sm:$0xff] %v12495_v23  ;;  %v12502_v35 = vadd.f32 %v10394_v50, %v1471_v37  ;;  %v12516_v15 = vpop.f32.mrf.mxu1 }
 0x19c   : > { %v12498_v43 = vpop.f32.mrf.mxu0 }
 0x19d   : > { %15424 = vst [vmem:[#allocation24_spill] sm:$0xff] %v12498_v43  ;;  %15426 = vst [vmem:[#allocation26_spill] sm:$0xff] %v12502_v35  ;;  %v12520_v3 = vpop.f32.mrf.mxu1 }
 0x19e   : > { %v12504_v40 = vpop.f32.mrf.mxu0 }
 0x19f   : > { %v12524_v55 = vpop.f32.mrf.mxu1 }
 0x1a0   : > { %v12506_v59 = vpop.f32.mrf.mxu0 }
 0x1a1   : > { %v12528_v43 = vpop.f32.mrf.mxu1 }
 0x1a2   : > { %v12510_v5 = vpop.f32.mrf.mxu0 }
 0x1a3   : > { %v12532_v23 = vpop.f32.mrf.mxu1 }
 0x1a4   : > { %v12514_v29 = vpop.f32.mrf.mxu0 }
 0x1a5   : > { %v12536_v20 = vpop.f32.mrf.mxu1 }
 0x1a6   : > { %v12518_v58 = vpop.f32.mrf.mxu0 }
 0x1a7   : > { %v12540_v27 = vpop.f32.mrf.mxu1 }
 0x1a8   : > { %v12522_v50 = vpop.f32.mrf.mxu0  ;;  %15430 = vst [vmem:[#allocation30_spill] sm:$0xff] %v12540_v27 }
 0x1a9   : > { %v12549_v7 = vpop.f32.mrf.mxu1 }
 0x1aa   : > { %v12526_v37 = vpop.f32.mrf.mxu0  ;;  %15433 = vst [vmem:[#allocation33_spill] sm:$0xff] %v12549_v7 }
 0x1ac   : > { %v12530_v35 = vpop.f32.mrf.mxu0 }
 0x1ad   : > { %15427 = vst [vmem:[#allocation27_spill] sm:$0xff] %v12530_v35 }
 0x1ae   : > { %v12534_v16 = vpop.f32.mrf.mxu0 }
 0x1af   : > { %15428 = vst [vmem:[#allocation28_spill] sm:$0xff] %v12534_v16  ;;  %v12554_v16 = vpop.f32.mrf.mxu1 }
 0x1b0   : > { %v12538_v52 = vpop.f32.mrf.mxu0  ;;  %15435 = vst [vmem:[#allocation35_spill] sm:$0xff] %v12554_v16 }
 0x1b1   : > { %15429 = vst [vmem:[#allocation29_spill] sm:$0xff] %v12538_v52  ;;  %v12558_v52 = vpop.f32.mrf.mxu1 }
 0x1b2   : > { %v12542_v26 = vpop.f32.mrf.mxu0  ;;  %15437 = vst [vmem:[#allocation37_spill] sm:$0xff] %v12558_v52 }
 0x1b3   : > { %15431 = vst [vmem:[#allocation31_spill] sm:$0xff] %v12542_v26  ;;  %v12562_v26 = vpop.f32.mrf.mxu1 }
 0x1b4   : > { %v12551_v19 = vpop.f32.mrf.mxu0  ;;  %15439 = vst [vmem:[#allocation39_spill] sm:$0xff] %v12562_v26 }
 0x1b5   : > { %15434 = vst [vmem:[#allocation34_spill] sm:$0xff] %v12551_v19  ;;  %v12566_v51 = vpop.f32.mrf.mxu1 }
 0x1b6   : > { %v12556_v35 = vpop.f32.mrf.mxu0  ;;  %15441 = vst [vmem:[#allocation41_spill] sm:$0xff] %v12566_v51 }
 0x1b7   : > { %15436 = vst [vmem:[#allocation36_spill] sm:$0xff] %v12556_v35  ;;  %v12570_v7 = vpop.f32.mrf.mxu1 }
 0x1b8   : > { %v12560_v61 = vpop.f32.mrf.mxu0  ;;  %15443 = vst [vmem:[#allocation43_spill] sm:$0xff] %v12570_v7 }
 0x1b9   : > { %15438 = vst [vmem:[#allocation38_spill] sm:$0xff] %v12560_v61  ;;  %v12574_v63 = vpop.f32.mrf.mxu1 }
 0x1ba   : > { %v12564_v1 = vpop.f32.mrf.mxu0  ;;  %15445 = vst [vmem:[#allocation45_spill] sm:$0xff] %v12574_v63 }
 0x1bb   : > { %15440 = vst [vmem:[#allocation40_spill] sm:$0xff] %v12564_v1  ;;  %v12578_v35 = vpop.f32.mrf.mxu1 }
 0x1bc   : > { %v12568_v27 = vpop.f32.mrf.mxu0  ;;  %15447 = vst [vmem:[#allocation47_spill] sm:$0xff] %v12578_v35 }
 0x1bd   : > { %15442 = vst [vmem:[#allocation42_spill] sm:$0xff] %v12568_v27  ;;  %v12582_v61 = vpop.f32.mrf.mxu1 }
 0x1be   : > { %v12572_v19 = vpop.f32.mrf.mxu0  ;;  %15449 = vst [vmem:[#allocation49_spill] sm:$0xff] %v12582_v61 }
 0x1bf   : > { %15444 = vst [vmem:[#allocation44_spill] sm:$0xff] %v12572_v19  ;;  %v12586_v1 = vpop.f32.mrf.mxu1 }
 0x1c0   : > { %v12576_v16 = vpop.f32.mrf.mxu0  ;;  %15451 = vst [vmem:[#allocation51_spill] sm:$0xff] %v12586_v1 }
 0x1c1   : > { %15446 = vst [vmem:[#allocation46_spill] sm:$0xff] %v12576_v16  ;;  %v12590_v27 = vpop.f32.mrf.mxu1 }
 0x1c2   : > { %v12580_v52 = vpop.f32.mrf.mxu0  ;;  %15453 = vst [vmem:[#allocation53_spill] sm:$0xff] %v12590_v27 }
 0x1c3   : > { %15448 = vst [vmem:[#allocation48_spill] sm:$0xff] %v12580_v52  ;;  %v12594_v19 = vpop.f32.mrf.mxu1 }
 0x1c4   : > { %v12584_v26 = vpop.f32.mrf.mxu0  ;;  %15455 = vst [vmem:[#allocation55_spill] sm:$0xff] %v12594_v19 }
 0x1c5   : > { %15450 = vst [vmem:[#allocation50_spill] sm:$0xff] %v12584_v26  ;;  %v12598_v16 = vpop.f32.mrf.mxu1 }
 0x1c6   : > { %v12588_v51 = vpop.f32.mrf.mxu0  ;;  %15457 = vst [vmem:[#allocation57_spill] sm:$0xff] %v12598_v16 }
 0x1c7   : > { %15452 = vst [vmem:[#allocation52_spill] sm:$0xff] %v12588_v51  ;;  %v12602_v52 = vpop.f32.mrf.mxu1 }
 0x1c8   : > { %v12592_v7 = vpop.f32.mrf.mxu0  ;;  %15459 = vst [vmem:[#allocation59_spill] sm:$0xff] %v12602_v52 }
 0x1c9   : > { %15454 = vst [vmem:[#allocation54_spill] sm:$0xff] %v12592_v7  ;;  %v12606_v26 = vpop.f32.mrf.mxu1 }
 0x1ca   : > { %v12596_v63 = vpop.f32.mrf.mxu0 }
 0x1cb   : > { %15456 = vst [vmem:[#allocation56_spill] sm:$0xff] %v12596_v63  ;;  %v12610_v51 = vpop.f32.mrf.mxu1 }
 0x1cc   : > { %v12600_v35 = vpop.f32.mrf.mxu0  ;;  %15462 = vst [vmem:[#allocation62_spill] sm:$0xff] %v12610_v51  ;;  %v2030_v51 = vadd.f32 %v10399_v24, %v12159_v34 }
 0x1cd   : > { %15458 = vst [vmem:[#allocation58_spill] sm:$0xff] %v12600_v35  ;;  %v12614_v7 = vpop.f32.mrf.mxu1 }
 0x1ce   : > { %v12604_v61 = vpop.f32.mrf.mxu0 }
 0x1cf   : > { %15460 = vst [vmem:[#allocation60_spill] sm:$0xff] %v12604_v61  ;;  %v12618_v63 = vpop.f32.mrf.mxu1 }
 0x1d0   : > { %v12608_v1 = vpop.f32.mrf.mxu0  ;;  %15465 = vst [vmem:[#allocation65_spill] sm:$0xff] %v12618_v63  ;;  %v840_v63 = vadd.f32 %v12113_v32, %v11928_v38  ;;  %v1445_v38 = vadd.f32 %v12336_v62, %v12027_v0 }
 0x1d1   : > { %15461 = vst [vmem:[#allocation61_spill] sm:$0xff] %v12608_v1  ;;  %v12622_v35 = vpop.f32.mrf.mxu1  ;;  %v1441_v1 = vadd.f32 %v12167_v13, %v12005_v10  ;;  %v872_v10 = vadd.f32 %v12154_v49, %v11980_v33  ;;  %v1449_v33 = vadd.f32 %v12424_v18, %v12049_v57  ;;  %v12670_v57 = vld [vmem:[%s15327_s2] ss:$0 sm:$0xff] }
 0x1d2   : > { %v12612_v27 = vpop.f32.mrf.mxu0  ;;  %15467 = vst [vmem:[#allocation67_spill] sm:$0xff] %v12622_v35  ;;  %v1739_v18 = vadd.f32 %v12334_v44, %v1445_v38  ;;  %v12686_v44 = vld [vmem:[%s15328_s3] ss:$0 sm:$0xff] }
 0x1d3   : > { %15463 = vst [vmem:[#allocation63_spill] sm:$0xff] %v12612_v27  ;;  %v12626_v61 = vpop.f32.mrf.mxu1 }
 0x1d4   : > { %v12616_v19 = vpop.f32.mrf.mxu0  ;;  %15469 = vst [vmem:[#allocation69_spill] sm:$0xff] %v12626_v61  ;;  %v2028_v61 = vadd.f32 %v12508_v42, %v12162_v4  ;;  %v1166_v4 = vadd.f32 %v12111_v46, %v840_v63 }
 0x1d5   : > { %15464 = vst [vmem:[#allocation64_spill] sm:$0xff] %v12616_v19  ;;  %v824_v19 = vadd.f32 %v12090_v36, %v11904_v28  ;;  %v1735_v28 = vadd.f32 %v12165_v60, %v1441_v1  ;;  %v2325_v36 = vadd.f32 %v12504_v40, %v2030_v51  ;;  %v1174_v1 = vadd.f32 %v12149_v30, %v872_v10 }
 0x1d6   : > { %v12620_v16 = vpop.f32.mrf.mxu0  ;;  %v2323_v60 = vadd.f32 %v12506_v59, %v2028_v61  ;;  %v1461_v46 = vadd.f32 %v12474_v11, %v1166_v4  ;;  %v12675_v40 = vadd.f32 %v12422_v14, %v1449_v33  ;;  %v15473_v4 = vld [vmem:[#allocation7_spill] sm:$0xff] }
 0x1d7   : > { %15466 = vst [vmem:[#allocation66_spill] sm:$0xff] %v12620_v16  ;;  %v12637_v16 = vpop.f32.mrf.mxu1  ;;  %v2029_v0 = vadd.f32 %v12516_v15, %v1735_v28 }
 0x1d8   : > { %v12624_v52 = vpop.f32.mrf.mxu0 }
 0x1d9   : > { %15468 = vst [vmem:[#allocation68_spill] sm:$0xff] %v12624_v52  ;;  %v856_v52 = vadd.f32 %v12136_v12, %v11957_v8  ;;  %v12647_v34 = vpop.f32.mrf.mxu1  ;;  %v2031_v8 = vadd.f32 %v12512_v22, %v12169_v21  ;;  %v1162_v12 = vadd.f32 %v12088_v6, %v824_v19  ;;  %v1453_v21 = vadd.f32 %v12442_v56, %v12074_v39 }
 0x1da   : > { %v12631_v27 = vpop.f32.mrf.mxu0  ;;  %v2034_v39 = vadd.f32 %v12520_v3, %v12326_v54  ;;  %v2032_v56 = vadd.f32 %v12524_v55, %v12331_v17  ;;  %v2324_v61 = vadd.f32 %v12514_v29, %v2029_v0 }
 0x1db   : > { %v10467_v49 = vpop.f32.mrf.mxu1  ;;  %v1170_v13 = vadd.f32 %v12134_v41, %v856_v52  ;;  %v1457_v6 = vadd.f32 %v12460_v53, %v1162_v12  ;;  %v2326_v19 = vadd.f32 %v12510_v5, %v2031_v8  ;;  %v2035_v53 = vadd.f32 %v12528_v43, %v12410_v45 }
 0x1dc   : > { %v12643_v35 = vpop.f32.mrf.mxu0  ;;  %v2619_v62 = vadd.f32 %v10467_v49, %v2325_v36  ;;  %v12691_v54 = vadd.f32 %v12440_v47, %v1453_v21  ;;  %v12697_v45 = vadd.f32 %v12472_v48, %v1461_v46  ;;  %v2329_v47 = vadd.f32 %v12518_v58, %v2034_v39  ;;  %v15472_v58 = vld [vmem:[#allocation30_spill] sm:$0xff] }
 0x1dd   : > { %v2490_v41 = vpop.f32.mrf.mxu1  ;;  %v12694_v17 = vadd.f32 %v12453_v25, %v1457_v6  ;;  %v1465_v43 = vadd.f32 %v12487_v2, %v1170_v13  ;;  %v2327_v10 = vadd.f32 %v12522_v50, %v2032_v56  ;;  %v2330_v25 = vadd.f32 %v12526_v37, %v2035_v53  ;;  %v15474_v37 = vld [vmem:[#allocation33_spill] sm:$0xff]  ;;  %v15478_v6 = vld [vmem:[#allocation27_spill] sm:$0xff]  ;;  %v15480_v56 = vld [vmem:[#allocation28_spill] sm:$0xff] }
 0x1de   : > { %v10501_v32 = vpop.f32.mrf.mxu0  ;;  %v2617_v52 = vadd.f32 %v2490_v41, %v2323_v60  ;;  %v2033_v48 = vadd.f32 %v12532_v23, %v1739_v18  ;;  %v2038_v12 = vadd.f32 %v12536_v20, %v12416_v31  ;;  %v2036_v50 = vadd.f32 %v15472_v58, %v12419_v9 }
 0x1df   : > { %v2913_v63 = vadd.f32 %v10501_v32, %v2619_v62  ;;  %v10468_v11 = vpop.f32.mrf.mxu1  ;;  %v2039_v33 = vadd.f32 %v15474_v37, %v15473_v4  ;;  %v15476_v62 = vld [vmem:[#allocation20_spill] sm:$0xff]  ;;  %v15490_v37 = vld [vmem:[#allocation10_spill] sm:$0xff] }
 0x1e0   : > { %v2784_v51 = vpop.f32.mrf.mxu0  ;;  %v2620_v59 = vadd.f32 %v10468_v11, %v2326_v19  ;;  %v12728_v9 = vadd.f32 %v15476_v62, %v1465_v43  ;;  %v2328_v46 = vadd.f32 %v15478_v6, %v2033_v48  ;;  %v2333_v53 = vadd.f32 %v15480_v56, %v2038_v12  ;;  %v15486_v48 = vld [vmem:[#allocation9_spill] sm:$0xff] }
 0x1e1   : > { %v2952_v14 = vmul.f32 %v12670_v57, %v2913_v63  ;;  %v2911_v24 = vadd.f32 %v2784_v51, %v2617_v52  ;;  %v2493_v5 = vpop.f32.mrf.mxu1  ;;  %v15477_v51 = vld [vmem:[#allocation25_spill] sm:$0xff] }
 0x1e2   : > { %v10502_v30 = vpop.f32.mrf.mxu0  ;;  %v2618_v3 = vadd.f32 %v2493_v5, %v2324_v61  ;;  %v12731_v21 = vadd.f32 %v15477_v51, %v1174_v1  ;;  %v15481_v1 = vld [vmem:[#allocation29_spill] sm:$0xff]  ;;  %v15482_v61 = vld [vmem:[#allocation31_spill] sm:$0xff] }
 0x1e3   : > { %v12701_v22 = vadd.f32 %v12686_v44, %v2952_v14  ;;  %v2950_v29 = vmul.f32 %v12670_v57, %v2911_v24  ;;  %v2914_v15 = vadd.f32 %v10502_v30, %v2620_v59  ;;  %v10471_v28 = vpop.f32.mrf.mxu1  ;;  %v2331_v11 = vadd.f32 %v15481_v1, %v2036_v50 }
 0x1e4   : > { %v2787_v42 = vpop.f32.mrf.mxu0  ;;  %v2623_v23 = vadd.f32 %v10471_v28, %v2329_v47  ;;  %v2334_v14 = vadd.f32 %v15482_v61, %v2039_v33  ;;  %v15484_v47 = vld [vmem:[#allocation8_spill] sm:$0xff]  ;;  %v15487_v28 = vld [vmem:[#allocation39_spill] sm:$0xff]  ;;  %v15491_v33 = vld [vmem:[#allocation41_spill] sm:$0xff] }
 0x1e5   : > { %15470 = vst [vmem:[#allocation70_spill] sm:$0xff] %v12701_v22  ;;  %v15350_v2 = vmax.f32 %v12701_v22, 0.0  ;;  %v12710_v38 = vadd.f32 %v12686_v44, %v2950_v29  ;;  %v2953_v36 = vmul.f32 %v12670_v57, %v2914_v15  ;;  %v2912_v8 = vadd.f32 %v2787_v42, %v2618_v3  ;;  %v2506_v49 = vpop.f32.mrf.mxu1  ;;  %v15483_v3 = vld [vmem:[#allocation35_spill] sm:$0xff] }
 0x1e6   : > { %v10505_v55 = vpop.f32.mrf.mxu0  ;;  %v2621_v31 = vadd.f32 %v2506_v49, %v2327_v10  ;;  %v15485_v10 = vld [vmem:[#allocation37_spill] sm:$0xff]  ;;  %v15492_v49 = vld [vmem:[#allocation43_spill] sm:$0xff] }
 0x1e7   : > { %15471 = vst [vmem:[#allocation71_spill] sm:$0xff] %v12710_v38  ;;  %3112 = vst.msk [vmem:[#allocation2 + $0x31] sm:$0xff] %vm3053_vm2, %v15350_v2  ;;  %v15351_v13 = vmax.f32 %v12710_v38, 0.0  ;;  %v12724_v60 = vadd.f32 %v12686_v44, %v2953_v36  ;;  %v2951_v0 = vmul.f32 %v12670_v57, %v2912_v8  ;;  %v2917_v41 = vadd.f32 %v10505_v55, %v2623_v23  ;;  %v10472_v18 = vpop.f32.mrf.mxu1 }
 0x1e8   : > { %v2800_v32 = vpop.f32.mrf.mxu0  ;;  %v2624_v30 = vadd.f32 %v10472_v18, %v2330_v25  ;;  %v2037_v55 = vadd.f32 %v15483_v3, %v12675_v40  ;;  %v2042_v25 = vadd.f32 %v15485_v10, %v15484_v47  ;;  %v2040_v36 = vadd.f32 %v15487_v28, %v15486_v48  ;;  %v15501_v10 = vld [vmem:[#allocation42_spill] sm:$0xff] }
 0x1e9   : > { %15475 = vst [vmem:[#allocation30_spill] sm:$0xff] %v12724_v60  ;;  %3110 = vst.msk [vmem:[#allocation2 + $0x19] sm:$0xff] %vm3053_vm2, %v15351_v13  ;;  %v15349_v19 = vmax.f32 %v12724_v60, 0.0  ;;  %v12739_v63 = vadd.f32 %v12686_v44, %v2951_v0  ;;  %v2915_v52 = vadd.f32 %v2800_v32, %v2621_v31  ;;  %v2956_v24 = vmul.f32 %v12670_v57, %v2917_v41  ;;  %v2509_v59 = vpop.f32.mrf.mxu1  ;;  %v15493_v31 = vld [vmem:[#allocation11_spill] sm:$0xff] }
 0x1ea   : > { %v10506_v20 = vpop.f32.mrf.mxu0  ;;  %v2622_v29 = vadd.f32 %v2509_v59, %v2328_v46  ;;  %v2043_v23 = vadd.f32 %v15491_v33, %v15490_v37  ;;  %v2041_v0 = vadd.f32 %v15492_v49, %v12691_v54  ;;  %v15498_v54 = vld [vmem:[#allocation38_spill] sm:$0xff]  ;;  %v15504_v33 = vld [vmem:[#allocation12_spill] sm:$0xff] }
 0x1eb   : > { %15479 = vst [vmem:[#allocation7_spill] sm:$0xff] %v12739_v63  ;;  %3113 = vst.msk [vmem:[#allocation2 + $0x39] sm:$0xff] %vm3053_vm2, %v15349_v19  ;;  %v15345_v42 = vmax.f32 %v12739_v63, 0.0  ;;  %v2954_v43 = vmul.f32 %v12670_v57, %v2915_v52  ;;  %v2918_v5 = vadd.f32 %v10506_v20, %v2624_v30  ;;  %v12757_v8 = vadd.f32 %v12686_v44, %v2956_v24  ;;  %v10475_v32 = vpop.f32.mrf.mxu1  ;;  %v15494_v20 = vld [vmem:[#allocation45_spill] sm:$0xff] }
 0x1ec   : > { %v2803_v39 = vpop.f32.mrf.mxu0  ;;  %v2627_v50 = vadd.f32 %v10475_v32, %v2333_v53  ;;  %v2046_v62 = vadd.f32 %v15494_v20, %v15493_v31  ;;  %v15497_v53 = vld [vmem:[#allocation36_spill] sm:$0xff]  ;;  %v2335_v61 = vadd.f32 %v15498_v54, %v2040_v36  ;;  %v15507_v31 = vld [vmem:[#allocation49_spill] sm:$0xff]  ;;  %v15508_v20 = vld [vmem:[#allocation51_spill] sm:$0xff] }
 0x1ed   : > { %15488 = vst [vmem:[#allocation33_spill] sm:$0xff] %v12757_v8  ;;  %3111 = vst.msk [vmem:[#allocation2 + $0x21] sm:$0xff] %vm3053_vm2, %v15345_v42  ;;  %v12763_v12 = vadd.f32 %v12686_v44, %v2954_v43  ;;  %v2957_v58 = vmul.f32 %v12670_v57, %v2918_v5  ;;  %v2916_v40 = vadd.f32 %v2803_v39, %v2622_v29  ;;  %v15343_v51 = vmax.f32 %v12757_v8, 0.0  ;;  %v2522_v6 = vpop.f32.mrf.mxu1  ;;  %v15496_v39 = vld [vmem:[#allocation34_spill] sm:$0xff] }
 0x1ee   : > { %v10509_v15 = vpop.f32.mrf.mxu0  ;;  %v2332_v56 = vadd.f32 %v15496_v39, %v2037_v55  ;;  %v2337_v1 = vadd.f32 %v15497_v53, %v2042_v25  ;;  %v2625_v24 = vadd.f32 %v2522_v6, %v2331_v11  ;;  %v15500_v55 = vld [vmem:[#allocation40_spill] sm:$0xff]  ;;  %v12794_v25 = vadd.f32 %v15501_v10, %v2041_v0  ;;  %v15506_v0 = vld [vmem:[#allocation14_spill] sm:$0xff] }
 0x1ef   : > { %15489 = vst [vmem:[#allocation20_spill] sm:$0xff] %v12763_v12  ;;  %v15344_v46 = vmax.f32 %v12763_v12, 0.0  ;;  %v12775_v41 = vadd.f32 %v12686_v44, %v2957_v58  ;;  %v2955_v18 = vmul.f32 %v12670_v57, %v2916_v40  ;;  %v2921_v52 = vadd.f32 %v10509_v15, %v2627_v50  ;;  %3116 = vst.msk [vmem:[#allocation2 + $0x61] sm:$0xff] %vm3053_vm2, %v15343_v51  ;;  %v10476_v59 = vpop.f32.mrf.mxu1  ;;  %v15502_v11 = vld [vmem:[#allocation44_spill] sm:$0xff] }
 0x1f0   : > { %v2816_v4 = vpop.f32.mrf.mxu0  ;;  %v2628_v15 = vadd.f32 %v10476_v59, %v2334_v14  ;;  %v2338_v47 = vadd.f32 %v15500_v55, %v2043_v23  ;;  %v12797_v48 = vadd.f32 %v15502_v11, %v2046_v62  ;;  %v15505_v23 = vld [vmem:[#allocation47_spill] sm:$0xff]  ;;  %v2045_v62 = vadd.f32 %v15508_v20, %v12694_v17  ;;  %v3198_v53 = vld [vmem:[#allocation2 + $0x31] sm:$0xff] }
 0x1f1   : > { %15495 = vst [vmem:[#allocation25_spill] sm:$0xff] %v12775_v41  ;;  %3114 = vst.msk [vmem:[#allocation2 + $0x49] sm:$0xff] %vm3053_vm2, %v15344_v46  ;;  %v15342_v43 = vmax.f32 %v12775_v41, 0.0  ;;  %v12789_v5 = vadd.f32 %v12686_v44, %v2955_v18  ;;  %v2960_v29 = vmul.f32 %v12670_v57, %v2921_v52  ;;  %v2919_v28 = vadd.f32 %v2816_v4, %v2625_v24  ;;  %v2525_v36 = vpop.f32.mrf.mxu1  ;;  %v15512_v20 = vld [vmem:[#allocation15_spill] sm:$0xff] }
 0x1f2   : > { %v10510_v30 = vpop.f32.mrf.mxu0  ;;  %v2626_v40 = vadd.f32 %v2525_v36, %v2332_v56  ;;  %v3199_v37 = vld [vmem:[#allocation2 + $0x39] sm:$0xff]  ;;  %v2044_v49 = vadd.f32 %v15505_v23, %v15504_v33  ;;  %v2047_v4 = vadd.f32 %v15507_v31, %v15506_v0  ;;  %v3146_v0 = vld [vmem:[#allocation2 + $0x30] sm:$0xff] }
 0x1f3   : > { %15499 = vst [vmem:[#allocation27_spill] sm:$0xff] %v12789_v5  ;;  %3117 = vst.msk [vmem:[#allocation2 + $0x69] sm:$0xff] %vm3053_vm2, %v15342_v43  ;;  %v15341_v32 = vmax.f32 %v12789_v5, 0.0  ;;  %v12804_v58 = vadd.f32 %v12686_v44, %v2960_v29  ;;  %v2922_v14 = vadd.f32 %v10510_v30, %v2628_v15  ;;  %v2958_v6 = vmul.f32 %v12670_v57, %v2919_v28  ;;  %v10479_v18 = vpop.f32.mrf.mxu1  ;;  %v3196_v29 = vld [vmem:[#allocation2 + $0x19] sm:$0xff] }
 0x1f4   : > { %v2819_v3 = vpop.f32.mrf.mxu0  ;;  %v3197_v52 = vld [vmem:[#allocation2 + $0x21] sm:$0xff]  ;;  %v2631_v24 = vadd.f32 %v10479_v18, %v2337_v1  ;;  %v3144_v15 = vld [vmem:[#allocation2 + $0x18] sm:$0xff]  ;;  %v12825_v36 = vpack.c.bf16 %v3199_v37, %v3198_v53 }
 0x1f5   : > { %15503 = vst [vmem:[#allocation28_spill] sm:$0xff] %v12804_v58  ;;  %v3145_v39 = vld [vmem:[#allocation2 + $0x20] sm:$0xff]  ;;  %3115 = vst.msk [vmem:[#allocation2 + $0x51] sm:$0xff] %vm3053_vm2, %v15341_v32  ;;  %v15340_v30 = vmax.f32 %v12804_v58, 0.0  ;;  %v2961_v56 = vmul.f32 %v12670_v57, %v2922_v14  ;;  %v2920_v54 = vadd.f32 %v2819_v3, %v2626_v40  ;;  %v3147_v17 = vld [vmem:[#allocation2 + $0x38] sm:$0xff]  ;;  %v12819_v55 = vadd.f32 %v12686_v44, %v2958_v6  ;;  %v2538_v10 = vpop.f32.mrf.mxu1 }
 0x1f6   : > { %v10513_v50 = vpop.f32.mrf.mxu0  ;;  %v12821_v11 = vpack.c.bf16 %v3197_v52, %v3196_v29  ;;  %v12823_v28 = vpack.c.bf16 %v3145_v39, %v3144_v15  ;;  %v11237_v14 = vld [vmem:[%s15329_s4 + $0x20] sm:$0xff]   ;;  %v2629_v33 = vadd.f32 %v2538_v10, %v2335_v61  ;;  %v15513_v6 = vld [vmem:[#allocation53_spill] sm:$0xff]  ;;  %v12845_v53 = vpack.c.bf16 %v3147_v17, %v3146_v0  ;;  %v15516_v15 = vld [vmem:[#allocation48_spill] sm:$0xff] }
 0x1f7   : > { %15509 = vst [vmem:[#allocation29_spill] sm:$0xff] %v12819_v55  ;;  %3120 = vst.msk [vmem:[#allocation2 + $0x91] sm:$0xff] %vm3053_vm2, %v15340_v30  ;;  %v12834_v1 = vadd.f32 %v12686_v44, %v2961_v56  ;;  %v2959_v3 = vmul.f32 %v12670_v57, %v2920_v54  ;;  %v2925_v40 = vadd.f32 %v10513_v50, %v2631_v24  ;;  %v15511_v31 = vld [vmem:[#allocation46_spill] sm:$0xff]  ;;  %v15338_v52 = vmax.f32 %v12819_v55, 0.0  ;;  %v10480_v39 = vpop.f32.mrf.mxu1  ;;  %v11239_v61 = vld [vmem:[%s15329_s4 + $0x30] sm:$0xff]  }
 0x1f8   : > { %v2832_v59 = vpop.f32.mrf.mxu0  ;;  %v2339_v37 = vadd.f32 %v15511_v31, %v2044_v49  ;;  %v2050_v18 = vadd.f32 %v15513_v6, %v15512_v20  ;;  %10536 = vmatmul.mubr.msk.bf16.vlgmr.msra.gmra.mxu1 %vm3053_vm2, %v12821_v11  ;;  %10572 = vmatmul.mubr.msk.bf16.vlgmr.msra.gmra.mxu0 %vm3053_vm2, %v12823_v28  ;;  %v15515_v24 = vld [vmem:[#allocation13_spill] sm:$0xff]  ;;  %v2342_v17 = vadd.f32 %v15516_v15, %v2047_v4  ;;  %v15517_v10 = vld [vmem:[#allocation50_spill] sm:$0xff]  ;;  %v15519_v6 = vld [vmem:[#allocation32_spill] sm:$0xff] }
 0x1f9   : > { %15510 = vst [vmem:[#allocation31_spill] sm:$0xff] %v12834_v1  ;;  %v15339_v50 = vmax.f32 %v12834_v1, 0.0  ;;  %v12852_v49 = vadd.f32 %v12686_v44, %v2959_v3  ;;  %v2964_v56 = vmul.f32 %v12670_v57, %v2925_v40  ;;  %v2923_v54 = vadd.f32 %v2832_v59, %v2629_v33  ;;  %10604 = vmatpush3.bf16.msra.mxu1 %v15515_v24  ;;  %v2541_v59 = vpop.f32.mrf.mxu1  ;;  %v12870_v40 = vld [vmem:[%s15329_s4 + $0x48] sm:$0xff]   ;;  %v15524_v30 = vld [vmem:[#allocation57_spill] sm:$0xff] }
 0x1fa   : > { %v10514_v23 = vpop.f32.mrf.mxu0  ;;  %10539 = vmatprep.mubr.msk.bf16.mxu1 %vm3053_vm2, %v12825_v36  ;;  %v12860_v0 = vadd.f32 %v15517_v10, %v2045_v62  ;;  %3118 = vst.msk [vmem:[#allocation2 + $0x79] sm:$0xff] %vm3053_vm2, %v15338_v52  ;;  %v2632_v3 = vadd.f32 %v10480_v39, %v2338_v47  ;;  %10575 = vmatprep.mubr.msk.bf16.mxu0 %vm3053_vm2, %v12845_v53  ;;  %v3203_v20 = vld [vmem:[#allocation2 + $0x69] sm:$0xff] }
 0x1fb   : > { %15514 = vst [vmem:[#allocation35_spill] sm:$0xff] %v12852_v49  ;;  %10605 = vmatprep.subr.bf16.mxu1 %v11237_v14  ;;  %3121 = vst.msk [vmem:[#allocation2 + $0x99] sm:$0xff] %vm3053_vm2, %v15339_v50  ;;  %v15346_v4 = vmax.f32 %v12852_v49, 0.0  ;;  %v12877_v62 = vadd.f32 %v12686_v44, %v2964_v56  ;;  %v2962_v47 = vmul.f32 %v12670_v57, %v2923_v54  ;;  %10640 = vmatpush3.bf16.msra.mxu0 %v15519_v6  ;;  %v15520_v39 = vld [vmem:[#allocation52_spill] sm:$0xff]  ;;  %v15522_v10 = vld [vmem:[#allocation55_spill] sm:$0xff]  ;;  %v10483_v56 = vpop.f32.mrf.mxu1 }
 0x1fc   : > { %v2835_v29 = vpop.f32.mrf.mxu0  ;;  %v2630_v33 = vadd.f32 %v2541_v59, %v12794_v25  ;;  %v12883_v24 = vadd.f32 %v15520_v39, %v2050_v18  ;;  %v15521_v15 = vld [vmem:[#allocation16_spill] sm:$0xff]  ;;  %v15523_v50 = vld [vmem:[#allocation17_spill] sm:$0xff]  ;;  %v2926_v43 = vadd.f32 %v10514_v23, %v2632_v3  ;;  %v3202_v54 = vld [vmem:[#allocation2 + $0x61] sm:$0xff]  ;;  %10641 = vmatprep.subr.bf16.mxu0 %v11239_v61  ;;  %v2635_v6 = vadd.f32 %v10483_v56, %v12797_v48 }
 0x1fd   : > { %15518 = vst [vmem:[#allocation8_spill] sm:$0xff] %v12877_v62  ;;  %v2048_v52 = vadd.f32 %v15522_v10, %v15521_v15  ;;  %v2051_v32 = vadd.f32 %v15524_v30, %v15523_v50  ;;  %v3201_v51 = vld [vmem:[#allocation2 + $0x51] sm:$0xff]  ;;  %3119 = vst.msk [vmem:[#allocation2 + $0x81] sm:$0xff] %vm3053_vm2, %v15346_v4  ;;  %v15347_v25 = vmax.f32 %v12877_v62, 0.0  ;;  %v12894_v18 = vadd.f32 %v12686_v44, %v2962_v47  ;;  %v3200_v30 = vld [vmem:[#allocation2 + $0x49] sm:$0xff]  ;;  %v2554_v15 = vpop.f32.mrf.mxu1 }
 0x1fe   : > { %v10517_v31 = vpop.f32.mrf.mxu0  ;;  %v3149_v46 = vld [vmem:[#allocation2 + $0x50] sm:$0xff]  ;;  %v2924_v59 = vadd.f32 %v2835_v29, %v2630_v33  ;;  %v3148_v23 = vld [vmem:[#allocation2 + $0x48] sm:$0xff]  ;;  %10606 = vmatpush3.bf16.msra.mxu1 %v11237_v14  ;;  %v2965_v3 = vmul.f32 %v12670_v57, %v2926_v43  ;;  %v12898_v10 = vpack.c.bf16 %v3201_v51, %v3200_v30  ;;  %v12902_v4 = vpack.c.bf16 %v3203_v20, %v3202_v54  ;;  %v12908_v48 = vld [vmem:[%s15329_s4 + $0x58] sm:$0xff]  }
 0x1ff   : > { %15525 = vst [vmem:[#allocation37_spill] sm:$0xff] %v12894_v18  ;;  %v3151_v50 = vld [vmem:[#allocation2 + $0x68] sm:$0xff]  ;;  %v12900_v42 = vpack.c.bf16 %v3149_v46, %v3148_v23  ;;  %10675 = vmatprep.subr.bf16.mxu1 %v12870_v40  ;;  %3124 = vst.msk [vmem:[#allocation2 + $0xc1] sm:$0xff] %vm3053_vm2, %v15347_v25  ;;  %v15348_v43 = vmax.f32 %v12894_v18, 0.0  ;;  %v2929_v14 = vadd.f32 %v10517_v31, %v2635_v6  ;;  %v3150_v47 = vld [vmem:[#allocation2 + $0x60] sm:$0xff]  ;;  %10642 = vmatpush3.bf16.msra.mxu0 %v11239_v61  ;;  %v10484_v54 = vpop.f32.mrf.mxu1 }
 0x200   : > { %v2848_v39 = vpop.f32.mrf.mxu0  ;;  %v2963_v51 = vmul.f32 %v12670_v57, %v2924_v59  ;;  %v2633_v46 = vadd.f32 %v2554_v15, %v2339_v37  ;;  %v15526_v33 = vld [vmem:[#allocation54_spill] sm:$0xff]  ;;  %v12917_v56 = vadd.f32 %v12686_v44, %v2965_v3  ;;  %10540 = vmatmul.mubr.msk.bf16.gmra.mxu1 %vm3053_vm2, %v12898_v10  ;;  %v12923_v30 = vpack.c.bf16 %v3151_v50, %v3150_v47  ;;  %v15529_v6 = vld [vmem:[#allocation56_spill] sm:$0xff]  ;;  %v15530_v50 = vld [vmem:[#allocation59_spill] sm:$0xff] }
 0x201   : > { %v2343_v20 = vadd.f32 %v15526_v33, %v2048_v52  ;;  %10576 = vmatmul.mubr.msk.bf16.gmra.mxu0 %vm3053_vm2, %v12900_v42  ;;  %3122 = vst.msk [vmem:[#allocation2 + $0xa9] sm:$0xff] %vm3053_vm2, %v15348_v43  ;;  %v2968_v52 = vmul.f32 %v12670_v57, %v2929_v14  ;;  %v2636_v31 = vadd.f32 %v10484_v54, %v2342_v17  ;;  %v15531_v15 = vld [vmem:[#allocation18_spill] sm:$0xff]  ;;  %v3206_v54 = vld [vmem:[#allocation2 + $0x91] sm:$0xff] }
 0x202   : > { %v10518_v29 = vpop.f32.mrf.mxu0  ;;  %15527 = vst [vmem:[#allocation9_spill] sm:$0xff] %v12917_v56  ;;  %v12929_v37 = vadd.f32 %v12686_v44, %v2963_v51  ;;  %v2927_v61 = vadd.f32 %v2848_v39, %v2633_v46  ;;  %10543 = vmatprep.mubr.msk.bf16.mxu1 %vm3053_vm2, %v12902_v4  ;;  %v2346_v23 = vadd.f32 %v15529_v6, %v2051_v32  ;;  %v15352_v33 = vmax.f32 %v12917_v56, 0.0  ;;  %v2557_v51 = vpop.f32.mrf.mxu1  ;;  %v3207_v39 = vld [vmem:[#allocation2 + $0x99] sm:$0xff]  ;;  %v15533_v6 = vld [vmem:[#allocation19_spill] sm:$0xff] }
 0x203   : > { %v2049_v3 = vadd.f32 %v15530_v50, %v12697_v45  ;;  %v2054_v47 = vadd.f32 %v12606_v26, %v15531_v15  ;;  %10579 = vmatprep.mubr.msk.bf16.mxu0 %vm3053_vm2, %v12923_v30  ;;  %10711 = vmatprep.subr.bf16.mxu0 %v12908_v48  ;;  %v12945_v14 = vadd.f32 %v12686_v44, %v2968_v52  ;;  %v3155_v26 = vld [vmem:[#allocation2 + $0x98] sm:$0xff] }
 0x204   : > { %15528 = vst [vmem:[#allocation39_spill] sm:$0xff] %v12929_v37  ;;  %v2851_v59 = vpop.f32.mrf.mxu0  ;;  %v15354_v17 = vmax.f32 %v12929_v37, 0.0  ;;  %v2966_v32 = vmul.f32 %v12670_v57, %v2927_v61  ;;  %v2930_v45 = vadd.f32 %v10518_v29, %v2636_v31  ;;  %v15534_v50 = vld [vmem:[#allocation62_spill] sm:$0xff]  ;;  %v15535_v25 = vld [vmem:[#allocation21_spill] sm:$0xff]  ;;  %3125 = vst.msk [vmem:[#allocation2 + $0xc9] sm:$0xff] %vm3053_vm2, %v15352_v33  ;;  %v2634_v19 = vadd.f32 %v2557_v51, %v12860_v0  ;;  %v10487_v52 = vpop.f32.mrf.mxu1 }
 0x205   : > { %15532 = vst [vmem:[#allocation10_spill] sm:$0xff] %v12945_v14  ;;  %v2052_v15 = vadd.f32 %v15534_v50, %v15533_v6  ;;  %v2055_v43 = vadd.f32 %v12614_v7, %v15535_v25  ;;  %v3205_v2 = vld [vmem:[#allocation2 + $0x81] sm:$0xff]  ;;  %v12956_v61 = vpack.c.bf16 %v3207_v39, %v3206_v54  ;;  %v15356_v29 = vmax.f32 %v12945_v14, 0.0  ;;  %v3204_v0 = vld [vmem:[#allocation2 + $0x79] sm:$0xff]  ;;  %v3154_v50 = vld [vmem:[#allocation2 + $0x90] sm:$0xff] }
 0x206   : > { %v10521_v46 = vpop.f32.mrf.mxu0  ;;  %v3153_v13 = vld [vmem:[#allocation2 + $0x80] sm:$0xff]  ;;  %3123 = vst.msk [vmem:[#allocation2 + $0xb1] sm:$0xff] %vm3053_vm2, %v15354_v17  ;;  %v12963_v31 = vadd.f32 %v12686_v44, %v2966_v32  ;;  %v2969_v7 = vmul.f32 %v12670_v57, %v2930_v45  ;;  %v2639_v25 = vadd.f32 %v10487_v52, %v12883_v24  ;;  %v3152_v51 = vld [vmem:[#allocation2 + $0x78] sm:$0xff]  ;;  %v2928_v33 = vadd.f32 %v2851_v59, %v2634_v19  ;;  %v2570_v39 = vpop.f32.mrf.mxu1 }
 0x207   : > { %v12967_v54 = vpack.c.bf16 %v3205_v2, %v3204_v0  ;;  %v12969_v37 = vpack.c.bf16 %v3153_v13, %v3152_v51  ;;  %v12971_v17 = vpack.c.bf16 %v3155_v26, %v3154_v50  ;;  %3128 = vst.msk [vmem:[#allocation2 + $0xf1] sm:$0xff] %vm3053_vm2, %v15356_v29  ;;  %v2637_v52 = vadd.f32 %v2570_v39, %v2343_v20  ;;  %v15538_v19 = vld [vmem:[#allocation58_spill] sm:$0xff]  ;;  %v15539_v2 = vld [vmem:[#allocation60_spill] sm:$0xff]  ;;  %v15541_v51 = vld [vmem:[#allocation63_spill] sm:$0xff] }
 0x208   : > { %15536 = vst [vmem:[#allocation41_spill] sm:$0xff] %v12963_v31  ;;  %v2864_v6 = vpop.f32.mrf.mxu0  ;;  %v15357_v32 = vmax.f32 %v12963_v31, 0.0  ;;  %v12978_v24 = vadd.f32 %v12686_v44, %v2969_v7  ;;  %v2933_v45 = vadd.f32 %v10521_v46, %v2639_v25  ;;  %v2344_v59 = vadd.f32 %v15538_v19, %v2049_v3  ;;  %v10488_v26 = vpop.f32.mrf.mxu1  ;;  %v15542_v39 = vld [vmem:[#allocation65_spill] sm:$0xff]  ;;  %v15547_v29 = vld [vmem:[#allocation23_spill] sm:$0xff] }
 0x209   : > { %v2349_v0 = vadd.f32 %v15539_v2, %v2054_v47  ;;  %v2967_v13 = vmul.f32 %v12670_v57, %v2928_v33  ;;  %10544 = vmatmul.mubr.msk.bf16.gmra.mxu1 %vm3053_vm2, %v12967_v54  ;;  %10580 = vmatmul.mubr.msk.bf16.gmra.mxu0 %vm3053_vm2, %v12969_v37  ;;  %v2931_v3 = vadd.f32 %v2864_v6, %v2637_v52  ;;  %v15540_v33 = vld [vmem:[#allocation61_spill] sm:$0xff]  ;;  %v3158_v18 = vld [vmem:[#allocation2 + $0xc0] sm:$0xff] }
 0x20a   : > { %15537 = vst [vmem:[#allocation43_spill] sm:$0xff] %v12978_v24  ;;  %v10522_v56 = vpop.f32.mrf.mxu0  ;;  %3126 = vst.msk [vmem:[#allocation2 + $0xd9] sm:$0xff] %vm3053_vm2, %v15357_v32  ;;  %v15360_v20 = vmax.f32 %v12978_v24, 0.0  ;;  %v2972_v46 = vmul.f32 %v12670_v57, %v2933_v45  ;;  %v2640_v7 = vadd.f32 %v10488_v26, %v2346_v23  ;;  %10547 = vmatprep.mubr.msk.bf16.mxu1 %vm3053_vm2, %v12956_v61  ;;  %10583 = vmatprep.mubr.msk.bf16.mxu0 %vm3053_vm2, %v12971_v17  ;;  %v2573_v45 = vpop.f32.mrf.mxu1  ;;  %v15548_v32 = vld [vmem:[#allocation69_spill] sm:$0xff] }
 0x20b   : > { %v2347_v25 = vadd.f32 %v15540_v33, %v2052_v15  ;;  %v2350_v50 = vadd.f32 %v15541_v51, %v2055_v43  ;;  %v2053_v19 = vadd.f32 %v15542_v39, %v12728_v9  ;;  %v13001_v2 = vadd.f32 %v12686_v44, %v2967_v13  ;;  %v3210_v43 = vld [vmem:[#allocation2 + $0xc1] sm:$0xff]  ;;  %v3211_v33 = vld [vmem:[#allocation2 + $0xc9] sm:$0xff] }
 0x20c   : > { %v2867_v47 = vpop.f32.mrf.mxu0  ;;  %3129 = vst.msk [vmem:[#allocation2 + $0xf9] sm:$0xff] %vm3053_vm2, %v15360_v20  ;;  %v13007_v23 = vadd.f32 %v12686_v44, %v2972_v46  ;;  %v2970_v6 = vmul.f32 %v12670_v57, %v2931_v3  ;;  %v2934_v52 = vadd.f32 %v10522_v56, %v2640_v7  ;;  %v2638_v15 = vadd.f32 %v2573_v45, %v2344_v59  ;;  %v3159_v51 = vld [vmem:[#allocation2 + $0xc8] sm:$0xff]  ;;  %v15545_v9 = vld [vmem:[#allocation22_spill] sm:$0xff]  ;;  %v10491_v20 = vpop.f32.mrf.mxu1 }
 0x20d   : > { %15543 = vst [vmem:[#allocation11_spill] sm:$0xff] %v13001_v2  ;;  %v15546_v39 = vld [vmem:[#allocation67_spill] sm:$0xff]  ;;  %v2056_v14 = vadd.f32 %v15548_v32, %v15547_v29  ;;  %v15364_v24 = vmax.f32 %v13001_v2, 0.0  ;;  %v3209_v31 = vld [vmem:[#allocation2 + $0xb1] sm:$0xff]  ;;  %v13015_v62 = vpack.c.bf16 %v3211_v33, %v3210_v43  ;;  %v2643_v29 = vadd.f32 %v10491_v20, %v2349_v0  ;;  %v5535_v2 = vld [vmem:[#allocation2 + $0x9a] sm:$0xff] }
 0x20e   : > { %15544 = vst [vmem:[#allocation45_spill] sm:$0xff] %v13007_v23  ;;  %v10525_v26 = vpop.f32.mrf.mxu0  ;;  %v2058_v13 = vadd.f32 %v15546_v39, %v15545_v9  ;;  %v3157_v46 = vld [vmem:[#allocation2 + $0xb0] sm:$0xff]  ;;  %v13019_v59 = vadd.f32 %v12686_v44, %v2970_v6  ;;  %v2973_v3 = vmul.f32 %v12670_v57, %v2934_v52  ;;  %v2932_v7 = vadd.f32 %v2867_v47, %v2638_v15  ;;  %v3156_v39 = vld [vmem:[#allocation2 + $0xa8] sm:$0xff]  ;;  %v2586_v32 = vpop.f32.mrf.mxu1 }
 0x20f   : > { %v3208_v9 = vld [vmem:[#allocation2 + $0xa9] sm:$0xff]  ;;  %3127 = vst.msk [vmem:[#allocation2 + $0xe1] sm:$0xff] %vm3053_vm2, %v15364_v24  ;;  %v13027_v33 = vpack.c.bf16 %v3157_v46, %v3156_v39  ;;  %v13029_v56 = vpack.c.bf16 %v3159_v51, %v3158_v18  ;;  %v15550_v6 = vmax.f32 %v13007_v23, 0.0  ;;  %v2641_v24 = vadd.f32 %v2586_v32, %v2347_v25 }
 0x210   : > { %15549 = vst [vmem:[#allocation34_spill] sm:$0xff] %v13019_v59  ;;  %v2880_v45 = vpop.f32.mrf.mxu0  ;;  %v13025_v43 = vpack.c.bf16 %v3209_v31, %v3208_v9  ;;  %v15365_v47 = vmax.f32 %v13019_v59, 0.0  ;;  %v13036_v52 = vadd.f32 %v12686_v44, %v2973_v3  ;;  %v2971_v15 = vmul.f32 %v12670_v57, %v2932_v7  ;;  %v15552_v20 = vld [vmem:[#allocation64_spill] sm:$0xff]  ;;  %v15553_v9 = vld [vmem:[#allocation26_spill] sm:$0xff]  ;;  %v10492_v51 = vpop.f32.mrf.mxu1 }
 0x211   : > { %3132 = vst.msk [vmem:[#allocation2 + $0x121] sm:$0xff] %vm3053_vm2, %v15550_v6  ;;  %v2348_v31 = vadd.f32 %v15552_v20, %v2053_v19  ;;  %v2059_v46 = vadd.f32 %v12637_v16, %v15553_v9  ;;  %v2937_v18 = vadd.f32 %v10525_v26, %v2643_v29  ;;  %10584 = vmatmul.mubr.msk.bf16.gmra.mxu0 %vm3053_vm2, %v13027_v33  ;;  %v15555_v26 = vld [vmem:[#allocation24_spill] sm:$0xff]  ;;  %v15556_v29 = vld [vmem:[#allocation66_spill] sm:$0xff] }
 0x212   : > { %15551 = vst [vmem:[#allocation36_spill] sm:$0xff] %v13036_v52  ;;  %v10526_v0 = vpop.f32.mrf.mxu0  ;;  %10548 = vmatmul.mubr.msk.bf16.gmra.mxu1 %vm3053_vm2, %v13025_v43  ;;  %3130 = vst.msk [vmem:[#allocation2 + $0x109] sm:$0xff] %vm3053_vm2, %v15365_v47  ;;  %v15368_v25 = vmax.f32 %v13036_v52, 0.0  ;;  %v13051_v3 = vadd.f32 %v12686_v44, %v2971_v15  ;;  %v2935_v19 = vadd.f32 %v2880_v45, %v2641_v24  ;;  %10587 = vmatprep.mubr.msk.bf16.mxu0 %vm3053_vm2, %v13029_v56  ;;  %v15557_v6 = vld [vmem:[#allocation68_spill] sm:$0xff]  ;;  %v2589_v15 = vpop.f32.mrf.mxu1 }
 0x213   : > { %v2644_v7 = vadd.f32 %v10492_v51, %v2350_v50  ;;  %10551 = vmatprep.mubr.msk.bf16.mxu1 %vm3053_vm2, %v13015_v62  ;;  %v1763_v39 = vadd.f32 %v15555_v26, %v12731_v21  ;;  %v2353_v32 = vadd.f32 %v15556_v29, %v2058_v13  ;;  %v2351_v20 = vadd.f32 %v15557_v6, %v2056_v14  ;;  %v3215_v47 = vld [vmem:[#allocation2 + $0xf9] sm:$0xff]  ;;  %v3214_v21 = vld [vmem:[#allocation2 + $0xf1] sm:$0xff] }
 0x214   : > { %15554 = vst [vmem:[#allocation38_spill] sm:$0xff] %v13051_v3  ;;  %v2883_v16 = vpop.f32.mrf.mxu0  ;;  %v2976_v9 = vmul.f32 %v12670_v57, %v2937_v18  ;;  %3133 = vst.msk [vmem:[#allocation2 + $0x129] sm:$0xff] %vm3053_vm2, %v15368_v25  ;;  %v15370_v24 = vmax.f32 %v13051_v3, 0.0  ;;  %v2974_v50 = vmul.f32 %v12670_v57, %v2935_v19  ;;  %v2642_v51 = vadd.f32 %v2589_v15, %v2348_v31  ;;  %v3163_v26 = vld [vmem:[#allocation2 + $0xf8] sm:$0xff]  ;;  %v10495_v29 = vpop.f32.mrf.mxu1  ;;  %v3162_v25 = vld [vmem:[#allocation2 + $0xf0] sm:$0xff] }
 0x215   : > { %v2938_v45 = vadd.f32 %v10526_v0, %v2644_v7  ;;  %v2354_v13 = vadd.f32 %v12631_v27, %v2059_v46  ;;  %v2057_v14 = vadd.f32 %v12647_v34, %v1763_v39  ;;  %v3212_v6 = vld [vmem:[#allocation2 + $0xd9] sm:$0xff]  ;;  %v13072_v52 = vpack.c.bf16 %v3215_v47, %v3214_v21 }
 0x216   : > { %v10529_v59 = vpop.f32.mrf.mxu0  ;;  %v13070_v18 = vadd.f32 %v12686_v44, %v2976_v9  ;;  %3131 = vst.msk [vmem:[#allocation2 + $0x111] sm:$0xff] %vm3053_vm2, %v15370_v24  ;;  %v13078_v0 = vadd.f32 %v12686_v44, %v2974_v50  ;;  %v2936_v27 = vadd.f32 %v2883_v16, %v2642_v51  ;;  %v2647_v46 = vadd.f32 %v10495_v29, %v2353_v32  ;;  %v3213_v19 = vld [vmem:[#allocation2 + $0xe1] sm:$0xff]  ;;  %v3160_v7 = vld [vmem:[#allocation2 + $0xd8] sm:$0xff]  ;;  %v2602_v47 = vpop.f32.mrf.mxu1 }
 0x217   : > { %v2977_v31 = vmul.f32 %v12670_v57, %v2938_v45  ;;  %v3161_v39 = vld [vmem:[#allocation2 + $0xe0] sm:$0xff]  ;;  %v13082_v15 = vpack.c.bf16 %v3213_v19, %v3212_v6  ;;  %v13086_v3 = vpack.c.bf16 %v3163_v26, %v3162_v25  ;;  %v2352_v45 = vadd.f32 %v12643_v35, %v2057_v14 }
 0x218   : > { %15558 = vst [vmem:[#allocation40_spill] sm:$0xff] %v13070_v18  ;;  %15559 = vst [vmem:[#allocation42_spill] sm:$0xff] %v13078_v0  ;;  %v2896_v34 = vpop.f32.mrf.mxu0  ;;  %v15377_v9 = vmax.f32 %v13070_v18, 0.0  ;;  %v13084_v21 = vpack.c.bf16 %v3161_v39, %v3160_v7  ;;  %v15378_v50 = vmax.f32 %v13078_v0, 0.0  ;;  %v2975_v16 = vmul.f32 %v12670_v57, %v2936_v27  ;;  %v10496_v25 = vpop.f32.mrf.mxu1 }
 0x219   : > { %v13090_v24 = vadd.f32 %v12686_v44, %v2977_v31  ;;  %v2941_v32 = vadd.f32 %v10529_v59, %v2647_v46  ;;  %v2645_v51 = vadd.f32 %v2602_v47, %v2351_v20  ;;  %v2648_v20 = vadd.f32 %v10496_v25, %v2354_v13  ;;  %v3216_v13 = vld [vmem:[#allocation2 + $0x109] sm:$0xff] }
 0x21a   : > { %3136 = vst.msk [vmem:[#allocation2 + $0x151] sm:$0xff] %vm3053_vm2, %v15377_v9  ;;  %10552 = vmatmul.mubr.msk.bf16.gmra.mxu1 %vm3053_vm2, %v13082_v15  ;;  %10588 = vmatmul.mubr.msk.bf16.gmra.mxu0 %vm3053_vm2, %v13084_v21  ;;  %v10530_v26 = vpop.f32.mrf.mxu0  ;;  %3134 = vst.msk [vmem:[#allocation2 + $0x139] sm:$0xff] %vm3053_vm2, %v15378_v50  ;;  %v13106_v35 = vadd.f32 %v12686_v44, %v2975_v16  ;;  %v2605_v6 = vpop.f32.mrf.mxu1  ;;  %v3692_v9 = vld [vmem:[#allocation2 + $0x22] sm:$0xff]  ;;  %v3693_v50 = vld [vmem:[#allocation2 + $0x32] sm:$0xff] }
 0x21b   : > { %15560 = vst [vmem:[#allocation44_spill] sm:$0xff] %v13090_v24  ;;  %v15371_v59 = vmax.f32 %v13090_v24, 0.0  ;;  %v2980_v14 = vmul.f32 %v12670_v57, %v2941_v32  ;;  %10555 = vmatprep.mubr.msk.bf16.mxu1 %vm3053_vm2, %v13072_v52  ;;  %10591 = vmatprep.mubr.msk.bf16.mxu0 %vm3053_vm2, %v13086_v3  ;;  %v2939_v29 = vadd.f32 %v2896_v34, %v2645_v51  ;;  %v3219_v7 = vld [vmem:[#allocation2 + $0x129] sm:$0xff] }
 0x21c   : > { %15561 = vst [vmem:[#allocation12_spill] sm:$0xff] %v13106_v35  ;;  %v15372_v31 = vmax.f32 %v13106_v35, 0.0  ;;  %v2942_v46 = vadd.f32 %v10530_v26, %v2648_v20  ;;  %v2646_v19 = vadd.f32 %v2605_v6, %v2352_v45  ;;  %v2899_v47 = vpop.f32.mrf.mxu0  ;;  %v3167_v34 = vld [vmem:[#allocation2 + $0x128] sm:$0xff]  ;;  %v3166_v6 = vld [vmem:[#allocation2 + $0x120] sm:$0xff] }
 0x21d   : > { %3137 = vst.msk [vmem:[#allocation2 + $0x159] sm:$0xff] %vm3053_vm2, %v15371_v59  ;;  %v13118_v27 = vadd.f32 %v12686_v44, %v2980_v14  ;;  %v2978_v39 = vmul.f32 %v12670_v57, %v2939_v29  ;;  %v3217_v16 = vld [vmem:[#allocation2 + $0x111] sm:$0xff]  ;;  %v3164_v45 = vld [vmem:[#allocation2 + $0x108] sm:$0xff] }
 0x21e   : > { %v3165_v32 = vld [vmem:[#allocation2 + $0x110] sm:$0xff]  ;;  %3135 = vst.msk [vmem:[#allocation2 + $0x141] sm:$0xff] %vm3053_vm2, %v15372_v31  ;;  %v2981_v25 = vmul.f32 %v12670_v57, %v2942_v46  ;;  %v2940_v14 = vadd.f32 %v2899_v47, %v2646_v19  ;;  %v13126_v59 = vpack.c.bf16 %v3217_v16, %v3216_v13  ;;  %v3218_v29 = vld [vmem:[#allocation2 + $0x121] sm:$0xff]  ;;  %v13142_v13 = vpack.c.bf16 %v3167_v34, %v3166_v6 }
 0x21f   : > { %15562 = vst [vmem:[#allocation47_spill] sm:$0xff] %v13118_v27  ;;  %v15373_v51 = vmax.f32 %v13118_v27, 0.0  ;;  %v13129_v26 = vadd.f32 %v12686_v44, %v2978_v39  ;;  %v13131_v20 = vpack.c.bf16 %v3165_v32, %v3164_v45  ;;  %v13140_v19 = vpack.c.bf16 %v3219_v7, %v3218_v29  ;;  %v3714_v27 = vld [vmem:[#allocation2 + $0x12a] sm:$0xff] }
 0x220   : > { %v13137_v31 = vadd.f32 %v12686_v44, %v2981_v25  ;;  %v2979_v46 = vmul.f32 %v12670_v57, %v2940_v14 }
 0x221   : > { %15563 = vst [vmem:[#allocation14_spill] sm:$0xff] %v13129_v26  ;;  %3140 = vst.msk [vmem:[#allocation2 + $0x181] sm:$0xff] %vm3053_vm2, %v15373_v51  ;;  %v15376_v39 = vmax.f32 %v13129_v26, 0.0  ;;  %v3220_v7 = vld [vmem:[#allocation2 + $0x139] sm:$0xff]  ;;  %v3222_v6 = vld [vmem:[#allocation2 + $0x151] sm:$0xff] }
 0x222   : > { %15564 = vst [vmem:[#allocation49_spill] sm:$0xff] %v13137_v31  ;;  %10556 = vmatmul.mubr.msk.bf16.gmra.mxu1 %vm3053_vm2, %v13126_v59  ;;  %10592 = vmatmul.mubr.msk.bf16.gmra.mxu0 %vm3053_vm2, %v13131_v20  ;;  %v15374_v47 = vmax.f32 %v13137_v31, 0.0  ;;  %v13151_v16 = vadd.f32 %v12686_v44, %v2979_v46  ;;  %v3168_v32 = vld [vmem:[#allocation2 + $0x138] sm:$0xff]  ;;  %v3170_v46 = vld [vmem:[#allocation2 + $0x150] sm:$0xff] }
 0x223   : > { %10559 = vmatprep.mubr.msk.bf16.mxu1 %vm3053_vm2, %v13140_v19  ;;  %10595 = vmatprep.mubr.msk.bf16.mxu0 %vm3053_vm2, %v13142_v13  ;;  %3138 = vst.msk [vmem:[#allocation2 + $0x169] sm:$0xff] %vm3053_vm2, %v15376_v39  ;;  %v3691_v39 = vld [vmem:[#allocation2 + $0x1a] sm:$0xff] }
 0x224   : > { %15565 = vst [vmem:[#allocation51_spill] sm:$0xff] %v13151_v16  ;;  %3141 = vst.msk [vmem:[#allocation2 + $0x189] sm:$0xff] %vm3053_vm2, %v15374_v47  ;;  %v15375_v57 = vmax.f32 %v13151_v16, 0.0  ;;  %v3223_v44 = vld [vmem:[#allocation2 + $0x159] sm:$0xff]  ;;  %v3713_v16 = vld [vmem:[#allocation2 + $0x122] sm:$0xff] }
 0x225   : > { %v3221_v34 = vld [vmem:[#allocation2 + $0x141] sm:$0xff]  ;;  %v3171_v14 = vld [vmem:[#allocation2 + $0x158] sm:$0xff]  ;;  %v13171_v51 = vpack.c.bf16 %v3223_v44, %v3222_v6  ;;  %v3733_v35 = vpack.c.bf16 %v3714_v27, %v3713_v16 }
 0x226   : > { %v3169_v25 = vld [vmem:[#allocation2 + $0x140] sm:$0xff]  ;;  %3139 = vst.msk [vmem:[#allocation2 + $0x171] sm:$0xff] %vm3053_vm2, %v15375_v57  ;;  %v13167_v45 = vpack.c.bf16 %v3221_v34, %v3220_v7  ;;  %v13173_v47 = vpack.c.bf16 %v3171_v14, %v3170_v46 }
 0x227   : > { %v13169_v29 = vpack.c.bf16 %v3169_v25, %v3168_v32  ;;  %v3689_v7 = vld [vmem:[#allocation2 + $0x2] sm:$0xff]  ;;  %v3690_v32 = vld [vmem:[#allocation2 + $0xa] sm:$0xff]  ;;  %v3694_v31 = vld [vmem:[#allocation2 + $0x3a] sm:$0xff] }
 0x228   : > { %v3721_v57 = vpack.c.bf16 %v3690_v32, %v3689_v7  ;;  %v11241_v7 = vld [vmem:[%s15329_s4 + $0x40] sm:$0xff]   ;;  %v13199_v32 = vpack.c.bf16 %v3694_v31, %v3693_v50  ;;  %v3695_v50 = vld [vmem:[#allocation2 + $0x4a] sm:$0xff] }
 0x229   : > { %v3697_v31 = vld [vmem:[#allocation2 + $0x62] sm:$0xff] }
 0x22a   : > { %10560 = vmatmul.mubr.msk.bf16.gmra.mxu1 %vm3053_vm2, %v13167_v45  ;;  %10596 = vmatmul.mubr.msk.bf16.gmra.mxu0 %vm3053_vm2, %v13169_v29  ;;  %v3224_v34 = vld [vmem:[#allocation2 + $0x169] sm:$0xff] }
 0x22b   : > { %10563 = vmatprep.mubr.msk.bf16.mxu1 %vm3053_vm2, %v13171_v51  ;;  %10599 = vmatprep.mubr.msk.bf16.mxu0 %vm3053_vm2, %v13173_v47  ;;  %v3172_v44 = vld [vmem:[#allocation2 + $0x168] sm:$0xff] }
 0x22d   : > { %v3225_v25 = vld [vmem:[#allocation2 + $0x171] sm:$0xff] }
 0x22e   : > { %v3173_v6 = vld [vmem:[#allocation2 + $0x170] sm:$0xff]  ;;  %v13183_v14 = vpack.c.bf16 %v3225_v25, %v3224_v34  ;;  %v13194_v34 = vpack.c.bf16 %v3692_v9, %v3691_v39  ;;  %v13216_v9 = vld [vmem:[%s15329_s4 + $0x68] sm:$0xff]  }
 0x22f   : > { %v13185_v46 = vpack.c.bf16 %v3173_v6, %v3172_v44  ;;  %v3698_v39 = vld [vmem:[#allocation2 + $0x6a] sm:$0xff]  ;;  %v3700_v25 = vld [vmem:[#allocation2 + $0x82] sm:$0xff]  ;;  %v3701_v44 = vld [vmem:[#allocation2 + $0x92] sm:$0xff] }
 0x230   : > { %v3702_v6 = vld [vmem:[#allocation2 + $0x9a] sm:$0xff]  ;;  %v3719_v27 = vld [vmem:[#allocation2 + $0x16a] sm:$0xff]  ;;  %v3720_v16 = vld [vmem:[#allocation2 + $0x172] sm:$0xff] }
 0x231   : > { %v3736_v0 = vpack.c.bf16 %v3720_v16, %v3719_v27  ;;  %v11249_v27 = vld [vmem:[%s15329_s4 + $0x80] sm:$0xff]   ;;  %v5553_v12 = vld [vmem:[#allocation2 + $0x172] sm:$0xff] }
 0x232   : > { %10564 = vmatmul.mubr.msk.bf16.gmra.mxu1 %vm3053_vm2, %v13183_v14  ;;  %10600 = vmatmul.mubr.msk.bf16.gmra.mxu0 %vm3053_vm2, %v13185_v46 }
 0x233   : > { %10643 = vmatprep.mubr.msk.bf16.mxu0 %vm3053_vm2, %v12823_v28  ;;  %10607 = vmatprep.mubr.msk.bf16.mxu1 %vm3053_vm2, %v3721_v57  ;;  %v11243_v28 = vld [vmem:[%s15329_s4 + $0x50] sm:$0xff]   ;;  %v13227_v57 = vpack.c.bf16 %v3698_v39, %v3697_v31 }
 0x23a   : > { %10608 = vmatmul.mubr.msk.bf16.vlgmr.msra.gmra.mxu1 %vm3053_vm2, %v13194_v34  ;;  %10644 = vmatmul.mubr.msk.bf16.vlgmr.msra.gmra.mxu0 %vm3053_vm2, %v12845_v53  ;;  %v3696_v53 = vld [vmem:[#allocation2 + $0x52] sm:$0xff] }
 0x23b   : > { %10676 = vmatpush3.bf16.msra.mxu1 %v12870_v40  ;;  %10611 = vmatprep.mubr.msk.bf16.mxu1 %vm3053_vm2, %v13199_v32  ;;  %v13219_v40 = vpack.c.bf16 %v3696_v53, %v3695_v50  ;;  %v3705_v50 = vld [vmem:[#allocation2 + $0xc2] sm:$0xff]  ;;  %v3706_v53 = vld [vmem:[#allocation2 + $0xca] sm:$0xff] }
 0x23c   : > { %10647 = vmatprep.mubr.msk.bf16.mxu0 %vm3053_vm2, %v12900_v42  ;;  %10677 = vmatprep.subr.bf16.mxu1 %v11241_v7  ;;  %v13225_v42 = vld [vmem:[%s15329_s4 + $0x78] sm:$0xff]   ;;  %v13252_v39 = vpack.c.bf16 %v3706_v53, %v3705_v50  ;;  %v3711_v50 = vld [vmem:[#allocation2 + $0x10a] sm:$0xff] }
 0x23d   : > { %10712 = vmatpush3.bf16.msra.mxu0 %v12908_v48  ;;  %v3699_v48 = vld [vmem:[#allocation2 + $0x7a] sm:$0xff]  ;;  %v3712_v53 = vld [vmem:[#allocation2 + $0x112] sm:$0xff] }
 0x23e   : > { %10713 = vmatprep.subr.bf16.mxu0 %v11243_v28  ;;  %v3732_v26 = vpack.c.bf16 %v3712_v53, %v3711_v50  ;;  %v4026_v50 = vld [vmem:[#allocation2 + $0x188] sm:$0xff]  ;;  %v4025_v53 = vld [vmem:[#allocation2 + $0x180] sm:$0xff] }
 0x23f   : > { %10678 = vmatpush3.bf16.msra.mxu1 %v11241_v7  ;;  %v13238_v7 = vpack.c.bf16 %v3700_v25, %v3699_v48  ;;  %v3707_v48 = vld [vmem:[#allocation2 + $0xda] sm:$0xff]  ;;  %v3708_v25 = vld [vmem:[#allocation2 + $0xe2] sm:$0xff]  ;;  %v13280_v23 = vpack.c.bf16 %v4026_v50, %v4025_v53 }
 0x240   : > { %10747 = vmatprep.subr.bf16.mxu1 %v13216_v9  ;;  %v5224_v50 = vld [vmem:[#allocation2 + $0x61] sm:$0xff] }
 0x241   : > { %10714 = vmatpush3.bf16.msra.mxu0 %v11243_v28  ;;  %v13240_v28 = vpack.c.bf16 %v3702_v6, %v3701_v44  ;;  %v3709_v44 = vld [vmem:[#allocation2 + $0xf2] sm:$0xff]  ;;  %v3710_v6 = vld [vmem:[#allocation2 + $0xfa] sm:$0xff] }
 0x242   : > { %10612 = vmatmul.mubr.msk.bf16.gmra.mxu1 %vm3053_vm2, %v13219_v40  ;;  %10648 = vmatmul.mubr.msk.bf16.gmra.mxu0 %vm3053_vm2, %v12923_v30  ;;  %v3703_v30 = vld [vmem:[#allocation2 + $0xaa] sm:$0xff] }
 0x243   : > { %10615 = vmatprep.mubr.msk.bf16.mxu1 %vm3053_vm2, %v13227_v57  ;;  %10651 = vmatprep.mubr.msk.bf16.mxu0 %vm3053_vm2, %v12969_v37  ;;  %v3704_v37 = vld [vmem:[#allocation2 + $0xb2] sm:$0xff] }
 0x244   : > { %10783 = vmatprep.subr.bf16.mxu0 %v13225_v42  ;;  %v13250_v31 = vpack.c.bf16 %v3704_v37, %v3703_v30  ;;  %v3730_v30 = vpack.c.bf16 %v3708_v25, %v3707_v48  ;;  %v3731_v37 = vpack.c.bf16 %v3710_v6, %v3709_v44  ;;  %v3715_v48 = vld [vmem:[#allocation2 + $0x13a] sm:$0xff]  ;;  %v3716_v25 = vld [vmem:[#allocation2 + $0x142] sm:$0xff]  ;;  %v3717_v44 = vld [vmem:[#allocation2 + $0x152] sm:$0xff] }
 0x245   : > { %v3718_v6 = vld [vmem:[#allocation2 + $0x15a] sm:$0xff]  ;;  %v3734_v24 = vpack.c.bf16 %v3716_v25, %v3715_v48  ;;  %v11247_v25 = vld [vmem:[%s15329_s4 + $0x70] sm:$0xff]  }
 0x246   : > { %v3735_v18 = vpack.c.bf16 %v3718_v6, %v3717_v44  ;;  %v11245_v48 = vld [vmem:[%s15329_s4 + $0x60] sm:$0xff]  }
 0x247   : > { %v4918_v6 = vld [vmem:[#allocation2 + $0x60] sm:$0xff] }
 0x24a   : > { %10616 = vmatmul.mubr.msk.bf16.gmra.mxu1 %vm3053_vm2, %v13238_v7  ;;  %10652 = vmatmul.mubr.msk.bf16.gmra.mxu0 %vm3053_vm2, %v12971_v17 }
 0x24b   : > { %10619 = vmatprep.mubr.msk.bf16.mxu1 %vm3053_vm2, %v13240_v28  ;;  %10655 = vmatprep.mubr.msk.bf16.mxu0 %vm3053_vm2, %v13027_v33 }
 0x252   : > { %10620 = vmatmul.mubr.msk.bf16.gmra.mxu1 %vm3053_vm2, %v13250_v31  ;;  %10656 = vmatmul.mubr.msk.bf16.gmra.mxu0 %vm3053_vm2, %v13029_v56 }
 0x253   : > { %10623 = vmatprep.mubr.msk.bf16.mxu1 %vm3053_vm2, %v13252_v39  ;;  %10659 = vmatprep.mubr.msk.bf16.mxu0 %vm3053_vm2, %v13084_v21 }
 0x25a   : > { %10624 = vmatmul.mubr.msk.bf16.gmra.mxu1 %vm3053_vm2, %v3730_v30  ;;  %10660 = vmatmul.mubr.msk.bf16.gmra.mxu0 %vm3053_vm2, %v13086_v3 }
 0x25b   : > { %10627 = vmatprep.mubr.msk.bf16.mxu1 %vm3053_vm2, %v3731_v37  ;;  %10663 = vmatprep.mubr.msk.bf16.mxu0 %vm3053_vm2, %v13131_v20 }
 0x262   : > { %10628 = vmatmul.mubr.msk.bf16.gmra.mxu1 %vm3053_vm2, %v3732_v26  ;;  %10664 = vmatmul.mubr.msk.bf16.gmra.mxu0 %vm3053_vm2, %v13142_v13 }
 0x263   : > { %10631 = vmatprep.mubr.msk.bf16.mxu1 %vm3053_vm2, %v3733_v35  ;;  %10667 = vmatprep.mubr.msk.bf16.mxu0 %vm3053_vm2, %v13169_v29 }
 0x26a   : > { %10632 = vmatmul.mubr.msk.bf16.gmra.mxu1 %vm3053_vm2, %v3734_v24  ;;  %10668 = vmatmul.mubr.msk.bf16.gmra.mxu0 %vm3053_vm2, %v13173_v47 }
 0x26b   : > { %10635 = vmatprep.mubr.msk.bf16.mxu1 %vm3053_vm2, %v3735_v18  ;;  %10671 = vmatprep.mubr.msk.bf16.mxu0 %vm3053_vm2, %v13185_v46 }
 0x272   : > { %10636 = vmatmul.mubr.msk.bf16.gmra.mxu1 %vm3053_vm2, %v3736_v0  ;;  %10672 = vmatmul.mubr.msk.bf16.gmra.mxu0 %vm3053_vm2, %v13280_v23 }
 0x273   : > { %10679 = vmatprep.mubr.msk.bf16.mxu1 %vm3053_vm2, %v12821_v11  ;;  %10715 = vmatprep.mubr.msk.bf16.mxu0 %vm3053_vm2, %v13194_v34  ;;  %v13307_v11 = vld [vmem:[%s15329_s4 + $0x88] sm:$0xff]  }
 0x27a   : > { %10680 = vmatmul.mubr.msk.bf16.vlgmr.msra.gmra.mxu1 %vm3053_vm2, %v12825_v36  ;;  %10716 = vmatmul.mubr.msk.bf16.vlgmr.msra.gmra.mxu0 %vm3053_vm2, %v13199_v32  ;;  %v4332_v36 = vld [vmem:[#allocation2 + $0x189] sm:$0xff] }
 0x27b   : > { %10748 = vmatpush3.bf16.msra.mxu1 %v13216_v9  ;;  %10683 = vmatprep.mubr.msk.bf16.mxu1 %vm3053_vm2, %v12898_v10  ;;  %v4638_v10 = vld [vmem:[#allocation2 + $0x18a] sm:$0xff] }
 0x27c   : > { %10719 = vmatprep.mubr.msk.bf16.mxu0 %vm3053_vm2, %v13219_v40  ;;  %10749 = vmatprep.subr.bf16.mxu1 %v11245_v48  ;;  %v5220_v9 = vld [vmem:[#allocation2 + $0x31] sm:$0xff] }
 0x27d   : > { %10784 = vmatpush3.bf16.msra.mxu0 %v13225_v42 }
 0x27e   : > { %10785 = vmatprep.subr.bf16.mxu0 %v11247_v25 }
 0x27f   : > { %10750 = vmatpush3.bf16.msra.mxu1 %v11245_v48 }
 0x280   : > { %10819 = vmatprep.subr.bf16.mxu1 %v13307_v11 }
 0x281   : > { %10786 = vmatpush3.bf16.msra.mxu0 %v11247_v25 }
 0x282   : > { %10684 = vmatmul.mubr.msk.bf16.gmra.mxu1 %vm3053_vm2, %v12902_v4  ;;  %10720 = vmatmul.mubr.msk.bf16.gmra.mxu0 %vm3053_vm2, %v13227_v57  ;;  %v4637_v4 = vld [vmem:[#allocation2 + $0x182] sm:$0xff] }
 0x283   : > { %10687 = vmatprep.mubr.msk.bf16.mxu1 %vm3053_vm2, %v12967_v54  ;;  %10723 = vmatprep.mubr.msk.bf16.mxu0 %vm3053_vm2, %v13238_v7  ;;  %v5221_v54 = vld [vmem:[#allocation2 + $0x39] sm:$0xff]  ;;  %v13354_v34 = vpack.c.bf16 %v4638_v10, %v4637_v4 }
 0x284   : > { %v5252_v7 = vpack.c.bf16 %v5221_v54, %v5220_v9  ;;  %v4921_v54 = vld [vmem:[#allocation2 + $0x80] sm:$0xff] }
 0x28a   : > { %10688 = vmatmul.mubr.msk.bf16.gmra.mxu1 %vm3053_vm2, %v12956_v61  ;;  %10724 = vmatmul.mubr.msk.bf16.gmra.mxu0 %vm3053_vm2, %v13240_v28  ;;  %v4915_v61 = vld [vmem:[#allocation2 + $0x38] sm:$0xff]  ;;  %v4919_v28 = vld [vmem:[#allocation2 + $0x68] sm:$0xff] }
 0x28b   : > { %10691 = vmatprep.mubr.msk.bf16.mxu1 %vm3053_vm2, %v13025_v43  ;;  %10727 = vmatprep.mubr.msk.bf16.mxu0 %vm3053_vm2, %v13250_v31  ;;  %v4916_v31 = vld [vmem:[#allocation2 + $0x48] sm:$0xff]  ;;  %v4948_v16 = vpack.c.bf16 %v4919_v28, %v4918_v6 }
 0x292   : > { %10692 = vmatmul.mubr.msk.bf16.gmra.mxu1 %vm3053_vm2, %v13015_v62  ;;  %10728 = vmatmul.mubr.msk.bf16.gmra.mxu0 %vm3053_vm2, %v13252_v39  ;;  %v5222_v39 = vld [vmem:[#allocation2 + $0x49] sm:$0xff] }
 0x293   : > { %10695 = vmatprep.mubr.msk.bf16.mxu1 %vm3053_vm2, %v13082_v15  ;;  %10731 = vmatprep.mubr.msk.bf16.mxu0 %vm3053_vm2, %v3730_v30  ;;  %v5225_v30 = vld [vmem:[#allocation2 + $0x69] sm:$0xff] }
 0x294   : > { %v5254_v25 = vpack.c.bf16 %v5225_v30, %v5224_v50  ;;  %v5228_v30 = vld [vmem:[#allocation2 + $0x91] sm:$0xff] }
 0x29a   : > { %10696 = vmatmul.mubr.msk.bf16.gmra.mxu1 %vm3053_vm2, %v13072_v52  ;;  %10732 = vmatmul.mubr.msk.bf16.gmra.mxu0 %vm3053_vm2, %v3731_v37 }
 0x29b   : > { %10699 = vmatprep.mubr.msk.bf16.mxu1 %vm3053_vm2, %v13126_v59  ;;  %10735 = vmatprep.mubr.msk.bf16.mxu0 %vm3053_vm2, %v3732_v26 }
 0x2a2   : > { %10700 = vmatmul.mubr.msk.bf16.gmra.mxu1 %vm3053_vm2, %v13140_v19  ;;  %10736 = vmatmul.mubr.msk.bf16.gmra.mxu0 %vm3053_vm2, %v3733_v35  ;;  %v4331_v35 = vld [vmem:[#allocation2 + $0x181] sm:$0xff] }
 0x2a3   : > { %10703 = vmatprep.mubr.msk.bf16.mxu1 %vm3053_vm2, %v13167_v45  ;;  %10739 = vmatprep.mubr.msk.bf16.mxu0 %vm3053_vm2, %v3734_v24  ;;  %v13352_v26 = vpack.c.bf16 %v4332_v36, %v4331_v35  ;;  %v4914_v24 = vld [vmem:[#allocation2 + $0x30] sm:$0xff]  ;;  %v5227_v35 = vld [vmem:[#allocation2 + $0x81] sm:$0xff] }
 0x2a4   : > { %v4946_v42 = vpack.c.bf16 %v4915_v61, %v4914_v24 }
 0x2aa   : > { %10704 = vmatmul.mubr.msk.bf16.gmra.mxu1 %vm3053_vm2, %v13171_v51  ;;  %10740 = vmatmul.mubr.msk.bf16.gmra.mxu0 %vm3053_vm2, %v3735_v18  ;;  %v4917_v18 = vld [vmem:[#allocation2 + $0x50] sm:$0xff] }
 0x2ab   : > { %10707 = vmatprep.mubr.msk.bf16.mxu1 %vm3053_vm2, %v13183_v14  ;;  %10743 = vmatprep.mubr.msk.bf16.mxu0 %vm3053_vm2, %v3736_v0  ;;  %v5223_v0 = vld [vmem:[#allocation2 + $0x51] sm:$0xff]  ;;  %v4947_v37 = vpack.c.bf16 %v4917_v18, %v4916_v31 }
 0x2ac   : > { %v5253_v44 = vpack.c.bf16 %v5223_v0, %v5222_v39  ;;  %v4920_v18 = vld [vmem:[#allocation2 + $0x78] sm:$0xff] }
 0x2ad   : > { %v5226_v0 = vld [vmem:[#allocation2 + $0x79] sm:$0xff]  ;;  %v4949_v31 = vpack.c.bf16 %v4921_v54, %v4920_v18 }
 0x2ae   : > { %v5255_v39 = vpack.c.bf16 %v5227_v35, %v5226_v0 }
 0x2b2   : > { %10708 = vmatmul.mubr.msk.bf16.gmra.mxu1 %vm3053_vm2, %v13352_v26  ;;  %10744 = vmatmul.mubr.msk.bf16.gmra.mxu0 %vm3053_vm2, %v13354_v34 }
 0x2b3   : > { %10751 = vmatprep.mubr.msk.bf16.mxu1 %vm3053_vm2, %v4946_v42  ;;  %10787 = vmatprep.mubr.msk.bf16.mxu0 %vm3053_vm2, %v5252_v7  ;;  %v5229_v42 = vld [vmem:[#allocation2 + $0x99] sm:$0xff] }
 0x2b8   : > { %v10537_v53 = vpop.f32.mrf.mxu1  ;;  %v10573_v48 = vpop.f32.mrf.mxu0 }
 0x2b9   : > { %v13367_v36 = vadd.f32 %v10573_v48, %v10537_v53 }
 0x2ba   : > { %10752 = vmatmul.mubr.msk.bf16.vlgmr.msra.gmra.mxu1 %vm3053_vm2, %v4947_v37  ;;  %10788 = vmatmul.mubr.msk.bf16.vlgmr.msra.gmra.mxu0 %vm3053_vm2, %v5253_v44  ;;  %v3341_v4 = vpop.f32.mrf.mxu1  ;;  %v3562_v10 = vpop.f32.mrf.mxu0  ;;  %v5256_v44 = vpack.c.bf16 %v5229_v42, %v5228_v30 }
 0x2bb   : > { %10820 = vmatpush3.bf16.msra.mxu1 %v13307_v11  ;;  %10755 = vmatprep.mubr.msk.bf16.mxu1 %vm3053_vm2, %v4948_v16  ;;  %v13372_v61 = vadd.f32 %v3562_v10, %v3341_v4 }
 0x2bc   : > { %10791 = vmatprep.mubr.msk.bf16.mxu0 %vm3053_vm2, %v5254_v25  ;;  %10821 = vmatprep.subr.bf16.mxu1 %v11249_v27  ;;  %v10538_v24 = vpop.f32.mrf.mxu1  ;;  %v10574_v9 = vpop.f32.mrf.mxu0 }
 0x2bd   : > { %v13374_v7 = vadd.f32 %v10574_v9, %v10538_v24 }
 0x2be   : > { %v3344_v11 = vpop.f32.mrf.mxu1  ;;  %v3565_v28 = vpop.f32.mrf.mxu0 }
 0x2bf   : > { %10822 = vmatpush3.bf16.msra.mxu1 %v11249_v27  ;;  %v13376_v37 = vadd.f32 %v3565_v28, %v3344_v11 }
 0x2c0   : > { %v10541_v6 = vpop.f32.mrf.mxu1 }
 0x2c1   : > { %v10577_v16 = vpop.f32.mrf.mxu0 }
 0x2c2   : > { %10756 = vmatmul.mubr.msk.bf16.gmra.mxu1 %vm3053_vm2, %v4949_v31  ;;  %10792 = vmatmul.mubr.msk.bf16.gmra.mxu0 %vm3053_vm2, %v5255_v39  ;;  %v13380_v50 = vadd.f32 %v10577_v16, %v10541_v6  ;;  %v3357_v27 = vpop.f32.mrf.mxu1 }
 0x2c3   : > { %10759 = vmatprep.mubr.msk.bf16.mxu1 %vm3053_vm2, %v12971_v17  ;;  %10795 = vmatprep.mubr.msk.bf16.mxu0 %vm3053_vm2, %v5256_v44  ;;  %v3578_v53 = vpop.f32.mrf.mxu0 }
 0x2c4   : > { %v13385_v48 = vadd.f32 %v3578_v53, %v3357_v27  ;;  %v10542_v25 = vpop.f32.mrf.mxu1 }
 0x2c5   : > { %v10578_v4 = vpop.f32.mrf.mxu0 }
 0x2c6   : > { %v13387_v10 = vadd.f32 %v10578_v4, %v10542_v25  ;;  %v3360_v54 = vpop.f32.mrf.mxu1 }
 0x2c7   : > { %v3581_v35 = vpop.f32.mrf.mxu0 }
 0x2c8   : > { %v13389_v24 = vadd.f32 %v3581_v35, %v3360_v54 }
 0x2c9   : > { %v10545_v9 = vpop.f32.mrf.mxu1  ;;  %v10581_v42 = vpop.f32.mrf.mxu0 }
 0x2ca   : > { %10760 = vmatmul.mubr.msk.bf16.gmra.mxu1 %vm3053_vm2, %v13027_v33  ;;  %10796 = vmatmul.mubr.msk.bf16.gmra.mxu0 %vm3053_vm2, %v13025_v43  ;;  %v13395_v17 = vadd.f32 %v10581_v42, %v10545_v9 }
 0x2cb   : > { %10763 = vmatprep.mubr.msk.bf16.mxu1 %vm3053_vm2, %v13029_v56  ;;  %10799 = vmatprep.mubr.msk.bf16.mxu0 %vm3053_vm2, %v13015_v62  ;;  %v3373_v18 = vpop.f32.mrf.mxu1  ;;  %v3594_v0 = vpop.f32.mrf.mxu0 }
 0x2cc   : > { %v13401_v11 = vadd.f32 %v3594_v0, %v3373_v18 }
 0x2cd   : > { %v10546_v28 = vpop.f32.mrf.mxu1  ;;  %v10582_v31 = vpop.f32.mrf.mxu0 }
 0x2ce   : > { %v13403_v39 = vadd.f32 %v10582_v31, %v10546_v28 }
 0x2cf   : > { %v3376_v33 = vpop.f32.mrf.mxu1  ;;  %v3597_v30 = vpop.f32.mrf.mxu0 }
 0x2d0   : > { %v13405_v44 = vadd.f32 %v3597_v30, %v3376_v33 }
 0x2d1   : > { %v10585_v6 = vpop.f32.mrf.mxu0 }
 0x2d2   : > { %v10549_v43 = vpop.f32.mrf.mxu1  ;;  %10764 = vmatmul.mubr.msk.bf16.gmra.mxu1 %vm3053_vm2, %v13084_v21  ;;  %10800 = vmatmul.mubr.msk.bf16.gmra.mxu0 %vm3053_vm2, %v13082_v15 }
 0x2d3   : > { %v13411_v62 = vadd.f32 %v10585_v6, %v10549_v43  ;;  %10767 = vmatprep.mubr.msk.bf16.mxu1 %vm3053_vm2, %v13086_v3  ;;  %10803 = vmatprep.mubr.msk.bf16.mxu0 %vm3053_vm2, %v13072_v52  ;;  %v3610_v16 = vpop.f32.mrf.mxu0 }
 0x2d4   : > { %v3389_v56 = vpop.f32.mrf.mxu1 }
 0x2d5   : > { %v13417_v27 = vadd.f32 %v3610_v16, %v3389_v56  ;;  %v10586_v25 = vpop.f32.mrf.mxu0 }
 0x2d6   : > { %v10550_v53 = vpop.f32.mrf.mxu1 }
 0x2d7   : > { %v13419_v4 = vadd.f32 %v10586_v25, %v10550_v53  ;;  %v3613_v54 = vpop.f32.mrf.mxu0 }
 0x2d8   : > { %v3392_v21 = vpop.f32.mrf.mxu1 }
 0x2d9   : > { %v13421_v35 = vadd.f32 %v3613_v54, %v3392_v21  ;;  %v4945_v54 = vld [vmem:[#allocation2 + $0x1a0] sm:$0xff] }
 0x2da   : > { %v10553_v15 = vpop.f32.mrf.mxu1  ;;  %v10589_v9 = vpop.f32.mrf.mxu0  ;;  %10768 = vmatmul.mubr.msk.bf16.gmra.mxu1 %vm3053_vm2, %v13131_v20  ;;  %10804 = vmatmul.mubr.msk.bf16.gmra.mxu0 %vm3053_vm2, %v13126_v59 }
 0x2db   : > { %v13427_v52 = vadd.f32 %v10589_v9, %v10553_v15  ;;  %10771 = vmatprep.mubr.msk.bf16.mxu1 %vm3053_vm2, %v13142_v13  ;;  %10807 = vmatprep.mubr.msk.bf16.mxu0 %vm3053_vm2, %v13140_v19  ;;  %v5250_v15 = vld [vmem:[#allocation2 + $0x199] sm:$0xff]  ;;  %v5251_v9 = vld [vmem:[#allocation2 + $0x1a1] sm:$0xff] }
 0x2dc   : > { %v3405_v3 = vpop.f32.mrf.mxu1  ;;  %v3626_v42 = vpop.f32.mrf.mxu0 }
 0x2dd   : > { %v13433_v18 = vadd.f32 %v3626_v42, %v3405_v3 }
 0x2de   : > { %v10554_v0 = vpop.f32.mrf.mxu1  ;;  %v10590_v28 = vpop.f32.mrf.mxu0 }
 0x2df   : > { %v13435_v31 = vadd.f32 %v10590_v28, %v10554_v0 }
 0x2e0   : > { %v13437_v20 = vpop.f32.mrf.mxu1  ;;  %v13439_v33 = vpop.f32.mrf.mxu0 }
 0x2e2   : > { %v10557_v59 = vpop.f32.mrf.mxu1  ;;  %v10593_v30 = vpop.f32.mrf.mxu0  ;;  %10772 = vmatmul.mubr.msk.bf16.gmra.mxu1 %vm3053_vm2, %v13169_v29  ;;  %10808 = vmatmul.mubr.msk.bf16.gmra.mxu0 %vm3053_vm2, %v13167_v45 }
 0x2e3   : > { %v13445_v19 = vadd.f32 %v10593_v30, %v10557_v59  ;;  %10775 = vmatprep.mubr.msk.bf16.mxu1 %vm3053_vm2, %v13173_v47  ;;  %10811 = vmatprep.mubr.msk.bf16.mxu0 %vm3053_vm2, %v13171_v51  ;;  %v4944_v51 = vld [vmem:[#allocation2 + $0x198] sm:$0xff] }
 0x2e4   : > { %v3421_v13 = vpop.f32.mrf.mxu1  ;;  %v3642_v43 = vpop.f32.mrf.mxu0  ;;  %v4961_v59 = vpack.c.bf16 %v4945_v54, %v4944_v51 }
 0x2e5   : > { %v13451_v6 = vadd.f32 %v3642_v43, %v3421_v13 }
 0x2e6   : > { %v10558_v56 = vpop.f32.mrf.mxu1  ;;  %v10594_v16 = vpop.f32.mrf.mxu0 }
 0x2e7   : > { %v13453_v53 = vadd.f32 %v10594_v16, %v10558_v56 }
 0x2e8   : > { %v13455_v29 = vpop.f32.mrf.mxu1  ;;  %v13457_v25 = vpop.f32.mrf.mxu0 }
 0x2ea   : > { %v10561_v45 = vpop.f32.mrf.mxu1  ;;  %v10597_v21 = vpop.f32.mrf.mxu0  ;;  %10776 = vmatmul.mubr.msk.bf16.gmra.mxu1 %vm3053_vm2, %v13185_v46  ;;  %10812 = vmatmul.mubr.msk.bf16.gmra.mxu0 %vm3053_vm2, %v13183_v14  ;;  %v5267_v14 = vpack.c.bf16 %v5251_v9, %v5250_v15 }
 0x2eb   : > { %v13463_v47 = vadd.f32 %v10597_v21, %v10561_v45  ;;  %10779 = vmatprep.mubr.msk.bf16.mxu1 %vm3053_vm2, %v13280_v23  ;;  %10815 = vmatprep.mubr.msk.bf16.mxu0 %vm3053_vm2, %v13352_v26 }
 0x2ec   : > { %v3437_v3 = vpop.f32.mrf.mxu1  ;;  %v3658_v42 = vpop.f32.mrf.mxu0 }
 0x2ed   : > { %v13469_v0 = vadd.f32 %v3658_v42, %v3437_v3 }
 0x2ee   : > { %v10562_v46 = vpop.f32.mrf.mxu1  ;;  %v10598_v28 = vpop.f32.mrf.mxu0 }
 0x2ef   : > { %v13471_v30 = vadd.f32 %v10598_v28, %v10562_v46 }
 0x2f0   : > { %v13473_v13 = vpop.f32.mrf.mxu1  ;;  %v13475_v43 = vpop.f32.mrf.mxu0 }
 0x2f2   : > { %v10565_v23 = vpop.f32.mrf.mxu1  ;;  %v10601_v56 = vpop.f32.mrf.mxu0  ;;  %10780 = vmatmul.mubr.msk.bf16.gmra.mxu1 %vm3053_vm2, %v4961_v59  ;;  %10816 = vmatmul.mubr.msk.bf16.gmra.mxu0 %vm3053_vm2, %v5267_v14 }
 0x2f3   : > { %v13479_v26 = vadd.f32 %v10601_v56, %v10565_v23  ;;  %10823 = vmatprep.mubr.msk.bf16.mxu1 %vm3053_vm2, %v13199_v32  ;;  %v5532_v56 = vld [vmem:[#allocation2 + $0x7a] sm:$0xff] }
 0x2f4   : > { %v3453_v16 = vpop.f32.mrf.mxu1  ;;  %v3674_v45 = vpop.f32.mrf.mxu0 }
 0x2f5   : > { %v13483_v21 = vadd.f32 %v3674_v45, %v3453_v16  ;;  %v5533_v16 = vld [vmem:[#allocation2 + $0x82] sm:$0xff] }
 0x2f6   : > { %v10566_v51 = vpop.f32.mrf.mxu1  ;;  %v10602_v54 = vpop.f32.mrf.mxu0 }
 0x2f7   : > { %v13485_v15 = vadd.f32 %v10602_v54, %v10566_v51  ;;  %v5534_v54 = vld [vmem:[#allocation2 + $0x92] sm:$0xff] }
 0x2f8   : > { %v13487_v9 = vpop.f32.mrf.mxu1  ;;  %v13489_v3 = vpop.f32.mrf.mxu0 }
 0x2fa   : > { %v10609_v42 = vpop.f32.mrf.mxu1  ;;  %v10645_v46 = vpop.f32.mrf.mxu0  ;;  %10824 = vmatmul.mubr.msk.bf16.vlgmr.msra.gmra.mxu1 %vm3053_vm2, %v13219_v40 }
 0x2fb   : > { %v3965_v28 = vadd.f32 %v10609_v42, %v13367_v36  ;;  %10827 = vmatprep.mubr.msk.bf16.mxu1 %vm3053_vm2, %v13227_v57  ;;  %v5561_v57 = vpack.c.bf16 %v5533_v16, %v5532_v56  ;;  %v5536_v16 = vld [vmem:[#allocation2 + $0xaa] sm:$0xff] }
 0x2fc   : > { %v3836_v32 = vpop.f32.mrf.mxu1  ;;  %v4142_v59 = vpop.f32.mrf.mxu0 }
 0x2fd   : > { %v13496_v14 = vadd.f32 %v10645_v46, %v3965_v28  ;;  %v3963_v23 = vadd.f32 %v3836_v32, %v13372_v61  ;;  %v5562_v61 = vpack.c.bf16 %v5535_v2, %v5534_v54  ;;  %v5539_v2 = vld [vmem:[#allocation2 + $0xca] sm:$0xff] }
 0x2fe   : > { %v10610_v45 = vpop.f32.mrf.mxu1  ;;  %v10646_v51 = vpop.f32.mrf.mxu0 }
 0x2ff   : > { %v13499_v49 = vadd.f32 %v4142_v59, %v3963_v23  ;;  %v3966_v40 = vadd.f32 %v10610_v45, %v13374_v7  ;;  %v5537_v45 = vld [vmem:[#allocation2 + $0xb2] sm:$0xff] }
 0x300   : > { %v3839_v36 = vpop.f32.mrf.mxu1  ;;  %v13502_v42 = vpop.f32.mrf.mxu0 }
 0x301   : > { %v13504_v1 = vadd.f32 %v10646_v51, %v3966_v40  ;;  %v13507_v46 = vadd.f32 %v3839_v36, %v13376_v37  ;;  %v5538_v40 = vld [vmem:[#allocation2 + $0xc2] sm:$0xff] }
 0x302   : > { %v10613_v28 = vpop.f32.mrf.mxu1  ;;  %v10649_v32 = vpop.f32.mrf.mxu0  ;;  %10828 = vmatmul.mubr.msk.bf16.gmra.mxu1 %vm3053_vm2, %v5561_v57 }
 0x303   : > { %v3969_v55 = vadd.f32 %v10613_v28, %v13380_v50  ;;  %10831 = vmatprep.mubr.msk.bf16.mxu1 %vm3053_vm2, %v5562_v61  ;;  %v5563_v61 = vpack.c.bf16 %v5537_v45, %v5536_v16  ;;  %v5540_v45 = vld [vmem:[#allocation2 + $0xda] sm:$0xff] }
 0x304   : > { %v3852_v59 = vpop.f32.mrf.mxu1  ;;  %v4158_v7 = vpop.f32.mrf.mxu0 }
 0x305   : > { %v13512_v23 = vadd.f32 %v10649_v32, %v3969_v55  ;;  %v3967_v56 = vadd.f32 %v3852_v59, %v13385_v48  ;;  %v5564_v48 = vpack.c.bf16 %v5539_v2, %v5538_v40  ;;  %v5543_v40 = vld [vmem:[#allocation2 + $0xfa] sm:$0xff] }
 0x306   : > { %v10614_v51 = vpop.f32.mrf.mxu1  ;;  %v10650_v37 = vpop.f32.mrf.mxu0 }
 0x307   : > { %v13515_v54 = vadd.f32 %v4158_v7, %v3967_v56  ;;  %v3970_v36 = vadd.f32 %v10614_v51, %v13387_v10  ;;  %v5541_v51 = vld [vmem:[#allocation2 + $0xe2] sm:$0xff] }
 0x308   : > { %v3855_v57 = vpop.f32.mrf.mxu1  ;;  %v13518_v50 = vpop.f32.mrf.mxu0 }
 0x309   : > { %v13520_v28 = vadd.f32 %v10650_v37, %v3970_v36  ;;  %v13523_v55 = vadd.f32 %v3855_v57, %v13389_v24  ;;  %v5542_v36 = vld [vmem:[#allocation2 + $0xf2] sm:$0xff] }
 0x30a   : > { %v10617_v32 = vpop.f32.mrf.mxu1  ;;  %v10653_v59 = vpop.f32.mrf.mxu0  ;;  %10832 = vmatmul.mubr.msk.bf16.gmra.mxu1 %vm3053_vm2, %v5563_v61 }
 0x30b   : > { %v3973_v58 = vadd.f32 %v10617_v32, %v13395_v17  ;;  %10835 = vmatprep.mubr.msk.bf16.mxu1 %vm3053_vm2, %v5564_v48  ;;  %v5565_v48 = vpack.c.bf16 %v5541_v51, %v5540_v45  ;;  %v5544_v51 = vld [vmem:[#allocation2 + $0x10a] sm:$0xff] }
 0x30c   : > { %v3868_v7 = vpop.f32.mrf.mxu1  ;;  %v4174_v10 = vpop.f32.mrf.mxu0 }
 0x30d   : > { %v13528_v56 = vadd.f32 %v10653_v59, %v3973_v58  ;;  %v3971_v16 = vadd.f32 %v3868_v7, %v13401_v11  ;;  %v5566_v11 = vpack.c.bf16 %v5543_v40, %v5542_v36  ;;  %v5546_v40 = vld [vmem:[#allocation2 + $0x122] sm:$0xff] }
 0x30e   : > { %v10618_v37 = vpop.f32.mrf.mxu1  ;;  %v10654_v24 = vpop.f32.mrf.mxu0 }
 0x30f   : > { %v13531_v2 = vadd.f32 %v4174_v10, %v3971_v16  ;;  %v3974_v57 = vadd.f32 %v10618_v37, %v13403_v39  ;;  %v5545_v37 = vld [vmem:[#allocation2 + $0x112] sm:$0xff] }
 0x310   : > { %v3871_v61 = vpop.f32.mrf.mxu1  ;;  %v13534_v17 = vpop.f32.mrf.mxu0 }
 0x311   : > { %v13536_v32 = vadd.f32 %v10654_v24, %v3974_v57  ;;  %v13539_v58 = vadd.f32 %v3871_v61, %v13405_v44  ;;  %v11250_v44 = vld [vmem:[%s15332_s7 + $0x18] sm:$0xff]   ;;  %v5547_v57 = vld [vmem:[#allocation2 + $0x12a] sm:$0xff] }
 0x312   : > { %v10621_v59 = vpop.f32.mrf.mxu1  ;;  %v10657_v7 = vpop.f32.mrf.mxu0  ;;  %10836 = vmatmul.mubr.msk.bf16.gmra.mxu1 %vm3053_vm2, %v5565_v48  ;;  %10855 = vmatprep.subr.bf16.mxu0 %v11250_v44 }
 0x313   : > { %v3977_v5 = vadd.f32 %v10621_v59, %v13411_v62  ;;  %10839 = vmatprep.mubr.msk.bf16.mxu1 %vm3053_vm2, %v5566_v11  ;;  %v5567_v11 = vpack.c.bf16 %v5545_v37, %v5544_v51  ;;  %10856 = vmatpush3.bf16.msra.mxu0 %v11250_v44  ;;  %v5548_v37 = vld [vmem:[#allocation2 + $0x13a] sm:$0xff]  ;;  %v5549_v44 = vld [vmem:[#allocation2 + $0x142] sm:$0xff] }
 0x314   : > { %v3884_v10 = vpop.f32.mrf.mxu1  ;;  %v4190_v39 = vpop.f32.mrf.mxu0 }
 0x315   : > { %v13544_v16 = vadd.f32 %v10657_v7, %v3977_v5  ;;  %v3975_v45 = vadd.f32 %v3884_v10, %v13417_v27  ;;  %v5568_v7 = vpack.c.bf16 %v5547_v57, %v5546_v40  ;;  %v5551_v40 = vld [vmem:[#allocation2 + $0x15a] sm:$0xff] }
 0x316   : > { %v10622_v24 = vpop.f32.mrf.mxu1  ;;  %v10658_v36 = vpop.f32.mrf.mxu0 }
 0x317   : > { %v13550_v61 = vadd.f32 %v4190_v39, %v3975_v45  ;;  %v3978_v62 = vadd.f32 %v10622_v24, %v13419_v4 }
 0x318   : > { %v3887_v48 = vpop.f32.mrf.mxu1  ;;  %v13553_v5 = vpop.f32.mrf.mxu0 }
 0x319   : > { %v13555_v27 = vadd.f32 %v10658_v36, %v3978_v62  ;;  %v13558_v59 = vadd.f32 %v3887_v48, %v13421_v35  ;;  %v5550_v62 = vld [vmem:[#allocation2 + $0x152] sm:$0xff] }
 0x31a   : > { %v10625_v10 = vpop.f32.mrf.mxu1  ;;  %v10661_v41 = vpop.f32.mrf.mxu0  ;;  %10840 = vmatmul.mubr.msk.bf16.gmra.mxu1 %vm3053_vm2, %v5567_v11 }
 0x31b   : > { %v3981_v39 = vadd.f32 %v10625_v10, %v13427_v52  ;;  %10843 = vmatprep.mubr.msk.bf16.mxu1 %vm3053_vm2, %v5568_v7  ;;  %v5569_v7 = vpack.c.bf16 %v5549_v44, %v5548_v37 }
 0x31c   : > { %v3900_v4 = vpop.f32.mrf.mxu1  ;;  %v4206_v45 = vpop.f32.mrf.mxu0 }
 0x31d   : > { %v13563_v24 = vadd.f32 %v10661_v41, %v3981_v39  ;;  %v3979_v51 = vadd.f32 %v3900_v4, %v13433_v18  ;;  %v5570_v41 = vpack.c.bf16 %v5551_v40, %v5550_v62 }
 0x31e   : > { %v10626_v36 = vpop.f32.mrf.mxu1  ;;  %v10662_v35 = vpop.f32.mrf.mxu0 }
 0x31f   : > { %v13566_v57 = vadd.f32 %v4206_v45, %v3979_v51  ;;  %v3982_v48 = vadd.f32 %v10626_v36, %v13435_v31  ;;  %v5552_v36 = vld [vmem:[#allocation2 + $0x16a] sm:$0xff] }
 0x320   : > { %v13569_v11 = vpop.f32.mrf.mxu1  ;;  %v13571_v52 = vpop.f32.mrf.mxu0 }
 0x321   : > { %v13573_v10 = vadd.f32 %v10662_v35, %v3982_v48 }
 0x322   : > { %v10629_v39 = vpop.f32.mrf.mxu1  ;;  %v10665_v18 = vpop.f32.mrf.mxu0  ;;  %10844 = vmatmul.mubr.msk.bf16.gmra.mxu1 %vm3053_vm2, %v5569_v7 }
 0x323   : > { %v3985_v4 = vadd.f32 %v10629_v39, %v13445_v19  ;;  %10847 = vmatprep.mubr.msk.bf16.mxu1 %vm3053_vm2, %v5570_v41  ;;  %v5571_v19 = vpack.c.bf16 %v5553_v12, %v5552_v36 }
 0x324   : > { %v3916_v45 = vpop.f32.mrf.mxu1  ;;  %v4222_v51 = vpop.f32.mrf.mxu0 }
 0x325   : > { %v13578_v8 = vadd.f32 %v10665_v18, %v3985_v4  ;;  %v3983_v31 = vadd.f32 %v3916_v45, %v13451_v6  ;;  %v5556_v18 = vld [vmem:[#allocation2 + $0x19a] sm:$0xff]  ;;  %v5557_v4 = vld [vmem:[#allocation2 + $0x1a2] sm:$0xff] }
 0x326   : > { %v10630_v37 = vpop.f32.mrf.mxu1  ;;  %v10666_v44 = vpop.f32.mrf.mxu0 }
 0x327   : > { %v13581_v35 = vadd.f32 %v4222_v51, %v3983_v31  ;;  %v3986_v62 = vadd.f32 %v10630_v37, %v13453_v53  ;;  %v5573_v37 = vpack.c.bf16 %v5557_v4, %v5556_v18 }
 0x328   : > { %v13584_v40 = vpop.f32.mrf.mxu1  ;;  %v13586_v48 = vpop.f32.mrf.mxu0 }
 0x329   : > { %v13588_v7 = vadd.f32 %v10666_v44, %v3986_v62 }
 0x32a   : > { %v10633_v41 = vpop.f32.mrf.mxu1  ;;  %v10669_v39 = vpop.f32.mrf.mxu0  ;;  %10848 = vmatmul.mubr.msk.bf16.gmra.mxu1 %vm3053_vm2, %v5571_v19 }
 0x32b   : > { %v3989_v6 = vadd.f32 %v10633_v41, %v13463_v47  ;;  %10851 = vmatprep.mubr.msk.bf16.mxu1 %vm3053_vm2, %v13354_v34 }
 0x32c   : > { %v3932_v45 = vpop.f32.mrf.mxu1  ;;  %v4238_v53 = vpop.f32.mrf.mxu0 }
 0x32d   : > { %v13594_v51 = vadd.f32 %v10669_v39, %v3989_v6  ;;  %v3987_v31 = vadd.f32 %v3932_v45, %v13469_v0  ;;  %v11251_v0 = vld [vmem:[%s15332_s7 + $0x10] sm:$0xff]  }
 0x32e   : > { %v10634_v12 = vpop.f32.mrf.mxu1  ;;  %v10670_v36 = vpop.f32.mrf.mxu0  ;;  %10857 = vmatprep.subr.bf16.mxu0 %v11251_v0 }
 0x32f   : > { %v13597_v44 = vadd.f32 %v4238_v53, %v3987_v31  ;;  %v3990_v62 = vadd.f32 %v10634_v12, %v13471_v30  ;;  %10858 = vmatpush3.bf16.msra.mxu0 %v11251_v0 }
 0x330   : > { %v13600_v19 = vpop.f32.mrf.mxu1  ;;  %v13602_v47 = vpop.f32.mrf.mxu0 }
 0x331   : > { %v13604_v34 = vadd.f32 %v10670_v36, %v3990_v62 }
 0x332   : > { %v10637_v41 = vpop.f32.mrf.mxu1  ;;  %v10673_v63 = vpop.f32.mrf.mxu0  ;;  %10852 = vmatmul.mubr.msk.bf16.gmra.mxu1 %vm3053_vm2, %v5573_v37 }
 0x333   : > { %v3993_v39 = vadd.f32 %v10637_v41, %v13479_v26 }
 0x334   : > { %v3948_v6 = vpop.f32.mrf.mxu1  ;;  %v4254_v18 = vpop.f32.mrf.mxu0 }
 0x335   : > { %v13611_v4 = vadd.f32 %v10673_v63, %v3993_v39  ;;  %v3991_v30 = vadd.f32 %v3948_v6, %v13483_v21 }
 0x336   : > { %v10638_v45 = vpop.f32.mrf.mxu1  ;;  %v10674_v53 = vpop.f32.mrf.mxu0 }
 0x337   : > { %v13614_v31 = vadd.f32 %v4254_v18, %v3991_v30  ;;  %v3994_v12 = vadd.f32 %v10638_v45, %v13485_v15 }
 0x338   : > { %v13617_v36 = vpop.f32.mrf.mxu1  ;;  %v13619_v26 = vpop.f32.mrf.mxu0 }
 0x339   : > { %15566 = vst [vmem:[#allocation46_spill] sm:$0xff] %v13619_v26  ;;  %v13621_v37 = vadd.f32 %v10674_v53, %v3994_v12 }
 0x33a   : > { %v10681_v62 = vpop.f32.mrf.mxu1  ;;  %v13623_v41 = vpop.f32.mrf.mxu0 }
 0x33b   : > { %v13626_v63 = vadd.f32 %v10681_v62, %v13496_v14 }
 0x33c   : > { %v4448_v21 = vpop.f32.mrf.mxu1  ;;  %v13628_v39 = vpop.f32.mrf.mxu0 }
 0x33d   : > { %v13631_v0 = vadd.f32 %v4448_v21, %v13499_v49 }
 0x33e   : > { %v10682_v6 = vpop.f32.mrf.mxu1  ;;  %v13633_v15 = vpop.f32.mrf.mxu0 }
 0x33f   : > { %v13636_v18 = vadd.f32 %v10682_v6, %v13504_v1 }
 0x340   : > { %v13638_v30 = vpop.f32.mrf.mxu1  ;;  %v13640_v45 = vpop.f32.mrf.mxu0 }
 0x342   : > { %v10685_v53 = vpop.f32.mrf.mxu1  ;;  %v13642_v12 = vpop.f32.mrf.mxu0 }
 0x343   : > { %15567 = vst [vmem:[#allocation15_spill] sm:$0xff] %v13642_v12  ;;  %v13645_v14 = vadd.f32 %v10685_v53, %v13512_v23 }
 0x344   : > { %v4464_v62 = vpop.f32.mrf.mxu1  ;;  %v13647_v60 = vpop.f32.mrf.mxu0 }
 0x345   : > { %15568 = vst [vmem:[#allocation53_spill] sm:$0xff] %v13647_v60  ;;  %v13650_v49 = vadd.f32 %v4464_v62, %v13515_v54 }
 0x346   : > { %v10686_v21 = vpop.f32.mrf.mxu1  ;;  %v13652_v22 = vpop.f32.mrf.mxu0 }
 0x347   : > { %15569 = vst [vmem:[#allocation13_spill] sm:$0xff] %v13652_v22  ;;  %v13655_v1 = vadd.f32 %v10686_v21, %v13520_v28  ;;  %v11252_v21 = vld [vmem:[%s15332_s7 + $0x8] sm:$0xff]  }
 0x348   : > { %v13657_v6 = vpop.f32.mrf.mxu1  ;;  %v13659_v38 = vpop.f32.mrf.mxu0  ;;  %10891 = vmatprep.subr.bf16.mxu1 %v11252_v21 }
 0x349   : > { %15570 = vst [vmem:[#allocation48_spill] sm:$0xff] %v13659_v38  ;;  %10892 = vmatpush3.bf16.msra.mxu1 %v11252_v21  ;;  %v6030_v21 = vld [vmem:[#allocation3 + $0x8] sm:$0xff] }
 0x34a   : > { %v10689_v26 = vpop.f32.mrf.mxu1  ;;  %v13661_v12 = vpop.f32.mrf.mxu0 }
 0x34b   : > { %15571 = vst [vmem:[#allocation50_spill] sm:$0xff] %v13661_v12  ;;  %v13664_v23 = vadd.f32 %v10689_v26, %v13528_v56 }
 0x34c   : > { %v4480_v53 = vpop.f32.mrf.mxu1  ;;  %v13666_v60 = vpop.f32.mrf.mxu0 }
 0x34d   : > { %15572 = vst [vmem:[#allocation32_spill] sm:$0xff] %v13664_v23  ;;  %15573 = vst [vmem:[#allocation52_spill] sm:$0xff] %v13666_v60  ;;  %v13669_v54 = vadd.f32 %v4480_v53, %v13531_v2 }
 0x34e   : > { %v10690_v62 = vpop.f32.mrf.mxu1  ;;  %v13671_v22 = vpop.f32.mrf.mxu0 }
 0x34f   : > { %15574 = vst [vmem:[#allocation16_spill] sm:$0xff] %v13669_v54  ;;  %15575 = vst [vmem:[#allocation55_spill] sm:$0xff] %v13671_v22  ;;  %v13674_v28 = vadd.f32 %v10690_v62, %v13536_v32  ;;  %v11253_v32 = vld [vmem:[%s15332_s7] sm:$0xff]   ;;  %v6029_v54 = vld [vmem:[#allocation3] sm:$0xff] }
 0x350   : > { %v13679_v12 = vpop.f32.mrf.mxu1  ;;  %v13681_v56 = vpop.f32.mrf.mxu0  ;;  %10893 = vmatprep.subr.bf16.mxu1 %v11253_v32 }
 0x351   : > { %15576 = vst [vmem:[#allocation17_spill] sm:$0xff] %v13674_v28  ;;  %15577 = vst [vmem:[#allocation57_spill] sm:$0xff] %v13681_v56  ;;  %v6081_v56 = vld [vmem:[#allocation3 + $0x1] sm:$0xff]  ;;  %v6082_v28 = vld [vmem:[#allocation3 + $0x9] sm:$0xff]  ;;  %10894 = vmatpush3.bf16.msra.mxu1 %v11253_v32 }
 0x352   : > { %v10693_v26 = vpop.f32.mrf.mxu1  ;;  %v13683_v60 = vpop.f32.mrf.mxu0 }
 0x353   : > { %15578 = vst [vmem:[#allocation54_spill] sm:$0xff] %v13683_v60  ;;  %v13686_v2 = vadd.f32 %v10693_v26, %v13544_v16  ;;  %v6113_v16 = vpack.c.bf16 %v6082_v28, %v6081_v56 }
 0x354   : > { %v4496_v53 = vpop.f32.mrf.mxu1  ;;  %v13691_v62 = vpop.f32.mrf.mxu0 }
 0x355   : > { %15579 = vst [vmem:[#allocation56_spill] sm:$0xff] %v13686_v2  ;;  %15580 = vst [vmem:[#allocation59_spill] sm:$0xff] %v13691_v62  ;;  %v13694_v22 = vadd.f32 %v4496_v53, %v13550_v61  ;;  %v6061_v2 = vpack.c.bf16 %v6030_v21, %v6029_v54  ;;  %10859 = vmatprep.mubr.msk.bf16.mxu0 %vm3053_vm2, %v6113_v16 }
 0x356   : > { %v10694_v23 = vpop.f32.mrf.mxu1  ;;  %v13696_v60 = vpop.f32.mrf.mxu0 }
 0x357   : > { %15581 = vst [vmem:[#allocation18_spill] sm:$0xff] %v13696_v60  ;;  %v13699_v26 = vadd.f32 %v10694_v23, %v13555_v27  ;;  %10895 = vmatprep.mubr.msk.bf16.mxu1 %vm3053_vm2, %v6061_v2  ;;  %v13715_v27 = vld [vmem:[%s15332_s7 + $0x28] sm:$0xff]  }
 0x358   : > { %v13701_v38 = vpop.f32.mrf.mxu1  ;;  %v13703_v62 = vpop.f32.mrf.mxu0  ;;  %15585 = vst [vmem:[#allocation58_spill] sm:$0xff] %v13715_v27  ;;  %10927 = vmatprep.subr.bf16.mxu0 %v13715_v27 }
 0x359   : > { %15582 = vst [vmem:[#allocation19_spill] sm:$0xff] %v13703_v62 }
 0x35a   : > { %v10697_v61 = vpop.f32.mrf.mxu1  ;;  %v13707_v53 = vpop.f32.mrf.mxu0 }
 0x35b   : > { %15583 = vst [vmem:[#allocation62_spill] sm:$0xff] %v13707_v53  ;;  %v13710_v60 = vadd.f32 %v10697_v61, %v13563_v24 }
 0x35c   : > { %v4512_v23 = vpop.f32.mrf.mxu1  ;;  %v13717_v54 = vpop.f32.mrf.mxu0 }
 0x35d   : > { %15584 = vst [vmem:[#allocation21_spill] sm:$0xff] %v13710_v60  ;;  %15586 = vst [vmem:[#allocation60_spill] sm:$0xff] %v13717_v54  ;;  %v13720_v28 = vadd.f32 %v4512_v23, %v13566_v57 }
 0x35e   : > { %v10698_v56 = vpop.f32.mrf.mxu1  ;;  %v13723_v2 = vpop.f32.mrf.mxu0 }
 0x35f   : > { %15587 = vst [vmem:[#allocation61_spill] sm:$0xff] %v13720_v28  ;;  %15588 = vst [vmem:[#allocation63_spill] sm:$0xff] %v13723_v2  ;;  %v13726_v32 = vadd.f32 %v10698_v56, %v13573_v10 }
 0x360   : > { %v13728_v24 = vpop.f32.mrf.mxu1  ;;  %v13730_v16 = vpop.f32.mrf.mxu0 }
 0x361   : > { %15589 = vst [vmem:[#allocation65_spill] sm:$0xff] %v13726_v32  ;;  %15590 = vst [vmem:[#allocation22_spill] sm:$0xff] %v13728_v24 }
 0x362   : > { %15591 = vst [vmem:[#allocation67_spill] sm:$0xff] %v13730_v16  ;;  %v10701_v21 = vpop.f32.mrf.mxu1  ;;  %v13732_v61 = vpop.f32.mrf.mxu0 }
 0x363   : > { %15592 = vst [vmem:[#allocation23_spill] sm:$0xff] %v13732_v61  ;;  %v13735_v54 = vadd.f32 %v10701_v21, %v13578_v8 }
 0x364   : > { %v4528_v57 = vpop.f32.mrf.mxu1  ;;  %v13737_v23 = vpop.f32.mrf.mxu0 }
 0x365   : > { %15593 = vst [vmem:[#allocation69_spill] sm:$0xff] %v13735_v54  ;;  %15594 = vst [vmem:[#allocation64_spill] sm:$0xff] %v13737_v23  ;;  %v13740_v27 = vadd.f32 %v4528_v57, %v13581_v35 }
 0x366   : > { %v10702_v2 = vpop.f32.mrf.mxu1  ;;  %v13742_v28 = vpop.f32.mrf.mxu0 }
 0x367   : > { %15595 = vst [vmem:[#allocation26_spill] sm:$0xff] %v13740_v27  ;;  %15596 = vst [vmem:[#allocation24_spill] sm:$0xff] %v13742_v28  ;;  %v13745_v10 = vadd.f32 %v10702_v2, %v13588_v7 }
 0x368   : > { %v13747_v56 = vpop.f32.mrf.mxu1  ;;  %v13749_v16 = vpop.f32.mrf.mxu0 }
 0x369   : > { %15597 = vst [vmem:[#allocation66_spill] sm:$0xff] %v13745_v10  ;;  %15598 = vst [vmem:[#allocation68_spill] sm:$0xff] %v13747_v56 }
 0x36a   : > { %15599 = vst [vmem:[#allocation72_spill] sm:$0xff] %v13749_v16  ;;  %v10705_v61 = vpop.f32.mrf.mxu1  ;;  %v13751_v32 = vpop.f32.mrf.mxu0 }
 0x36b   : > { %15600 = vst [vmem:[#allocation73_spill] sm:$0xff] %v13751_v32  ;;  %v13754_v8 = vadd.f32 %v10705_v61, %v13594_v51 }
 0x36c   : > { %v4544_v21 = vpop.f32.mrf.mxu1  ;;  %v13756_v23 = vpop.f32.mrf.mxu0 }
 0x36d   : > { %15601 = vst [vmem:[#allocation74_spill] sm:$0xff] %v13754_v8  ;;  %15602 = vst [vmem:[#allocation75_spill] sm:$0xff] %v13756_v23  ;;  %v13759_v35 = vadd.f32 %v4544_v21, %v13597_v44 }
 0x36e   : > { %v10706_v57 = vpop.f32.mrf.mxu1  ;;  %v13761_v28 = vpop.f32.mrf.mxu0 }
 0x36f   : > { %15603 = vst [vmem:[#allocation76_spill] sm:$0xff] %v13759_v35  ;;  %15604 = vst [vmem:[#allocation77_spill] sm:$0xff] %v13761_v28  ;;  %v13764_v7 = vadd.f32 %v10706_v57, %v13604_v34  ;;  %v13818_v35 = vld [vmem:[%s15332_s7 + $0x38] sm:$0xff]  }
 0x370   : > { %v13766_v2 = vpop.f32.mrf.mxu1  ;;  %v13768_v16 = vpop.f32.mrf.mxu0  ;;  %15618 = vst [vmem:[#allocation91_spill] sm:$0xff] %v13818_v35  ;;  %10963 = vmatprep.subr.bf16.mxu1 %v13818_v35 }
 0x371   : > { %15605 = vst [vmem:[#allocation78_spill] sm:$0xff] %v13764_v7  ;;  %15606 = vst [vmem:[#allocation79_spill] sm:$0xff] %v13766_v2 }
 0x372   : > { %15607 = vst [vmem:[#allocation80_spill] sm:$0xff] %v13768_v16  ;;  %v10709_v32 = vpop.f32.mrf.mxu1  ;;  %v13770_v10 = vpop.f32.mrf.mxu0 }
 0x373   : > { %15608 = vst [vmem:[#allocation81_spill] sm:$0xff] %v13770_v10  ;;  %v13773_v51 = vadd.f32 %v10709_v32, %v13611_v4 }
 0x374   : > { %v4560_v61 = vpop.f32.mrf.mxu1  ;;  %v13775_v23 = vpop.f32.mrf.mxu0 }
 0x375   : > { %15609 = vst [vmem:[#allocation82_spill] sm:$0xff] %v13773_v51  ;;  %15610 = vst [vmem:[#allocation83_spill] sm:$0xff] %v13775_v23  ;;  %v13778_v44 = vadd.f32 %v4560_v61, %v13614_v31 }
 0x376   : > { %v10710_v21 = vpop.f32.mrf.mxu1  ;;  %v13780_v28 = vpop.f32.mrf.mxu0 }
 0x377   : > { %15611 = vst [vmem:[#allocation84_spill] sm:$0xff] %v13778_v44  ;;  %15612 = vst [vmem:[#allocation85_spill] sm:$0xff] %v13780_v28  ;;  %v13783_v34 = vadd.f32 %v10710_v21, %v13621_v37 }
 0x378   : > { %v13785_v57 = vpop.f32.mrf.mxu1  ;;  %v13787_v16 = vpop.f32.mrf.mxu0 }
 0x379   : > { %15613 = vst [vmem:[#allocation86_spill] sm:$0xff] %v13783_v34  ;;  %15614 = vst [vmem:[#allocation87_spill] sm:$0xff] %v13785_v57 }
 0x37a   : > { %15615 = vst [vmem:[#allocation88_spill] sm:$0xff] %v13787_v16  ;;  %v10753_v10 = vpop.f32.mrf.mxu1  ;;  %v13789_v7 = vpop.f32.mrf.mxu0 }
 0x37c   : > { %v5061_v4 = vpop.f32.mrf.mxu1  ;;  %v13791_v32 = vpop.f32.mrf.mxu0 }
 0x37e   : > { %v13793_v23 = vpop.f32.mrf.mxu1  ;;  %v13797_v61 = vpop.f32.mrf.mxu0 }
 0x380   : > { %v13795_v31 = vpop.f32.mrf.mxu1  ;;  %v13803_v21 = vpop.f32.mrf.mxu0 }
 0x382   : > { %v13799_v28 = vpop.f32.mrf.mxu1  ;;  %v13809_v57 = vpop.f32.mrf.mxu0 }
 0x384   : > { %v13801_v37 = vpop.f32.mrf.mxu1  ;;  %v13820_v2 = vpop.f32.mrf.mxu0 }
 0x386   : > { %v13805_v34 = vpop.f32.mrf.mxu1  ;;  %v13827_v54 = vpop.f32.mrf.mxu0 }
 0x387   : > { %15621 = vst [vmem:[#allocation94_spill] sm:$0xff] %v13827_v54 }
 0x388   : > { %v13807_v16 = vpop.f32.mrf.mxu1 }
 0x38a   : > { %v13811_v44 = vpop.f32.mrf.mxu1 }
 0x38b   : > { %15616 = vst [vmem:[#allocation89_spill] sm:$0xff] %v13811_v44 }
 0x38c   : > { %v13813_v51 = vpop.f32.mrf.mxu1 }
 0x38d   : > { %15617 = vst [vmem:[#allocation90_spill] sm:$0xff] %v13813_v51  ;;  %v13833_v51 = vpop.f32.mrf.mxu0 }
 0x38e   : > { %v13822_v8 = vpop.f32.mrf.mxu1  ;;  %15624 = vst [vmem:[#allocation97_spill] sm:$0xff] %v13833_v51 }
 0x38f   : > { %15619 = vst [vmem:[#allocation92_spill] sm:$0xff] %v13822_v8  ;;  %v13839_v44 = vpop.f32.mrf.mxu0 }
 0x390   : > { %v13825_v27 = vpop.f32.mrf.mxu1  ;;  %15627 = vst [vmem:[#allocation100_spill] sm:$0xff] %v13839_v44 }
 0x391   : > { %15620 = vst [vmem:[#allocation93_spill] sm:$0xff] %v13825_v27  ;;  %v13845_v35 = vpop.f32.mrf.mxu0 }
 0x392   : > { %v13829_v56 = vpop.f32.mrf.mxu1  ;;  %15630 = vst [vmem:[#allocation103_spill] sm:$0xff] %v13845_v35 }
 0x393   : > { %15622 = vst [vmem:[#allocation95_spill] sm:$0xff] %v13829_v56  ;;  %v13851_v56 = vpop.f32.mrf.mxu0 }
 0x394   : > { %v13831_v24 = vpop.f32.mrf.mxu1  ;;  %15633 = vst [vmem:[#allocation106_spill] sm:$0xff] %v13851_v56 }
 0x395   : > { %15623 = vst [vmem:[#allocation96_spill] sm:$0xff] %v13831_v24 }
 0x396   : > { %v13835_v53 = vpop.f32.mrf.mxu1 }
 0x397   : > { %15625 = vst [vmem:[#allocation98_spill] sm:$0xff] %v13835_v53  ;;  %v13857_v53 = vpop.f32.mrf.mxu0 }
 0x398   : > { %v13837_v60 = vpop.f32.mrf.mxu1 }
 0x399   : > { %15626 = vst [vmem:[#allocation99_spill] sm:$0xff] %v13837_v60 }
 0x39a   : > { %v13841_v62 = vpop.f32.mrf.mxu1 }
 0x39b   : > { %15628 = vst [vmem:[#allocation101_spill] sm:$0xff] %v13841_v62  ;;  %v13863_v62 = vpop.f32.mrf.mxu0 }
 0x39c   : > { %v13843_v8 = vpop.f32.mrf.mxu1 }
 0x39d   : > { %15629 = vst [vmem:[#allocation102_spill] sm:$0xff] %v13843_v8 }
 0x39e   : > { %v13847_v27 = vpop.f32.mrf.mxu1 }
 0x39f   : > { %15631 = vst [vmem:[#allocation104_spill] sm:$0xff] %v13847_v27  ;;  %v13869_v27 = vpop.f32.mrf.mxu0 }
 0x3a0   : > { %v13849_v54 = vpop.f32.mrf.mxu1 }
 0x3a1   : > { %15632 = vst [vmem:[#allocation105_spill] sm:$0xff] %v13849_v54 }
 0x3a2   : > { %v13853_v24 = vpop.f32.mrf.mxu1 }
 0x3a3   : > { %15634 = vst [vmem:[#allocation107_spill] sm:$0xff] %v13853_v24  ;;  %v13875_v24 = vpop.f32.mrf.mxu0 }
 0x3a4   : > { %v13855_v51 = vpop.f32.mrf.mxu1 }
 0x3a5   : > { %15635 = vst [vmem:[#allocation108_spill] sm:$0xff] %v13855_v51 }
 0x3a6   : > { %v13859_v60 = vpop.f32.mrf.mxu1 }
 0x3a7   : > { %15636 = vst [vmem:[#allocation109_spill] sm:$0xff] %v13859_v60  ;;  %v4270_v60 = vadd.f32 %v13502_v42, %v13507_v46  ;;  %v4881_v42 = vadd.f32 %v13628_v39, %v13631_v0 }
 0x3a8   : > { %v13861_v44 = vpop.f32.mrf.mxu1 }
 0x3a9   : > { %15637 = vst [vmem:[#allocation110_spill] sm:$0xff] %v13861_v44  ;;  %v4883_v44 = vadd.f32 %v13623_v41, %v13626_v63  ;;  %v4576_v46 = vadd.f32 %v13638_v30, %v4270_v60  ;;  %v13896_v63 = vpop.f32.mrf.mxu0  ;;  %v5188_v60 = vadd.f32 %v5061_v4, %v4881_v42  ;;  %v15644_v30 = vld [vmem:[#allocation46_spill] sm:$0xff] }
 0x3aa   : > { %v13865_v8 = vpop.f32.mrf.mxu1  ;;  %v15649_v42 = vld [vmem:[#allocation50_spill] sm:$0xff] }
 0x3ab   : > { %15638 = vst [vmem:[#allocation111_spill] sm:$0xff] %v13865_v8  ;;  %v3630_v8 = vadd.f32 %v13439_v33, %v13437_v20  ;;  %v5190_v41 = vadd.f32 %v10753_v10, %v4883_v44 }
 0x3ac   : > { %v13867_v35 = vpop.f32.mrf.mxu1 }
 0x3ad   : > { %15639 = vst [vmem:[#allocation112_spill] sm:$0xff] %v13867_v35  ;;  %v3646_v35 = vadd.f32 %v13457_v25, %v13455_v29  ;;  %v3980_v20 = vadd.f32 %v13569_v11, %v3630_v8  ;;  %v4282_v11 = vadd.f32 %v13553_v5, %v13558_v59 }
 0x3ae   : > { %v13871_v54 = vpop.f32.mrf.mxu1 }
 0x3af   : > { %15640 = vst [vmem:[#allocation113_spill] sm:$0xff] %v13871_v54  ;;  %v3662_v54 = vadd.f32 %v13475_v43, %v13473_v13  ;;  %v3984_v33 = vadd.f32 %v13584_v40, %v3646_v35  ;;  %v4274_v13 = vadd.f32 %v13518_v50, %v13523_v55  ;;  %v5496_v50 = vadd.f32 %v13789_v7, %v5190_v41  ;;  %v13948_v35 = vld [vmem:[%s15331_s6] ss:$0 sm:$0xff] }
 0x3b0   : > { %v13873_v56 = vpop.f32.mrf.mxu1  ;;  %v4286_v0 = vadd.f32 %v13571_v52, %v3980_v20  ;;  %v5494_v52 = vadd.f32 %v13791_v32, %v5188_v60  ;;  %v15652_v20 = vld [vmem:[#allocation17_spill] sm:$0xff] }
 0x3b1   : > { %15641 = vst [vmem:[#allocation114_spill] sm:$0xff] %v13873_v56  ;;  %v3988_v29 = vadd.f32 %v13600_v19, %v3662_v54  ;;  %v4882_v19 = vadd.f32 %v13640_v45, %v4576_v46  ;;  %v4580_v39 = vadd.f32 %v13657_v6, %v4274_v13  ;;  %v15650_v46 = vld [vmem:[#allocation16_spill] sm:$0xff] }
 0x3b2   : > { %v13877_v51 = vpop.f32.mrf.mxu1 }
 0x3b3   : > { %15642 = vst [vmem:[#allocation115_spill] sm:$0xff] %v13877_v51  ;;  %v3678_v51 = vadd.f32 %v13489_v3, %v13487_v9  ;;  %v4884_v9 = vadd.f32 %v13633_v15, %v13636_v18  ;;  %v4278_v3 = vadd.f32 %v13534_v17, %v13539_v58  ;;  %v13922_v15 = vadd.f32 %v13586_v48, %v3984_v33  ;;  %v15643_v58 = vld [vmem:[#allocation15_spill] sm:$0xff]  ;;  %v13932_v18 = vld [vmem:[%s15330_s5] ss:$0 sm:$0xff] }
 0x3b4   : > { %v13889_v56 = vpop.f32.mrf.mxu1  ;;  %v13925_v17 = vadd.f32 %v13602_v47, %v3988_v29  ;;  %v4887_v5 = vadd.f32 %v15643_v58, %v13645_v14  ;;  %v5189_v48 = vadd.f32 %v13795_v31, %v4882_v19  ;;  %v15645_v47 = vld [vmem:[#allocation53_spill] sm:$0xff]  ;;  %v15653_v33 = vld [vmem:[#allocation55_spill] sm:$0xff] }
 0x3b5   : > { %v3992_v43 = vadd.f32 %v13617_v36, %v3678_v51  ;;  %v5191_v55 = vadd.f32 %v13793_v23, %v4884_v9  ;;  %v13918_v36 = vpop.f32.mrf.mxu0  ;;  %v4885_v54 = vadd.f32 %v15645_v47, %v13650_v49  ;;  %v15646_v23 = vld [vmem:[#allocation13_spill] sm:$0xff]  ;;  %v4584_v10 = vadd.f32 %v13679_v12, %v4278_v3  ;;  %v15647_v51 = vld [vmem:[#allocation48_spill] sm:$0xff] }
 0x3b6   : > { %v13901_v25 = vpop.f32.mrf.mxu1  ;;  %v4888_v14 = vadd.f32 %v15646_v23, %v13655_v1  ;;  %v5194_v8 = vadd.f32 %v13799_v28, %v4887_v5  ;;  %v4886_v44 = vadd.f32 %v15647_v51, %v4580_v39  ;;  %v15648_v1 = vld [vmem:[#allocation32_spill] sm:$0xff]  ;;  %v4892_v29 = vadd.f32 %v15653_v33, %v15652_v20  ;;  %v15654_v19 = vld [vmem:[#allocation57_spill] sm:$0xff] }
 0x3b7   : > { %v13935_v45 = vadd.f32 %v15644_v30, %v3992_v43  ;;  %v5497_v4 = vadd.f32 %v13797_v61, %v5191_v55  ;;  %v13952_v32 = vpop.f32.mrf.mxu0  ;;  %v4891_v12 = vadd.f32 %v15649_v42, %v15648_v1  ;;  %v15651_v28 = vld [vmem:[#allocation52_spill] sm:$0xff]  ;;  %v5192_v13 = vadd.f32 %v13801_v37, %v4885_v54  ;;  %v15657_v54 = vld [vmem:[#allocation59_spill] sm:$0xff]  ;;  %v15662_v33 = vld [vmem:[#allocation21_spill] sm:$0xff] }
 0x3b8   : > { %v13912_v40 = vpop.f32.mrf.mxu1  ;;  %v4889_v41 = vadd.f32 %v15651_v28, %v15650_v46  ;;  %v5495_v9 = vadd.f32 %v13803_v21, %v5189_v48  ;;  %v4890_v39 = vadd.f32 %v15654_v19, %v4584_v10  ;;  %v5500_v55 = vadd.f32 %v13809_v57, %v5194_v8  ;;  %v15655_v48 = vld [vmem:[#allocation56_spill] sm:$0xff] }
 0x3b9   : > { %v5195_v58 = vadd.f32 %v13805_v34, %v4888_v14  ;;  %v4893_v23 = vadd.f32 %v15657_v54, %v13694_v22  ;;  %v5193_v57 = vadd.f32 %v13807_v16, %v4886_v44  ;;  %v15660_v22 = vld [vmem:[#allocation94_spill] sm:$0xff] }
 0x3ba   : > { %v10825_v59 = vpop.f32.mrf.mxu1 }
 0x3bb   : > { %v5802_v6 = vadd.f32 %v10825_v59, %v5496_v50  ;;  %v4588_v50 = vadd.f32 %v13701_v38, %v4282_v11  ;;  %v13969_v59 = vpop.f32.mrf.mxu0  ;;  %v5498_v38 = vadd.f32 %v13820_v2, %v5192_v13  ;;  %v15661_v2 = vld [vmem:[#allocation89_spill] sm:$0xff] }
 0x3bc   : > { %v5673_v7 = vpop.f32.mrf.mxu1  ;;  %v5198_v1 = vadd.f32 %v15661_v2, %v4891_v12  ;;  %v15666_v12 = vld [vmem:[#allocation90_spill] sm:$0xff]  ;;  %v15675_v2 = vld [vmem:[#allocation103_spill] sm:$0xff] }
 0x3bd   : > { %v5841_v49 = vmul.f32 %v13932_v18, %v5802_v6  ;;  %v5800_v31 = vadd.f32 %v5673_v7, %v5494_v52  ;;  %v15656_v6 = vld [vmem:[#allocation54_spill] sm:$0xff]  ;;  %v13989_v44 = vpop.f32.mrf.mxu0 }
 0x3be   : > { %v10826_v43 = vpop.f32.mrf.mxu1  ;;  %v4895_v47 = vadd.f32 %v15656_v6, %v15655_v48  ;;  %v15658_v7 = vld [vmem:[#allocation18_spill] sm:$0xff]  ;;  %v15670_v48 = vld [vmem:[#allocation63_spill] sm:$0xff]  ;;  %v15671_v6 = vld [vmem:[#allocation100_spill] sm:$0xff] }
 0x3bf   : > { %v5880_v61 = vadd.f32 %v13948_v35, %v5841_v49  ;;  %v5839_v60 = vmul.f32 %v13932_v18, %v5800_v31  ;;  %v5803_v3 = vadd.f32 %v10826_v43, %v5497_v4  ;;  %v4896_v51 = vadd.f32 %v15658_v7, %v13699_v26  ;;  %v15659_v4 = vld [vmem:[#allocation19_spill] sm:$0xff]  ;;  %v15663_v26 = vld [vmem:[#allocation62_spill] sm:$0xff] }
 0x3c0   : > { %v5676_v5 = vpop.f32.mrf.mxu1  ;;  %v13985_v49 = vadd.f32 %v15659_v4, %v4588_v50  ;;  %v5501_v31 = vadd.f32 %v15660_v22, %v5195_v58  ;;  %v13996_v13 = vadd.f32 %v15663_v26, %v15662_v33  ;;  %v15664_v43 = vld [vmem:[#allocation22_spill] sm:$0xff]  ;;  %v5504_v54 = vadd.f32 %v15671_v6, %v5198_v1  ;;  %v15673_v7 = vld [vmem:[#allocation67_spill] sm:$0xff]  ;;  %v15674_v22 = vld [vmem:[#allocation68_spill] sm:$0xff] }
 0x3c1   : > { %v5912_v37 = vmax.f32 %v5880_v61, 0.0  ;;  %v5878_v30 = vadd.f32 %v13948_v35, %v5839_v60  ;;  %v5842_v21 = vmul.f32 %v13932_v18, %v5803_v3  ;;  %v5801_v52 = vadd.f32 %v5676_v5, %v5495_v9  ;;  %v15665_v61 = vld [vmem:[#allocation97_spill] sm:$0xff]  ;;  %v15677_v26 = vld [vmem:[#allocation106_spill] sm:$0xff]  ;;  %v15686_v6 = vld [vmem:[#allocation24_spill] sm:$0xff] }
 0x3c2   : > { %v10829_v34 = vpop.f32.mrf.mxu1  ;;  %v4592_v9 = vadd.f32 %v15664_v43, %v4286_v0  ;;  %v5499_v60 = vadd.f32 %v15665_v61, %v5193_v57  ;;  %v5196_v3 = vadd.f32 %v15666_v12, %v4889_v41  ;;  %v15672_v41 = vld [vmem:[#allocation92_spill] sm:$0xff] }
 0x3c3   : > { %5999 = vst.msk [vmem:[#allocation3 + $0x31] sm:$0xff] %vm3053_vm2, %v5912_v37  ;;  %v5910_v11 = vmax.f32 %v5878_v30, 0.0  ;;  %v5881_v14 = vadd.f32 %v13948_v35, %v5842_v21  ;;  %v5840_v10 = vmul.f32 %v13932_v18, %v5801_v52  ;;  %v5806_v8 = vadd.f32 %v10829_v34, %v5500_v55  ;;  %v15667_v37 = vld [vmem:[#allocation61_spill] sm:$0xff]  ;;  %v15668_v30 = vld [vmem:[#allocation60_spill] sm:$0xff]  ;;  %v14014_v34 = vpop.f32.mrf.mxu0 }
 0x3c4   : > { %v5689_v16 = vpop.f32.mrf.mxu1  ;;  %v14006_v21 = vadd.f32 %v15668_v30, %v15667_v37  ;;  %v15669_v52 = vld [vmem:[#allocation65_spill] sm:$0xff]  ;;  %v14020_v4 = vadd.f32 %v15673_v7, %v4592_v9  ;;  %v5502_v1 = vadd.f32 %v15675_v2, %v5196_v3  ;;  %v15678_v9 = vld [vmem:[#allocation95_spill] sm:$0xff]  ;;  %v15687_v7 = vld [vmem:[#allocation72_spill] sm:$0xff] }
 0x3c5   : > { %5997 = vst.msk [vmem:[#allocation3 + $0x19] sm:$0xff] %vm3053_vm2, %v5910_v11  ;;  %v5913_v42 = vmax.f32 %v5881_v14, 0.0  ;;  %v5879_v46 = vadd.f32 %v13948_v35, %v5840_v10  ;;  %v5845_v28 = vmul.f32 %v13932_v18, %v5806_v8  ;;  %v5804_v20 = vadd.f32 %v5689_v16, %v5498_v38  ;;  %v15681_v37 = vld [vmem:[#allocation69_spill] sm:$0xff]  ;;  %v15682_v30 = vld [vmem:[#allocation23_spill] sm:$0xff] }
 0x3c6   : > { %v10830_v19 = vpop.f32.mrf.mxu1  ;;  %v14010_v0 = vadd.f32 %v15670_v48, %v15669_v52  ;;  %v5199_v38 = vadd.f32 %v15672_v41, %v4892_v29  ;;  %v15676_v29 = vld [vmem:[#allocation93_spill] sm:$0xff]  ;;  %v5202_v61 = vadd.f32 %v15678_v9, %v4895_v47  ;;  %v14040_v52 = vadd.f32 %v15682_v30, %v15681_v37  ;;  %v15683_v47 = vld [vmem:[#allocation26_spill] sm:$0xff]  ;;  %v15684_v48 = vld [vmem:[#allocation64_spill] sm:$0xff] }
 0x3c7   : > { %6000 = vst.msk [vmem:[#allocation3 + $0x39] sm:$0xff] %vm3053_vm2, %v5913_v42  ;;  %v5911_v50 = vmax.f32 %v5879_v46, 0.0  ;;  %v5884_v55 = vadd.f32 %v13948_v35, %v5845_v28  ;;  %v5843_v58 = vmul.f32 %v13932_v18, %v5804_v20  ;;  %v5807_v5 = vadd.f32 %v10830_v19, %v5501_v31  ;;  %v15690_v30 = vld [vmem:[#allocation102_spill] sm:$0xff] }
 0x3c8   : > { %v5692_v57 = vpop.f32.mrf.mxu1  ;;  %v4596_v31 = vadd.f32 %v15674_v22, %v13922_v15  ;;  %v5197_v16 = vadd.f32 %v15676_v29, %v4890_v39  ;;  %v5505_v43 = vadd.f32 %v15677_v26, %v5199_v38  ;;  %v15680_v15 = vld [vmem:[#allocation98_spill] sm:$0xff]  ;;  %v5508_v2 = vadd.f32 %v13863_v62, %v5202_v61 }
 0x3c9   : > { %5998 = vst.msk [vmem:[#allocation3 + $0x21] sm:$0xff] %vm3053_vm2, %v5911_v50  ;;  %v5916_v11 = vmax.f32 %v5884_v55, 0.0  ;;  %v5882_v14 = vadd.f32 %v13948_v35, %v5843_v58  ;;  %v5846_v10 = vmul.f32 %v13932_v18, %v5807_v5  ;;  %v5805_v8 = vadd.f32 %v5692_v57, %v5499_v60  ;;  %v15679_v60 = vld [vmem:[#allocation96_spill] sm:$0xff]  ;;  %v14033_v50 = vpop.f32.mrf.mxu0 }
 0x3ca   : > { %v10833_v42 = vpop.f32.mrf.mxu1  ;;  %v5200_v12 = vadd.f32 %v15679_v60, %v4893_v23  ;;  %v5203_v19 = vadd.f32 %v15680_v15, %v4896_v51  ;;  %v14044_v23 = vadd.f32 %v15684_v48, %v15683_v47  ;;  %v15685_v51 = vld [vmem:[#allocation66_spill] sm:$0xff]  ;;  %v5503_v41 = vadd.f32 %v13857_v53, %v5197_v16 }
 0x3cb   : > { %6003 = vst.msk [vmem:[#allocation3 + $0x61] sm:$0xff] %vm3053_vm2, %v5916_v11  ;;  %v5914_v46 = vmax.f32 %v5882_v14, 0.0  ;;  %v5885_v28 = vadd.f32 %v13948_v35, %v5846_v10  ;;  %v5844_v20 = vmul.f32 %v13932_v18, %v5805_v8  ;;  %v5810_v33 = vadd.f32 %v10833_v42, %v5504_v54 }
 0x3cc   : > { %v5705_v3 = vpop.f32.mrf.mxu1  ;;  %v14048_v54 = vadd.f32 %v15686_v6, %v15685_v51  ;;  %v14055_v22 = vadd.f32 %v15687_v7, %v4596_v31  ;;  %v5509_v29 = vadd.f32 %v13875_v24, %v5203_v19  ;;  %v6031_v62 = vld [vmem:[#allocation3 + $0x18] sm:$0xff]  ;;  %v11255_v19 = vld [vmem:[%s15332_s7 + $0x20] sm:$0xff]   ;;  %v5204_v47 = vadd.f32 %v15690_v30, %v14006_v21  ;;  %v11257_v6 = vld [vmem:[%s15332_s7 + $0x30] sm:$0xff]  }
 0x3cd   : > { %6001 = vst.msk [vmem:[#allocation3 + $0x49] sm:$0xff] %vm3053_vm2, %v5914_v46  ;;  %v5917_v39 = vmax.f32 %v5885_v28, 0.0  ;;  %v5883_v55 = vadd.f32 %v13948_v35, %v5844_v20  ;;  %v5849_v58 = vmul.f32 %v13932_v18, %v5810_v33  ;;  %v5808_v5 = vadd.f32 %v5705_v3, %v5502_v1  ;;  %v6085_v46 = vld [vmem:[#allocation3 + $0x31] sm:$0xff]  ;;  %v14060_v28 = vpop.f32.mrf.mxu0 }
 0x3ce   : > { %v10834_v38 = vpop.f32.mrf.mxu1  ;;  %v6086_v8 = vld [vmem:[#allocation3 + $0x39] sm:$0xff]  ;;  %v5506_v1 = vadd.f32 %v13869_v27, %v5200_v12 }
 0x3cf   : > { %6004 = vst.msk [vmem:[#allocation3 + $0x69] sm:$0xff] %vm3053_vm2, %v5917_v39  ;;  %v5915_v57 = vmax.f32 %v5883_v55, 0.0  ;;  %v5888_v11 = vadd.f32 %v13948_v35, %v5849_v58  ;;  %v5847_v14 = vmul.f32 %v13932_v18, %v5808_v5  ;;  %v5811_v10 = vadd.f32 %v10834_v38, %v5505_v43  ;;  %v6083_v43 = vld [vmem:[#allocation3 + $0x19] sm:$0xff]  ;;  %v15689_v5 = vld [vmem:[#allocation101_spill] sm:$0xff] }
 0x3d0   : > { %v5708_v53 = vpop.f32.mrf.mxu1  ;;  %v6084_v16 = vld [vmem:[#allocation3 + $0x21] sm:$0xff]  ;;  %v6034_v9 = vld [vmem:[#allocation3 + $0x38] sm:$0xff]  ;;  %v14071_v15 = vpack.c.bf16 %v6086_v8, %v6085_v46  ;;  %v5206_v37 = vadd.f32 %v15689_v5, %v13996_v13 }
 0x3d1   : > { %v6032_v42 = vld [vmem:[#allocation3 + $0x20] sm:$0xff]  ;;  %6002 = vst.msk [vmem:[#allocation3 + $0x51] sm:$0xff] %vm3053_vm2, %v5915_v57  ;;  %v5920_v20 = vmax.f32 %v5888_v11, 0.0  ;;  %v5886_v33 = vadd.f32 %v13948_v35, %v5847_v14  ;;  %v5850_v31 = vmul.f32 %v13932_v18, %v5811_v10  ;;  %v5809_v26 = vadd.f32 %v5708_v53, %v5503_v41  ;;  %v15688_v27 = vld [vmem:[#allocation99_spill] sm:$0xff]  ;;  %v14092_v41 = vpop.f32.mrf.mxu0  ;;  %v15691_v57 = vld [vmem:[#allocation58_spill] sm:$0xff] }
 0x3d2   : > { %v5201_v24 = vadd.f32 %v15688_v27, %v13985_v49  ;;  %v10837_v61 = vpop.f32.mrf.mxu1  ;;  %v14067_v60 = vpack.c.bf16 %v6084_v16, %v6083_v43  ;;  %v14069_v12 = vpack.c.bf16 %v6032_v42, %v6031_v62  ;;  %v6033_v49 = vld [vmem:[#allocation3 + $0x30] sm:$0xff]  ;;  %v15693_v10 = vld [vmem:[#allocation73_spill] sm:$0xff]  ;;  %v5510_v43 = vadd.f32 %v13952_v32, %v5204_v47  ;;  %v15696_v62 = vld [vmem:[#allocation104_spill] sm:$0xff] }
 0x3d3   : > { %6007 = vst.msk [vmem:[#allocation3 + $0x91] sm:$0xff] %vm3053_vm2, %v5920_v20  ;;  %v5918_v3 = vmax.f32 %v5886_v33, 0.0  ;;  %v5889_v39 = vadd.f32 %v13948_v35, %v5850_v31  ;;  %v5848_v55 = vmul.f32 %v13932_v18, %v5809_v26  ;;  %v5814_v58 = vadd.f32 %v10837_v61, %v5508_v2  ;;  %v15692_v14 = vld [vmem:[#allocation74_spill] sm:$0xff]  ;;  %v15694_v7 = vld [vmem:[#allocation79_spill] sm:$0xff]  ;;  %v15697_v27 = vld [vmem:[#allocation105_spill] sm:$0xff] }
 0x3d4   : > { %10860 = vmatmul.mubr.msk.bf16.vlgmr.msra.gmra.mxu0 %vm3053_vm2, %v14067_v60  ;;  %10896 = vmatmul.mubr.msk.bf16.vlgmr.msra.gmra.mxu1 %vm3053_vm2, %v14069_v12  ;;  %v5721_v48 = vpop.f32.mrf.mxu1  ;;  %v14087_v51 = vpack.c.bf16 %v6034_v9, %v6033_v49  ;;  %v14102_v8 = vadd.f32 %v15693_v10, %v15692_v14  ;;  %v4600_v2 = vadd.f32 %v15694_v7, %v13925_v17  ;;  %v15695_v31 = vld [vmem:[#allocation91_spill] sm:$0xff]  ;;  %v6087_v5 = vld [vmem:[#allocation3 + $0x49] sm:$0xff] }
 0x3d5   : > { %6005 = vst.msk [vmem:[#allocation3 + $0x79] sm:$0xff] %vm3053_vm2, %v5918_v3  ;;  %v5921_v13 = vmax.f32 %v5889_v39, 0.0  ;;  %v5887_v21 = vadd.f32 %v13948_v35, %v5848_v55  ;;  %v5853_v38 = vmul.f32 %v13932_v18, %v5814_v58  ;;  %10928 = vmatpush3.bf16.msra.mxu0 %v15691_v57  ;;  %v5812_v11 = vadd.f32 %v5721_v48, %v5506_v1  ;;  %v14112_v1 = vld [vmem:[%s15332_s7 + $0x48] sm:$0xff]   ;;  %v6089_v55 = vld [vmem:[#allocation3 + $0x61] sm:$0xff] }
 0x3d6   : > { %10863 = vmatprep.mubr.msk.bf16.mxu0 %vm3053_vm2, %v14071_v15  ;;  %v5507_v53 = vadd.f32 %v13896_v63, %v5201_v24  ;;  %10899 = vmatprep.mubr.msk.bf16.mxu1 %vm3053_vm2, %v14087_v51  ;;  %v10838_v16 = vpop.f32.mrf.mxu1  ;;  %v6090_v33 = vld [vmem:[#allocation3 + $0x69] sm:$0xff]  ;;  %v5512_v26 = vadd.f32 %v13918_v36, %v5206_v37  ;;  %v5207_v9 = vadd.f32 %v15696_v62, %v14010_v0  ;;  %v6037_v37 = vld [vmem:[#allocation3 + $0x60] sm:$0xff]  ;;  %v15698_v10 = vld [vmem:[#allocation107_spill] sm:$0xff] }
 0x3d7   : > { %10929 = vmatprep.subr.bf16.mxu0 %v11255_v19  ;;  %6008 = vst.msk [vmem:[#allocation3 + $0x99] sm:$0xff] %vm3053_vm2, %v5921_v13  ;;  %v5919_v42 = vmax.f32 %v5887_v21, 0.0  ;;  %v5892_v46 = vadd.f32 %v13948_v35, %v5853_v38  ;;  %v5851_v20 = vmul.f32 %v13932_v18, %v5812_v11  ;;  %v5815_v17 = vadd.f32 %v10838_v16, %v5509_v29  ;;  %v6038_v63 = vld [vmem:[#allocation3 + $0x68] sm:$0xff]  ;;  %v14124_v29 = vpop.f32.mrf.mxu0  ;;  %v15704_v62 = vld [vmem:[#allocation80_spill] sm:$0xff] }
 0x3d8   : > { %10964 = vmatpush3.bf16.msra.mxu1 %v15695_v31  ;;  %v5205_v24 = vadd.f32 %v15697_v27, %v14020_v4  ;;  %v5724_v61 = vpop.f32.mrf.mxu1  ;;  %v6088_v3 = vld [vmem:[#allocation3 + $0x51] sm:$0xff]  ;;  %v6035_v0 = vld [vmem:[#allocation3 + $0x48] sm:$0xff]  ;;  %v14133_v48 = vpack.c.bf16 %v6090_v33, %v6089_v55  ;;  %v14135_v13 = vpack.c.bf16 %v6038_v63, %v6037_v37  ;;  %v5513_v14 = vadd.f32 %v13969_v59, %v5207_v9 }
 0x3d9   : > { %v6036_v39 = vld [vmem:[#allocation3 + $0x50] sm:$0xff]  ;;  %10965 = vmatprep.subr.bf16.mxu1 %v11257_v6  ;;  %6006 = vst.msk [vmem:[#allocation3 + $0x81] sm:$0xff] %vm3053_vm2, %v5919_v42  ;;  %v5924_v58 = vmax.f32 %v5892_v46, 0.0  ;;  %v5890_v36 = vadd.f32 %v13948_v35, %v5851_v20  ;;  %v5854_v32 = vmul.f32 %v13932_v18, %v5815_v17  ;;  %v5813_v49 = vadd.f32 %v5724_v61, %v5507_v53  ;;  %v14141_v21 = vld [vmem:[%s15332_s7 + $0x58] sm:$0xff]   ;;  %v15699_v53 = vld [vmem:[#allocation108_spill] sm:$0xff]  ;;  %v14155_v46 = vpop.f32.mrf.mxu0 }
 0x3da   : > { %10930 = vmatpush3.bf16.msra.mxu0 %v11255_v19  ;;  %v10841_v4 = vpop.f32.mrf.mxu1  ;;  %v14129_v30 = vpack.c.bf16 %v6088_v3, %v6087_v5  ;;  %v14131_v47 = vpack.c.bf16 %v6036_v39, %v6035_v0  ;;  %v5210_v7 = vadd.f32 %v15698_v10, %v14040_v52  ;;  %v5208_v16 = vadd.f32 %v15699_v53, %v14044_v23  ;;  %v15700_v23 = vld [vmem:[#allocation76_spill] sm:$0xff]  ;;  %v15701_v17 = vld [vmem:[#allocation75_spill] sm:$0xff]  ;;  %v15702_v63 = vld [vmem:[#allocation78_spill] sm:$0xff] }
 0x3db   : > { %10999 = vmatprep.subr.bf16.mxu0 %v14112_v1  ;;  %6011 = vst.msk [vmem:[#allocation3 + $0xc1] sm:$0xff] %vm3053_vm2, %v5924_v58  ;;  %v5922_v38 = vmax.f32 %v5890_v36, 0.0  ;;  %v5893_v19 = vadd.f32 %v13948_v35, %v5854_v32  ;;  %v5852_v57 = vmul.f32 %v13932_v18, %v5813_v49  ;;  %v5818_v11 = vadd.f32 %v10841_v4, %v5512_v26  ;;  %v15703_v31 = vld [vmem:[#allocation77_spill] sm:$0xff] }
 0x3dc   : > { %10966 = vmatpush3.bf16.msra.mxu1 %v11257_v6  ;;  %10864 = vmatmul.mubr.msk.bf16.gmra.mxu0 %vm3053_vm2, %v14129_v30  ;;  %v5737_v42 = vpop.f32.mrf.mxu1  ;;  %v4905_v33 = vadd.f32 %v15701_v17, %v15700_v23  ;;  %v14168_v26 = vadd.f32 %v15703_v31, %v15702_v63  ;;  %v14171_v9 = vadd.f32 %v15704_v62, %v4600_v2  ;;  %v15705_v49 = vld [vmem:[#allocation109_spill] sm:$0xff]  ;;  %v6039_v10 = vld [vmem:[#allocation3 + $0x78] sm:$0xff] }
 0x3dd   : > { %10900 = vmatmul.mubr.msk.bf16.gmra.mxu1 %vm3053_vm2, %v14131_v47  ;;  %6009 = vst.msk [vmem:[#allocation3 + $0xa9] sm:$0xff] %vm3053_vm2, %v5922_v38  ;;  %v5925_v6 = vmax.f32 %v5893_v19, 0.0  ;;  %v5891_v59 = vadd.f32 %v13948_v35, %v5852_v57  ;;  %v5857_v20 = vmul.f32 %v13932_v18, %v5818_v11  ;;  %v5816_v52 = vadd.f32 %v5737_v42, %v5510_v43  ;;  %v6093_v38 = vld [vmem:[#allocation3 + $0x91] sm:$0xff]  ;;  %v14184_v19 = vpop.f32.mrf.mxu0  ;;  %v15708_v31 = vld [vmem:[#allocation112_spill] sm:$0xff] }
 0x3de   : > { %10867 = vmatprep.mubr.msk.bf16.mxu0 %vm3053_vm2, %v14133_v48  ;;  %10903 = vmatprep.mubr.msk.bf16.mxu1 %vm3053_vm2, %v14135_v13  ;;  %v5511_v27 = vadd.f32 %v13989_v44, %v5205_v24  ;;  %v10842_v61 = vpop.f32.mrf.mxu1  ;;  %v6094_v58 = vld [vmem:[#allocation3 + $0x99] sm:$0xff]  ;;  %v5516_v32 = vadd.f32 %v14014_v34, %v5210_v7  ;;  %v5514_v2 = vadd.f32 %v14033_v50, %v5208_v16  ;;  %v15706_v24 = vld [vmem:[#allocation110_spill] sm:$0xff] }
 0x3df   : > { %11035 = vmatprep.subr.bf16.mxu1 %v14141_v21  ;;  %6012 = vst.msk [vmem:[#allocation3 + $0xc9] sm:$0xff] %vm3053_vm2, %v5925_v6  ;;  %v5923_v43 = vmax.f32 %v5891_v59, 0.0  ;;  %v5896_v3 = vadd.f32 %v13948_v35, %v5857_v20  ;;  %v5855_v39 = vmul.f32 %v13932_v18, %v5816_v52  ;;  %v5819_v55 = vadd.f32 %v10842_v61, %v5513_v14  ;;  %v6042_v36 = vld [vmem:[#allocation3 + $0x98] sm:$0xff]  ;;  %v14208_v61 = vpop.f32.mrf.mxu0 }
 0x3e0   : > { %v5211_v44 = vadd.f32 %v15705_v49, %v14048_v54  ;;  %v5209_v5 = vadd.f32 %v15706_v24, %v14055_v22  ;;  %v5740_v0 = vpop.f32.mrf.mxu1  ;;  %v6092_v37 = vld [vmem:[#allocation3 + $0x81] sm:$0xff]  ;;  %v6091_v14 = vld [vmem:[#allocation3 + $0x79] sm:$0xff]  ;;  %v6041_v54 = vld [vmem:[#allocation3 + $0x90] sm:$0xff]  ;;  %v14193_v16 = vpack.c.bf16 %v6094_v58, %v6093_v38  ;;  %v5212_v62 = vadd.f32 %v15708_v31, %v4905_v33 }
 0x3e1   : > { %v6040_v4 = vld [vmem:[#allocation3 + $0x80] sm:$0xff]  ;;  %6010 = vst.msk [vmem:[#allocation3 + $0xb1] sm:$0xff] %vm3053_vm2, %v5923_v43  ;;  %v5928_v57 = vmax.f32 %v5896_v3, 0.0  ;;  %v5894_v11 = vadd.f32 %v13948_v35, %v5855_v39  ;;  %v5858_v34 = vmul.f32 %v13932_v18, %v5819_v55  ;;  %v5817_v50 = vadd.f32 %v5740_v0, %v5511_v27  ;;  %v15707_v17 = vld [vmem:[#allocation111_spill] sm:$0xff] }
 0x3e2   : > { %v10845_v7 = vpop.f32.mrf.mxu1  ;;  %v14189_v53 = vpack.c.bf16 %v6092_v37, %v6091_v14  ;;  %v14191_v22 = vpack.c.bf16 %v6040_v4, %v6039_v10  ;;  %v14195_v42 = vpack.c.bf16 %v6042_v36, %v6041_v54  ;;  %v5517_v23 = vadd.f32 %v14060_v28, %v5211_v44  ;;  %v15710_v33 = vld [vmem:[#allocation81_spill] sm:$0xff]  ;;  %v15711_v58 = vld [vmem:[#allocation84_spill] sm:$0xff]  ;;  %v15712_v36 = vld [vmem:[#allocation83_spill] sm:$0xff]  ;;  %v10817_v37 = vpop.f32.mrf.mxu0 }
 0x3e3   : > { %6015 = vst.msk [vmem:[#allocation3 + $0xf1] sm:$0xff] %vm3053_vm2, %v5928_v57  ;;  %v5926_v6 = vmax.f32 %v5894_v11, 0.0  ;;  %v5897_v59 = vadd.f32 %v13948_v35, %v5858_v34  ;;  %v5856_v20 = vmul.f32 %v13932_v18, %v5817_v50  ;;  %v5822_v52 = vadd.f32 %v10845_v7, %v5516_v32  ;;  %v15713_v49 = vld [vmem:[#allocation87_spill] sm:$0xff] }
 0x3e4   : > { %v5214_v63 = vadd.f32 %v15707_v17, %v14102_v8  ;;  %10868 = vmatmul.mubr.msk.bf16.gmra.mxu0 %vm3053_vm2, %v14189_v53  ;;  %v5753_v27 = vpop.f32.mrf.mxu1  ;;  %v15709_v8 = vld [vmem:[#allocation82_spill] sm:$0xff]  ;;  %v4909_v32 = vadd.f32 %v15712_v36, %v15711_v58  ;;  %v4604_v44 = vadd.f32 %v15713_v49, %v13935_v45  ;;  %v5515_v24 = vadd.f32 %v14092_v41, %v5209_v5  ;;  %v15714_v45 = vld [vmem:[#allocation113_spill] sm:$0xff]  ;;  %v15716_v58 = vld [vmem:[#allocation115_spill] sm:$0xff] }
 0x3e5   : > { %10904 = vmatmul.mubr.msk.bf16.gmra.mxu1 %vm3053_vm2, %v14191_v22  ;;  %6013 = vst.msk [vmem:[#allocation3 + $0xd9] sm:$0xff] %vm3053_vm2, %v5926_v6  ;;  %v5929_v43 = vmax.f32 %v5897_v59, 0.0  ;;  %v5895_v3 = vadd.f32 %v13948_v35, %v5856_v20  ;;  %v5861_v28 = vmul.f32 %v13932_v18, %v5822_v52  ;;  %v5820_v39 = vadd.f32 %v5753_v27, %v5514_v2  ;;  %v15715_v41 = vld [vmem:[#allocation114_spill] sm:$0xff]  ;;  %v6097_v59 = vld [vmem:[#allocation3 + $0xc1] sm:$0xff] }
 0x3e6   : > { %10871 = vmatprep.mubr.msk.bf16.mxu0 %vm3053_vm2, %v14193_v16  ;;  %10907 = vmatprep.mubr.msk.bf16.mxu1 %vm3053_vm2, %v14195_v42  ;;  %v4911_v55 = vadd.f32 %v15710_v33, %v15709_v8  ;;  %v10846_v0 = vpop.f32.mrf.mxu1  ;;  %v6098_v11 = vld [vmem:[#allocation3 + $0xc9] sm:$0xff]  ;;  %v5520_v50 = vadd.f32 %v14124_v29, %v5214_v63  ;;  %v5518_v14 = vadd.f32 %v14155_v46, %v5212_v62  ;;  %v6045_v63 = vld [vmem:[#allocation3 + $0xc0] sm:$0xff] }
 0x3e7   : > { %6016 = vst.msk [vmem:[#allocation3 + $0xf9] sm:$0xff] %vm3053_vm2, %v5929_v43  ;;  %v5927_v2 = vmax.f32 %v5895_v3, 0.0  ;;  %v5900_v4 = vadd.f32 %v13948_v35, %v5861_v28  ;;  %v5859_v38 = vmul.f32 %v13932_v18, %v5820_v39  ;;  %v5823_v57 = vadd.f32 %v10846_v0, %v5517_v23  ;;  %v6046_v34 = vld [vmem:[#allocation3 + $0xc8] sm:$0xff]  ;;  %v5479_v43 = vpop.f32.mrf.mxu0 }
 0x3e8   : > { %v5215_v10 = vadd.f32 %v15714_v45, %v14168_v26  ;;  %v5213_v5 = vadd.f32 %v15715_v41, %v14171_v9  ;;  %v5756_v54 = vpop.f32.mrf.mxu1  ;;  %v6096_v7 = vld [vmem:[#allocation3 + $0xb1] sm:$0xff]  ;;  %v6095_v17 = vld [vmem:[#allocation3 + $0xa9] sm:$0xff]  ;;  %v14240_v9 = vpack.c.bf16 %v6098_v11, %v6097_v59  ;;  %v14242_v27 = vpack.c.bf16 %v6046_v34, %v6045_v63 }
 0x3e9   : > { %v6044_v6 = vld [vmem:[#allocation3 + $0xb0] sm:$0xff]  ;;  %6014 = vst.msk [vmem:[#allocation3 + $0xe1] sm:$0xff] %vm3053_vm2, %v5927_v2  ;;  %v5932_v20 = vmax.f32 %v5900_v4, 0.0  ;;  %v5898_v52 = vadd.f32 %v13948_v35, %v5859_v38  ;;  %v5862_v23 = vmul.f32 %v13932_v18, %v5823_v57  ;;  %v5821_v29 = vadd.f32 %v5756_v54, %v5515_v24  ;;  %v6043_v46 = vld [vmem:[#allocation3 + $0xa8] sm:$0xff] }
 0x3ea   : > { %v10849_v31 = vpop.f32.mrf.mxu1  ;;  %v14236_v26 = vpack.c.bf16 %v6096_v7, %v6095_v17  ;;  %v14238_v62 = vpack.c.bf16 %v6044_v6, %v6043_v46  ;;  %v5521_v33 = vadd.f32 %v14184_v19, %v5215_v10  ;;  %v5218_v36 = vadd.f32 %v15716_v58, %v4911_v55  ;;  %v15718_v19 = vld [vmem:[#allocation85_spill] sm:$0xff] }
 0x3eb   : > { %6019 = vst.msk [vmem:[#allocation3 + $0x121] sm:$0xff] %vm3053_vm2, %v5932_v20  ;;  %v5930_v3 = vmax.f32 %v5898_v52, 0.0  ;;  %v5901_v28 = vadd.f32 %v13948_v35, %v5862_v23  ;;  %v5860_v39 = vmul.f32 %v13932_v18, %v5821_v29  ;;  %v5826_v8 = vadd.f32 %v10849_v31, %v5520_v50  ;;  %v10818_v50 = vpop.f32.mrf.mxu0  ;;  %v6101_v23 = vld [vmem:[#allocation3 + $0xf1] sm:$0xff] }
 0x3ec   : > { %v5216_v49 = vadd.f32 %v13889_v56, %v4909_v32  ;;  %10872 = vmatmul.mubr.msk.bf16.gmra.mxu0 %vm3053_vm2, %v14236_v26  ;;  %v5769_v24 = vpop.f32.mrf.mxu1  ;;  %v15717_v56 = vld [vmem:[#allocation86_spill] sm:$0xff]  ;;  %v15719_v32 = vld [vmem:[#allocation88_spill] sm:$0xff]  ;;  %v5519_v11 = vadd.f32 %v14208_v61, %v5213_v5  ;;  %v5524_v6 = vadd.f32 %v10817_v37, %v5218_v36 }
 0x3ed   : > { %10908 = vmatmul.mubr.msk.bf16.gmra.mxu1 %vm3053_vm2, %v14238_v62  ;;  %6017 = vst.msk [vmem:[#allocation3 + $0x109] sm:$0xff] %vm3053_vm2, %v5930_v3  ;;  %v5933_v0 = vmax.f32 %v5901_v28, 0.0  ;;  %v5899_v2 = vadd.f32 %v13948_v35, %v5860_v39  ;;  %v5865_v4 = vmul.f32 %v13932_v18, %v5826_v8  ;;  %v5824_v38 = vadd.f32 %v5769_v24, %v5518_v14  ;;  %v6099_v31 = vld [vmem:[#allocation3 + $0xd9] sm:$0xff]  ;;  %v6049_v37 = vld [vmem:[#allocation3 + $0xf0] sm:$0xff]  ;;  %v5482_v8 = vpop.f32.mrf.mxu0 }
 0x3ee   : > { %10875 = vmatprep.mubr.msk.bf16.mxu0 %vm3053_vm2, %v14240_v9  ;;  %10911 = vmatprep.mubr.msk.bf16.mxu1 %vm3053_vm2, %v14242_v27  ;;  %v4912_v55 = vadd.f32 %v15718_v19, %v15717_v56  ;;  %v4910_v57 = vadd.f32 %v15719_v32, %v4604_v44  ;;  %v10850_v34 = vpop.f32.mrf.mxu1  ;;  %v6102_v54 = vld [vmem:[#allocation3 + $0xf9] sm:$0xff]  ;;  %v5522_v20 = vadd.f32 %v5479_v43, %v5216_v49 }
 0x3ef   : > { %6020 = vst.msk [vmem:[#allocation3 + $0x129] sm:$0xff] %vm3053_vm2, %v5933_v0  ;;  %v5931_v45 = vmax.f32 %v5899_v2, 0.0  ;;  %v5904_v14 = vadd.f32 %v13948_v35, %v5865_v4  ;;  %v5863_v10 = vmul.f32 %v13932_v18, %v5824_v38  ;;  %v5827_v41 = vadd.f32 %v10850_v34, %v5521_v33  ;;  %v6050_v7 = vld [vmem:[#allocation3 + $0xf8] sm:$0xff] }
 0x3f0   : > { %v5219_v59 = vadd.f32 %v13901_v25, %v4912_v55  ;;  %v5217_v44 = vadd.f32 %v13912_v40, %v4910_v57  ;;  %v5772_v52 = vpop.f32.mrf.mxu1  ;;  %v6100_v61 = vld [vmem:[#allocation3 + $0xe1] sm:$0xff]  ;;  %v6047_v3 = vld [vmem:[#allocation3 + $0xd8] sm:$0xff]  ;;  %v14277_v40 = vpack.c.bf16 %v6102_v54, %v6101_v23  ;;  %v14279_v39 = vpack.c.bf16 %v6050_v7, %v6049_v37 }
 0x3f1   : > { %v6048_v5 = vld [vmem:[#allocation3 + $0xe0] sm:$0xff]  ;;  %6018 = vst.msk [vmem:[#allocation3 + $0x111] sm:$0xff] %vm3053_vm2, %v5931_v45  ;;  %v5936_v29 = vmax.f32 %v5904_v14, 0.0  ;;  %v5902_v17 = vadd.f32 %v13948_v35, %v5863_v10  ;;  %v5866_v46 = vmul.f32 %v13932_v18, %v5827_v41  ;;  %v5825_v63 = vadd.f32 %v5772_v52, %v5519_v11 }
 0x3f2   : > { %v10853_v28 = vpop.f32.mrf.mxu1  ;;  %v14273_v25 = vpack.c.bf16 %v6100_v61, %v6099_v31  ;;  %v14275_v43 = vpack.c.bf16 %v6048_v5, %v6047_v3  ;;  %v5525_v24 = vadd.f32 %v10818_v50, %v5219_v59  ;;  %v5523_v19 = vadd.f32 %v5482_v8, %v5217_v44  ;;  %v6105_v52 = vld [vmem:[#allocation3 + $0x121] sm:$0xff] }
 0x3f3   : > { %6023 = vst.msk [vmem:[#allocation3 + $0x151] sm:$0xff] %vm3053_vm2, %v5936_v29  ;;  %v5934_v33 = vmax.f32 %v5902_v17, 0.0  ;;  %v5905_v58 = vadd.f32 %v13948_v35, %v5866_v46  ;;  %v5864_v36 = vmul.f32 %v13932_v18, %v5825_v63  ;;  %v5830_v49 = vadd.f32 %v10853_v28, %v5524_v6  ;;  %v6053_v29 = vld [vmem:[#allocation3 + $0x120] sm:$0xff] }
 0x3f4   : > { %10876 = vmatmul.mubr.msk.bf16.gmra.mxu0 %vm3053_vm2, %v14273_v25  ;;  %v5785_v0 = vpop.f32.mrf.mxu1  ;;  %v6051_v44 = vld [vmem:[#allocation3 + $0x108] sm:$0xff] }
 0x3f5   : > { %10912 = vmatmul.mubr.msk.bf16.gmra.mxu1 %vm3053_vm2, %v14275_v43  ;;  %6021 = vst.msk [vmem:[#allocation3 + $0x139] sm:$0xff] %vm3053_vm2, %v5934_v33  ;;  %v5937_v2 = vmax.f32 %v5905_v58, 0.0  ;;  %v5903_v4 = vadd.f32 %v13948_v35, %v5864_v36  ;;  %v5869_v38 = vmul.f32 %v13932_v18, %v5830_v49  ;;  %v5828_v56 = vadd.f32 %v5785_v0, %v5522_v20  ;;  %v6103_v20 = vld [vmem:[#allocation3 + $0x109] sm:$0xff] }
 0x3f6   : > { %10879 = vmatprep.mubr.msk.bf16.mxu0 %vm3053_vm2, %v14277_v40  ;;  %10915 = vmatprep.mubr.msk.bf16.mxu1 %vm3053_vm2, %v14279_v39  ;;  %v10854_v55 = vpop.f32.mrf.mxu1  ;;  %v6106_v50 = vld [vmem:[#allocation3 + $0x129] sm:$0xff] }
 0x3f7   : > { %6024 = vst.msk [vmem:[#allocation3 + $0x159] sm:$0xff] %vm3053_vm2, %v5937_v2  ;;  %v5935_v32 = vmax.f32 %v5903_v4, 0.0  ;;  %v5908_v57 = vadd.f32 %v13948_v35, %v5869_v38  ;;  %v5867_v11 = vmul.f32 %v13932_v18, %v5828_v56  ;;  %v5831_v34 = vadd.f32 %v10854_v55, %v5525_v24  ;;  %v6054_v41 = vld [vmem:[#allocation3 + $0x128] sm:$0xff] }
 0x3f8   : > { %v5788_v45 = vpop.f32.mrf.mxu1  ;;  %v6104_v14 = vld [vmem:[#allocation3 + $0x111] sm:$0xff]  ;;  %v14305_v23 = vpack.c.bf16 %v6106_v50, %v6105_v52  ;;  %v14310_v31 = vpack.c.bf16 %v6054_v41, %v6053_v29  ;;  %v6576_v56 = vld [vmem:[#allocation3 + $0x2] sm:$0xff] }
 0x3f9   : > { %v6052_v10 = vld [vmem:[#allocation3 + $0x110] sm:$0xff]  ;;  %6022 = vst.msk [vmem:[#allocation3 + $0x141] sm:$0xff] %vm3053_vm2, %v5935_v32  ;;  %v5940_v54 = vmax.f32 %v5908_v57, 0.0  ;;  %v5906_v7 = vadd.f32 %v13948_v35, %v5867_v11  ;;  %v5870_v6 = vmul.f32 %v13932_v18, %v5831_v34  ;;  %v5829_v59 = vadd.f32 %v5788_v45, %v5523_v19  ;;  %v6584_v52 = vld [vmem:[#allocation3 + $0x62] sm:$0xff] }
 0x3fa   : > { %v14301_v61 = vpack.c.bf16 %v6104_v14, %v6103_v20  ;;  %v14303_v5 = vpack.c.bf16 %v6052_v10, %v6051_v44  ;;  %v6109_v0 = vld [vmem:[#allocation3 + $0x151] sm:$0xff]  ;;  %v6578_v14 = vld [vmem:[#allocation3 + $0x1a] sm:$0xff]  ;;  %v6579_v10 = vld [vmem:[#allocation3 + $0x22] sm:$0xff] }
 0x3fb   : > { %6027 = vst.msk [vmem:[#allocation3 + $0x181] sm:$0xff] %vm3053_vm2, %v5940_v54  ;;  %v5938_v17 = vmax.f32 %v5906_v7, 0.0  ;;  %v5909_v46 = vadd.f32 %v13948_v35, %v5870_v6  ;;  %v5868_v63 = vmul.f32 %v13932_v18, %v5829_v59  ;;  %v6057_v2 = vld [vmem:[#allocation3 + $0x150] sm:$0xff]  ;;  %v6581_v54 = vld [vmem:[#allocation3 + $0x3a] sm:$0xff]  ;;  %v14351_v7 = vpack.c.bf16 %v6579_v10, %v6578_v14 }
 0x3fc   : > { %10880 = vmatmul.mubr.msk.bf16.gmra.mxu0 %vm3053_vm2, %v14301_v61  ;;  %v6107_v28 = vld [vmem:[#allocation3 + $0x139] sm:$0xff]  ;;  %v6577_v19 = vld [vmem:[#allocation3 + $0xa] sm:$0xff] }
 0x3fd   : > { %10916 = vmatmul.mubr.msk.bf16.gmra.mxu1 %vm3053_vm2, %v14303_v5  ;;  %6025 = vst.msk [vmem:[#allocation3 + $0x169] sm:$0xff] %vm3053_vm2, %v5938_v17  ;;  %v5941_v3 = vmax.f32 %v5909_v46, 0.0  ;;  %v5907_v37 = vadd.f32 %v13948_v35, %v5868_v63  ;;  %10883 = vmatprep.mubr.msk.bf16.mxu0 %vm3053_vm2, %v14305_v23  ;;  %v6055_v8 = vld [vmem:[#allocation3 + $0x138] sm:$0xff]  ;;  %v6608_v45 = vpack.c.bf16 %v6577_v19, %v6576_v56  ;;  %v11259_v6 = vld [vmem:[%s15332_s7 + $0x40] sm:$0xff]   ;;  %v6587_v46 = vld [vmem:[#allocation3 + $0x82] sm:$0xff] }
 0x3fe   : > { %10919 = vmatprep.mubr.msk.bf16.mxu1 %vm3053_vm2, %v14310_v31  ;;  %v6110_v33 = vld [vmem:[#allocation3 + $0x159] sm:$0xff]  ;;  %v6582_v44 = vld [vmem:[#allocation3 + $0x4a] sm:$0xff] }
 0x3ff   : > { %6028 = vst.msk [vmem:[#allocation3 + $0x189] sm:$0xff] %vm3053_vm2, %v5941_v3  ;;  %v5939_v18 = vmax.f32 %v5907_v37, 0.0  ;;  %v6058_v49 = vld [vmem:[#allocation3 + $0x158] sm:$0xff]  ;;  %v14328_v4 = vpack.c.bf16 %v6110_v33, %v6109_v0  ;;  %v6585_v29 = vld [vmem:[#allocation3 + $0x6a] sm:$0xff]  ;;  %v6592_v33 = vld [vmem:[#allocation3 + $0xc2] sm:$0xff] }
 0x400   : > { %v6108_v58 = vld [vmem:[#allocation3 + $0x141] sm:$0xff]  ;;  %v14330_v38 = vpack.c.bf16 %v6058_v49, %v6057_v2  ;;  %v6580_v41 = vld [vmem:[#allocation3 + $0x32] sm:$0xff]  ;;  %v14384_v17 = vpack.c.bf16 %v6585_v29, %v6584_v52  ;;  %v6601_v14 = vld [vmem:[#allocation3 + $0x12a] sm:$0xff] }
 0x401   : > { %v6056_v36 = vld [vmem:[#allocation3 + $0x140] sm:$0xff]  ;;  %6026 = vst.msk [vmem:[#allocation3 + $0x171] sm:$0xff] %vm3053_vm2, %v5939_v18  ;;  %v14324_v24 = vpack.c.bf16 %v6108_v58, %v6107_v28  ;;  %v14356_v59 = vpack.c.bf16 %v6581_v54, %v6580_v41  ;;  %v14373_v20 = vld [vmem:[%s15332_s7 + $0x68] sm:$0xff]   ;;  %v6590_v28 = vld [vmem:[#allocation3 + $0xaa] sm:$0xff] }
 0x402   : > { %v14326_v35 = vpack.c.bf16 %v6056_v36, %v6055_v8  ;;  %v6588_v63 = vld [vmem:[#allocation3 + $0x92] sm:$0xff]  ;;  %v6589_v3 = vld [vmem:[#allocation3 + $0x9a] sm:$0xff]  ;;  %v6593_v58 = vld [vmem:[#allocation3 + $0xca] sm:$0xff] }
 0x403   : > { %v14397_v18 = vpack.c.bf16 %v6589_v3, %v6588_v63  ;;  %v6591_v8 = vld [vmem:[#allocation3 + $0xb2] sm:$0xff]  ;;  %v14409_v49 = vpack.c.bf16 %v6593_v58, %v6592_v33  ;;  %v6594_v0 = vld [vmem:[#allocation3 + $0xda] sm:$0xff]  ;;  %v6595_v2 = vld [vmem:[#allocation3 + $0xe2] sm:$0xff] }
 0x404   : > { %10884 = vmatmul.mubr.msk.bf16.gmra.mxu0 %vm3053_vm2, %v14324_v24  ;;  %v6111_v55 = vld [vmem:[#allocation3 + $0x169] sm:$0xff]  ;;  %v14407_v36 = vpack.c.bf16 %v6591_v8, %v6590_v28  ;;  %v6596_v56 = vld [vmem:[#allocation3 + $0xf2] sm:$0xff]  ;;  %v6597_v19 = vld [vmem:[#allocation3 + $0xfa] sm:$0xff] }
 0x405   : > { %10920 = vmatmul.mubr.msk.bf16.gmra.mxu1 %vm3053_vm2, %v14326_v35  ;;  %10887 = vmatprep.mubr.msk.bf16.mxu0 %vm3053_vm2, %v14328_v4  ;;  %v6059_v57 = vld [vmem:[#allocation3 + $0x168] sm:$0xff]  ;;  %v6602_v54 = vld [vmem:[#allocation3 + $0x13a] sm:$0xff]  ;;  %v11263_v8 = vld [vmem:[%s15332_s7 + $0x60] sm:$0xff]  }
 0x406   : > { %10923 = vmatprep.mubr.msk.bf16.mxu1 %vm3053_vm2, %v14330_v38  ;;  %v6912_v63 = vld [vmem:[#allocation3 + $0x180] sm:$0xff]  ;;  %v8107_v58 = vld [vmem:[#allocation3 + $0x31] sm:$0xff] }
 0x407   : > { %v11265_v33 = vld [vmem:[%s15332_s7 + $0x70] sm:$0xff]  }
 0x408   : > { %v6112_v32 = vld [vmem:[#allocation3 + $0x171] sm:$0xff] }
 0x409   : > { %v6060_v11 = vld [vmem:[#allocation3 + $0x170] sm:$0xff]  ;;  %v14340_v34 = vpack.c.bf16 %v6112_v32, %v6111_v55  ;;  %v6617_v55 = vpack.c.bf16 %v6595_v2, %v6594_v0  ;;  %v6618_v32 = vpack.c.bf16 %v6597_v19, %v6596_v56  ;;  %v7803_v56 = vld [vmem:[#allocation3 + $0x48] sm:$0xff] }
 0x40a   : > { %v14342_v50 = vpack.c.bf16 %v6060_v11, %v6059_v57  ;;  %v6598_v57 = vld [vmem:[#allocation3 + $0x10a] sm:$0xff]  ;;  %v6599_v11 = vld [vmem:[#allocation3 + $0x112] sm:$0xff] }
 0x40b   : > { %v6619_v10 = vpack.c.bf16 %v6599_v11, %v6598_v57  ;;  %v6606_v29 = vld [vmem:[#allocation3 + $0x16a] sm:$0xff] }
 0x40c   : > { %10888 = vmatmul.mubr.msk.bf16.gmra.mxu0 %vm3053_vm2, %v14340_v34  ;;  %v7804_v0 = vld [vmem:[#allocation3 + $0x50] sm:$0xff] }
 0x40d   : > { %10924 = vmatmul.mubr.msk.bf16.gmra.mxu1 %vm3053_vm2, %v14342_v50  ;;  %10931 = vmatprep.mubr.msk.bf16.mxu0 %vm3053_vm2, %v6608_v45  ;;  %v6600_v45 = vld [vmem:[#allocation3 + $0x122] sm:$0xff]  ;;  %v8110_v2 = vld [vmem:[#allocation3 + $0x51] sm:$0xff] }
 0x40e   : > { %10967 = vmatprep.mubr.msk.bf16.mxu1 %vm3053_vm2, %v14069_v12  ;;  %v11261_v12 = vld [vmem:[%s15332_s7 + $0x50] sm:$0xff]   ;;  %v6620_v41 = vpack.c.bf16 %v6601_v14, %v6600_v45  ;;  %v8109_v19 = vld [vmem:[#allocation3 + $0x49] sm:$0xff] }
 0x40f   : > { %v8140_v57 = vpack.c.bf16 %v8110_v2, %v8109_v19  ;;  %v11267_v11 = vld [vmem:[%s15332_s7 + $0x80] sm:$0xff]   ;;  %v8111_v45 = vld [vmem:[#allocation3 + $0x61] sm:$0xff] }
 0x414   : > { %10932 = vmatmul.mubr.msk.bf16.vlgmr.msra.gmra.mxu0 %vm3053_vm2, %v14351_v7 }
 0x415   : > { %10968 = vmatmul.mubr.msk.bf16.vlgmr.msra.gmra.mxu1 %vm3053_vm2, %v14087_v51  ;;  %11000 = vmatpush3.bf16.msra.mxu0 %v14112_v1  ;;  %v6583_v51 = vld [vmem:[#allocation3 + $0x52] sm:$0xff] }
 0x416   : > { %10935 = vmatprep.mubr.msk.bf16.mxu0 %vm3053_vm2, %v14356_v59  ;;  %10971 = vmatprep.mubr.msk.bf16.mxu1 %vm3053_vm2, %v14131_v47  ;;  %v14376_v1 = vpack.c.bf16 %v6583_v51, %v6582_v44  ;;  %v14382_v47 = vld [vmem:[%s15332_s7 + $0x78] sm:$0xff]   ;;  %v6605_v44 = vld [vmem:[#allocation3 + $0x15a] sm:$0xff] }
 0x417   : > { %11001 = vmatprep.subr.bf16.mxu0 %v11259_v6  ;;  %11036 = vmatpush3.bf16.msra.mxu1 %v14141_v21  ;;  %v6586_v21 = vld [vmem:[#allocation3 + $0x7a] sm:$0xff] }
 0x418   : > { %11037 = vmatprep.subr.bf16.mxu1 %v11261_v12  ;;  %v14395_v37 = vpack.c.bf16 %v6587_v46, %v6586_v21  ;;  %v6607_v21 = vld [vmem:[#allocation3 + $0x172] sm:$0xff]  ;;  %v6913_v46 = vld [vmem:[#allocation3 + $0x188] sm:$0xff] }
 0x419   : > { %11002 = vmatpush3.bf16.msra.mxu0 %v11259_v6  ;;  %v6603_v6 = vld [vmem:[#allocation3 + $0x142] sm:$0xff]  ;;  %v6623_v3 = vpack.c.bf16 %v6607_v21, %v6606_v29  ;;  %v14437_v28 = vpack.c.bf16 %v6913_v46, %v6912_v63  ;;  %v8113_v46 = vld [vmem:[#allocation3 + $0x79] sm:$0xff] }
 0x41a   : > { %11071 = vmatprep.subr.bf16.mxu0 %v14373_v20  ;;  %v6621_v51 = vpack.c.bf16 %v6603_v6, %v6602_v54 }
 0x41b   : > { %11038 = vmatpush3.bf16.msra.mxu1 %v11261_v12  ;;  %v6604_v12 = vld [vmem:[#allocation3 + $0x152] sm:$0xff] }
 0x41c   : > { %10936 = vmatmul.mubr.msk.bf16.gmra.mxu0 %vm3053_vm2, %v14376_v1  ;;  %11107 = vmatprep.subr.bf16.mxu1 %v14382_v47  ;;  %v6622_v52 = vpack.c.bf16 %v6605_v44, %v6604_v12 }
 0x41d   : > { %10972 = vmatmul.mubr.msk.bf16.gmra.mxu1 %vm3053_vm2, %v14135_v13  ;;  %10939 = vmatprep.mubr.msk.bf16.mxu0 %vm3053_vm2, %v14384_v17 }
 0x41e   : > { %10975 = vmatprep.mubr.msk.bf16.mxu1 %vm3053_vm2, %v14191_v22 }
 0x424   : > { %10940 = vmatmul.mubr.msk.bf16.gmra.mxu0 %vm3053_vm2, %v14395_v37 }
 0x425   : > { %10976 = vmatmul.mubr.msk.bf16.gmra.mxu1 %vm3053_vm2, %v14195_v42  ;;  %10943 = vmatprep.mubr.msk.bf16.mxu0 %vm3053_vm2, %v14397_v18 }
 0x426   : > { %10979 = vmatprep.mubr.msk.bf16.mxu1 %vm3053_vm2, %v14238_v62 }
 0x42c   : > { %10944 = vmatmul.mubr.msk.bf16.gmra.mxu0 %vm3053_vm2, %v14407_v36 }
 0x42d   : > { %10980 = vmatmul.mubr.msk.bf16.gmra.mxu1 %vm3053_vm2, %v14242_v27  ;;  %10947 = vmatprep.mubr.msk.bf16.mxu0 %vm3053_vm2, %v14409_v49 }
 0x42e   : > { %10983 = vmatprep.mubr.msk.bf16.mxu1 %vm3053_vm2, %v14275_v43 }
 0x434   : > { %10948 = vmatmul.mubr.msk.bf16.gmra.mxu0 %vm3053_vm2, %v6617_v55 }
 0x435   : > { %10984 = vmatmul.mubr.msk.bf16.gmra.mxu1 %vm3053_vm2, %v14279_v39  ;;  %10951 = vmatprep.mubr.msk.bf16.mxu0 %vm3053_vm2, %v6618_v32 }
 0x436   : > { %10987 = vmatprep.mubr.msk.bf16.mxu1 %vm3053_vm2, %v14303_v5 }
 0x43c   : > { %10952 = vmatmul.mubr.msk.bf16.gmra.mxu0 %vm3053_vm2, %v6619_v10 }
 0x43d   : > { %10988 = vmatmul.mubr.msk.bf16.gmra.mxu1 %vm3053_vm2, %v14310_v31  ;;  %10955 = vmatprep.mubr.msk.bf16.mxu0 %vm3053_vm2, %v6620_v41 }
 0x43e   : > { %10991 = vmatprep.mubr.msk.bf16.mxu1 %vm3053_vm2, %v14326_v35 }
 0x444   : > { %10956 = vmatmul.mubr.msk.bf16.gmra.mxu0 %vm3053_vm2, %v6621_v51 }
 0x445   : > { %10992 = vmatmul.mubr.msk.bf16.gmra.mxu1 %vm3053_vm2, %v14330_v38  ;;  %10959 = vmatprep.mubr.msk.bf16.mxu0 %vm3053_vm2, %v6622_v52 }
 0x446   : > { %10995 = vmatprep.mubr.msk.bf16.mxu1 %vm3053_vm2, %v14342_v50 }
 0x44c   : > { %10960 = vmatmul.mubr.msk.bf16.gmra.mxu0 %vm3053_vm2, %v6623_v3 }
 0x44d   : > { %10996 = vmatmul.mubr.msk.bf16.gmra.mxu1 %vm3053_vm2, %v14437_v28  ;;  %11003 = vmatprep.mubr.msk.bf16.mxu0 %vm3053_vm2, %v14067_v60  ;;  %v11266_v60 = vld [vmem:[%s15332_s7 + $0x88] sm:$0xff]  }
 0x44e   : > { %11039 = vmatprep.mubr.msk.bf16.mxu1 %vm3053_vm2, %v14351_v7  ;;  %v8108_v7 = vld [vmem:[#allocation3 + $0x39] sm:$0xff] }
 0x454   : > { %11004 = vmatmul.mubr.msk.bf16.vlgmr.msra.gmra.mxu0 %vm3053_vm2, %v14071_v15  ;;  %v7219_v15 = vld [vmem:[#allocation3 + $0x189] sm:$0xff] }
 0x455   : > { %11040 = vmatmul.mubr.msk.bf16.vlgmr.msra.gmra.mxu1 %vm3053_vm2, %v14356_v59  ;;  %11072 = vmatpush3.bf16.msra.mxu0 %v14373_v20  ;;  %v7218_v20 = vld [vmem:[#allocation3 + $0x181] sm:$0xff] }
 0x456   : > { %11007 = vmatprep.mubr.msk.bf16.mxu0 %vm3053_vm2, %v14129_v30  ;;  %11043 = vmatprep.mubr.msk.bf16.mxu1 %vm3053_vm2, %v14376_v1  ;;  %v7524_v30 = vld [vmem:[#allocation3 + $0x182] sm:$0xff] }
 0x457   : > { %11073 = vmatprep.subr.bf16.mxu0 %v11263_v8  ;;  %11108 = vmatpush3.bf16.msra.mxu1 %v14382_v47  ;;  %v14506_v47 = vpack.c.bf16 %v7219_v15, %v7218_v20 }
 0x458   : > { %11109 = vmatprep.subr.bf16.mxu1 %v11265_v33 }
 0x459   : > { %11074 = vmatpush3.bf16.msra.mxu0 %v11263_v8 }
 0x45a   : > { %11143 = vmatprep.subr.bf16.mxu0 %v11266_v60 }
 0x45b   : > { %11110 = vmatpush3.bf16.msra.mxu1 %v11265_v33 }
 0x45c   : > { %11008 = vmatmul.mubr.msk.bf16.gmra.mxu0 %vm3053_vm2, %v14133_v48  ;;  %v7525_v48 = vld [vmem:[#allocation3 + $0x18a] sm:$0xff] }
 0x45d   : > { %11044 = vmatmul.mubr.msk.bf16.gmra.mxu1 %vm3053_vm2, %v14384_v17  ;;  %11011 = vmatprep.mubr.msk.bf16.mxu0 %vm3053_vm2, %v14189_v53  ;;  %v7802_v53 = vld [vmem:[#allocation3 + $0x38] sm:$0xff] }
 0x45e   : > { %11047 = vmatprep.mubr.msk.bf16.mxu1 %vm3053_vm2, %v14395_v37  ;;  %v14508_v37 = vpack.c.bf16 %v7525_v48, %v7524_v30 }
 0x464   : > { %11012 = vmatmul.mubr.msk.bf16.gmra.mxu0 %vm3053_vm2, %v14193_v16 }
 0x465   : > { %11048 = vmatmul.mubr.msk.bf16.gmra.mxu1 %vm3053_vm2, %v14397_v18  ;;  %11015 = vmatprep.mubr.msk.bf16.mxu0 %vm3053_vm2, %v14236_v26  ;;  %v7801_v18 = vld [vmem:[#allocation3 + $0x30] sm:$0xff] }
 0x466   : > { %11051 = vmatprep.mubr.msk.bf16.mxu1 %vm3053_vm2, %v14407_v36  ;;  %v7833_v36 = vpack.c.bf16 %v7802_v53, %v7801_v18 }
 0x46c   : > { %11016 = vmatmul.mubr.msk.bf16.gmra.mxu0 %vm3053_vm2, %v14240_v9 }
 0x46d   : > { %11052 = vmatmul.mubr.msk.bf16.gmra.mxu1 %vm3053_vm2, %v14409_v49  ;;  %11019 = vmatprep.mubr.msk.bf16.mxu0 %vm3053_vm2, %v14273_v25  ;;  %v8139_v49 = vpack.c.bf16 %v8108_v7, %v8107_v58 }
 0x46e   : > { %11055 = vmatprep.mubr.msk.bf16.mxu1 %vm3053_vm2, %v6617_v55  ;;  %v8112_v55 = vld [vmem:[#allocation3 + $0x69] sm:$0xff] }
 0x474   : > { %11020 = vmatmul.mubr.msk.bf16.gmra.mxu0 %vm3053_vm2, %v14277_v40 }
 0x475   : > { %11056 = vmatmul.mubr.msk.bf16.gmra.mxu1 %vm3053_vm2, %v6618_v32  ;;  %11023 = vmatprep.mubr.msk.bf16.mxu0 %vm3053_vm2, %v14301_v61  ;;  %v7834_v32 = vpack.c.bf16 %v7804_v0, %v7803_v56 }
 0x476   : > { %11059 = vmatprep.mubr.msk.bf16.mxu1 %vm3053_vm2, %v6619_v10 }
 0x47c   : > { %11024 = vmatmul.mubr.msk.bf16.gmra.mxu0 %vm3053_vm2, %v14305_v23 }
 0x47d   : > { %11060 = vmatmul.mubr.msk.bf16.gmra.mxu1 %vm3053_vm2, %v6620_v41  ;;  %11027 = vmatprep.mubr.msk.bf16.mxu0 %vm3053_vm2, %v14324_v24  ;;  %v8141_v41 = vpack.c.bf16 %v8112_v55, %v8111_v45 }
 0x47e   : > { %11063 = vmatprep.mubr.msk.bf16.mxu1 %vm3053_vm2, %v6621_v51  ;;  %v8114_v51 = vld [vmem:[#allocation3 + $0x81] sm:$0xff] }
 0x47f   : > { %v8142_v8 = vpack.c.bf16 %v8114_v51, %v8113_v46 }
 0x484   : > { %11028 = vmatmul.mubr.msk.bf16.gmra.mxu0 %vm3053_vm2, %v14328_v4 }
 0x485   : > { %11064 = vmatmul.mubr.msk.bf16.gmra.mxu1 %vm3053_vm2, %v6622_v52  ;;  %11031 = vmatprep.mubr.msk.bf16.mxu0 %vm3053_vm2, %v14340_v34 }
 0x486   : > { %11067 = vmatprep.mubr.msk.bf16.mxu1 %vm3053_vm2, %v6623_v3 }
 0x48c   : > { %11032 = vmatmul.mubr.msk.bf16.gmra.mxu0 %vm3053_vm2, %v14506_v47 }
 0x48d   : > { %11068 = vmatmul.mubr.msk.bf16.gmra.mxu1 %vm3053_vm2, %v14508_v37  ;;  %11075 = vmatprep.mubr.msk.bf16.mxu0 %vm3053_vm2, %v7833_v36 }
 0x48e   : > { %11111 = vmatprep.mubr.msk.bf16.mxu1 %vm3053_vm2, %v8139_v49 }
 0x494   : > { %v10861_v14 = vpop.f32.mrf.mxu0  ;;  %v10897_v10 = vpop.f32.mrf.mxu1  ;;  %11076 = vmatmul.mubr.msk.bf16.vlgmr.msra.gmra.mxu0 %vm3053_vm2, %v7834_v32 }
 0x495   : > { %11112 = vmatmul.mubr.msk.bf16.vlgmr.msra.gmra.mxu1 %vm3053_vm2, %v8140_v57  ;;  %v14521_v54 = vadd.f32 %v10897_v10, %v10861_v14  ;;  %11144 = vmatpush3.bf16.msra.mxu0 %v11266_v60 }
 0x496   : > { %11079 = vmatprep.mubr.msk.bf16.mxu0 %vm3053_vm2, %v14135_v13  ;;  %11115 = vmatprep.mubr.msk.bf16.mxu1 %vm3053_vm2, %v8141_v41  ;;  %v6228_v6 = vpop.f32.mrf.mxu0  ;;  %v6449_v12 = vpop.f32.mrf.mxu1 }
 0x497   : > { %11145 = vmatprep.subr.bf16.mxu0 %v11267_v11  ;;  %v14526_v44 = vadd.f32 %v6449_v12, %v6228_v6 }
 0x498   : > { %v10862_v52 = vpop.f32.mrf.mxu0  ;;  %v10898_v29 = vpop.f32.mrf.mxu1 }
 0x499   : > { %v14528_v21 = vadd.f32 %v10898_v29, %v10862_v52  ;;  %11146 = vmatpush3.bf16.msra.mxu0 %v11267_v11 }
 0x49a   : > { %v6231_v63 = vpop.f32.mrf.mxu0  ;;  %v6452_v3 = vpop.f32.mrf.mxu1 }
 0x49b   : > { %v14530_v33 = vadd.f32 %v6452_v3, %v6231_v63 }
 0x49c   : > { %v10865_v13 = vpop.f32.mrf.mxu0  ;;  %11080 = vmatmul.mubr.msk.bf16.gmra.mxu0 %vm3053_vm2, %v14191_v22 }
 0x49d   : > { %v10901_v60 = vpop.f32.mrf.mxu1  ;;  %11116 = vmatmul.mubr.msk.bf16.gmra.mxu1 %vm3053_vm2, %v8142_v8  ;;  %11083 = vmatprep.mubr.msk.bf16.mxu0 %vm3053_vm2, %v14195_v42 }
 0x49e   : > { %v14535_v15 = vadd.f32 %v10901_v60, %v10865_v13  ;;  %11119 = vmatprep.mubr.msk.bf16.mxu1 %vm3053_vm2, %v14193_v16  ;;  %v6244_v30 = vpop.f32.mrf.mxu0 }
 0x49f   : > { %v6465_v48 = vpop.f32.mrf.mxu1 }
 0x4a0   : > { %v14541_v53 = vadd.f32 %v6465_v48, %v6244_v30  ;;  %v10866_v7 = vpop.f32.mrf.mxu0 }
 0x4a1   : > { %v10902_v20 = vpop.f32.mrf.mxu1 }
 0x4a2   : > { %v14543_v18 = vadd.f32 %v10902_v20, %v10866_v7  ;;  %v6247_v58 = vpop.f32.mrf.mxu0 }
 0x4a3   : > { %v6468_v22 = vpop.f32.mrf.mxu1 }
 0x4a4   : > { %v14545_v36 = vadd.f32 %v6468_v22, %v6247_v58  ;;  %v10869_v49 = vpop.f32.mrf.mxu0  ;;  %11084 = vmatmul.mubr.msk.bf16.gmra.mxu0 %vm3053_vm2, %v14238_v62 }
 0x4a5   : > { %v10905_v0 = vpop.f32.mrf.mxu1  ;;  %11120 = vmatmul.mubr.msk.bf16.gmra.mxu1 %vm3053_vm2, %v14236_v26  ;;  %11087 = vmatprep.mubr.msk.bf16.mxu0 %vm3053_vm2, %v14242_v27 }
 0x4a6   : > { %v14551_v16 = vadd.f32 %v10905_v0, %v10869_v49  ;;  %11123 = vmatprep.mubr.msk.bf16.mxu1 %vm3053_vm2, %v14240_v9  ;;  %v6260_v42 = vpop.f32.mrf.mxu0 }
 0x4a7   : > { %v6481_v2 = vpop.f32.mrf.mxu1 }
 0x4a8   : > { %v14557_v56 = vadd.f32 %v6481_v2, %v6260_v42  ;;  %v10870_v19 = vpop.f32.mrf.mxu0 }
 0x4a9   : > { %v10906_v55 = vpop.f32.mrf.mxu1 }
 0x4aa   : > { %v14559_v32 = vadd.f32 %v10906_v55, %v10870_v19  ;;  %v6263_v62 = vpop.f32.mrf.mxu0  ;;  %v7832_v19 = vld [vmem:[#allocation3 + $0x1a0] sm:$0xff] }
 0x4ab   : > { %v6484_v57 = vpop.f32.mrf.mxu1  ;;  %v8137_v55 = vld [vmem:[#allocation3 + $0x199] sm:$0xff] }
 0x4ac   : > { %v14561_v11 = vadd.f32 %v6484_v57, %v6263_v62  ;;  %v10873_v26 = vpop.f32.mrf.mxu0  ;;  %11088 = vmatmul.mubr.msk.bf16.gmra.mxu0 %vm3053_vm2, %v14275_v43  ;;  %v8138_v62 = vld [vmem:[#allocation3 + $0x1a1] sm:$0xff] }
 0x4ad   : > { %v10909_v45 = vpop.f32.mrf.mxu1  ;;  %11124 = vmatmul.mubr.msk.bf16.gmra.mxu1 %vm3053_vm2, %v14273_v25  ;;  %11091 = vmatprep.mubr.msk.bf16.mxu0 %vm3053_vm2, %v14279_v39 }
 0x4ae   : > { %v14567_v9 = vadd.f32 %v10909_v45, %v10873_v26  ;;  %11127 = vmatprep.mubr.msk.bf16.mxu1 %vm3053_vm2, %v14277_v40  ;;  %v6276_v27 = vpop.f32.mrf.mxu0 }
 0x4af   : > { %v6497_v14 = vpop.f32.mrf.mxu1 }
 0x4b0   : > { %v14573_v10 = vadd.f32 %v6497_v14, %v6276_v27  ;;  %v10874_v41 = vpop.f32.mrf.mxu0 }
 0x4b1   : > { %v10910_v6 = vpop.f32.mrf.mxu1 }
 0x4b2   : > { %v14575_v12 = vadd.f32 %v10910_v6, %v10874_v41  ;;  %v6279_v43 = vpop.f32.mrf.mxu0 }
 0x4b3   : > { %v6500_v51 = vpop.f32.mrf.mxu1 }
 0x4b4   : > { %v14577_v52 = vadd.f32 %v6500_v51, %v6279_v43  ;;  %v10877_v25 = vpop.f32.mrf.mxu0  ;;  %11092 = vmatmul.mubr.msk.bf16.gmra.mxu0 %vm3053_vm2, %v14303_v5 }
 0x4b5   : > { %v10913_v29 = vpop.f32.mrf.mxu1  ;;  %11128 = vmatmul.mubr.msk.bf16.gmra.mxu1 %vm3053_vm2, %v14301_v61  ;;  %11095 = vmatprep.mubr.msk.bf16.mxu0 %vm3053_vm2, %v14310_v31 }
 0x4b6   : > { %v14583_v40 = vadd.f32 %v10913_v29, %v10877_v25  ;;  %11131 = vmatprep.mubr.msk.bf16.mxu1 %vm3053_vm2, %v14305_v23  ;;  %v6292_v39 = vpop.f32.mrf.mxu0 }
 0x4b7   : > { %v6513_v46 = vpop.f32.mrf.mxu1 }
 0x4b8   : > { %v14589_v63 = vadd.f32 %v6513_v46, %v6292_v39  ;;  %v10878_v3 = vpop.f32.mrf.mxu0 }
 0x4b9   : > { %v10914_v8 = vpop.f32.mrf.mxu1 }
 0x4ba   : > { %v14591_v13 = vadd.f32 %v10914_v8, %v10878_v3  ;;  %v6295_v5 = vpop.f32.mrf.mxu0 }
 0x4bb   : > { %v6516_v60 = vpop.f32.mrf.mxu1 }
 0x4bc   : > { %v14593_v30 = vadd.f32 %v6516_v60, %v6295_v5  ;;  %v10881_v61 = vpop.f32.mrf.mxu0  ;;  %11096 = vmatmul.mubr.msk.bf16.gmra.mxu0 %vm3053_vm2, %v14326_v35 }
 0x4bd   : > { %v10917_v48 = vpop.f32.mrf.mxu1  ;;  %11132 = vmatmul.mubr.msk.bf16.gmra.mxu1 %vm3053_vm2, %v14324_v24  ;;  %11099 = vmatprep.mubr.msk.bf16.mxu0 %vm3053_vm2, %v14330_v38 }
 0x4be   : > { %v14599_v23 = vadd.f32 %v10917_v48, %v10881_v61  ;;  %11135 = vmatprep.mubr.msk.bf16.mxu1 %vm3053_vm2, %v14328_v4  ;;  %v6308_v31 = vpop.f32.mrf.mxu0  ;;  %v7831_v4 = vld [vmem:[#allocation3 + $0x198] sm:$0xff] }
 0x4bf   : > { %v6529_v7 = vpop.f32.mrf.mxu1  ;;  %v7848_v14 = vpack.c.bf16 %v7832_v19, %v7831_v4 }
 0x4c0   : > { %v14605_v20 = vadd.f32 %v6529_v7, %v6308_v31  ;;  %v10882_v58 = vpop.f32.mrf.mxu0 }
 0x4c1   : > { %v10918_v22 = vpop.f32.mrf.mxu1 }
 0x4c2   : > { %v14607_v49 = vadd.f32 %v10918_v22, %v10882_v58  ;;  %v6311_v35 = vpop.f32.mrf.mxu0 }
 0x4c3   : > { %v6532_v0 = vpop.f32.mrf.mxu1 }
 0x4c4   : > { %v14609_v42 = vadd.f32 %v6532_v0, %v6311_v35  ;;  %v10885_v24 = vpop.f32.mrf.mxu0  ;;  %11100 = vmatmul.mubr.msk.bf16.gmra.mxu0 %vm3053_vm2, %v14342_v50 }
 0x4c5   : > { %v10921_v2 = vpop.f32.mrf.mxu1  ;;  %11136 = vmatmul.mubr.msk.bf16.gmra.mxu1 %vm3053_vm2, %v14340_v34  ;;  %11103 = vmatprep.mubr.msk.bf16.mxu0 %vm3053_vm2, %v14437_v28  ;;  %v8154_v34 = vpack.c.bf16 %v8138_v62, %v8137_v55  ;;  %v8421_v55 = vld [vmem:[#allocation3 + $0x92] sm:$0xff]  ;;  %v8422_v62 = vld [vmem:[#allocation3 + $0x9a] sm:$0xff] }
 0x4c6   : > { %v14615_v38 = vadd.f32 %v10921_v2, %v10885_v24  ;;  %11139 = vmatprep.mubr.msk.bf16.mxu1 %vm3053_vm2, %v14506_v47  ;;  %v6324_v57 = vpop.f32.mrf.mxu0  ;;  %v8419_v24 = vld [vmem:[#allocation3 + $0x7a] sm:$0xff]  ;;  %v8420_v2 = vld [vmem:[#allocation3 + $0x82] sm:$0xff] }
 0x4c7   : > { %v6545_v26 = vpop.f32.mrf.mxu1 }
 0x4c8   : > { %v14621_v45 = vadd.f32 %v6545_v26, %v6324_v57  ;;  %v10886_v50 = vpop.f32.mrf.mxu0 }
 0x4c9   : > { %v10922_v27 = vpop.f32.mrf.mxu1 }
 0x4ca   : > { %v14623_v41 = vadd.f32 %v10922_v27, %v10886_v50  ;;  %v6327_v6 = vpop.f32.mrf.mxu0  ;;  %v8448_v50 = vpack.c.bf16 %v8420_v2, %v8419_v24 }
 0x4cb   : > { %v6548_v43 = vpop.f32.mrf.mxu1 }
 0x4cc   : > { %v14625_v51 = vadd.f32 %v6548_v43, %v6327_v6  ;;  %v10889_v28 = vpop.f32.mrf.mxu0  ;;  %11104 = vmatmul.mubr.msk.bf16.gmra.mxu0 %vm3053_vm2, %v7848_v14  ;;  %v8449_v14 = vpack.c.bf16 %v8422_v62, %v8421_v55 }
 0x4cd   : > { %v10925_v25 = vpop.f32.mrf.mxu1  ;;  %11140 = vmatmul.mubr.msk.bf16.gmra.mxu1 %vm3053_vm2, %v8154_v34  ;;  %11147 = vmatprep.mubr.msk.bf16.mxu0 %vm3053_vm2, %v14356_v59 }
 0x4ce   : > { %v14629_v47 = vadd.f32 %v10925_v25, %v10889_v28  ;;  %v6340_v29 = vpop.f32.mrf.mxu0 }
 0x4cf   : > { %v6561_v39 = vpop.f32.mrf.mxu1 }
 0x4d0   : > { %v14633_v46 = vadd.f32 %v6561_v39, %v6340_v29  ;;  %v10890_v3 = vpop.f32.mrf.mxu0  ;;  %v8423_v39 = vld [vmem:[#allocation3 + $0xaa] sm:$0xff] }
 0x4d1   : > { %v10926_v8 = vpop.f32.mrf.mxu1 }
 0x4d2   : > { %v14635_v5 = vadd.f32 %v10926_v8, %v10890_v3  ;;  %v6343_v60 = vpop.f32.mrf.mxu0  ;;  %v8424_v3 = vld [vmem:[#allocation3 + $0xb2] sm:$0xff] }
 0x4d3   : > { %v6564_v61 = vpop.f32.mrf.mxu1 }
 0x4d4   : > { %v14637_v48 = vadd.f32 %v6564_v61, %v6343_v60  ;;  %v10933_v31 = vpop.f32.mrf.mxu0  ;;  %11148 = vmatmul.mubr.msk.bf16.vlgmr.msra.gmra.mxu0 %vm3053_vm2, %v14376_v1  ;;  %v8425_v60 = vld [vmem:[#allocation3 + $0xc2] sm:$0xff]  ;;  %v8426_v61 = vld [vmem:[#allocation3 + $0xca] sm:$0xff] }
 0x4d5   : > { %v10969_v7 = vpop.f32.mrf.mxu1  ;;  %v6852_v58 = vadd.f32 %v10933_v31, %v14521_v54  ;;  %11151 = vmatprep.mubr.msk.bf16.mxu0 %vm3053_vm2, %v14384_v17  ;;  %v8451_v24 = vpack.c.bf16 %v8426_v61, %v8425_v60 }
 0x4d6   : > { %v6723_v59 = vpop.f32.mrf.mxu0 }
 0x4d7   : > { %v7029_v22 = vpop.f32.mrf.mxu1  ;;  %v14644_v35 = vadd.f32 %v10969_v7, %v6852_v58  ;;  %v6850_v0 = vadd.f32 %v6723_v59, %v14526_v44  ;;  %v8450_v59 = vpack.c.bf16 %v8424_v3, %v8423_v39 }
 0x4d8   : > { %v10934_v4 = vpop.f32.mrf.mxu0 }
 0x4d9   : > { %v10970_v19 = vpop.f32.mrf.mxu1  ;;  %v14647_v57 = vadd.f32 %v7029_v22, %v6850_v0  ;;  %v6853_v1 = vadd.f32 %v10934_v4, %v14528_v21 }
 0x4da   : > { %v6726_v54 = vpop.f32.mrf.mxu0 }
 0x4db   : > { %v7032_v26 = vpop.f32.mrf.mxu1  ;;  %v14650_v17 = vadd.f32 %v10970_v19, %v6853_v1  ;;  %v6851_v27 = vadd.f32 %v6726_v54, %v14530_v33  ;;  %v8427_v54 = vld [vmem:[#allocation3 + $0xda] sm:$0xff] }
 0x4dc   : > { %v10937_v34 = vpop.f32.mrf.mxu0  ;;  %11152 = vmatmul.mubr.msk.bf16.gmra.mxu0 %vm3053_vm2, %v8448_v50 }
 0x4dd   : > { %v10973_v44 = vpop.f32.mrf.mxu1  ;;  %v14654_v6 = vadd.f32 %v7032_v26, %v6851_v27  ;;  %v6856_v43 = vadd.f32 %v10937_v34, %v14535_v15  ;;  %11155 = vmatprep.mubr.msk.bf16.mxu0 %vm3053_vm2, %v8449_v14  ;;  %v8428_v26 = vld [vmem:[#allocation3 + $0xe2] sm:$0xff]  ;;  %v8429_v27 = vld [vmem:[#allocation3 + $0xf2] sm:$0xff]  ;;  %v8430_v14 = vld [vmem:[#allocation3 + $0xfa] sm:$0xff] }
 0x4de   : > { %v6739_v28 = vpop.f32.mrf.mxu0  ;;  %v8453_v39 = vpack.c.bf16 %v8430_v14, %v8429_v27 }
 0x4df   : > { %v7045_v21 = vpop.f32.mrf.mxu1  ;;  %v14658_v25 = vadd.f32 %v10973_v44, %v6856_v43  ;;  %v6854_v29 = vadd.f32 %v6739_v28, %v14541_v53  ;;  %v8452_v28 = vpack.c.bf16 %v8428_v26, %v8427_v54 }
 0x4e0   : > { %v10938_v33 = vpop.f32.mrf.mxu0 }
 0x4e1   : > { %v10974_v8 = vpop.f32.mrf.mxu1  ;;  %v14661_v31 = vadd.f32 %v7045_v21, %v6854_v29  ;;  %v6857_v7 = vadd.f32 %v10938_v33, %v14543_v18 }
 0x4e2   : > { %v6742_v58 = vpop.f32.mrf.mxu0 }
 0x4e3   : > { %v7048_v15 = vpop.f32.mrf.mxu1  ;;  %v14664_v22 = vadd.f32 %v10974_v8, %v6857_v7  ;;  %v6855_v0 = vadd.f32 %v6742_v58, %v14545_v36  ;;  %v8431_v58 = vld [vmem:[#allocation3 + $0x10a] sm:$0xff] }
 0x4e4   : > { %v10941_v2 = vpop.f32.mrf.mxu0  ;;  %11156 = vmatmul.mubr.msk.bf16.gmra.mxu0 %vm3053_vm2, %v8450_v59 }
 0x4e5   : > { %v10977_v53 = vpop.f32.mrf.mxu1  ;;  %v14668_v4 = vadd.f32 %v7048_v15, %v6855_v0  ;;  %v6860_v19 = vadd.f32 %v10941_v2, %v14551_v16  ;;  %11159 = vmatprep.mubr.msk.bf16.mxu0 %vm3053_vm2, %v8451_v24  ;;  %v8432_v15 = vld [vmem:[#allocation3 + $0x112] sm:$0xff]  ;;  %v8433_v0 = vld [vmem:[#allocation3 + $0x122] sm:$0xff]  ;;  %v8434_v24 = vld [vmem:[#allocation3 + $0x12a] sm:$0xff] }
 0x4e6   : > { %v6755_v55 = vpop.f32.mrf.mxu0  ;;  %v8455_v54 = vpack.c.bf16 %v8434_v24, %v8433_v0 }
 0x4e7   : > { %v7061_v18 = vpop.f32.mrf.mxu1  ;;  %v14672_v62 = vadd.f32 %v10977_v53, %v6860_v19  ;;  %v6858_v1 = vadd.f32 %v6755_v55, %v14557_v56  ;;  %v8454_v55 = vpack.c.bf16 %v8432_v15, %v8431_v58 }
 0x4e8   : > { %v10942_v36 = vpop.f32.mrf.mxu0 }
 0x4e9   : > { %v10978_v50 = vpop.f32.mrf.mxu1  ;;  %v14675_v34 = vadd.f32 %v7061_v18, %v6858_v1  ;;  %v6861_v44 = vadd.f32 %v10942_v36, %v14559_v32 }
 0x4ea   : > { %v6758_v43 = vpop.f32.mrf.mxu0 }
 0x4eb   : > { %v7064_v16 = vpop.f32.mrf.mxu1  ;;  %v14678_v21 = vadd.f32 %v10978_v50, %v6861_v44  ;;  %v6859_v29 = vadd.f32 %v6758_v43, %v14561_v11  ;;  %v8435_v43 = vld [vmem:[#allocation3 + $0x13a] sm:$0xff] }
 0x4ec   : > { %v10945_v3 = vpop.f32.mrf.mxu0  ;;  %11160 = vmatmul.mubr.msk.bf16.gmra.mxu0 %vm3053_vm2, %v8452_v28 }
 0x4ed   : > { %v10981_v56 = vpop.f32.mrf.mxu1  ;;  %v14682_v33 = vadd.f32 %v7064_v16, %v6859_v29  ;;  %v6864_v8 = vadd.f32 %v10945_v3, %v14567_v9  ;;  %11163 = vmatprep.mubr.msk.bf16.mxu0 %vm3053_vm2, %v8453_v39  ;;  %v8436_v16 = vld [vmem:[#allocation3 + $0x142] sm:$0xff]  ;;  %v8437_v29 = vld [vmem:[#allocation3 + $0x152] sm:$0xff]  ;;  %v8438_v39 = vld [vmem:[#allocation3 + $0x15a] sm:$0xff] }
 0x4ee   : > { %v6771_v60 = vpop.f32.mrf.mxu0  ;;  %v8457_v58 = vpack.c.bf16 %v8438_v39, %v8437_v29 }
 0x4ef   : > { %v7077_v32 = vpop.f32.mrf.mxu1  ;;  %v14686_v61 = vadd.f32 %v10981_v56, %v6864_v8  ;;  %v6862_v7 = vadd.f32 %v6771_v60, %v14573_v10  ;;  %v8456_v60 = vpack.c.bf16 %v8436_v16, %v8435_v43  ;;  %v8443_v16 = vld [vmem:[#allocation3 + $0x19a] sm:$0xff] }
 0x4f0   : > { %v10946_v11 = vpop.f32.mrf.mxu0 }
 0x4f1   : > { %v10982_v59 = vpop.f32.mrf.mxu1  ;;  %v14689_v2 = vadd.f32 %v7077_v32, %v6862_v7  ;;  %v6865_v53 = vadd.f32 %v10946_v11, %v14575_v12 }
 0x4f2   : > { %v6774_v19 = vpop.f32.mrf.mxu0 }
 0x4f3   : > { %v7080_v9 = vpop.f32.mrf.mxu1  ;;  %v14692_v18 = vadd.f32 %v10982_v59, %v6865_v53  ;;  %v6863_v1 = vadd.f32 %v6774_v19, %v14577_v52  ;;  %v8439_v19 = vld [vmem:[#allocation3 + $0x16a] sm:$0xff] }
 0x4f4   : > { %v10949_v26 = vpop.f32.mrf.mxu0  ;;  %11164 = vmatmul.mubr.msk.bf16.gmra.mxu0 %vm3053_vm2, %v8454_v55 }
 0x4f5   : > { %v10985_v10 = vpop.f32.mrf.mxu1  ;;  %v14696_v36 = vadd.f32 %v7080_v9, %v6863_v1  ;;  %v6868_v50 = vadd.f32 %v10949_v26, %v14583_v40  ;;  %11167 = vmatprep.mubr.msk.bf16.mxu0 %vm3053_vm2, %v8455_v54  ;;  %v8440_v9 = vld [vmem:[#allocation3 + $0x172] sm:$0xff] }
 0x4f6   : > { %v6787_v27 = vpop.f32.mrf.mxu0 }
 0x4f7   : > { %v7093_v12 = vpop.f32.mrf.mxu1  ;;  %v14700_v14 = vadd.f32 %v10985_v10, %v6868_v50  ;;  %v6866_v44 = vadd.f32 %v6787_v27, %v14589_v63  ;;  %v8458_v50 = vpack.c.bf16 %v8440_v9, %v8439_v19 }
 0x4f8   : > { %v10950_v52 = vpop.f32.mrf.mxu0 }
 0x4f9   : > { %v10986_v28 = vpop.f32.mrf.mxu1  ;;  %v14703_v3 = vadd.f32 %v7093_v12, %v6866_v44  ;;  %v6869_v56 = vadd.f32 %v10950_v52, %v14591_v13 }
 0x4fa   : > { %v6790_v8 = vpop.f32.mrf.mxu0 }
 0x4fb   : > { %v7096_v40 = vpop.f32.mrf.mxu1  ;;  %v14706_v32 = vadd.f32 %v10986_v28, %v6869_v56  ;;  %v6867_v7 = vadd.f32 %v6790_v8, %v14593_v30 }
 0x4fc   : > { %v10953_v15 = vpop.f32.mrf.mxu0  ;;  %11168 = vmatmul.mubr.msk.bf16.gmra.mxu0 %vm3053_vm2, %v8456_v60 }
 0x4fd   : > { %v10989_v63 = vpop.f32.mrf.mxu1  ;;  %v14710_v11 = vadd.f32 %v7096_v40, %v6867_v7  ;;  %v6872_v59 = vadd.f32 %v10953_v15, %v14599_v23  ;;  %11171 = vmatprep.mubr.msk.bf16.mxu0 %vm3053_vm2, %v8457_v58 }
 0x4fe   : > { %v6803_v0 = vpop.f32.mrf.mxu0 }
 0x4ff   : > { %v7109_v13 = vpop.f32.mrf.mxu1  ;;  %v14714_v24 = vadd.f32 %v10989_v63, %v6872_v59  ;;  %v6870_v53 = vadd.f32 %v6803_v0, %v14605_v20 }
 0x500   : > { %v10954_v30 = vpop.f32.mrf.mxu0 }
 0x501   : > { %v10990_v55 = vpop.f32.mrf.mxu1  ;;  %v14717_v1 = vadd.f32 %v7109_v13, %v6870_v53  ;;  %v6873_v54 = vadd.f32 %v10954_v30, %v14607_v49  ;;  %v8444_v49 = vld [vmem:[#allocation3 + $0x1a2] sm:$0xff] }
 0x502   : > { %v6806_v26 = vpop.f32.mrf.mxu0  ;;  %v8460_v8 = vpack.c.bf16 %v8444_v49, %v8443_v16 }
 0x503   : > { %v7112_v10 = vpop.f32.mrf.mxu1  ;;  %v14720_v23 = vadd.f32 %v10990_v55, %v6873_v54  ;;  %v6871_v27 = vadd.f32 %v6806_v26, %v14609_v42 }
 0x504   : > { %v10957_v12 = vpop.f32.mrf.mxu0  ;;  %11172 = vmatmul.mubr.msk.bf16.gmra.mxu0 %vm3053_vm2, %v8458_v50 }
 0x505   : > { %v10993_v44 = vpop.f32.mrf.mxu1  ;;  %v14724_v20 = vadd.f32 %v7112_v10, %v6871_v27  ;;  %v6876_v43 = vadd.f32 %v10957_v12, %v14615_v38  ;;  %11175 = vmatprep.mubr.msk.bf16.mxu0 %vm3053_vm2, %v14508_v37 }
 0x506   : > { %v6819_v52 = vpop.f32.mrf.mxu0 }
 0x507   : > { %v7125_v28 = vpop.f32.mrf.mxu1  ;;  %v14729_v29 = vadd.f32 %v10993_v44, %v6876_v43  ;;  %v6874_v39 = vadd.f32 %v6819_v52, %v14621_v45 }
 0x508   : > { %v10958_v42 = vpop.f32.mrf.mxu0 }
 0x509   : > { %v10994_v56 = vpop.f32.mrf.mxu1  ;;  %v14732_v40 = vadd.f32 %v7125_v28, %v6874_v39  ;;  %v6877_v60 = vadd.f32 %v10958_v42, %v14623_v41 }
 0x50a   : > { %v6822_v7 = vpop.f32.mrf.mxu0 }
 0x50b   : > { %v7128_v38 = vpop.f32.mrf.mxu1  ;;  %v14735_v58 = vadd.f32 %v10994_v56, %v6877_v60  ;;  %v6875_v37 = vadd.f32 %v6822_v7, %v14625_v51 }
 0x50c   : > { %v10961_v15 = vpop.f32.mrf.mxu0  ;;  %11176 = vmatmul.mubr.msk.bf16.gmra.mxu0 %vm3053_vm2, %v8460_v8 }
 0x50d   : > { %v10997_v63 = vpop.f32.mrf.mxu1  ;;  %v14739_v59 = vadd.f32 %v7128_v38, %v6875_v37  ;;  %v6880_v45 = vadd.f32 %v10961_v15, %v14629_v47 }
 0x50e   : > { %v6835_v0 = vpop.f32.mrf.mxu0 }
 0x50f   : > { %v7141_v13 = vpop.f32.mrf.mxu1  ;;  %v14742_v53 = vadd.f32 %v10997_v63, %v6880_v45  ;;  %v6878_v41 = vadd.f32 %v6835_v0, %v14633_v46 }
 0x510   : > { %v10962_v19 = vpop.f32.mrf.mxu0 }
 0x511   : > { %v10998_v9 = vpop.f32.mrf.mxu1  ;;  %v14745_v30 = vadd.f32 %v7141_v13, %v6878_v41  ;;  %v6881_v51 = vadd.f32 %v10962_v19, %v14635_v5 }
 0x512   : > { %v6838_v55 = vpop.f32.mrf.mxu0 }
 0x513   : > { %v7144_v54 = vpop.f32.mrf.mxu1  ;;  %v14748_v26 = vadd.f32 %v10998_v9, %v6881_v51  ;;  %v6879_v10 = vadd.f32 %v6838_v55, %v14637_v48 }
 0x514   : > { %v11005_v50 = vpop.f32.mrf.mxu0 }
 0x515   : > { %v11041_v47 = vpop.f32.mrf.mxu1  ;;  %v14751_v27 = vadd.f32 %v7144_v54, %v6879_v10  ;;  %v7464_v12 = vadd.f32 %v11005_v50, %v14644_v35 }
 0x516   : > { %v7335_v44 = vpop.f32.mrf.mxu0 }
 0x517   : > { %v7641_v46 = vpop.f32.mrf.mxu1  ;;  %v14754_v43 = vadd.f32 %v11041_v47, %v7464_v12  ;;  %v7462_v16 = vadd.f32 %v7335_v44, %v14647_v57 }
 0x518   : > { %v11006_v49 = vpop.f32.mrf.mxu0 }
 0x519   : > { %v11042_v5 = vpop.f32.mrf.mxu1  ;;  %v14757_v52 = vadd.f32 %v7641_v46, %v7462_v16  ;;  %v7465_v28 = vadd.f32 %v11006_v49, %v14650_v17 }
 0x51a   : > { %v7338_v39 = vpop.f32.mrf.mxu0 }
 0x51b   : > { %v14760_v48 = vpop.f32.mrf.mxu1  ;;  %v14762_v42 = vadd.f32 %v11042_v5, %v7465_v28  ;;  %v14765_v56 = vadd.f32 %v7338_v39, %v14654_v6 }
 0x51c   : > { %v11009_v35 = vpop.f32.mrf.mxu0 }
 0x51d   : > { %v11045_v8 = vpop.f32.mrf.mxu1  ;;  %v7468_v60 = vadd.f32 %v11009_v35, %v14658_v25 }
 0x51e   : > { %v7351_v7 = vpop.f32.mrf.mxu0 }
 0x51f   : > { %v14768_v57 = vpop.f32.mrf.mxu1  ;;  %v14770_v38 = vadd.f32 %v11045_v8, %v7468_v60  ;;  %v14773_v37 = vadd.f32 %v7351_v7, %v14661_v31 }
 0x520   : > { %v11010_v17 = vpop.f32.mrf.mxu0 }
 0x521   : > { %v11046_v15 = vpop.f32.mrf.mxu1  ;;  %v7469_v63 = vadd.f32 %v11010_v17, %v14664_v22 }
 0x522   : > { %v7354_v45 = vpop.f32.mrf.mxu0 }
 0x523   : > { %v14776_v0 = vpop.f32.mrf.mxu1  ;;  %v14778_v6 = vadd.f32 %v11046_v15, %v7469_v63  ;;  %v14781_v13 = vadd.f32 %v7354_v45, %v14668_v4 }
 0x524   : > { %v11013_v25 = vpop.f32.mrf.mxu0 }
 0x525   : > { %v11049_v41 = vpop.f32.mrf.mxu1  ;;  %v7472_v19 = vadd.f32 %v11013_v25, %v14672_v62 }
 0x526   : > { %v7367_v9 = vpop.f32.mrf.mxu0 }
 0x527   : > { %v14784_v51 = vpop.f32.mrf.mxu1  ;;  %v14786_v31 = vadd.f32 %v11049_v41, %v7472_v19  ;;  %v14789_v55 = vadd.f32 %v7367_v9, %v14675_v34 }
 0x528   : > { %v11014_v22 = vpop.f32.mrf.mxu0 }
 0x529   : > { %v11050_v54 = vpop.f32.mrf.mxu1  ;;  %v7473_v10 = vadd.f32 %v11014_v22, %v14678_v21 }
 0x52a   : > { %v7370_v50 = vpop.f32.mrf.mxu0 }
 0x52b   : > { %v14792_v47 = vpop.f32.mrf.mxu1  ;;  %v14794_v4 = vadd.f32 %v11050_v54, %v7473_v10  ;;  %v14797_v12 = vadd.f32 %v7370_v50, %v14682_v33 }
 0x52c   : > { %v11017_v62 = vpop.f32.mrf.mxu0 }
 0x52d   : > { %v11053_v44 = vpop.f32.mrf.mxu1  ;;  %v7476_v46 = vadd.f32 %v11017_v62, %v14686_v61 }
 0x52e   : > { %v7383_v16 = vpop.f32.mrf.mxu0 }
 0x52f   : > { %v14800_v49 = vpop.f32.mrf.mxu1  ;;  %v14802_v34 = vadd.f32 %v11053_v44, %v7476_v46  ;;  %v14805_v5 = vadd.f32 %v7383_v16, %v14689_v2 }
 0x530   : > { %v11018_v21 = vpop.f32.mrf.mxu0 }
 0x531   : > { %v11054_v28 = vpop.f32.mrf.mxu1  ;;  %v7477_v39 = vadd.f32 %v11018_v21, %v14692_v18 }
 0x532   : > { %v7386_v35 = vpop.f32.mrf.mxu0 }
 0x533   : > { %v14808_v8 = vpop.f32.mrf.mxu1  ;;  %v14810_v33 = vadd.f32 %v11054_v28, %v7477_v39  ;;  %v14813_v60 = vadd.f32 %v7386_v35, %v14696_v36 }
 0x534   : > { %v11021_v61 = vpop.f32.mrf.mxu0 }
 0x535   : > { %v11057_v7 = vpop.f32.mrf.mxu1  ;;  %v7480_v17 = vadd.f32 %v11021_v61, %v14700_v14 }
 0x536   : > { %v7399_v15 = vpop.f32.mrf.mxu0 }
 0x537   : > { %v14816_v63 = vpop.f32.mrf.mxu1  ;;  %v14818_v2 = vadd.f32 %v11057_v7, %v7480_v17  ;;  %v14821_v45 = vadd.f32 %v7399_v15, %v14703_v3 }
 0x538   : > { %v11022_v18 = vpop.f32.mrf.mxu0 }
 0x539   : > { %v11058_v25 = vpop.f32.mrf.mxu1  ;;  %v7481_v41 = vadd.f32 %v11022_v18, %v14706_v32 }
 0x53a   : > { %v7402_v19 = vpop.f32.mrf.mxu0 }
 0x53b   : > { %v14824_v9 = vpop.f32.mrf.mxu1  ;;  %v14826_v36 = vadd.f32 %v11058_v25, %v7481_v41  ;;  %v14829_v22 = vadd.f32 %v7402_v19, %v14710_v11 }
 0x53c   : > { %v11025_v14 = vpop.f32.mrf.mxu0 }
 0x53d   : > { %v11061_v54 = vpop.f32.mrf.mxu1  ;;  %v7484_v10 = vadd.f32 %v11025_v14, %v14714_v24 }
 0x53e   : > { %v7415_v50 = vpop.f32.mrf.mxu0 }
 0x53f   : > { %v14832_v62 = vpop.f32.mrf.mxu1  ;;  %v14834_v3 = vadd.f32 %v11061_v54, %v7484_v10  ;;  %v14837_v44 = vadd.f32 %v7415_v50, %v14717_v1 }
 0x540   : > { %v11026_v32 = vpop.f32.mrf.mxu0 }
 0x541   : > { %v11062_v46 = vpop.f32.mrf.mxu1  ;;  %v7485_v16 = vadd.f32 %v11026_v32, %v14720_v23 }
 0x542   : > { %v7418_v21 = vpop.f32.mrf.mxu0 }
 0x543   : > { %v14840_v28 = vpop.f32.mrf.mxu1  ;;  %v14842_v11 = vadd.f32 %v11062_v46, %v7485_v16  ;;  %v14845_v39 = vadd.f32 %v7418_v21, %v14724_v20 }
 0x544   : > { %v11029_v24 = vpop.f32.mrf.mxu0 }
 0x545   : > { %v11065_v35 = vpop.f32.mrf.mxu1  ;;  %v7488_v61 = vadd.f32 %v11029_v24, %v14729_v29 }
 0x546   : > { %v7431_v7 = vpop.f32.mrf.mxu0 }
 0x547   : > { %v14848_v17 = vpop.f32.mrf.mxu1  ;;  %v14850_v1 = vadd.f32 %v11065_v35, %v7488_v61  ;;  %v14853_v15 = vadd.f32 %v7431_v7, %v14732_v40 }
 0x548   : > { %v11030_v23 = vpop.f32.mrf.mxu0 }
 0x549   : > { %v11066_v18 = vpop.f32.mrf.mxu1  ;;  %v7489_v25 = vadd.f32 %v11030_v23, %v14735_v58 }
 0x54a   : > { %v7434_v41 = vpop.f32.mrf.mxu0 }
 0x54b   : > { %v14856_v19 = vpop.f32.mrf.mxu1  ;;  %v14858_v20 = vadd.f32 %v11066_v18, %v7489_v25  ;;  %v14861_v14 = vadd.f32 %v7434_v41, %v14739_v59 }
 0x54c   : > { %v11033_v29 = vpop.f32.mrf.mxu0 }
 0x54d   : > { %v11069_v54 = vpop.f32.mrf.mxu1  ;;  %v7492_v10 = vadd.f32 %v11033_v29, %v14742_v53 }
 0x54e   : > { %v7447_v50 = vpop.f32.mrf.mxu0 }
 0x54f   : > { %v14864_v32 = vpop.f32.mrf.mxu1  ;;  %v14866_v40 = vadd.f32 %v11069_v54, %v7492_v10  ;;  %v14869_v46 = vadd.f32 %v7447_v50, %v14745_v30 }
 0x550   : > { %v11034_v58 = vpop.f32.mrf.mxu0 }
 0x551   : > { %v11070_v16 = vpop.f32.mrf.mxu1  ;;  %v7493_v21 = vadd.f32 %v11034_v58, %v14748_v26 }
 0x552   : > { %v7450_v24 = vpop.f32.mrf.mxu0 }
 0x553   : > { %v14872_v35 = vpop.f32.mrf.mxu1  ;;  %v14874_v59 = vadd.f32 %v11070_v16, %v7493_v21  ;;  %v14877_v61 = vadd.f32 %v7450_v24, %v14751_v27 }
 0x554   : > { %v11077_v53 = vpop.f32.mrf.mxu0 }
 0x555   : > { %v14879_v7 = vpop.f32.mrf.mxu1  ;;  %v14882_v23 = vadd.f32 %v11077_v53, %v14754_v43 }
 0x556   : > { %v7948_v30 = vpop.f32.mrf.mxu0 }
 0x557   : > { %v14885_v18 = vadd.f32 %v7948_v30, %v14757_v52  ;;  %v14887_v25 = vpop.f32.mrf.mxu1 }
 0x558   : > { %v11078_v26 = vpop.f32.mrf.mxu0 }
 0x559   : > { %v14890_v41 = vadd.f32 %v11078_v26, %v14762_v42  ;;  %v14894_v27 = vpop.f32.mrf.mxu1 }
 0x55a   : > { %v14892_v29 = vpop.f32.mrf.mxu0 }
 0x55b   : > { %v14901_v50 = vpop.f32.mrf.mxu1 }
 0x55c   : > { %v11081_v54 = vpop.f32.mrf.mxu0 }
 0x55d   : > { %v14897_v10 = vadd.f32 %v11081_v54, %v14770_v38  ;;  %v14908_v42 = vpop.f32.mrf.mxu1 }
 0x55e   : > { %v14899_v43 = vpop.f32.mrf.mxu0  ;;  %15721 = vst [vmem:[#allocation46_spill] sm:$0xff] %v14908_v42 }
 0x55f   : > { %v14915_v38 = vpop.f32.mrf.mxu1 }
 0x560   : > { %v11082_v52 = vpop.f32.mrf.mxu0  ;;  %15723 = vst [vmem:[#allocation13_spill] sm:$0xff] %v14915_v38 }
 0x561   : > { %v14904_v58 = vadd.f32 %v11082_v52, %v14778_v6  ;;  %v14922_v6 = vpop.f32.mrf.mxu1 }
 0x562   : > { %v14906_v16 = vpop.f32.mrf.mxu0 }
 0x563   : > { %15720 = vst [vmem:[#allocation15_spill] sm:$0xff] %v14904_v58 }
 0x564   : > { %v11085_v21 = vpop.f32.mrf.mxu0 }
 0x565   : > { %v14911_v24 = vadd.f32 %v11085_v21, %v14786_v31  ;;  %v14929_v31 = vpop.f32.mrf.mxu1 }
 0x566   : > { %v14913_v53 = vpop.f32.mrf.mxu0 }
 0x567   : > { %15722 = vst [vmem:[#allocation53_spill] sm:$0xff] %v14911_v24 }
 0x568   : > { %v11086_v30 = vpop.f32.mrf.mxu0 }
 0x569   : > { %v14918_v26 = vadd.f32 %v11086_v30, %v14794_v4  ;;  %v14936_v4 = vpop.f32.mrf.mxu1 }
 0x56a   : > { %v14920_v54 = vpop.f32.mrf.mxu0 }
 0x56b   : > { %15724 = vst [vmem:[#allocation48_spill] sm:$0xff] %v14918_v26  ;;  %15725 = vst [vmem:[#allocation32_spill] sm:$0xff] %v14920_v54 }
 0x56c   : > { %v11089_v52 = vpop.f32.mrf.mxu0 }
 0x56d   : > { %v14925_v58 = vadd.f32 %v11089_v52, %v14802_v34  ;;  %v14943_v34 = vpop.f32.mrf.mxu1 }
 0x56e   : > { %v14927_v42 = vpop.f32.mrf.mxu0 }
 0x56f   : > { %15726 = vst [vmem:[#allocation50_spill] sm:$0xff] %v14925_v58  ;;  %15727 = vst [vmem:[#allocation16_spill] sm:$0xff] %v14927_v42 }
 0x570   : > { %v11090_v21 = vpop.f32.mrf.mxu0 }
 0x571   : > { %v14932_v24 = vadd.f32 %v11090_v21, %v14810_v33  ;;  %v14950_v33 = vpop.f32.mrf.mxu1 }
 0x572   : > { %v14934_v38 = vpop.f32.mrf.mxu0 }
 0x573   : > { %15728 = vst [vmem:[#allocation52_spill] sm:$0xff] %v14932_v24  ;;  %15729 = vst [vmem:[#allocation17_spill] sm:$0xff] %v14934_v38 }
 0x574   : > { %v11093_v30 = vpop.f32.mrf.mxu0 }
 0x575   : > { %v14939_v26 = vadd.f32 %v11093_v30, %v14818_v2  ;;  %v14957_v2 = vpop.f32.mrf.mxu1 }
 0x576   : > { %v14941_v54 = vpop.f32.mrf.mxu0 }
 0x577   : > { %15730 = vst [vmem:[#allocation55_spill] sm:$0xff] %v14939_v26  ;;  %15731 = vst [vmem:[#allocation57_spill] sm:$0xff] %v14941_v54 }
 0x578   : > { %v11094_v52 = vpop.f32.mrf.mxu0 }
 0x579   : > { %v14946_v58 = vadd.f32 %v11094_v52, %v14826_v36  ;;  %v14964_v36 = vpop.f32.mrf.mxu1 }
 0x57a   : > { %v14948_v42 = vpop.f32.mrf.mxu0 }
 0x57b   : > { %15732 = vst [vmem:[#allocation56_spill] sm:$0xff] %v14946_v58  ;;  %15733 = vst [vmem:[#allocation54_spill] sm:$0xff] %v14948_v42 }
 0x57c   : > { %v11097_v21 = vpop.f32.mrf.mxu0 }
 0x57d   : > { %v14953_v38 = vadd.f32 %v11097_v21, %v14834_v3  ;;  %v14971_v3 = vpop.f32.mrf.mxu1 }
 0x57e   : > { %v14955_v24 = vpop.f32.mrf.mxu0 }
 0x57f   : > { %15734 = vst [vmem:[#allocation59_spill] sm:$0xff] %v14953_v38  ;;  %15735 = vst [vmem:[#allocation18_spill] sm:$0xff] %v14955_v24 }
 0x580   : > { %v11098_v30 = vpop.f32.mrf.mxu0 }
 0x581   : > { %v14960_v26 = vadd.f32 %v11098_v30, %v14842_v11  ;;  %v14978_v11 = vpop.f32.mrf.mxu1 }
 0x582   : > { %v14962_v54 = vpop.f32.mrf.mxu0 }
 0x583   : > { %15736 = vst [vmem:[#allocation19_spill] sm:$0xff] %v14960_v26  ;;  %15737 = vst [vmem:[#allocation94_spill] sm:$0xff] %v14962_v54 }
 0x584   : > { %v11101_v52 = vpop.f32.mrf.mxu0 }
 0x585   : > { %v14967_v42 = vadd.f32 %v11101_v52, %v14850_v1  ;;  %v14985_v1 = vpop.f32.mrf.mxu1 }
 0x586   : > { %v14969_v58 = vpop.f32.mrf.mxu0 }
 0x587   : > { %15738 = vst [vmem:[#allocation89_spill] sm:$0xff] %v14967_v42  ;;  %15739 = vst [vmem:[#allocation21_spill] sm:$0xff] %v14969_v58 }
 0x588   : > { %v11102_v21 = vpop.f32.mrf.mxu0 }
 0x589   : > { %v14974_v38 = vadd.f32 %v11102_v21, %v14858_v20  ;;  %v7769_v20 = vadd.f32 %v14760_v48, %v14765_v56  ;;  %v8383_v21 = vadd.f32 %v14879_v7, %v14882_v23  ;;  %v8381_v48 = vadd.f32 %v14887_v25, %v14885_v18 }
 0x58a   : > { %v14976_v24 = vpop.f32.mrf.mxu0  ;;  %v7780_v23 = vadd.f32 %v14800_v49, %v14805_v5  ;;  %v8384_v18 = vadd.f32 %v14894_v27, %v14890_v41  ;;  %v15038_v49 = vadd.f32 %v14832_v62, %v14837_v44  ;;  %v15042_v5 = vadd.f32 %v14840_v28, %v14845_v39 }
 0x58b   : > { %v8076_v56 = vadd.f32 %v14892_v29, %v7769_v20  ;;  %v15055_v62 = vadd.f32 %v14856_v19, %v14861_v14  ;;  %v15059_v44 = vadd.f32 %v14864_v32, %v14869_v46  ;;  %v15068_v19 = vadd.f32 %v14872_v35, %v14877_v61  ;;  %v15742_v14 = vld [vmem:[#allocation46_spill] sm:$0xff]  ;;  %v15743_v46 = vld [vmem:[#allocation13_spill] sm:$0xff]  ;;  %v15745_v20 = vld [vmem:[#allocation32_spill] sm:$0xff] }
 0x58c   : > { %v11105_v30 = vpop.f32.mrf.mxu0  ;;  %v8387_v32 = vadd.f32 %v15742_v14, %v14897_v10  ;;  %v15748_v10 = vld [vmem:[#allocation16_spill] sm:$0xff] }
 0x58d   : > { %v14981_v26 = vadd.f32 %v11105_v30, %v14866_v40  ;;  %v7772_v40 = vadd.f32 %v14768_v57, %v14773_v37  ;;  %v14998_v30 = vpop.f32.mrf.mxu1  ;;  %v7776_v57 = vadd.f32 %v14784_v51, %v14789_v55  ;;  %v7777_v37 = vadd.f32 %v14792_v47, %v14797_v12  ;;  %v15030_v55 = vld [vmem:[%s15334_s9] ss:$0 sm:$0xff] }
 0x58e   : > { %v14983_v54 = vpop.f32.mrf.mxu0  ;;  %v15034_v12 = vadd.f32 %v14824_v9, %v14829_v22  ;;  %v8382_v9 = vadd.f32 %v14901_v50, %v8076_v56  ;;  %v15744_v50 = vld [vmem:[#allocation15_spill] sm:$0xff] }
 0x58f   : > { %15740 = vst [vmem:[#allocation62_spill] sm:$0xff] %v14981_v26  ;;  %15741 = vst [vmem:[#allocation22_spill] sm:$0xff] %v14983_v54  ;;  %v15003_v54 = vld [vmem:[%s15333_s8] ss:$0 sm:$0xff] }
 0x590   : > { %v11106_v52 = vpop.f32.mrf.mxu0 }
 0x591   : > { %v14988_v42 = vadd.f32 %v11106_v52, %v14874_v59  ;;  %v7773_v59 = vadd.f32 %v14776_v0, %v14781_v13  ;;  %v15018_v52 = vadd.f32 %v14808_v8, %v14813_v60  ;;  %v15022_v13 = vadd.f32 %v14816_v63, %v14821_v45  ;;  %v15045_v60 = vpop.f32.mrf.mxu1 }
 0x592   : > { %v14990_v58 = vpop.f32.mrf.mxu0  ;;  %v8079_v8 = vadd.f32 %v14899_v43, %v7772_v40  ;;  %v15049_v45 = vadd.f32 %v14848_v17, %v14853_v15  ;;  %v8083_v17 = vadd.f32 %v14913_v53, %v7776_v57  ;;  %v15746_v40 = vld [vmem:[#allocation71_spill] sm:$0xff]  ;;  %v15749_v57 = vld [vmem:[#allocation70_spill] sm:$0xff] }
 0x593   : > { %v8080_v28 = vadd.f32 %v14906_v16, %v7773_v59  ;;  %v8388_v16 = vadd.f32 %v14922_v6, %v15744_v50  ;;  %v15747_v59 = vmax.f32 %v15746_v40, 0.0  ;;  %v15758_v50 = vld [vmem:[#allocation52_spill] sm:$0xff] }
 0x594   : > { %v11149_v26 = vpop.f32.mrf.mxu0  ;;  %v8385_v43 = vadd.f32 %v15743_v46, %v8079_v8 }
 0x595   : > { %v8689_v7 = vadd.f32 %v11149_v26, %v8383_v21  ;;  %v15075_v26 = vpop.f32.mrf.mxu1  ;;  %v8084_v21 = vadd.f32 %v15745_v20, %v7777_v37  ;;  %v8386_v61 = vadd.f32 %v14929_v31, %v8080_v28  ;;  %v8389_v37 = vadd.f32 %v14943_v34, %v8083_v17  ;;  %v15753_v28 = vld [vmem:[#allocation30_spill] sm:$0xff]  ;;  %v15756_v17 = vld [vmem:[#allocation7_spill] sm:$0xff] }
 0x596   : > { %v8560_v0 = vpop.f32.mrf.mxu0  ;;  %v15757_v14 = vmax.f32 %v15756_v17, 0.0 }
 0x597   : > { %v8728_v51 = vmul.f32 %v15003_v54, %v8689_v7  ;;  %v8687_v47 = vadd.f32 %v8560_v0, %v8381_v48  ;;  %v8087_v7 = vadd.f32 %v15748_v10, %v7780_v23  ;;  %v15750_v0 = vmax.f32 %v15749_v57, 0.0 }
 0x598   : > { %v11150_v63 = vpop.f32.mrf.mxu0  ;;  %v15754_v23 = vmax.f32 %v15753_v28, 0.0  ;;  %v15763_v28 = vld [vmem:[#allocation33_spill] sm:$0xff] }
 0x599   : > { %v8726_v22 = vmul.f32 %v15003_v54, %v8687_v47  ;;  %v8690_v25 = vadd.f32 %v11150_v63, %v8384_v18  ;;  %v8767_v39 = vadd.f32 %v15030_v55, %v8728_v51  ;;  %v15751_v47 = vld [vmem:[#allocation53_spill] sm:$0xff]  ;;  %v15752_v63 = vld [vmem:[#allocation48_spill] sm:$0xff]  ;;  %v15103_v46 = vadd.f32 %v14971_v3, %v8087_v7 }
 0x59a   : > { %v8563_v41 = vpop.f32.mrf.mxu0  ;;  %v8391_v8 = vadd.f32 %v14936_v4, %v15751_v47  ;;  %v15755_v4 = vld [vmem:[#allocation50_spill] sm:$0xff]  ;;  %v15761_v47 = vld [vmem:[#allocation20_spill] sm:$0xff] }
 0x59b   : > { %v8765_v15 = vadd.f32 %v15030_v55, %v8726_v22  ;;  %v8729_v29 = vmul.f32 %v15003_v54, %v8690_v25  ;;  %v8688_v27 = vadd.f32 %v8563_v41, %v8382_v9  ;;  %v8799_v18 = vadd.f32 %v8767_v39, %v15750_v0  ;;  %v15092_v25 = vpop.f32.mrf.mxu1 }
 0x59c   : > { %v11153_v53 = vpop.f32.mrf.mxu0  ;;  %v8392_v9 = vadd.f32 %v14950_v33, %v15752_v63  ;;  %v8395_v34 = vadd.f32 %v14964_v36, %v15755_v4  ;;  %v15762_v63 = vmax.f32 %v15761_v47, 0.0 }
 0x59d   : > { %v8797_v48 = vadd.f32 %v8765_v15, %v15747_v59  ;;  %v8768_v56 = vadd.f32 %v15030_v55, %v8729_v29  ;;  %v8727_v35 = vmul.f32 %v15003_v54, %v8688_v27  ;;  %v8693_v6 = vadd.f32 %v11153_v53, %v8387_v32 }
 0x59e   : > { %v8576_v51 = vpop.f32.mrf.mxu0  ;;  %v8390_v27 = vadd.f32 %v14957_v2, %v8084_v21  ;;  %v15107_v53 = vadd.f32 %v14978_v11, %v15758_v50  ;;  %v8831_v20 = vmax.f32 %v8799_v18, 0.0 }
 0x59f   : > { %v8766_v22 = vadd.f32 %v15030_v55, %v8727_v35  ;;  %v8829_v31 = vmax.f32 %v8797_v48, 0.0  ;;  %v8800_v41 = vadd.f32 %v8768_v56, %v15754_v23  ;;  %v8732_v39 = vmul.f32 %v15003_v54, %v8693_v6  ;;  %v15759_v48 = vld [vmem:[#allocation17_spill] sm:$0xff]  ;;  %v15114_v56 = vpop.f32.mrf.mxu1 }
 0x5a0   : > { %v8691_v15 = vadd.f32 %v8576_v51, %v8385_v43  ;;  %v11154_v29 = vpop.f32.mrf.mxu0  ;;  %v15764_v23 = vmax.f32 %v15763_v28, 0.0  ;;  %v15774_v28 = vld [vmem:[#allocation56_spill] sm:$0xff] }
 0x5a1   : > { %v8798_v33 = vadd.f32 %v8766_v22, %v15757_v14  ;;  %v8694_v32 = vadd.f32 %v11154_v29, %v8388_v16  ;;  %v8771_v2 = vadd.f32 %v15030_v55, %v8732_v39  ;;  %v8088_v16 = vadd.f32 %v15759_v48, %v15018_v52  ;;  %v8334_v4 = vpop.f32.mrf.mxu1  ;;  %v15765_v14 = vld [vmem:[#allocation25_spill] sm:$0xff] }
 0x5a2   : > { %v8730_v43 = vmul.f32 %v15003_v54, %v8691_v15  ;;  %v8579_v40 = vpop.f32.mrf.mxu0  ;;  %v8861_v3 = vsel %vm3053_vm2, %v8829_v31, 0.0  ;;  %v8832_v35 = vmax.f32 %v8800_v41, 0.0  ;;  %v8864_v52 = vsel %vm3053_vm2, %v8831_v20, 0.0 }
 0x5a3   : > { %v8830_v59 = vmax.f32 %v8798_v33, 0.0  ;;  %v8733_v36 = vmul.f32 %v15003_v54, %v8694_v32  ;;  %v8692_v21 = vadd.f32 %v8579_v40, %v8386_v61  ;;  %v15760_v61 = vld [vmem:[#allocation57_spill] sm:$0xff]  ;;  %v8803_v41 = vadd.f32 %v8771_v2, %v15764_v23 }
 0x5a4   : > { %v8769_v11 = vadd.f32 %v15030_v55, %v8730_v43  ;;  %v11157_v10 = vpop.f32.mrf.mxu0  ;;  %v8091_v6 = vadd.f32 %v15760_v61, %v15022_v13  ;;  %v15766_v33 = vmax.f32 %v15765_v14, 0.0  ;;  %v8866_v20 = vsel %vm3053_vm2, %v8832_v35, 0.0  ;;  %v15767_v43 = vld [vmem:[#allocation27_spill] sm:$0xff] }
 0x5a5   : > { %v8862_v7 = vsel %vm3053_vm2, %v8830_v59, 0.0  ;;  %v8772_v57 = vadd.f32 %v15030_v55, %v8733_v36  ;;  %v8731_v0 = vmul.f32 %v15003_v54, %v8692_v21  ;;  %v8697_v18 = vadd.f32 %v11157_v10, %v8391_v8  ;;  %v15769_v21 = vld [vmem:[#allocation55_spill] sm:$0xff] }
 0x5a6   : > { %v8863_v51 = vadd.f32 %v8862_v7, %v8861_v3  ;;  %v8801_v22 = vadd.f32 %v8769_v11, %v15762_v63  ;;  %v8592_v31 = vpop.f32.mrf.mxu0  ;;  %v8394_v8 = vadd.f32 %v14985_v1, %v8088_v16  ;;  %v15768_v40 = vmax.f32 %v15767_v43, 0.0 }
 0x5a7   : > { %v8770_v39 = vadd.f32 %v15030_v55, %v8731_v0  ;;  %v8736_v15 = vmul.f32 %v15003_v54, %v8697_v18  ;;  %v8695_v29 = vadd.f32 %v8592_v31, %v8389_v37  ;;  %v8804_v32 = vadd.f32 %v8772_v57, %v15766_v33  ;;  %v11134_v57 = vpop.f32.mrf.mxu1  ;;  %v15775_v33 = vld [vmem:[#allocation54_spill] sm:$0xff] }
 0x5a8   : > { %v8865_v17 = vadd.f32 %v8864_v52, %v8863_v51  ;;  %v8833_v13 = vmax.f32 %v8801_v22, 0.0  ;;  %v11158_v50 = vpop.f32.mrf.mxu0  ;;  %v8399_v37 = vadd.f32 %v14998_v30, %v15769_v21  ;;  %v15141_v1 = vadd.f32 %v15045_v60, %v8091_v6  ;;  %v15770_v60 = vld [vmem:[#allocation28_spill] sm:$0xff] }
 0x5a9   : > { %v8802_v59 = vadd.f32 %v8770_v39, %v15768_v40  ;;  %v8775_v2 = vadd.f32 %v15030_v55, %v8736_v15  ;;  %v8734_v36 = vmul.f32 %v15003_v54, %v8695_v29  ;;  %v8698_v16 = vadd.f32 %v11158_v50, %v8392_v9  ;;  %v15772_v9 = vld [vmem:[#allocation29_spill] sm:$0xff] }
 0x5aa   : > { %v8867_v48 = vadd.f32 %v8866_v20, %v8865_v17  ;;  %v8595_v3 = vpop.f32.mrf.mxu0  ;;  %v8835_v11 = vmax.f32 %v8803_v41, 0.0  ;;  %v8868_v10 = vsel %vm3053_vm2, %v8833_v13, 0.0  ;;  %v8836_v18 = vmax.f32 %v8804_v32, 0.0 }
 0x5ab   : > { %v8834_v35 = vmax.f32 %v8802_v59, 0.0  ;;  %v8773_v7 = vadd.f32 %v15030_v55, %v8734_v36  ;;  %v8737_v61 = vmul.f32 %v15003_v54, %v8698_v16  ;;  %v8696_v52 = vadd.f32 %v8595_v3, %v8390_v27  ;;  %v15777_v16 = vld [vmem:[#allocation31_spill] sm:$0xff] }
 0x5ac   : > { %v8869_v0 = vadd.f32 %v8868_v10, %v8867_v48  ;;  %v11161_v51 = vpop.f32.mrf.mxu0  ;;  %v15771_v6 = vmax.f32 %v15770_v60, 0.0  ;;  %v15773_v63 = vmax.f32 %v15772_v9, 0.0  ;;  %v8400_v23 = vadd.f32 %v15075_v26, %v15774_v28  ;;  %v8337_v26 = vpop.f32.mrf.mxu1 }
 0x5ad   : > { %v8870_v30 = vsel %vm3053_vm2, %v8834_v35, 0.0  ;;  %v8701_v31 = vadd.f32 %v11161_v51, %v8395_v34  ;;  %v8776_v39 = vadd.f32 %v15030_v55, %v8737_v61  ;;  %v8735_v15 = vmul.f32 %v15003_v54, %v8696_v52  ;;  %v15776_v34 = vld [vmem:[#allocation18_spill] sm:$0xff] }
 0x5ae   : > { %v8807_v47 = vadd.f32 %v8775_v2, %v15771_v6  ;;  %v8805_v22 = vadd.f32 %v8773_v7, %v15773_v63  ;;  %v8871_v41 = vadd.f32 %v8870_v30, %v8869_v0  ;;  %v8608_v29 = vpop.f32.mrf.mxu0  ;;  %v8872_v27 = vsel %vm3053_vm2, %v8835_v11, 0.0  ;;  %v15779_v11 = vld [vmem:[#allocation35_spill] sm:$0xff]  ;;  %v11137_v30 = vpop.f32.mrf.mxu1  ;;  %v15782_v63 = vld [vmem:[#allocation94_spill] sm:$0xff] }
 0x5af   : > { %v8740_v13 = vmul.f32 %v15003_v54, %v8701_v31  ;;  %v8699_v14 = vadd.f32 %v8608_v29, %v15103_v46  ;;  %v8092_v32 = vadd.f32 %v15775_v33, %v15034_v12  ;;  %v8095_v50 = vadd.f32 %v15776_v34, %v15038_v49  ;;  %v15783_v31 = vld [vmem:[#allocation37_spill] sm:$0xff] }
 0x5b0   : > { %v8837_v17 = vmax.f32 %v8805_v22, 0.0  ;;  %v8873_v20 = vadd.f32 %v8872_v27, %v8871_v41  ;;  %v8774_v43 = vadd.f32 %v15030_v55, %v8735_v15  ;;  %v11162_v40 = vpop.f32.mrf.mxu0  ;;  %v8874_v59 = vsel %vm3053_vm2, %v8836_v18, 0.0  ;;  %v15785_v27 = vld [vmem:[#allocation19_spill] sm:$0xff] }
 0x5b1   : > { %v8839_v2 = vmax.f32 %v8807_v47, 0.0  ;;  %v8738_v36 = vmul.f32 %v15003_v54, %v8699_v14  ;;  %v8702_v21 = vadd.f32 %v11162_v40, %v15107_v53  ;;  %v15778_v12 = vmax.f32 %v15777_v16, 0.0  ;;  %v15781_v53 = vld [vmem:[#allocation59_spill] sm:$0xff]  ;;  %v15786_v14 = vld [vmem:[#allocation8_spill] sm:$0xff] }
 0x5b2   : > { %v8875_v48 = vadd.f32 %v8874_v59, %v8873_v20  ;;  %v8876_v46 = vsel %vm3053_vm2, %v8837_v17, 0.0  ;;  %v15780_v49 = vmax.f32 %v15779_v11, 0.0  ;;  %v8611_v35 = vpop.f32.mrf.mxu0  ;;  %v8779_v7 = vadd.f32 %v15030_v55, %v8740_v13 }
 0x5b3   : > { %v8808_v3 = vadd.f32 %v8776_v39, %v15778_v12  ;;  %v8777_v0 = vadd.f32 %v15030_v55, %v8738_v36  ;;  %v8741_v18 = vmul.f32 %v15003_v54, %v8702_v21  ;;  %v8700_v61 = vadd.f32 %v8611_v35, %v8394_v8  ;;  %v15791_v12 = vld [vmem:[#allocation39_spill] sm:$0xff] }
 0x5b4   : > { %v8806_v10 = vadd.f32 %v8774_v43, %v15780_v49  ;;  %v8398_v52 = vadd.f32 %v15092_v25, %v8092_v32  ;;  %v8403_v51 = vadd.f32 %v15114_v56, %v15781_v53  ;;  %v8877_v60 = vadd.f32 %v8876_v46, %v8875_v48  ;;  %v11165_v47 = vpop.f32.mrf.mxu0  ;;  %v8350_v32 = vpop.f32.mrf.mxu1  ;;  %v15789_v48 = vld [vmem:[#allocation9_spill] sm:$0xff] }
 0x5b5   : > { %v8401_v9 = vadd.f32 %v8334_v4, %v8095_v50  ;;  %v8096_v22 = vadd.f32 %v15782_v63, %v15042_v5  ;;  %v15784_v28 = vmax.f32 %v15783_v31, 0.0  ;;  %v8739_v39 = vmul.f32 %v15003_v54, %v8700_v61 }
 0x5b6   : > { %v8838_v6 = vmax.f32 %v8806_v10, 0.0  ;;  %v8840_v15 = vmax.f32 %v8808_v3, 0.0  ;;  %v8780_v25 = vadd.f32 %v15030_v55, %v8741_v18  ;;  %v8705_v29 = vadd.f32 %v11165_v47, %v8399_v37  ;;  %v8624_v56 = vpop.f32.mrf.mxu0  ;;  %v15788_v37 = vld [vmem:[#allocation21_spill] sm:$0xff] }
 0x5b7   : > { %v8809_v41 = vadd.f32 %v8777_v0, %v15784_v28  ;;  %v8404_v17 = vadd.f32 %v11134_v57, %v15785_v27  ;;  %v8880_v13 = vsel %vm3053_vm2, %v8839_v2, 0.0  ;;  %v15787_v33 = vmax.f32 %v15786_v14, 0.0 }
 0x5b8   : > { %v8878_v8 = vsel %vm3053_vm2, %v8838_v6, 0.0  ;;  %v8778_v50 = vadd.f32 %v15030_v55, %v8739_v39  ;;  %v8744_v20 = vmul.f32 %v15003_v54, %v8705_v29  ;;  %v8703_v43 = vadd.f32 %v8624_v56, %v15141_v1  ;;  %v11166_v40 = vpop.f32.mrf.mxu0  ;;  %v15796_v29 = vld [vmem:[#allocation10_spill] sm:$0xff] }
 0x5b9   : > { %v8879_v4 = vadd.f32 %v8878_v8, %v8877_v60  ;;  %v8811_v5 = vadd.f32 %v8779_v7, %v15787_v33  ;;  %v8841_v34 = vmax.f32 %v8809_v41, 0.0  ;;  %v8402_v59 = vadd.f32 %v8337_v26, %v8096_v22  ;;  %v15793_v22 = vld [vmem:[#allocation89_spill] sm:$0xff] }
 0x5ba   : > { %v8099_v36 = vadd.f32 %v15788_v37, %v15049_v45  ;;  %v8706_v21 = vadd.f32 %v11166_v40, %v8400_v23  ;;  %v8882_v2 = vsel %vm3053_vm2, %v8840_v15, 0.0  ;;  %v15790_v46 = vmax.f32 %v15789_v48, 0.0  ;;  %v8627_v10 = vpop.f32.mrf.mxu0  ;;  %v11138_v45 = vpop.f32.mrf.mxu1 }
 0x5bb   : > { %v8881_v57 = vadd.f32 %v8880_v13, %v8879_v4  ;;  %v15792_v3 = vmax.f32 %v15791_v12, 0.0  ;;  %v8742_v49 = vmul.f32 %v15003_v54, %v8703_v43  ;;  %v8783_v1 = vadd.f32 %v15030_v55, %v8744_v20  ;;  %v15798_v43 = vld [vmem:[#allocation43_spill] sm:$0xff] }
 0x5bc   : > { %v8812_v16 = vadd.f32 %v8780_v25, %v15790_v46  ;;  %v8745_v26 = vmul.f32 %v15003_v54, %v8706_v21  ;;  %v8704_v7 = vadd.f32 %v8627_v10, %v8398_v52  ;;  %v8843_v0 = vmax.f32 %v8811_v5, 0.0  ;;  %v11169_v53 = vpop.f32.mrf.mxu0  ;;  %v15794_v52 = vld [vmem:[#allocation41_spill] sm:$0xff]  ;;  %v8353_v33 = vpop.f32.mrf.mxu1 }
 0x5bd   : > { %v8810_v11 = vadd.f32 %v8778_v50, %v15792_v3  ;;  %v8883_v35 = vadd.f32 %v8882_v2, %v8881_v57  ;;  %v8884_v23 = vsel %vm3053_vm2, %v8841_v34, 0.0  ;;  %v8781_v61 = vadd.f32 %v15030_v55, %v8742_v49  ;;  %v15800_v57 = vld [vmem:[#allocation11_spill] sm:$0xff] }
 0x5be   : > { %v8784_v6 = vadd.f32 %v15030_v55, %v8745_v26  ;;  %v8743_v47 = vmul.f32 %v15003_v54, %v8704_v7  ;;  %v8709_v63 = vadd.f32 %v11169_v53, %v8403_v51  ;;  %v8407_v31 = vadd.f32 %v11137_v30, %v15793_v22  ;;  %v8640_v8 = vpop.f32.mrf.mxu0  ;;  %v11141_v48 = vpop.f32.mrf.mxu1 }
 0x5bf   : > { %v8842_v18 = vmax.f32 %v8810_v11, 0.0  ;;  %v8885_v60 = vadd.f32 %v8884_v23, %v8883_v35  ;;  %v8844_v28 = vmax.f32 %v8812_v16, 0.0  ;;  %v15795_v39 = vmax.f32 %v15794_v52, 0.0  ;;  %v15806_v52 = vld [vmem:[#allocation22_spill] sm:$0xff] }
 0x5c0   : > { %v15797_v56 = vmax.f32 %v15796_v29, 0.0  ;;  %v8782_v13 = vadd.f32 %v15030_v55, %v8743_v47  ;;  %v8748_v4 = vmul.f32 %v15003_v54, %v8709_v63  ;;  %v8405_v14 = vadd.f32 %v8350_v32, %v8099_v36  ;;  %v11170_v34 = vpop.f32.mrf.mxu0  ;;  %v8366_v23 = vpop.f32.mrf.mxu1 }
 0x5c1   : > { %v8886_v41 = vsel %vm3053_vm2, %v8842_v18, 0.0  ;;  %v8813_v15 = vadd.f32 %v8781_v61, %v15795_v39  ;;  %v8888_v51 = vsel %vm3053_vm2, %v8843_v0, 0.0  ;;  %v8707_v5 = vadd.f32 %v8640_v8, %v8401_v9  ;;  %v15802_v18 = vld [vmem:[#allocation45_spill] sm:$0xff] }
 0x5c2   : > { %v8887_v25 = vadd.f32 %v8886_v41, %v8885_v60  ;;  %v8815_v27 = vadd.f32 %v8783_v1, %v15797_v56  ;;  %v8408_v50 = vadd.f32 %v11138_v45, %v14974_v38  ;;  %v15799_v40 = vmax.f32 %v15798_v43, 0.0  ;;  %v8643_v12 = vpop.f32.mrf.mxu0  ;;  %v15807_v56 = vld [vmem:[#allocation36_spill] sm:$0xff] }
 0x5c3   : > { %v8845_v30 = vmax.f32 %v8813_v15, 0.0  ;;  %v15801_v21 = vmax.f32 %v15800_v57, 0.0  ;;  %v8890_v46 = vsel %vm3053_vm2, %v8844_v28, 0.0  ;;  %v8787_v32 = vadd.f32 %v15030_v55, %v8748_v4 }
 0x5c4   : > { %v8889_v20 = vadd.f32 %v8888_v51, %v8887_v25  ;;  %v8816_v37 = vadd.f32 %v8784_v6, %v15799_v40  ;;  %v8746_v36 = vmul.f32 %v15003_v54, %v8707_v5  ;;  %v8710_v16 = vadd.f32 %v11170_v34, %v8404_v17  ;;  %v11173_v26 = vpop.f32.mrf.mxu0  ;;  %v15809_v51 = vld [vmem:[#allocation62_spill] sm:$0xff]  ;;  %v11142_v5 = vpop.f32.mrf.mxu1 }
 0x5c5   : > { %v8814_v2 = vadd.f32 %v8782_v13, %v15801_v21  ;;  %v8100_v9 = vadd.f32 %v14976_v24, %v15055_v62  ;;  %v8847_v38 = vmax.f32 %v8815_v27, 0.0  ;;  %v8892_v49 = vsel %vm3053_vm2, %v8845_v30, 0.0  ;;  %v15804_v62 = vld [vmem:[#allocation34_spill] sm:$0xff] }
 0x5c6   : > { %v8891_v3 = vadd.f32 %v8890_v46, %v8889_v20  ;;  %v8785_v10 = vadd.f32 %v15030_v55, %v8746_v36  ;;  %v8749_v35 = vmul.f32 %v15003_v54, %v8710_v16  ;;  %v8708_v1 = vadd.f32 %v8643_v12, %v8402_v59  ;;  %v8656_v63 = vpop.f32.mrf.mxu0 }
 0x5c7   : > { %v8846_v11 = vmax.f32 %v8814_v2, 0.0  ;;  %v8848_v45 = vmax.f32 %v8816_v37, 0.0  ;;  %v8713_v17 = vadd.f32 %v11173_v26, %v8407_v31  ;;  %v15803_v61 = vmax.f32 %v15802_v18, 0.0 }
 0x5c8   : > { %v8893_v7 = vadd.f32 %v8892_v49, %v8891_v3  ;;  %v15805_v53 = vmax.f32 %v15804_v62, 0.0  ;;  %v8788_v6 = vadd.f32 %v15030_v55, %v8749_v35  ;;  %v8747_v47 = vmul.f32 %v15003_v54, %v8708_v1  ;;  %v11174_v25 = vpop.f32.mrf.mxu0  ;;  %v8369_v49 = vpop.f32.mrf.mxu1 }
 0x5c9   : > { %v8894_v0 = vsel %vm3053_vm2, %v8846_v11, 0.0  ;;  %v8819_v24 = vadd.f32 %v8787_v32, %v15803_v61  ;;  %v8406_v22 = vadd.f32 %v8353_v33, %v8100_v9  ;;  %v8752_v28 = vmul.f32 %v15003_v54, %v8713_v17 }
 0x5ca   : > { %v8817_v60 = vadd.f32 %v8785_v10, %v15805_v53  ;;  %v8895_v59 = vadd.f32 %v8894_v0, %v8893_v7  ;;  %v8711_v41 = vadd.f32 %v8656_v63, %v8405_v14  ;;  %v8103_v31 = vadd.f32 %v15806_v52, %v15059_v44  ;;  %v15810_v44 = vld [vmem:[#allocation38_spill] sm:$0xff]  ;;  %v8659_v40 = vpop.f32.mrf.mxu0 }
 0x5cb   : > { %v8896_v39 = vsel %vm3053_vm2, %v8847_v38, 0.0  ;;  %v8786_v8 = vadd.f32 %v15030_v55, %v8747_v47  ;;  %v15808_v27 = vmax.f32 %v15807_v56, 0.0  ;;  %v8714_v33 = vadd.f32 %v11174_v25, %v8408_v50  ;;  %v15812_v38 = vld [vmem:[#allocation42_spill] sm:$0xff] }
 0x5cc   : > { %v8849_v15 = vmax.f32 %v8817_v60, 0.0  ;;  %v8897_v29 = vadd.f32 %v8896_v39, %v8895_v59  ;;  %v8750_v4 = vmul.f32 %v15003_v54, %v8711_v41  ;;  %v8411_v30 = vadd.f32 %v11141_v48, %v15809_v51  ;;  %v11177_v36 = vpop.f32.mrf.mxu0 }
 0x5cd   : > { %v8820_v13 = vadd.f32 %v8788_v6, %v15808_v27  ;;  %v8898_v14 = vsel %vm3053_vm2, %v8848_v45, 0.0  ;;  %v8851_v34 = vmax.f32 %v8819_v24, 0.0  ;;  %v15811_v20 = vmax.f32 %v15810_v44, 0.0 }
 0x5ce   : > { %v8899_v37 = vadd.f32 %v8898_v14, %v8897_v29  ;;  %v8791_v57 = vadd.f32 %v15030_v55, %v8752_v28  ;;  %v8789_v21 = vadd.f32 %v15030_v55, %v8750_v4  ;;  %v8753_v2 = vmul.f32 %v15003_v54, %v8714_v33  ;;  %v8672_v7 = vpop.f32.mrf.mxu0  ;;  %v15818_v28 = vld [vmem:[#allocation12_spill] sm:$0xff]  ;;  %v15820_v14 = vld [vmem:[#allocation14_spill] sm:$0xff] }
 0x5cf   : > { %v8818_v43 = vadd.f32 %v8786_v8, %v15811_v20  ;;  %v8409_v46 = vadd.f32 %v8366_v23, %v8103_v31  ;;  %v8900_v50 = vsel %vm3053_vm2, %v8849_v15, 0.0  ;;  %v8712_v48 = vadd.f32 %v8659_v40, %v8406_v22  ;;  %v15816_v22 = vld [vmem:[#allocation44_spill] sm:$0xff] }
 0x5d0   : > { %v8104_v16 = vadd.f32 %v14990_v58, %v15068_v19  ;;  %v8901_v12 = vadd.f32 %v8900_v50, %v8899_v37  ;;  %v8852_v9 = vmax.f32 %v8820_v13, 0.0  ;;  %v15813_v3 = vmax.f32 %v15812_v38, 0.0  ;;  %v15814_v58 = vld [vmem:[#allocation40_spill] sm:$0xff]  ;;  %v11178_v53 = vpop.f32.mrf.mxu0 }
 0x5d1   : > { %v8850_v32 = vmax.f32 %v8818_v43, 0.0  ;;  %v8792_v35 = vadd.f32 %v15030_v55, %v8753_v2  ;;  %v8751_v1 = vmul.f32 %v15003_v54, %v8712_v48  ;;  %v8717_v26 = vadd.f32 %v11177_v36, %v8411_v30 }
 0x5d2   : > { %v8821_v11 = vadd.f32 %v8789_v21, %v15813_v3  ;;  %v8412_v45 = vadd.f32 %v11142_v5, %v14988_v42  ;;  %v8904_v0 = vsel %vm3053_vm2, %v8851_v34, 0.0  ;;  %v15815_v19 = vmax.f32 %v15814_v58, 0.0  ;;  %v8675_v39 = vpop.f32.mrf.mxu0 }
 0x5d3   : > { %v8902_v10 = vsel %vm3053_vm2, %v8850_v32, 0.0  ;;  %v8790_v61 = vadd.f32 %v15030_v55, %v8751_v1  ;;  %v8756_v24 = vmul.f32 %v15003_v54, %v8717_v26  ;;  %v8715_v62 = vadd.f32 %v8672_v7, %v8409_v46  ;;  %v15824_v32 = vld [vmem:[#allocation51_spill] sm:$0xff] }
 0x5d4   : > { %v8903_v17 = vadd.f32 %v8902_v10, %v8901_v12  ;;  %v8823_v23 = vadd.f32 %v8791_v57, %v15815_v19  ;;  %v8853_v18 = vmax.f32 %v8821_v11, 0.0  ;;  %v8410_v60 = vadd.f32 %v8369_v49, %v8104_v16  ;;  %v15822_v57 = vld [vmem:[#allocation47_spill] sm:$0xff]  ;;  %v15826_v16 = vld [vmem:[#allocation49_spill] sm:$0xff] }
 0x5d5   : > { %v8718_v47 = vadd.f32 %v11178_v53, %v8412_v45  ;;  %v8906_v63 = vsel %vm3053_vm2, %v8852_v9, 0.0  ;;  %v15817_v42 = vmax.f32 %v15816_v22, 0.0  ;;  %v15819_v41 = vmax.f32 %v15818_v28, 0.0 }
 0x5d6   : > { %v8905_v6 = vadd.f32 %v8904_v0, %v8903_v17  ;;  %v8754_v31 = vmul.f32 %v15003_v54, %v8715_v62  ;;  %v8855_v15 = vmax.f32 %v8823_v23, 0.0  ;;  %v8716_v29 = vadd.f32 %v8675_v39, %v8410_v60 }
 0x5d7   : > { %v8824_v59 = vadd.f32 %v8792_v35, %v15817_v42  ;;  %v8822_v52 = vadd.f32 %v8790_v61, %v15819_v41  ;;  %v8757_v25 = vmul.f32 %v15003_v54, %v8718_v47  ;;  %v8908_v56 = vsel %vm3053_vm2, %v8853_v18, 0.0 }
 0x5d8   : > { %v8907_v8 = vadd.f32 %v8906_v63, %v8905_v6  ;;  %v8795_v13 = vadd.f32 %v15030_v55, %v8756_v24  ;;  %v8793_v4 = vadd.f32 %v15030_v55, %v8754_v31  ;;  %v8755_v51 = vmul.f32 %v15003_v54, %v8716_v29 }
 0x5d9   : > { %v8854_v27 = vmax.f32 %v8822_v52, 0.0  ;;  %v8856_v30 = vmax.f32 %v8824_v59, 0.0  ;;  %v15821_v34 = vmax.f32 %v15820_v14, 0.0  ;;  %v8796_v20 = vadd.f32 %v15030_v55, %v8757_v25 }
 0x5da   : > { %v8909_v33 = vadd.f32 %v8908_v56, %v8907_v8  ;;  %v8794_v40 = vadd.f32 %v15030_v55, %v8755_v51  ;;  %v8912_v37 = vsel %vm3053_vm2, %v8855_v15, 0.0  ;;  %v15823_v21 = vmax.f32 %v15822_v57, 0.0 }
 0x5db   : > { %v8910_v5 = vsel %vm3053_vm2, %v8854_v27, 0.0  ;;  %v8825_v44 = vadd.f32 %v8793_v4, %v15821_v34  ;;  %v15825_v54 = vmax.f32 %v15824_v32, 0.0  ;;  %v8914_v36 = vsel %vm3053_vm2, %v8856_v30, 0.0 }
 0x5dc   : > { %v8911_v43 = vadd.f32 %v8910_v5, %v8909_v33  ;;  %v8827_v2 = vadd.f32 %v8795_v13, %v15823_v21  ;;  %v15827_v12 = vmax.f32 %v15826_v16, 0.0 }
 0x5dd   : > { %v8857_v46 = vmax.f32 %v8825_v44, 0.0  ;;  %v8826_v48 = vadd.f32 %v8794_v40, %v15825_v54 }
 0x5de   : > { %v8913_v50 = vadd.f32 %v8912_v37, %v8911_v43  ;;  %v8828_v9 = vadd.f32 %v8796_v20, %v15827_v12  ;;  %v8859_v11 = vmax.f32 %v8827_v2, 0.0 }
 0x5df   : > { %v8858_v3 = vmax.f32 %v8826_v48, 0.0  ;;  %v8916_v55 = vsel %vm3053_vm2, %v8857_v46, 0.0 }
 0x5e0   : > { %v8915_v38 = vadd.f32 %v8914_v36, %v8913_v50  ;;  %v8860_v35 = vmax.f32 %v8828_v9, 0.0  ;;  %v8920_v26 = vsel %vm3053_vm2, %v8859_v11, 0.0 }
 0x5e1   : > { %v8918_v10 = vsel %vm3053_vm2, %v8858_v3, 0.0 }
 0x5e2   : > { %v8917_v49 = vadd.f32 %v8916_v55, %v8915_v38  ;;  %v8922_v45 = vsel %vm3053_vm2, %v8860_v35, 0.0 }
 0x5e4   : > { %v8919_v1 = vadd.f32 %v8918_v10, %v8917_v49 }
 0x5e6   : > { %v8921_v7 = vadd.f32 %v8920_v26, %v8919_v1 }
 0x5e8   : > { %v8923_v0 = vadd.f32 %v8922_v45, %v8921_v7 }
 0x5ea   : > { %v8924_v17 = vrot.slane %v8923_v0, 4 }
 0x5ec   : > { %v8925_v58 = vadd.f32 %v8924_v17, %v8923_v0 }
 0x5ee   : > { %v8926_v19 = vrot.slane %v8925_v58, 2 }
 0x5f0   : > { %v8927_v23 = vadd.f32 %v8926_v19, %v8925_v58 }
 0x5f2   : > { %v8928_v18 = vrot.slane %v8927_v23, 1 }
 0x5f4   : > { %v8929_v61 = vadd.f32 %v8928_v18, %v8927_v23 }
 0x5f6   : > { %v8931_v24 = vmul.f32 0.00390625, %v8929_v61 }
 0x5f8   : > { %8933 = vst.msk [vmem:[%s351_s25] sm:$0x1] %vm8932_vm4, %v8931_v24 }
 0x5f9   : > { %11281 = shalt.err (!%p11278_p3)
}
 0x5fa   : > { %s11282_s0 = scalar_lea.hbm %s8945_s21, 16  ;;  %s11286_s25 = scalar_lea.hbm %s15335_s10, 32 }
 0x5fb   : > { %p11283_p4 = scmp.ne.s32.totalorder %s8945_s21, %s11282_s0  ;;  %p11287_p9 = scmp.lt.s32.totalorder %s8945_s21, %s15335_s10 }
 0x5fc   : > { %p11288_p10 = scmp.lt.s32.totalorder %s11286_s25, %s11282_s0 }
 0x5fd   : > { %p11284_p7 = pnand %p11283_p4, %p11425_p5 }
 0x5fe   : > { %p11289_p11 = por %p11288_p10, %p11287_p9 }
 0x5ff   : > { %p11285_p8 = pneg %p11284_p7 }
 0x601   : > { %p11290_p12 = pnand %p11289_p11, %p11285_p8 }
 0x603   : > { %11293 = shalt.err (!%p11290_p12)
}
 0x604   : > { %11192 = dma.vmem_to_hbm [thread:$0]  (%p11425_p5), %s8948_s26, 16, %s8945_s21, %s8935_s29  }
 0x605 PF: > { %p11198_p13 = scmp.ge.s32.totalorder %s11328_s16, 2  ;;  %s8959_s30 = sand.u32 1, %s11316_s13  }
 0x606   : > { %s8960_s11 = scalar_lea.sflag [#allocation5], %s8959_s30 }
 0x607   : > { %p11195_p0 = pnand %p11198_p13, %p11429_p6 }
 0x609   : > { %p11196_p1 = pneg %p11195_p0 }
 0x60b   : > { %11311 = dma.done.wait (%p11196_p1), %s8960_s11, 16  }
 0x60c   : > { %11313 = vsyncadd (%p11196_p1), %s8960_s11, 4294967280  ;;  %p20_p2 = scmp.ge.s32.totalorder %s11412_s19, 4   ;;  %s15828_s13 = smov %s11320_s14 }
 0x60d   : > { %s15829_s14 = smov %s11324_s15  ;;  %s15830_s15 = smov %s11423_s22 }
 0x60e   : > { %s15831_s16 = smov %s11412_s19  ;;  %22 = sbr.rel (!%p20_p2) target bundleno = 5 (0x5), region = 125 }
 0x613   :  { %8964 = vsyncpa [#allocation5], 1 }
 0x614   :  { %8966 = vsyncpa [#allocation5 + $0x1], 1 }

</bundles_post_ra>
